<compile_context>
chip_gen: v7x
topology: tpu7x:2x2x1
jax: 0.10.0
libtpu: 0.0.40
codegen_flags: <defaults>
</compile_context>

<pallas_src>
import jax
import jax.numpy as jnp
from jax import lax
from jax.experimental import pallas as pl
from jax.experimental.pallas import tpu as pltpu

EPS_NORM = 1e-12          # F.normalize default eps
BN_EPS = 1e-5             # BatchNorm default eps
PREC = lax.Precision.HIGHEST   # used only by the pure-JAX reference


# ----------------------------- glue / reference helpers ----------------------
def _l2normalize(x):
    n = jnp.sqrt(jnp.sum(x * x, axis=-1, keepdims=True))
    return x / jnp.maximum(n, EPS_NORM)


def _gather(points, idx):
    # index_points: points (B, Np, C), idx (B, N, K) -> (B, N, K, C)
    return jax.vmap(lambda p, i: p[i])(points, idx)


def _fold_conv_bn(W, b, gamma, beta, mean, var):
    # Fold eval-mode BatchNorm into a 1x1 conv / linear. W: (out, in), b: (out,)
    scale = gamma / jnp.sqrt(var + BN_EPS)
    return W * scale[:, None], scale * (b - mean) + beta


# ----------------------------- kernel-side helpers ----------------------------
def _cross0(a, b):
    # cross product over axis 0; a, b broadcastable to (3, K, TN)
    ax, ay, az = a[0:1], a[1:2], a[2:3]
    bx, by, bz = b[0:1], b[1:2], b[2:3]
    return jnp.concatenate(
        [ay * bz - az * by, az * bx - ax * bz, ax * by - ay * bx], axis=0)


def _inv_norm(sq):
    # F.normalize: v / max(||v||, eps)  ==  v * rsqrt(max(||v||^2, eps^2))  (EUP slot)
    return lax.rsqrt(jnp.maximum(sq, EPS_NORM * EPS_NORM))


# ------------------------------ Pallas kernel --------------------------------
def pointconv_res_block_kernel(
    xyz_ref, nrm_ref, gxyz_ref, gnrm_ref, gfeat_ref, feats_ref,
    w1g_ref, w1r_ref, b1_ref, w2_ref, b2_ref,          # feature MLP (layer1 split)
    wn1_ref, bn1_ref, wn2_ref, bn2_ref, wn3_ref, bn3_ref,  # WeightNet
    wl_ref, bl_ref,                                     # final linear (+bn folded)
    out_ref,
):
    K = gxyz_ref.shape[2]
    TN = xyz_ref.shape[-1]

    xyz = xyz_ref[0][:, None, :]          # (3, 1, TN)
    nrm = nrm_ref[0][:, None, :]          # (3, 1, TN)   n_miu
    gx = gxyz_ref[0]                      # (3, K, TN)
    na = gnrm_ref[0]                      # (3, K, TN)   n_alpha

    # ---------------- geometry / theta features, vectorized over K -----------
    r_miu = gx - xyz                                              # localized_xyz
    rr = jnp.sum(r_miu * r_miu, axis=0, keepdims=True)            # (1, K, TN)
    theta9 = jnp.sqrt(rr)
    r_hat = r_miu * _inv_norm(rr)

    theta2 = jnp.sum(nrm * r_hat, axis=0, keepdims=True)          # dot_rn
    v = nrm - theta2 * r_hat
    v_miu = v * _inv_norm(jnp.sum(v * v, axis=0, keepdims=True))
    wm = _cross0(r_hat, v_miu)
    w_miu = wm * _inv_norm(jnp.sum(wm * wm, axis=0, keepdims=True))

    theta1 = jnp.sum(na * nrm, axis=0, keepdims=True)
    theta3 = jnp.sum(r_hat * na, axis=0, keepdims=True)           # == theta5
    theta4 = jnp.sum(r_miu * nrm, axis=0, keepdims=True)
    theta6 = jnp.sum(na * v_miu, axis=0, keepdims=True)
    theta7 = jnp.sum(na * w_miu, axis=0, keepdims=True)
    theta8 = jnp.sum(r_miu * _cross0(na, nrm), axis=0, keepdims=True)

    wn_in3 = jnp.concatenate(
        [theta1, theta2, theta3, theta4, theta3, theta6, theta7, theta8,
         theta9, r_miu], axis=0)                                   # (12, K, TN)

    # flatten K into the lane axis (column order k*TN + n) only at the matmul RHS
    wn_in = jnp.concatenate([wn_in3[:, k, :] for k in range(K)], axis=-1)  # (12, K*TN)
    r_flat = wn_in[9:12, :]                                        # (3, K*TN) == r_miu
    gf = gfeat_ref[0, 0]                                           # (C, K*TN), bf16

    def dense(w_ref, b_ref, x):
        y = jnp.dot(w_ref[...], x, preferred_element_type=jnp.float32) + b_ref[...]
        return jnp.maximum(y, 0.0)

    # ---------------- 1x1 convs (channel-major matmuls, folded BN, ReLU) -----
    # layer 1 of the feature MLP split over [gathered_feat | localized_xyz]
    h = jnp.dot(w1g_ref[...], gf, preferred_element_type=jnp.float32)       # bf16 MXU
    h = h + jnp.dot(w1r_ref[...], r_flat, preferred_element_type=jnp.float32)
    h = jnp.maximum(h + b1_ref[...], 0.0)
    h2 = dense(w2_ref, b2_ref, h)                                  # (Cm, K*TN)

    wgt = dense(wn1_ref, bn1_ref, wn_in)                           # (8,  K*TN)
    wgt = dense(wn2_ref, bn2_ref, wgt)                             # (8,  K*TN)
    w3 = dense(wn3_ref, bn3_ref, wgt)                              # (Wt, K*TN)

    # ---------------- aggregation over K: broadcasted outer product ----------
    # agg[c*Wt + w, n] = sum_k h2[c, k*TN+n] * w3[w, k*TN+n]
    Cm = h2.shape[0]
    Wt = w3.shape[0]

    def outer_k(k):
        return (h2[:, k * TN:(k + 1) * TN][:, None, :] *
                w3[:, k * TN:(k + 1) * TN][None, :, :])            # (Cm, Wt, TN)

    acc = outer_k(0)
    for k in range(1, K):
        acc = acc + outer_k(k)
    agg = jnp.concatenate([acc[c] for c in range(Cm)], axis=0)     # (Cm*Wt, TN)

    # ---------------- final linear (bn folded) + ReLU + residual --------------
    out = jnp.dot(wl_ref[...], agg, preferred_element_type=jnp.float32) + bl_ref[...]
    out_ref[0] = jnp.maximum(out, 0.0) + feats_ref[0]              # lane-dense store


# ------------------------------- wrapper -------------------------------------
def pointconv_res_block(xyz, feats, nei_inds, xyz_norm, params, tile_n=None):
    B, N, _ = xyz.shape
    C = feats.shape[-1]
    K = nei_inds.shape[-1]

    # ---- generation-aware point-axis tile (lane dim) ----
    try:
        kind = jax.devices()[0].device_kind.lower()
    except Exception:
        kind = ""
    is_v7 = "v7" in kind
    if tile_n is None:
        max_tile = 256 if is_v7 else 512       # v7x: half the VMEM, 2 TCs/chip
        tile_n = N
        for cand in (512, 256, 128):
            if cand <= max_tile and N % cand == 0:
                tile_n = cand
                break
    assert N % tile_n == 0
    NT = N // tile_n

    # ---- neighbor gathers (index_points) + channel-major layout (JAX glue) ----
    # TODO(synk): move the gather in-kernel (scalar-prefetched nei_inds + manual DMA).
    gxyz = _gather(xyz, nei_inds)          # (B, N, K, 3)
    gnrm = _gather(xyz_norm, nei_inds)     # (B, N, K, 3)
    gfeat = _gather(feats, nei_inds)       # (B, N, K, C)

    xyz_t = jnp.transpose(xyz, (0, 2, 1))          # (B, 3, N)
    nrm_t = jnp.transpose(xyz_norm, (0, 2, 1))     # (B, 3, N)
    feats_t = jnp.transpose(feats, (0, 2, 1))      # (B, C, N)
    gxyz_t = jnp.transpose(gxyz, (0, 3, 2, 1))     # (B, 3, K, N)   f32 (cancellation-safe)
    gnrm_t = jnp.transpose(gnrm, (0, 3, 2, 1))     # (B, 3, K, N)
    # gathered features pre-flattened per tile: (B, NT, C, K*TN), bf16
    gfeat_r = (gfeat.reshape(B, NT, tile_n, K, C)
               .transpose(0, 1, 4, 3, 2)
               .reshape(B, NT, C, K * tile_n)
               .astype(jnp.bfloat16))

    # ---- fold eval-mode BN into conv / linear weights ((out, in) layout) ----
    (w1, b1), (w2, b2) = params['mlp_convs']
    w1f, b1f = _fold_conv_bn(w1, b1, *params['mlp_bns'][0])
    w2f, b2f = _fold_conv_bn(w2, b2, *params['mlp_bns'][1])

    (a1, c1), (a2, c2), (a3, c3) = params['wn_convs']
    wb1, wb2, wb3 = params['wn_bns']
    wn1f, wnb1f = _fold_conv_bn(a1, c1, *wb1)
    wn2f, wnb2f = _fold_conv_bn(a2, c2, *wb2)
    wn3f, wnb3f = _fold_conv_bn(a3, c3, *wb3)

    wl, bl = params['linear']
    wlf, blf = _fold_conv_bn(wl, bl, *params['bn_linear'])   # (C, Cm*Wt), (C,)

    # split layer-1 of the feature MLP over [gathered_feat | localized_xyz]
    w1g = w1f[:, :C].astype(jnp.bfloat16)   # bf16: matches the MXU's single bf16 pass
    w1r = w1f[:, C:]

    weight_args = [
        w1g, w1r, b1f[:, None], w2f, b2f[:, None],
        wn1f, wnb1f[:, None], wn2f, wnb2f[:, None], wn3f, wnb3f[:, None],
        wlf, blf[:, None],
    ]

    d3 = lambda b, t: (b, 0, t)
    d4 = lambda b, t: (b, 0, 0, t)
    data_specs = [
        pl.BlockSpec((1, 3, tile_n), d3),                      # xyz
        pl.BlockSpec((1, 3, tile_n), d3),                      # xyz_norm
        pl.BlockSpec((1, 3, K, tile_n), d4),                   # gathered xyz
        pl.BlockSpec((1, 3, K, tile_n), d4),                   # gathered norm
        pl.BlockSpec((1, 1, C, K * tile_n), lambda b, t: (b, t, 0, 0)),  # gathered feats
        pl.BlockSpec((1, C, tile_n), d3),                      # feats (residual)
    ]
    weight_specs = [pl.BlockSpec(w.shape, lambda b, t: (0, 0)) for w in weight_args]

    vmem_limit = (64 if (tile_n >= 512 and not is_v7) else 32) * 1024 * 1024

    out_t = pl.pallas_call(
        pointconv_res_block_kernel,
        out_shape=jax.ShapeDtypeStruct((B, C, N), jnp.float32),
        grid_spec=pltpu.PrefetchScalarGridSpec(
            num_scalar_prefetch=0,
            grid=(B, NT),
            in_specs=data_specs + weight_specs,
            out_specs=pl.BlockSpec((1, C, tile_n), d3),
        ),
        compiler_params=pltpu.CompilerParams(
            dimension_semantics=("parallel", "parallel"),
            vmem_limit_bytes=vmem_limit),
    )(xyz_t, nrm_t, gxyz_t, gnrm_t, gfeat_r, feats_t, *weight_args)

    return jnp.transpose(out_t, (0, 2, 1))     # back to (B, N, C)


# --------------------------- deterministic params ----------------------------
def init_params(key, in_channel, mlp, wn_in=12, wn_hidden=(8, 8), wn_out=16):
    keys = iter(jax.random.split(key, 64))

    def nrm(shape, scale=0.2):
        return scale * jax.random.normal(next(keys), shape, jnp.float32)

    def bn_params(ch):
        return (1.0 + nrm((ch,), 0.1),                 # gamma
                nrm((ch,), 0.1),                       # beta
                nrm((ch,), 0.1),                       # running_mean
                1.0 + jnp.abs(nrm((ch,), 0.3)))        # running_var

    params = {'mlp_convs': [], 'mlp_bns': [], 'wn_convs': [], 'wn_bns': []}
    last = in_channel + 3
    for out_ch in mlp:
        params['mlp_convs'].append((nrm((out_ch, last)), nrm((out_ch,))))
        params['mlp_bns'].append(bn_params(out_ch))
        last = out_ch
    wn_dims = [wn_in] + list(wn_hidden) + [wn_out]
    for i in range(1, len(wn_dims)):
        params['wn_convs'].append(
            (nrm((wn_dims[i], wn_dims[i - 1])), nrm((wn_dims[i],))))
        params['wn_bns'].append(bn_params(wn_dims[i]))
    params['linear'] = (nrm((in_channel, last * wn_out)), nrm((in_channel,)))
    params['bn_linear'] = bn_params(in_channel)
    return params


# --------------------------- pure-JAX reference -------------------------------
def reference_forward(xyz, feats, nei_inds, xyz_norm, params):
    gxyz = _gather(xyz, nei_inds)
    r_miu = gxyz - xyz[:, :, None, :]
    n_alpha = _gather(xyz_norm, nei_inds)
    n_miu = xyz_norm[:, :, None, :]
    r_hat = _l2normalize(r_miu)
    dot_rn = jnp.sum(n_miu * r_hat, -1, keepdims=True)
    v_miu = _l2normalize(n_miu - dot_rn * r_hat)
    w_miu = _l2normalize(jnp.cross(r_hat, v_miu, axis=-1))

    theta1 = jnp.sum(n_alpha * n_miu, -1, keepdims=True)
    theta2 = dot_rn
    theta3 = jnp.sum(r_hat * n_alpha, -1, keepdims=True)
    theta4 = jnp.sum(r_miu * n_miu, -1, keepdims=True)
    theta5 = jnp.sum(n_alpha * r_hat, -1, keepdims=True)
    theta6 = jnp.sum(n_alpha * v_miu, -1, keepdims=True)
    theta7 = jnp.sum(n_alpha * w_miu, -1, keepdims=True)
    theta8 = jnp.sum(
        r_miu * jnp.cross(n_alpha, jnp.broadcast_to(n_miu, n_alpha.shape),
                          axis=-1), -1, keepdims=True)
    theta9 = jnp.linalg.norm(r_miu, axis=-1, keepdims=True)
    wn_in = jnp.concatenate([theta1, theta2, theta3, theta4, theta5, theta6,
                             theta7, theta8, theta9, r_miu], axis=-1)

    gfeat = _gather(feats, nei_inds)
    x = jnp.concatenate([gfeat, r_miu], axis=-1)

    def conv_bn_relu(x, conv, bn):
        W, b = conv
        g, bt, m, v = bn
        y = jnp.einsum('...c,oc->...o', x, W, precision=PREC) + b
        y = g * (y - m) / jnp.sqrt(v + BN_EPS) + bt
        return jnp.maximum(y, 0.0)

    for conv, bn in zip(params['mlp_convs'], params['mlp_bns']):
        x = conv_bn_relu(x, conv, bn)
    w = wn_in
    for conv, bn in zip(params['wn_convs'], params['wn_bns']):
        w = conv_bn_relu(w, conv, bn)

    B, N = xyz.shape[:2]
    agg = jnp.einsum('bnkc,bnkw->bncw', x, w, precision=PREC).reshape(B, N, -1)
    Wl, bl = params['linear']
    y = jnp.einsum('bnd,od->bno', agg, Wl, precision=PREC) + bl
    g, bt, m, v = params['bn_linear']
    y = g * (y - m) / jnp.sqrt(v + BN_EPS) + bt
    return jnp.maximum(y, 0.0) + feats


if __name__ == "__main__":
    B, N, K, C_in = 2, 256, 8, 16
    mlp = [16, 16]

    key = jax.random.PRNGKey(0)
    k1, k2, k3, k4, k5 = jax.random.split(key, 5)
    xyz = jax.random.normal(k1, (B, N, 3), jnp.float32)
    feats = jax.random.normal(k2, (B, N, C_in), jnp.float32)
    nei_inds = jax.random.randint(k3, (B, N, K), 0, N)
    xyz_norm = _l2normalize(jax.random.normal(k4, (B, N, 3), jnp.float32))
    params = init_params(k5, C_in, mlp)

    out = pointconv_res_block(xyz, feats, nei_inds, xyz_norm, params)
    out = jax.block_until_ready(out)

    ref = reference_forward(xyz, feats, nei_inds, xyz_norm, params)
    assert out.shape == (B, N, C_in)
    assert bool(jnp.all(jnp.isfinite(out)))
    err = float(jnp.max(jnp.abs(out - ref)))
    scale = float(jnp.max(jnp.abs(ref)))
    # kernel matmuls run at DEFAULT (bf16 MXU) precision + bf16 gathered feats;
    # reference is f32 HIGHEST
    assert err <= 5e-2 * max(1.0, scale), f"max abs err {err} (ref scale {scale})"
    print("KERNEL_OK")
</pallas_src>

<mosaic_0001>
module attributes {stable_mosaic.version = 11 : i64} {
  func.func @pointconv_res_block_kernel(%arg0: i32, %arg1: i32, %arg2: memref<1x3x256xf32, #tpu.memory_space<vmem>>, %arg3: memref<1x3x256xf32, #tpu.memory_space<vmem>>, %arg4: memref<1x3x8x256xf32, #tpu.memory_space<vmem>>, %arg5: memref<1x3x8x256xf32, #tpu.memory_space<vmem>>, %arg6: memref<1x1x16x2048xbf16, #tpu.memory_space<vmem>>, %arg7: memref<1x16x256xf32, #tpu.memory_space<vmem>>, %arg8: memref<16x16xbf16, #tpu.memory_space<vmem>>, %arg9: memref<16x3xf32, #tpu.memory_space<vmem>>, %arg10: memref<16x1xf32, #tpu.memory_space<vmem>>, %arg11: memref<16x16xf32, #tpu.memory_space<vmem>>, %arg12: memref<16x1xf32, #tpu.memory_space<vmem>>, %arg13: memref<8x12xf32, #tpu.memory_space<vmem>>, %arg14: memref<8x1xf32, #tpu.memory_space<vmem>>, %arg15: memref<8x8xf32, #tpu.memory_space<vmem>>, %arg16: memref<8x1xf32, #tpu.memory_space<vmem>>, %arg17: memref<16x8xf32, #tpu.memory_space<vmem>>, %arg18: memref<16x1xf32, #tpu.memory_space<vmem>>, %arg19: memref<16x256xf32, #tpu.memory_space<vmem>>, %arg20: memref<16x1xf32, #tpu.memory_space<vmem>>, %arg21: memref<1x16x256xf32, #tpu.memory_space<vmem>>) attributes {dimension_semantics = [#tpu.dimension_semantics<parallel>, #tpu.dimension_semantics<parallel>], iteration_bounds = array<i64: 2, 1>, scalar_prefetch = 0 : i64, scratch_operands = 0 : i64, tpu.core_type = #tpu.core_type<tc>, window_params = [{transform_indices = @transform_0, window_bounds = array<i64: 1, 3, 256>}, {transform_indices = @transform_1, window_bounds = array<i64: 1, 3, 256>}, {transform_indices = @transform_2, window_bounds = array<i64: 1, 3, 8, 256>}, {transform_indices = @transform_3, window_bounds = array<i64: 1, 3, 8, 256>}, {transform_indices = @transform_4, window_bounds = array<i64: 1, 1, 16, 2048>}, {transform_indices = @transform_5, window_bounds = array<i64: 1, 16, 256>}, {pipeline_mode = #tpu.pipeline_mode<synchronous>, transform_indices = @transform_6, window_bounds = array<i64: 16, 16>}, {pipeline_mode = #tpu.pipeline_mode<synchronous>, transform_indices = @transform_7, window_bounds = array<i64: 16, 3>}, {pipeline_mode = #tpu.pipeline_mode<synchronous>, transform_indices = @transform_8, window_bounds = array<i64: 16, 1>}, {pipeline_mode = #tpu.pipeline_mode<synchronous>, transform_indices = @transform_9, window_bounds = array<i64: 16, 16>}, {pipeline_mode = #tpu.pipeline_mode<synchronous>, transform_indices = @transform_10, window_bounds = array<i64: 16, 1>}, {pipeline_mode = #tpu.pipeline_mode<synchronous>, transform_indices = @transform_11, window_bounds = array<i64: 8, 12>}, {pipeline_mode = #tpu.pipeline_mode<synchronous>, transform_indices = @transform_12, window_bounds = array<i64: 8, 1>}, {pipeline_mode = #tpu.pipeline_mode<synchronous>, transform_indices = @transform_13, window_bounds = array<i64: 8, 8>}, {pipeline_mode = #tpu.pipeline_mode<synchronous>, transform_indices = @transform_14, window_bounds = array<i64: 8, 1>}, {pipeline_mode = #tpu.pipeline_mode<synchronous>, transform_indices = @transform_15, window_bounds = array<i64: 16, 8>}, {pipeline_mode = #tpu.pipeline_mode<synchronous>, transform_indices = @transform_16, window_bounds = array<i64: 16, 1>}, {pipeline_mode = #tpu.pipeline_mode<synchronous>, transform_indices = @transform_17, window_bounds = array<i64: 16, 256>}, {pipeline_mode = #tpu.pipeline_mode<synchronous>, transform_indices = @transform_18, window_bounds = array<i64: 16, 1>}, {transform_indices = @transform_19, window_bounds = array<i64: 1, 16, 256>}]} {
    %c0 = arith.constant 0 : index
    %c0_0 = arith.constant 0 : index
    %c0_1 = arith.constant 0 : index
    %0 = vector.load %arg2[%c0, %c0_0, %c0_1] : memref<1x3x256xf32, #tpu.memory_space<vmem>>, vector<1x3x256xf32>
    %1 = vector.shape_cast %0 : vector<1x3x256xf32> to vector<3x256xf32>
    %2 = vector.shape_cast %1 : vector<3x256xf32> to vector<3x1x256xf32>
    %c0_2 = arith.constant 0 : index
    %c0_3 = arith.constant 0 : index
    %c0_4 = arith.constant 0 : index
    %3 = vector.load %arg3[%c0_2, %c0_3, %c0_4] : memref<1x3x256xf32, #tpu.memory_space<vmem>>, vector<1x3x256xf32>
    %4 = vector.shape_cast %3 : vector<1x3x256xf32> to vector<3x256xf32>
    %5 = vector.shape_cast %4 : vector<3x256xf32> to vector<3x1x256xf32>
    %c0_5 = arith.constant 0 : index
    %c0_6 = arith.constant 0 : index
    %c0_7 = arith.constant 0 : index
    %c0_8 = arith.constant 0 : index
    %6 = vector.load %arg4[%c0_5, %c0_6, %c0_7, %c0_8] : memref<1x3x8x256xf32, #tpu.memory_space<vmem>>, vector<1x3x8x256xf32>
    %7 = vector.shape_cast %6 : vector<1x3x8x256xf32> to vector<3x8x256xf32>
    %c0_9 = arith.constant 0 : index
    %c0_10 = arith.constant 0 : index
    %c0_11 = arith.constant 0 : index
    %c0_12 = arith.constant 0 : index
    %8 = vector.load %arg5[%c0_9, %c0_10, %c0_11, %c0_12] : memref<1x3x8x256xf32, #tpu.memory_space<vmem>>, vector<1x3x8x256xf32>
    %9 = vector.shape_cast %8 : vector<1x3x8x256xf32> to vector<3x8x256xf32>
    %10 = vector.broadcast %2 : vector<3x1x256xf32> to vector<3x8x256xf32>
    %11 = arith.subf %7, %10 : vector<3x8x256xf32>
    %12 = arith.mulf %11, %11 : vector<3x8x256xf32>
    %cst = arith.constant dense<0.000000e+00> : vector<8x256xf32>
    %13 = vector.multi_reduction <add>, %12, %cst [0] : vector<3x8x256xf32> to vector<8x256xf32>
    %14 = vector.shape_cast %13 : vector<8x256xf32> to vector<1x8x256xf32>
    %15 = math.sqrt %14 : vector<1x8x256xf32>
    %cst_13 = arith.constant 1.000000e-24 : f32
    %16 = vector.broadcast %cst_13 : f32 to vector<1x8x256xf32>
    %17 = arith.maximumf %14, %16 : vector<1x8x256xf32>
    %18 = math.rsqrt %17 : vector<1x8x256xf32>
    %19 = vector.broadcast %18 : vector<1x8x256xf32> to vector<3x8x256xf32>
    %20 = arith.mulf %11, %19 : vector<3x8x256xf32>
    %21 = vector.broadcast %5 : vector<3x1x256xf32> to vector<3x8x256xf32>
    %22 = arith.mulf %21, %20 : vector<3x8x256xf32>
    %cst_14 = arith.constant dense<0.000000e+00> : vector<8x256xf32>
    %23 = vector.multi_reduction <add>, %22, %cst_14 [0] : vector<3x8x256xf32> to vector<8x256xf32>
    %24 = vector.shape_cast %23 : vector<8x256xf32> to vector<1x8x256xf32>
    %25 = vector.broadcast %24 : vector<1x8x256xf32> to vector<3x8x256xf32>
    %26 = arith.mulf %25, %20 : vector<3x8x256xf32>
    %27 = vector.broadcast %5 : vector<3x1x256xf32> to vector<3x8x256xf32>
    %28 = arith.subf %27, %26 : vector<3x8x256xf32>
    %29 = arith.mulf %28, %28 : vector<3x8x256xf32>
    %cst_15 = arith.constant dense<0.000000e+00> : vector<8x256xf32>
    %30 = vector.multi_reduction <add>, %29, %cst_15 [0] : vector<3x8x256xf32> to vector<8x256xf32>
    %31 = vector.shape_cast %30 : vector<8x256xf32> to vector<1x8x256xf32>
    %cst_16 = arith.constant 1.000000e-24 : f32
    %32 = vector.broadcast %cst_16 : f32 to vector<1x8x256xf32>
    %33 = arith.maximumf %31, %32 : vector<1x8x256xf32>
    %34 = math.rsqrt %33 : vector<1x8x256xf32>
    %35 = vector.broadcast %34 : vector<1x8x256xf32> to vector<3x8x256xf32>
    %36 = arith.mulf %28, %35 : vector<3x8x256xf32>
    %37 = vector.extract_strided_slice %20 {offsets = [0, 0, 0], sizes = [1, 8, 256], strides = [1, 1, 1]} : vector<3x8x256xf32> to vector<1x8x256xf32>
    %38 = vector.extract_strided_slice %20 {offsets = [1, 0, 0], sizes = [1, 8, 256], strides = [1, 1, 1]} : vector<3x8x256xf32> to vector<1x8x256xf32>
    %39 = vector.extract_strided_slice %20 {offsets = [2, 0, 0], sizes = [1, 8, 256], strides = [1, 1, 1]} : vector<3x8x256xf32> to vector<1x8x256xf32>
    %40 = vector.extract_strided_slice %36 {offsets = [0, 0, 0], sizes = [1, 8, 256], strides = [1, 1, 1]} : vector<3x8x256xf32> to vector<1x8x256xf32>
    %41 = vector.extract_strided_slice %36 {offsets = [1, 0, 0], sizes = [1, 8, 256], strides = [1, 1, 1]} : vector<3x8x256xf32> to vector<1x8x256xf32>
    %42 = vector.extract_strided_slice %36 {offsets = [2, 0, 0], sizes = [1, 8, 256], strides = [1, 1, 1]} : vector<3x8x256xf32> to vector<1x8x256xf32>
    %43 = arith.mulf %38, %42 : vector<1x8x256xf32>
    %44 = arith.mulf %39, %41 : vector<1x8x256xf32>
    %45 = arith.subf %43, %44 : vector<1x8x256xf32>
    %46 = arith.mulf %39, %40 : vector<1x8x256xf32>
    %47 = arith.mulf %37, %42 : vector<1x8x256xf32>
    %48 = arith.subf %46, %47 : vector<1x8x256xf32>
    %49 = arith.mulf %37, %41 : vector<1x8x256xf32>
    %50 = arith.mulf %38, %40 : vector<1x8x256xf32>
    %51 = arith.subf %49, %50 : vector<1x8x256xf32>
    %52 = tpu.concatenate %45, %48, %51 in 0 : vector<1x8x256xf32>, vector<1x8x256xf32>, vector<1x8x256xf32> -> vector<3x8x256xf32>
    %53 = arith.mulf %52, %52 : vector<3x8x256xf32>
    %cst_17 = arith.constant dense<0.000000e+00> : vector<8x256xf32>
    %54 = vector.multi_reduction <add>, %53, %cst_17 [0] : vector<3x8x256xf32> to vector<8x256xf32>
    %55 = vector.shape_cast %54 : vector<8x256xf32> to vector<1x8x256xf32>
    %cst_18 = arith.constant 1.000000e-24 : f32
    %56 = vector.broadcast %cst_18 : f32 to vector<1x8x256xf32>
    %57 = arith.maximumf %55, %56 : vector<1x8x256xf32>
    %58 = math.rsqrt %57 : vector<1x8x256xf32>
    %59 = vector.broadcast %58 : vector<1x8x256xf32> to vector<3x8x256xf32>
    %60 = arith.mulf %52, %59 : vector<3x8x256xf32>
    %61 = vector.broadcast %5 : vector<3x1x256xf32> to vector<3x8x256xf32>
    %62 = arith.mulf %9, %61 : vector<3x8x256xf32>
    %cst_19 = arith.constant dense<0.000000e+00> : vector<8x256xf32>
    %63 = vector.multi_reduction <add>, %62, %cst_19 [0] : vector<3x8x256xf32> to vector<8x256xf32>
    %64 = vector.shape_cast %63 : vector<8x256xf32> to vector<1x8x256xf32>
    %65 = arith.mulf %20, %9 : vector<3x8x256xf32>
    %cst_20 = arith.constant dense<0.000000e+00> : vector<8x256xf32>
    %66 = vector.multi_reduction <add>, %65, %cst_20 [0] : vector<3x8x256xf32> to vector<8x256xf32>
    %67 = vector.shape_cast %66 : vector<8x256xf32> to vector<1x8x256xf32>
    %68 = vector.broadcast %5 : vector<3x1x256xf32> to vector<3x8x256xf32>
    %69 = arith.mulf %11, %68 : vector<3x8x256xf32>
    %cst_21 = arith.constant dense<0.000000e+00> : vector<8x256xf32>
    %70 = vector.multi_reduction <add>, %69, %cst_21 [0] : vector<3x8x256xf32> to vector<8x256xf32>
    %71 = vector.shape_cast %70 : vector<8x256xf32> to vector<1x8x256xf32>
    %72 = arith.mulf %9, %36 : vector<3x8x256xf32>
    %cst_22 = arith.constant dense<0.000000e+00> : vector<8x256xf32>
    %73 = vector.multi_reduction <add>, %72, %cst_22 [0] : vector<3x8x256xf32> to vector<8x256xf32>
    %74 = vector.shape_cast %73 : vector<8x256xf32> to vector<1x8x256xf32>
    %75 = arith.mulf %9, %60 : vector<3x8x256xf32>
    %cst_23 = arith.constant dense<0.000000e+00> : vector<8x256xf32>
    %76 = vector.multi_reduction <add>, %75, %cst_23 [0] : vector<3x8x256xf32> to vector<8x256xf32>
    %77 = vector.shape_cast %76 : vector<8x256xf32> to vector<1x8x256xf32>
    %78 = vector.extract_strided_slice %9 {offsets = [0, 0, 0], sizes = [1, 8, 256], strides = [1, 1, 1]} : vector<3x8x256xf32> to vector<1x8x256xf32>
    %79 = vector.extract_strided_slice %9 {offsets = [1, 0, 0], sizes = [1, 8, 256], strides = [1, 1, 1]} : vector<3x8x256xf32> to vector<1x8x256xf32>
    %80 = vector.extract_strided_slice %9 {offsets = [2, 0, 0], sizes = [1, 8, 256], strides = [1, 1, 1]} : vector<3x8x256xf32> to vector<1x8x256xf32>
    %81 = vector.extract_strided_slice %5 {offsets = [0, 0, 0], sizes = [1, 1, 256], strides = [1, 1, 1]} : vector<3x1x256xf32> to vector<1x1x256xf32>
    %82 = vector.extract_strided_slice %5 {offsets = [1, 0, 0], sizes = [1, 1, 256], strides = [1, 1, 1]} : vector<3x1x256xf32> to vector<1x1x256xf32>
    %83 = vector.extract_strided_slice %5 {offsets = [2, 0, 0], sizes = [1, 1, 256], strides = [1, 1, 1]} : vector<3x1x256xf32> to vector<1x1x256xf32>
    %84 = vector.broadcast %83 : vector<1x1x256xf32> to vector<1x8x256xf32>
    %85 = arith.mulf %79, %84 : vector<1x8x256xf32>
    %86 = vector.broadcast %82 : vector<1x1x256xf32> to vector<1x8x256xf32>
    %87 = arith.mulf %80, %86 : vector<1x8x256xf32>
    %88 = arith.subf %85, %87 : vector<1x8x256xf32>
    %89 = vector.broadcast %81 : vector<1x1x256xf32> to vector<1x8x256xf32>
    %90 = arith.mulf %80, %89 : vector<1x8x256xf32>
    %91 = vector.broadcast %83 : vector<1x1x256xf32> to vector<1x8x256xf32>
    %92 = arith.mulf %78, %91 : vector<1x8x256xf32>
    %93 = arith.subf %90, %92 : vector<1x8x256xf32>
    %94 = vector.broadcast %82 : vector<1x1x256xf32> to vector<1x8x256xf32>
    %95 = arith.mulf %78, %94 : vector<1x8x256xf32>
    %96 = vector.broadcast %81 : vector<1x1x256xf32> to vector<1x8x256xf32>
    %97 = arith.mulf %79, %96 : vector<1x8x256xf32>
    %98 = arith.subf %95, %97 : vector<1x8x256xf32>
    %99 = tpu.concatenate %88, %93, %98 in 0 : vector<1x8x256xf32>, vector<1x8x256xf32>, vector<1x8x256xf32> -> vector<3x8x256xf32>
    %100 = arith.mulf %11, %99 : vector<3x8x256xf32>
    %cst_24 = arith.constant dense<0.000000e+00> : vector<8x256xf32>
    %101 = vector.multi_reduction <add>, %100, %cst_24 [0] : vector<3x8x256xf32> to vector<8x256xf32>
    %102 = vector.shape_cast %101 : vector<8x256xf32> to vector<1x8x256xf32>
    %103 = tpu.concatenate %64, %24, %67, %71, %67, %74, %77, %102, %15, %11 in 0 : vector<1x8x256xf32>, vector<1x8x256xf32>, vector<1x8x256xf32>, vector<1x8x256xf32>, vector<1x8x256xf32>, vector<1x8x256xf32>, vector<1x8x256xf32>, vector<1x8x256xf32>, vector<1x8x256xf32>, vector<3x8x256xf32> -> vector<12x8x256xf32>
    %104 = vector.extract_strided_slice %103 {offsets = [0, 0, 0], sizes = [12, 1, 256], strides = [1, 1, 1]} : vector<12x8x256xf32> to vector<12x1x256xf32>
    %105 = vector.shape_cast %104 : vector<12x1x256xf32> to vector<12x256xf32>
    %106 = vector.extract_strided_slice %103 {offsets = [0, 1, 0], sizes = [12, 1, 256], strides = [1, 1, 1]} : vector<12x8x256xf32> to vector<12x1x256xf32>
    %107 = vector.shape_cast %106 : vector<12x1x256xf32> to vector<12x256xf32>
    %108 = vector.extract_strided_slice %103 {offsets = [0, 2, 0], sizes = [12, 1, 256], strides = [1, 1, 1]} : vector<12x8x256xf32> to vector<12x1x256xf32>
    %109 = vector.shape_cast %108 : vector<12x1x256xf32> to vector<12x256xf32>
    %110 = vector.extract_strided_slice %103 {offsets = [0, 3, 0], sizes = [12, 1, 256], strides = [1, 1, 1]} : vector<12x8x256xf32> to vector<12x1x256xf32>
    %111 = vector.shape_cast %110 : vector<12x1x256xf32> to vector<12x256xf32>
    %112 = vector.extract_strided_slice %103 {offsets = [0, 4, 0], sizes = [12, 1, 256], strides = [1, 1, 1]} : vector<12x8x256xf32> to vector<12x1x256xf32>
    %113 = vector.shape_cast %112 : vector<12x1x256xf32> to vector<12x256xf32>
    %114 = vector.extract_strided_slice %103 {offsets = [0, 5, 0], sizes = [12, 1, 256], strides = [1, 1, 1]} : vector<12x8x256xf32> to vector<12x1x256xf32>
    %115 = vector.shape_cast %114 : vector<12x1x256xf32> to vector<12x256xf32>
    %116 = vector.extract_strided_slice %103 {offsets = [0, 6, 0], sizes = [12, 1, 256], strides = [1, 1, 1]} : vector<12x8x256xf32> to vector<12x1x256xf32>
    %117 = vector.shape_cast %116 : vector<12x1x256xf32> to vector<12x256xf32>
    %118 = vector.extract_strided_slice %103 {offsets = [0, 7, 0], sizes = [12, 1, 256], strides = [1, 1, 1]} : vector<12x8x256xf32> to vector<12x1x256xf32>
    %119 = vector.shape_cast %118 : vector<12x1x256xf32> to vector<12x256xf32>
    %120 = tpu.concatenate %105, %107, %109, %111, %113, %115, %117, %119 in 1 : vector<12x256xf32>, vector<12x256xf32>, vector<12x256xf32>, vector<12x256xf32>, vector<12x256xf32>, vector<12x256xf32>, vector<12x256xf32>, vector<12x256xf32> -> vector<12x2048xf32>
    %121 = vector.extract_strided_slice %120 {offsets = [9, 0], sizes = [3, 2048], strides = [1, 1]} : vector<12x2048xf32> to vector<3x2048xf32>
    %c0_25 = arith.constant 0 : index
    %c0_26 = arith.constant 0 : index
    %c0_27 = arith.constant 0 : index
    %c0_28 = arith.constant 0 : index
    %122 = vector.load %arg6[%c0_25, %c0_26, %c0_27, %c0_28] : memref<1x1x16x2048xbf16, #tpu.memory_space<vmem>>, vector<1x1x16x2048xbf16>
    %123 = vector.shape_cast %122 : vector<1x1x16x2048xbf16> to vector<16x2048xbf16>
    %c0_29 = arith.constant 0 : index
    %c0_30 = arith.constant 0 : index
    %124 = vector.load %arg8[%c0_29, %c0_30] : memref<16x16xbf16, #tpu.memory_space<vmem>>, vector<16x16xbf16>
    %cst_31 = arith.constant dense<0.000000e+00> : vector<16x2048xf32>
    %125 = tpu.matmul %124, %123, %cst_31 {dimension_numbers = #tpu.dot_dimension_numbers<[1], [0], [0], [1], [0, 0, 1, 1], [], []>} : vector<16x16xbf16>, vector<16x2048xbf16>, vector<16x2048xf32> -> vector<16x2048xf32>
    %c0_32 = arith.constant 0 : index
    %c0_33 = arith.constant 0 : index
    %126 = vector.load %arg9[%c0_32, %c0_33] : memref<16x3xf32, #tpu.memory_space<vmem>>, vector<16x3xf32>
    %cst_34 = arith.constant dense<0.000000e+00> : vector<16x2048xf32>
    %127 = tpu.matmul %126, %121, %cst_34 {dimension_numbers = #tpu.dot_dimension_numbers<[1], [0], [0], [1], [0, 0, 1, 1], [], []>} : vector<16x3xf32>, vector<3x2048xf32>, vector<16x2048xf32> -> vector<16x2048xf32>
    %128 = arith.addf %125, %127 : vector<16x2048xf32>
    %c0_35 = arith.constant 0 : index
    %c0_36 = arith.constant 0 : index
    %129 = vector.load %arg10[%c0_35, %c0_36] : memref<16x1xf32, #tpu.memory_space<vmem>>, vector<16x1xf32>
    %130 = vector.broadcast %129 : vector<16x1xf32> to vector<16x2048xf32>
    %131 = arith.addf %128, %130 : vector<16x2048xf32>
    %cst_37 = arith.constant 0.000000e+00 : f32
    %132 = vector.broadcast %cst_37 : f32 to vector<16x2048xf32>
    %133 = arith.maximumf %131, %132 : vector<16x2048xf32>
    %c0_38 = arith.constant 0 : index
    %c0_39 = arith.constant 0 : index
    %134 = vector.load %arg11[%c0_38, %c0_39] : memref<16x16xf32, #tpu.memory_space<vmem>>, vector<16x16xf32>
    %cst_40 = arith.constant dense<0.000000e+00> : vector<16x2048xf32>
    %135 = tpu.matmul %134, %133, %cst_40 {dimension_numbers = #tpu.dot_dimension_numbers<[1], [0], [0], [1], [0, 0, 1, 1], [], []>} : vector<16x16xf32>, vector<16x2048xf32>, vector<16x2048xf32> -> vector<16x2048xf32>
    %c0_41 = arith.constant 0 : index
    %c0_42 = arith.constant 0 : index
    %136 = vector.load %arg12[%c0_41, %c0_42] : memref<16x1xf32, #tpu.memory_space<vmem>>, vector<16x1xf32>
    %137 = vector.broadcast %136 : vector<16x1xf32> to vector<16x2048xf32>
    %138 = arith.addf %135, %137 : vector<16x2048xf32>
    %cst_43 = arith.constant 0.000000e+00 : f32
    %139 = vector.broadcast %cst_43 : f32 to vector<16x2048xf32>
    %140 = arith.maximumf %138, %139 : vector<16x2048xf32>
    %c0_44 = arith.constant 0 : index
    %c0_45 = arith.constant 0 : index
    %141 = vector.load %arg13[%c0_44, %c0_45] : memref<8x12xf32, #tpu.memory_space<vmem>>, vector<8x12xf32>
    %cst_46 = arith.constant dense<0.000000e+00> : vector<8x2048xf32>
    %142 = tpu.matmul %141, %120, %cst_46 {dimension_numbers = #tpu.dot_dimension_numbers<[1], [0], [0], [1], [0, 0, 1, 1], [], []>} : vector<8x12xf32>, vector<12x2048xf32>, vector<8x2048xf32> -> vector<8x2048xf32>
    %c0_47 = arith.constant 0 : index
    %c0_48 = arith.constant 0 : index
    %143 = vector.load %arg14[%c0_47, %c0_48] : memref<8x1xf32, #tpu.memory_space<vmem>>, vector<8x1xf32>
    %144 = vector.broadcast %143 : vector<8x1xf32> to vector<8x2048xf32>
    %145 = arith.addf %142, %144 : vector<8x2048xf32>
    %cst_49 = arith.constant 0.000000e+00 : f32
    %146 = vector.broadcast %cst_49 : f32 to vector<8x2048xf32>
    %147 = arith.maximumf %145, %146 : vector<8x2048xf32>
    %c0_50 = arith.constant 0 : index
    %c0_51 = arith.constant 0 : index
    %148 = vector.load %arg15[%c0_50, %c0_51] : memref<8x8xf32, #tpu.memory_space<vmem>>, vector<8x8xf32>
    %cst_52 = arith.constant dense<0.000000e+00> : vector<8x2048xf32>
    %149 = tpu.matmul %148, %147, %cst_52 {dimension_numbers = #tpu.dot_dimension_numbers<[1], [0], [0], [1], [0, 0, 1, 1], [], []>} : vector<8x8xf32>, vector<8x2048xf32>, vector<8x2048xf32> -> vector<8x2048xf32>
    %c0_53 = arith.constant 0 : index
    %c0_54 = arith.constant 0 : index
    %150 = vector.load %arg16[%c0_53, %c0_54] : memref<8x1xf32, #tpu.memory_space<vmem>>, vector<8x1xf32>
    %151 = vector.broadcast %150 : vector<8x1xf32> to vector<8x2048xf32>
    %152 = arith.addf %149, %151 : vector<8x2048xf32>
    %cst_55 = arith.constant 0.000000e+00 : f32
    %153 = vector.broadcast %cst_55 : f32 to vector<8x2048xf32>
    %154 = arith.maximumf %152, %153 : vector<8x2048xf32>
    %c0_56 = arith.constant 0 : index
    %c0_57 = arith.constant 0 : index
    %155 = vector.load %arg17[%c0_56, %c0_57] : memref<16x8xf32, #tpu.memory_space<vmem>>, vector<16x8xf32>
    %cst_58 = arith.constant dense<0.000000e+00> : vector<16x2048xf32>
    %156 = tpu.matmul %155, %154, %cst_58 {dimension_numbers = #tpu.dot_dimension_numbers<[1], [0], [0], [1], [0, 0, 1, 1], [], []>} : vector<16x8xf32>, vector<8x2048xf32>, vector<16x2048xf32> -> vector<16x2048xf32>
    %c0_59 = arith.constant 0 : index
    %c0_60 = arith.constant 0 : index
    %157 = vector.load %arg18[%c0_59, %c0_60] : memref<16x1xf32, #tpu.memory_space<vmem>>, vector<16x1xf32>
    %158 = vector.broadcast %157 : vector<16x1xf32> to vector<16x2048xf32>
    %159 = arith.addf %156, %158 : vector<16x2048xf32>
    %cst_61 = arith.constant 0.000000e+00 : f32
    %160 = vector.broadcast %cst_61 : f32 to vector<16x2048xf32>
    %161 = arith.maximumf %159, %160 : vector<16x2048xf32>
    %162 = vector.extract_strided_slice %140 {offsets = [0, 0], sizes = [16, 256], strides = [1, 1]} : vector<16x2048xf32> to vector<16x256xf32>
    %163 = vector.shape_cast %162 : vector<16x256xf32> to vector<16x1x256xf32>
    %164 = vector.extract_strided_slice %161 {offsets = [0, 0], sizes = [16, 256], strides = [1, 1]} : vector<16x2048xf32> to vector<16x256xf32>
    %165 = vector.shape_cast %164 : vector<16x256xf32> to vector<1x16x256xf32>
    %166 = vector.broadcast %163 : vector<16x1x256xf32> to vector<16x16x256xf32>
    %167 = vector.broadcast %165 : vector<1x16x256xf32> to vector<16x16x256xf32>
    %168 = arith.mulf %166, %167 : vector<16x16x256xf32>
    %169 = vector.extract_strided_slice %140 {offsets = [0, 256], sizes = [16, 256], strides = [1, 1]} : vector<16x2048xf32> to vector<16x256xf32>
    %170 = vector.shape_cast %169 : vector<16x256xf32> to vector<16x1x256xf32>
    %171 = vector.extract_strided_slice %161 {offsets = [0, 256], sizes = [16, 256], strides = [1, 1]} : vector<16x2048xf32> to vector<16x256xf32>
    %172 = vector.shape_cast %171 : vector<16x256xf32> to vector<1x16x256xf32>
    %173 = vector.broadcast %170 : vector<16x1x256xf32> to vector<16x16x256xf32>
    %174 = vector.broadcast %172 : vector<1x16x256xf32> to vector<16x16x256xf32>
    %175 = arith.mulf %173, %174 : vector<16x16x256xf32>
    %176 = arith.addf %168, %175 : vector<16x16x256xf32>
    %177 = vector.extract_strided_slice %140 {offsets = [0, 512], sizes = [16, 256], strides = [1, 1]} : vector<16x2048xf32> to vector<16x256xf32>
    %178 = vector.shape_cast %177 : vector<16x256xf32> to vector<16x1x256xf32>
    %179 = vector.extract_strided_slice %161 {offsets = [0, 512], sizes = [16, 256], strides = [1, 1]} : vector<16x2048xf32> to vector<16x256xf32>
    %180 = vector.shape_cast %179 : vector<16x256xf32> to vector<1x16x256xf32>
    %181 = vector.broadcast %178 : vector<16x1x256xf32> to vector<16x16x256xf32>
    %182 = vector.broadcast %180 : vector<1x16x256xf32> to vector<16x16x256xf32>
    %183 = arith.mulf %181, %182 : vector<16x16x256xf32>
    %184 = arith.addf %176, %183 : vector<16x16x256xf32>
    %185 = vector.extract_strided_slice %140 {offsets = [0, 768], sizes = [16, 256], strides = [1, 1]} : vector<16x2048xf32> to vector<16x256xf32>
    %186 = vector.shape_cast %185 : vector<16x256xf32> to vector<16x1x256xf32>
    %187 = vector.extract_strided_slice %161 {offsets = [0, 768], sizes = [16, 256], strides = [1, 1]} : vector<16x2048xf32> to vector<16x256xf32>
    %188 = vector.shape_cast %187 : vector<16x256xf32> to vector<1x16x256xf32>
    %189 = vector.broadcast %186 : vector<16x1x256xf32> to vector<16x16x256xf32>
    %190 = vector.broadcast %188 : vector<1x16x256xf32> to vector<16x16x256xf32>
    %191 = arith.mulf %189, %190 : vector<16x16x256xf32>
    %192 = arith.addf %184, %191 : vector<16x16x256xf32>
    %193 = vector.extract_strided_slice %140 {offsets = [0, 1024], sizes = [16, 256], strides = [1, 1]} : vector<16x2048xf32> to vector<16x256xf32>
    %194 = vector.shape_cast %193 : vector<16x256xf32> to vector<16x1x256xf32>
    %195 = vector.extract_strided_slice %161 {offsets = [0, 1024], sizes = [16, 256], strides = [1, 1]} : vector<16x2048xf32> to vector<16x256xf32>
    %196 = vector.shape_cast %195 : vector<16x256xf32> to vector<1x16x256xf32>
    %197 = vector.broadcast %194 : vector<16x1x256xf32> to vector<16x16x256xf32>
    %198 = vector.broadcast %196 : vector<1x16x256xf32> to vector<16x16x256xf32>
    %199 = arith.mulf %197, %198 : vector<16x16x256xf32>
    %200 = arith.addf %192, %199 : vector<16x16x256xf32>
    %201 = vector.extract_strided_slice %140 {offsets = [0, 1280], sizes = [16, 256], strides = [1, 1]} : vector<16x2048xf32> to vector<16x256xf32>
    %202 = vector.shape_cast %201 : vector<16x256xf32> to vector<16x1x256xf32>
    %203 = vector.extract_strided_slice %161 {offsets = [0, 1280], sizes = [16, 256], strides = [1, 1]} : vector<16x2048xf32> to vector<16x256xf32>
    %204 = vector.shape_cast %203 : vector<16x256xf32> to vector<1x16x256xf32>
    %205 = vector.broadcast %202 : vector<16x1x256xf32> to vector<16x16x256xf32>
    %206 = vector.broadcast %204 : vector<1x16x256xf32> to vector<16x16x256xf32>
    %207 = arith.mulf %205, %206 : vector<16x16x256xf32>
    %208 = arith.addf %200, %207 : vector<16x16x256xf32>
    %209 = vector.extract_strided_slice %140 {offsets = [0, 1536], sizes = [16, 256], strides = [1, 1]} : vector<16x2048xf32> to vector<16x256xf32>
    %210 = vector.shape_cast %209 : vector<16x256xf32> to vector<16x1x256xf32>
    %211 = vector.extract_strided_slice %161 {offsets = [0, 1536], sizes = [16, 256], strides = [1, 1]} : vector<16x2048xf32> to vector<16x256xf32>
    %212 = vector.shape_cast %211 : vector<16x256xf32> to vector<1x16x256xf32>
    %213 = vector.broadcast %210 : vector<16x1x256xf32> to vector<16x16x256xf32>
    %214 = vector.broadcast %212 : vector<1x16x256xf32> to vector<16x16x256xf32>
    %215 = arith.mulf %213, %214 : vector<16x16x256xf32>
    %216 = arith.addf %208, %215 : vector<16x16x256xf32>
    %217 = vector.extract_strided_slice %140 {offsets = [0, 1792], sizes = [16, 256], strides = [1, 1]} : vector<16x2048xf32> to vector<16x256xf32>
    %218 = vector.shape_cast %217 : vector<16x256xf32> to vector<16x1x256xf32>
    %219 = vector.extract_strided_slice %161 {offsets = [0, 1792], sizes = [16, 256], strides = [1, 1]} : vector<16x2048xf32> to vector<16x256xf32>
    %220 = vector.shape_cast %219 : vector<16x256xf32> to vector<1x16x256xf32>
    %221 = vector.broadcast %218 : vector<16x1x256xf32> to vector<16x16x256xf32>
    %222 = vector.broadcast %220 : vector<1x16x256xf32> to vector<16x16x256xf32>
    %223 = arith.mulf %221, %222 : vector<16x16x256xf32>
    %224 = arith.addf %216, %223 : vector<16x16x256xf32>
    %225 = vector.extract_strided_slice %224 {offsets = [0, 0, 0], sizes = [1, 16, 256], strides = [1, 1, 1]} : vector<16x16x256xf32> to vector<1x16x256xf32>
    %226 = vector.shape_cast %225 : vector<1x16x256xf32> to vector<16x256xf32>
    %227 = vector.extract_strided_slice %224 {offsets = [1, 0, 0], sizes = [1, 16, 256], strides = [1, 1, 1]} : vector<16x16x256xf32> to vector<1x16x256xf32>
    %228 = vector.shape_cast %227 : vector<1x16x256xf32> to vector<16x256xf32>
    %229 = vector.extract_strided_slice %224 {offsets = [2, 0, 0], sizes = [1, 16, 256], strides = [1, 1, 1]} : vector<16x16x256xf32> to vector<1x16x256xf32>
    %230 = vector.shape_cast %229 : vector<1x16x256xf32> to vector<16x256xf32>
    %231 = vector.extract_strided_slice %224 {offsets = [3, 0, 0], sizes = [1, 16, 256], strides = [1, 1, 1]} : vector<16x16x256xf32> to vector<1x16x256xf32>
    %232 = vector.shape_cast %231 : vector<1x16x256xf32> to vector<16x256xf32>
    %233 = vector.extract_strided_slice %224 {offsets = [4, 0, 0], sizes = [1, 16, 256], strides = [1, 1, 1]} : vector<16x16x256xf32> to vector<1x16x256xf32>
    %234 = vector.shape_cast %233 : vector<1x16x256xf32> to vector<16x256xf32>
    %235 = vector.extract_strided_slice %224 {offsets = [5, 0, 0], sizes = [1, 16, 256], strides = [1, 1, 1]} : vector<16x16x256xf32> to vector<1x16x256xf32>
    %236 = vector.shape_cast %235 : vector<1x16x256xf32> to vector<16x256xf32>
    %237 = vector.extract_strided_slice %224 {offsets = [6, 0, 0], sizes = [1, 16, 256], strides = [1, 1, 1]} : vector<16x16x256xf32> to vector<1x16x256xf32>
    %238 = vector.shape_cast %237 : vector<1x16x256xf32> to vector<16x256xf32>
    %239 = vector.extract_strided_slice %224 {offsets = [7, 0, 0], sizes = [1, 16, 256], strides = [1, 1, 1]} : vector<16x16x256xf32> to vector<1x16x256xf32>
    %240 = vector.shape_cast %239 : vector<1x16x256xf32> to vector<16x256xf32>
    %241 = vector.extract_strided_slice %224 {offsets = [8, 0, 0], sizes = [1, 16, 256], strides = [1, 1, 1]} : vector<16x16x256xf32> to vector<1x16x256xf32>
    %242 = vector.shape_cast %241 : vector<1x16x256xf32> to vector<16x256xf32>
    %243 = vector.extract_strided_slice %224 {offsets = [9, 0, 0], sizes = [1, 16, 256], strides = [1, 1, 1]} : vector<16x16x256xf32> to vector<1x16x256xf32>
    %244 = vector.shape_cast %243 : vector<1x16x256xf32> to vector<16x256xf32>
    %245 = vector.extract_strided_slice %224 {offsets = [10, 0, 0], sizes = [1, 16, 256], strides = [1, 1, 1]} : vector<16x16x256xf32> to vector<1x16x256xf32>
    %246 = vector.shape_cast %245 : vector<1x16x256xf32> to vector<16x256xf32>
    %247 = vector.extract_strided_slice %224 {offsets = [11, 0, 0], sizes = [1, 16, 256], strides = [1, 1, 1]} : vector<16x16x256xf32> to vector<1x16x256xf32>
    %248 = vector.shape_cast %247 : vector<1x16x256xf32> to vector<16x256xf32>
    %249 = vector.extract_strided_slice %224 {offsets = [12, 0, 0], sizes = [1, 16, 256], strides = [1, 1, 1]} : vector<16x16x256xf32> to vector<1x16x256xf32>
    %250 = vector.shape_cast %249 : vector<1x16x256xf32> to vector<16x256xf32>
    %251 = vector.extract_strided_slice %224 {offsets = [13, 0, 0], sizes = [1, 16, 256], strides = [1, 1, 1]} : vector<16x16x256xf32> to vector<1x16x256xf32>
    %252 = vector.shape_cast %251 : vector<1x16x256xf32> to vector<16x256xf32>
    %253 = vector.extract_strided_slice %224 {offsets = [14, 0, 0], sizes = [1, 16, 256], strides = [1, 1, 1]} : vector<16x16x256xf32> to vector<1x16x256xf32>
    %254 = vector.shape_cast %253 : vector<1x16x256xf32> to vector<16x256xf32>
    %255 = vector.extract_strided_slice %224 {offsets = [15, 0, 0], sizes = [1, 16, 256], strides = [1, 1, 1]} : vector<16x16x256xf32> to vector<1x16x256xf32>
    %256 = vector.shape_cast %255 : vector<1x16x256xf32> to vector<16x256xf32>
    %257 = tpu.concatenate %226, %228, %230, %232, %234, %236, %238, %240, %242, %244, %246, %248, %250, %252, %254, %256 in 0 : vector<16x256xf32>, vector<16x256xf32>, vector<16x256xf32>, vector<16x256xf32>, vector<16x256xf32>, vector<16x256xf32>, vector<16x256xf32>, vector<16x256xf32>, vector<16x256xf32>, vector<16x256xf32>, vector<16x256xf32>, vector<16x256xf32>, vector<16x256xf32>, vector<16x256xf32>, vector<16x256xf32>, vector<16x256xf32> -> vector<256x256xf32>
    %c0_62 = arith.constant 0 : index
    %c0_63 = arith.constant 0 : index
    %258 = vector.load %arg19[%c0_62, %c0_63] : memref<16x256xf32, #tpu.memory_space<vmem>>, vector<16x256xf32>
    %cst_64 = arith.constant dense<0.000000e+00> : vector<16x256xf32>
    %259 = tpu.matmul %258, %257, %cst_64 {dimension_numbers = #tpu.dot_dimension_numbers<[1], [0], [0], [1], [0, 0, 1, 1], [], []>} : vector<16x256xf32>, vector<256x256xf32>, vector<16x256xf32> -> vector<16x256xf32>
    %c0_65 = arith.constant 0 : index
    %c0_66 = arith.constant 0 : index
    %260 = vector.load %arg20[%c0_65, %c0_66] : memref<16x1xf32, #tpu.memory_space<vmem>>, vector<16x1xf32>
    %261 = vector.broadcast %260 : vector<16x1xf32> to vector<16x256xf32>
    %262 = arith.addf %259, %261 : vector<16x256xf32>
    %cst_67 = arith.constant 0.000000e+00 : f32
    %263 = vector.broadcast %cst_67 : f32 to vector<16x256xf32>
    %264 = arith.maximumf %262, %263 : vector<16x256xf32>
    %c0_68 = arith.constant 0 : index
    %c0_69 = arith.constant 0 : index
    %c0_70 = arith.constant 0 : index
    %265 = vector.load %arg7[%c0_68, %c0_69, %c0_70] : memref<1x16x256xf32, #tpu.memory_space<vmem>>, vector<1x16x256xf32>
    %266 = vector.shape_cast %265 : vector<1x16x256xf32> to vector<16x256xf32>
    %267 = arith.addf %264, %266 : vector<16x256xf32>
    %c0_71 = arith.constant 0 : index
    %c0_72 = arith.constant 0 : index
    %c0_73 = arith.constant 0 : index
    %268 = vector.load %arg21[%c0_71, %c0_72, %c0_73] : memref<1x16x256xf32, #tpu.memory_space<vmem>>, vector<1x16x256xf32>
    %269 = vector.shape_cast %268 : vector<1x16x256xf32> to vector<16x256xf32>
    %270 = vector.shape_cast %267 : vector<16x256xf32> to vector<1x16x256xf32>
    tpu.vector_store %arg21[%c0_71, %c0_72, %c0_73], %270 {strides = array<i32>} : memref<1x16x256xf32, #tpu.memory_space<vmem>>, vector<1x16x256xf32>,
    return
  }
  func.func @transform_0(%arg0: i32, %arg1: i32) -> (i32, i32, i32) {
    %c0_i32 = arith.constant 0 : i32
    %c0_i32_0 = arith.constant 0 : i32
    return %arg0, %c0_i32, %arg1 : i32, i32, i32
  }
  func.func @transform_1(%arg0: i32, %arg1: i32) -> (i32, i32, i32) {
    %c0_i32 = arith.constant 0 : i32
    %c0_i32_0 = arith.constant 0 : i32
    return %arg0, %c0_i32, %arg1 : i32, i32, i32
  }
  func.func @transform_2(%arg0: i32, %arg1: i32) -> (i32, i32, i32, i32) {
    %c0_i32 = arith.constant 0 : i32
    %c0_i32_0 = arith.constant 0 : i32
    %c0_i32_1 = arith.constant 0 : i32
    return %arg0, %c0_i32, %c0_i32_0, %arg1 : i32, i32, i32, i32
  }
  func.func @transform_3(%arg0: i32, %arg1: i32) -> (i32, i32, i32, i32) {
    %c0_i32 = arith.constant 0 : i32
    %c0_i32_0 = arith.constant 0 : i32
    %c0_i32_1 = arith.constant 0 : i32
    return %arg0, %c0_i32, %c0_i32_0, %arg1 : i32, i32, i32, i32
  }
  func.func @transform_4(%arg0: i32, %arg1: i32) -> (i32, i32, i32, i32) {
    %c0_i32 = arith.constant 0 : i32
    %c0_i32_0 = arith.constant 0 : i32
    %c0_i32_1 = arith.constant 0 : i32
    return %arg0, %arg1, %c0_i32, %c0_i32_0 : i32, i32, i32, i32
  }
  func.func @transform_5(%arg0: i32, %arg1: i32) -> (i32, i32, i32) {
    %c0_i32 = arith.constant 0 : i32
    %c0_i32_0 = arith.constant 0 : i32
    return %arg0, %c0_i32, %arg1 : i32, i32, i32
  }
  func.func @transform_6(%arg0: i32, %arg1: i32) -> (i32, i32) {
    %c0_i32 = arith.constant 0 : i32
    %c0_i32_0 = arith.constant 0 : i32
    %c0_i32_1 = arith.constant 0 : i32
    return %c0_i32, %c0_i32_0 : i32, i32
  }
  func.func @transform_7(%arg0: i32, %arg1: i32) -> (i32, i32) {
    %c0_i32 = arith.constant 0 : i32
    %c0_i32_0 = arith.constant 0 : i32
    %c0_i32_1 = arith.constant 0 : i32
    return %c0_i32, %c0_i32_0 : i32, i32
  }
  func.func @transform_8(%arg0: i32, %arg1: i32) -> (i32, i32) {
    %c0_i32 = arith.constant 0 : i32
    %c0_i32_0 = arith.constant 0 : i32
    %c0_i32_1 = arith.constant 0 : i32
    return %c0_i32, %c0_i32_0 : i32, i32
  }
  func.func @transform_9(%arg0: i32, %arg1: i32) -> (i32, i32) {
    %c0_i32 = arith.constant 0 : i32
    %c0_i32_0 = arith.constant 0 : i32
    %c0_i32_1 = arith.constant 0 : i32
    return %c0_i32, %c0_i32_0 : i32, i32
  }
  func.func @transform_10(%arg0: i32, %arg1: i32) -> (i32, i32) {
    %c0_i32 = arith.constant 0 : i32
    %c0_i32_0 = arith.constant 0 : i32
    %c0_i32_1 = arith.constant 0 : i32
    return %c0_i32, %c0_i32_0 : i32, i32
  }
  func.func @transform_11(%arg0: i32, %arg1: i32) -> (i32, i32) {
    %c0_i32 = arith.constant 0 : i32
    %c0_i32_0 = arith.constant 0 : i32
    %c0_i32_1 = arith.constant 0 : i32
    return %c0_i32, %c0_i32_0 : i32, i32
  }
  func.func @transform_12(%arg0: i32, %arg1: i32) -> (i32, i32) {
    %c0_i32 = arith.constant 0 : i32
    %c0_i32_0 = arith.constant 0 : i32
    %c0_i32_1 = arith.constant 0 : i32
    return %c0_i32, %c0_i32_0 : i32, i32
  }
  func.func @transform_13(%arg0: i32, %arg1: i32) -> (i32, i32) {
    %c0_i32 = arith.constant 0 : i32
    %c0_i32_0 = arith.constant 0 : i32
    %c0_i32_1 = arith.constant 0 : i32
    return %c0_i32, %c0_i32_0 : i32, i32
  }
  func.func @transform_14(%arg0: i32, %arg1: i32) -> (i32, i32) {
    %c0_i32 = arith.constant 0 : i32
    %c0_i32_0 = arith.constant 0 : i32
    %c0_i32_1 = arith.constant 0 : i32
    return %c0_i32, %c0_i32_0 : i32, i32
  }
  func.func @transform_15(%arg0: i32, %arg1: i32) -> (i32, i32) {
    %c0_i32 = arith.constant 0 : i32
    %c0_i32_0 = arith.constant 0 : i32
    %c0_i32_1 = arith.constant 0 : i32
    return %c0_i32, %c0_i32_0 : i32, i32
  }
  func.func @transform_16(%arg0: i32, %arg1: i32) -> (i32, i32) {
    %c0_i32 = arith.constant 0 : i32
    %c0_i32_0 = arith.constant 0 : i32
    %c0_i32_1 = arith.constant 0 : i32
    return %c0_i32, %c0_i32_0 : i32, i32
  }
  func.func @transform_17(%arg0: i32, %arg1: i32) -> (i32, i32) {
    %c0_i32 = arith.constant 0 : i32
    %c0_i32_0 = arith.constant 0 : i32
    %c0_i32_1 = arith.constant 0 : i32
    return %c0_i32, %c0_i32_0 : i32, i32
  }
  func.func @transform_18(%arg0: i32, %arg1: i32) -> (i32, i32) {
    %c0_i32 = arith.constant 0 : i32
    %c0_i32_0 = arith.constant 0 : i32
    %c0_i32_1 = arith.constant 0 : i32
    return %c0_i32, %c0_i32_0 : i32, i32
  }
  func.func @transform_19(%arg0: i32, %arg1: i32) -> (i32, i32, i32) {
    %c0_i32 = arith.constant 0 : i32
    %c0_i32_0 = arith.constant 0 : i32
    return %arg0, %c0_i32, %arg1 : i32, i32, i32
  }
}

</mosaic_0001>

<bundles_post_ra>
// kernel: tpu_custom_call.1
= control target key start
LH: loop header
LB: loop body
LE: loop exit
PB: predicated region body
PF: predicated region fallthrough
CT: control target
= control target key end

     0   :  { %s13656_s0 = inlined_call_operand.vmem [shape: f32[2,3,256], index: 0, kind: input, shape index: {}]   ;;  %s13657_s1 = inlined_call_operand.vmem [shape: f32[2,3,256], index: 1, kind: input, shape index: {}]   ;;  %s13658_s2 = inlined_call_operand.vmem [shape: f32[2,3,8,256], index: 2, kind: input, shape index: {}]   ;;  %s13659_s3 = inlined_call_operand.vmem [shape: f32[2,3,8,256], index: 3, kind: input, shape index: {}]   ;;  %s13660_s4 = inlined_call_operand.hbm [shape: bf16[2,1,16,2048], index: 4, kind: input, shape index: {}]   ;;  %s13661_s5 = inlined_call_operand.hbm [shape: f32[2,16,256], index: 5, kind: input, shape index: {}]   ;;  %s13662_s6 = inlined_call_operand.hbm [shape: bf16[16,16], index: 6, kind: input, shape index: {}]   ;;  %s13663_s7 = inlined_call_operand.vmem [shape: f32[16,3], index: 7, kind: input, shape index: {}]   ;;  %s13664_s8 = inlined_call_operand.vmem [shape: f32[16,1], index: 8, kind: input, shape index: {}]   ;;  %s13665_s9 = inlined_call_operand.hbm [shape: f32[16,16], index: 9, kind: input, shape index: {}]   ;;  %s13666_s10 = inlined_call_operand.vmem [shape: f32[16,1], index: 10, kind: input, shape index: {}]   ;;  %s13667_s11 = inlined_call_operand.hbm [shape: f32[8,12], index: 11, kind: input, shape index: {}]   ;;  %s13668_s12 = inlined_call_operand.vmem [shape: f32[8,1], index: 12, kind: input, shape index: {}]   ;;  %s13669_s13 = inlined_call_operand.vmem [shape: f32[8,8], index: 13, kind: input, shape index: {}]   ;;  %s13670_s14 = inlined_call_operand.vmem [shape: f32[8,1], index: 14, kind: input, shape index: {}]   ;;  %s13671_s15 = inlined_call_operand.vmem [shape: f32[16,8], index: 15, kind: input, shape index: {}]   ;;  %s13672_s16 = inlined_call_operand.vmem [shape: f32[16,1], index: 16, kind: input, shape index: {}]   ;;  %s13673_s17 = inlined_call_operand.vmem [shape: f32[16,256], index: 17, kind: input, shape index: {}]   ;;  %s13674_s18 = inlined_call_operand.vmem [shape: f32[16,1], index: 18, kind: input, shape index: {}]   ;;  %s13675_s19 = inlined_call_operand.hbm [shape: f32[2,16,256], index: 19, kind: output, shape index: {}]  }
   0x1   :  { %13961 = sst [smem:[#allocation269_spill]] %s13656_s0 }
   0x2   :  { %13962 = sst [smem:[#allocation270_spill]] %s13657_s1 }
   0x3   :  { %13963 = sst [smem:[#allocation271_spill]] %s13658_s2 }
   0x4   :  { %13964 = sst [smem:[#allocation272_spill]] %s13659_s3 }
   0x5   :  { %13965 = sst [smem:[#allocation273_spill]] %s13660_s4 }
   0x6   :  { %13966 = sst [smem:[#allocation274_spill]] %s13662_s6 }
   0x7   :  { %13967 = sst [smem:[#allocation275_spill]] %s13663_s7 }
   0x8   :  { %13968 = sst [smem:[#allocation276_spill]] %s13665_s9 }
   0x9   :  { %13969 = sst [smem:[#allocation277_spill]] %s13667_s11 }
   0xa   :  { %13970 = sst [smem:[#allocation278_spill]] %s13668_s12 }
   0xb   :  { %13971 = sst [smem:[#allocation279_spill]] %s13669_s13 }
   0xc   :  { %13972 = sst [smem:[#allocation280_spill]] %s13670_s14 }
   0xd   :  { %13973 = sst [smem:[#allocation281_spill]] %s13671_s15 }
   0xe   :  { %13974 = sst [smem:[#allocation282_spill]] %s13673_s17 }
   0xf   :  { %13975 = sst [smem:[#allocation283_spill]] %s13674_s18 }
  0x10   :  { %13976 = sst [smem:[#allocation284_spill]] %s13675_s19 }
  0x11   :  { %24 = vsyncpa [#allocation3], 0 }
  0x12   :  { %26 = vsyncpa [#allocation3 + $0x1], 0 }
  0x13   :  { %27 = vsyncpa [#allocation6], 0 }
  0x14   :  { %29 = vsyncpa [#allocation6 + $0x1], 0 }
  0x15   :  { %30 = vsyncpa [#allocation9], 0 }
  0x16   :  { %31 = vsyncpa [#allocation4], 0 }
  0x17   :  { %33 = vsyncpa [#allocation4 + $0x1], 0  ;;  %s9566_s0 = smov 0   ;;  %s9568_s30 = smov 0  }
  0x18   :  { %s9570_s20 = smov 0   ;;  %s9572_s21 = smov 0  }
  0x19   :  { %s9574_s1 = smov 0   ;;  %s9576_s22 = smov 0  }
  0x1a LB: > { %13977 = sst [smem:[#allocation17_spill]] %s9425_s0  ;;  %s9597_s2 = sadd.s32 4294967295, %s9445_s22   ;;  %s9445_s22 = sphi %s9576_s22, %s39_s22   ;;  %s9441_s1 = sphi %s9574_s1, %s14578_s1   ;;  %s9437_s21 = sphi %s9572_s21, %s14577_s21   ;;  %s9433_s20 = sphi %s9570_s20, %s14576_s20   ;;  %s9429_s30 = sphi %s9568_s30, %s14575_s30   ;;  %s9425_s0 = sphi %s9566_s0, %s14574_s0  }
  0x1b   : > { %s8775_s23 = sadd.s32 4294967294, %s9445_s22   ;;  %p185_p0 = scmp.ne.s32.totalorder %s9429_s30, %s9425_s0 }
  0x1c   : > { %p13681_p1 = scmp.eq.s32.totalorder %s9597_s2, 0  ;;  %p518_p3 = scmp.eq.s32.totalorder %s8775_s23, 1 }
  0x1d   : > { %p8776_p5 = scmp.ge.s32.totalorder %s9445_s22, 1  ;;  %p525_p7 = scmp.lt.s32.totalorder %s9445_s22, 3 }
  0x1e   : > { %p9606_p4 = por %p13681_p1, %p185_p0  ;;  %p9611_p6 = por %p518_p3, %p185_p0 }
  0x1f   : > { %p9616_p8 = pnand %p8776_p5, %p525_p7  ;;  %s9447_s26 = smov [#allocation7]  }
  0x20   : > { %s13978_s24 = scalar_select %p9606_p4, 1, 0 }
  0x21   : > { %s13979_s25 = scalar_select %p9611_p6, 1, 0 }
  0x22   : > { %s13981_s3 = scalar_select %p9616_p8, 1, 0 }
  0x23   : > { %13980 = sst [smem:[#allocation18_spill]] %s13979_s25  ;;  %s537_s27 = sshll.u32 %s9447_s26, 4  ;;  %s9620_s27 = int_to_ptr.vmem [resolvable:$true] %s537_s27 }
  0x24   : > { %p9095_p9 = pneg %p9616_p8  ;;  %s9448_s29 = smov [#allocation8]  }
  0x25   : > { %s556_s23 = sshll.u32 %s9448_s29, 4  ;;  %s13983_s6 = sld [smem:[#allocation274_spill]]  ;;  %s9631_s23 = int_to_ptr.vmem [resolvable:$true] %s556_s23 }
  0x26   : > { %p9627_p11 = pnand %p9095_p9, %p13681_p1 }
  0x28   : > { %p9641_p13 = pneg %p9627_p11 }
  0x2b   : > { %s9207_s19 = scalar_lea.hbm %s13983_s6, 128 }
  0x2c   : > { %p9208_p12 = scmp.ne.s32.totalorder %s13983_s6, %s9207_s19  ;;  %p9214_p5 = scmp.lt.u32.totalorder %s9207_s19, %s13983_s6 }
  0x2e   : > { %p9210_p0 = pnand %p9641_p13, %p9208_p12 }
  0x30   : > { %p9211_p3 = pneg %p9210_p0 }
  0x32   : > { %p9216_p7 = pnand %p9214_p5, %p9211_p3 }
  0x34   : > { %9219 = shalt.err (!%p9216_p7)
}
  0x35   : > { %s9220_s17 = scalar_lea.vmem %s9620_s27, 128  ;;  %p9228_p2 = scmp.lt.s32.totalorder %s9620_s27, %s9620_s27 }
  0x36   : > { %p9221_p9 = scmp.ne.s32.totalorder %s9620_s27, %s9220_s17  ;;  %p9229_p6 = scmp.lt.s32.totalorder %s9220_s17, %s9220_s17 }
  0x38   : > { %p9223_p10 = pnand %p9221_p9, %p9641_p13  ;;  %p9230_p12 = por %p9229_p6, %p9228_p2 }
  0x3a   : > { %p9224_p1 = pneg %p9223_p10 }
  0x3c   : > { %p9231_p0 = pnand %p9230_p12, %p9224_p1 }
  0x3e   : > { %9234 = shalt.err (!%p9231_p0)
}
  0x3f   : > { %s13684_s0 = smov 64   ;;  %s9450_s13 = smov 4  }
  0x40   : > { %9098 = dma.hbm_to_vmem [thread:$0]  (!%p9627_p11), %s13983_s6, 128, %s9620_s27, [#allocation6], %s13684_s0, %s13684_s0, %s9450_s13  }
  0x41   : > { %s13985_s9 = sld [smem:[#allocation276_spill]] }
  0x47   : > { %s9235_s14 = scalar_lea.hbm %s13985_s9, 256 }
  0x48   : > { %p9236_p1 = scmp.ne.s32.totalorder %s13985_s9, %s9235_s14  ;;  %p9242_p10 = scmp.lt.u32.totalorder %s9235_s14, %s13985_s9 }
  0x4a   : > { %p9238_p2 = pnand %p9236_p1, %p9641_p13 }
  0x4c   : > { %p9239_p6 = pneg %p9238_p2 }
  0x4e   : > { %p9244_p3 = pnand %p9242_p10, %p9239_p6 }
  0x50   : > { %9247 = shalt.err (!%p9244_p3)
}
  0x51   : > { %s9248_s27 = scalar_lea.vmem %s9631_s23, 256  ;;  %p9256_p12 = scmp.lt.s32.totalorder %s9631_s23, %s9631_s23 }
  0x52   : > { %p9249_p5 = scmp.ne.s32.totalorder %s9631_s23, %s9248_s27  ;;  %p9257_p0 = scmp.lt.s32.totalorder %s9248_s27, %s9248_s27 }
  0x54   : > { %p9251_p7 = pnand %p9249_p5, %p9641_p13  ;;  %p9258_p1 = por %p9257_p0, %p9256_p12 }
  0x56   : > { %p9252_p9 = pneg %p9251_p7 }
  0x58   : > { %p9259_p2 = pnand %p9258_p1, %p9252_p9 }
  0x5a   : > { %9262 = shalt.err (!%p9259_p2)
}
  0x5b   : > { %s9451_s12 = smov 128   ;;  %s9452_s7 = smov 8  }
  0x5c   : > { %9101 = dma.hbm_to_vmem [thread:$0]  (!%p9627_p11), %s13985_s9, 256, %s9631_s23, [#allocation9], %s9451_s12, %s9451_s12, %s9452_s7  }
  0x5d   : > { %s9453_s13 = smov [#allocation10]   ;;  %s13986_s11 = sld [smem:[#allocation277_spill]] }
  0x5e   : > { %s573_s19 = sshll.u32 %s9453_s13, 4  ;;  %s574_s19 = int_to_ptr.vmem [resolvable:$true] %s573_s19 }
  0x63   : > { %s9263_s29 = scalar_lea.hbm %s13986_s11, 128 }
  0x64   : > { %p9264_p6 = scmp.ne.s32.totalorder %s13986_s11, %s9263_s29  ;;  %p9270_p5 = scmp.lt.u32.totalorder %s9263_s29, %s13986_s11 }
  0x66   : > { %p9266_p10 = pnand %p9264_p6, %p9641_p13 }
  0x68   : > { %p9267_p3 = pneg %p9266_p10 }
  0x6a   : > { %p9272_p7 = pnand %p9270_p5, %p9267_p3 }
  0x6c   : > { %9275 = shalt.err (!%p9272_p7)
}
  0x6d   : > { %s9276_s23 = scalar_lea.vmem %s574_s19, 128  ;;  %p9284_p1 = scmp.lt.s32.totalorder %s574_s19, %s574_s19 }
  0x6e   : > { %p9277_p9 = scmp.ne.s32.totalorder %s574_s19, %s9276_s23  ;;  %p9285_p2 = scmp.lt.s32.totalorder %s9276_s23, %s9276_s23 }
  0x70   : > { %p9279_p12 = pnand %p9277_p9, %p9641_p13  ;;  %p9286_p4 = por %p9285_p2, %p9284_p1 }
  0x72   : > { %p9280_p0 = pneg %p9279_p12 }
  0x74   : > { %p9287_p8 = pnand %p9286_p4, %p9280_p0 }
  0x76   : > { %9290 = shalt.err (!%p9287_p8)
}
  0x77   : > { %9104 = dma.hbm_to_vmem [thread:$0]  (!%p9627_p11), %s13986_s11, 128, %s574_s19, [#allocation9]  }
  0x78   : > { %s51_s6 = sadd.s32 1, %s9441_s1  ;;  %s172_s15 = sadd.s32 1, %s9433_s20 }
  0x79   : > { %p53_p4 = scmp.ge.s32.totalorder %s51_s6, 2  ;;  %p179_p8 = scmp.ne.s32.totalorder %s9433_s20, %s9429_s30 }
  0x7a   : > { %p180_p13 = scmp.eq.s32.totalorder %s9445_s22, 0  ;;  %p13989_p10 = scmp.eq.s32.totalorder %s9597_s2, 1 }
  0x7b   : > { %s14580_s6 = smov (%p53_p4, %s51_s6), 0  ;;  %p9119_p11 = scmp.lt.s32.totalorder %s9445_s22, 2 }
  0x7c   : > { %13987 = sst [smem:[#allocation19_spill]] %s14580_s6  ;;  %p9712_p6 = por %p180_p13, %p179_p8 }
  0x7d   : > { %p9718_p3 = por %p13989_p10, %p179_p8  ;;  %s167_s14 = ssub.s32 %s9441_s1, %s14580_s6 }
  0x7e   : > { %p170_p5 = scmp.eq.s32.totalorder %s167_s14, 0  ;;  %s9726_s18 = sand.u32 1, %s9433_s20  }
  0x7f   : > { %s8781_s13 = sshll.u32 %s9726_s18, 7  ;;  %s8927_s25 = sshll.u32 %s9441_s1, 11 }
  0x80   : > { %s9730_s19 = scalar_select %p170_p5, %s9433_s20, %s172_s15  }
  0x81   : > { %s13991_s4 = sld [smem:[#allocation273_spill]]  ;;  %s661_s27 = scalar_lea.vmem [#allocation2], %s8781_s13 }
  0x82   : > { %s670_s23 = sshll.u32 %s661_s27, 4  ;;  %p9742_p7 = pnand %p9119_p11, %p9712_p6  ;;  %s9738_s23 = int_to_ptr.vmem [resolvable:$true] %s670_s23 }
  0x83   : > { %s658_s15 = scalar_lea.sflag [#allocation3], %s9726_s18 }
  0x84   : > { %p9293_p12 = pneg %p9742_p7 }
  0x87   : > { %s9736_s17 = scalar_lea.hbm %s13991_s4, %s8927_s25  ;;  %s9296_s28 = scalar_lea.hbm %s13991_s4, 4096 }
  0x88   : > { %s9291_s14 = scalar_lea.hbm %s9736_s17, 2048  ;;  %p9297_p2 = scmp.lt.u32.totalorder %s9736_s17, %s13991_s4 }
  0x89   : > { %p9292_p9 = scmp.ne.s32.totalorder %s9736_s17, %s9291_s14  ;;  %p9298_p4 = scmp.lt.u32.totalorder %s9296_s28, %s9291_s14 }
  0x8a   : > { %p9300_p13 = scmp.lt.u32.totalorder %s9291_s14, %s9736_s17 }
  0x8b   : > { %p9294_p0 = pnand %p9293_p12, %p9292_p9  ;;  %p9299_p8 = por %p9298_p4, %p9297_p2 }
  0x8d   : > { %p9295_p1 = pneg %p9294_p0  ;;  %p9301_p6 = por %p9300_p13, %p9299_p8 }
  0x8f   : > { %p9302_p10 = pnand %p9301_p6, %p9295_p1 }
  0x91   : > { %9305 = shalt.err (!%p9302_p10)
}
  0x92   : > { %s9306_s27 = scalar_lea.vmem %s9738_s23, 2048  ;;  %s9454_s13 = smov [#allocation2]  }
  0x93   : > { %p9307_p11 = scmp.ne.s32.totalorder %s9738_s23, %s9306_s27  ;;  %s9311_s25 = sshll.u32 %s9454_s13, 4  ;;  %s9312_s25 = int_to_ptr.vmem [resolvable:$false] %s9311_s25 }
  0x94   : > { %s9313_s26 = scalar_lea.vmem %s9312_s25, 4096  ;;  %p9314_p0 = scmp.lt.s32.totalorder %s9738_s23, %s9312_s25 }
  0x95   : > { %p9309_p5 = pnand %p9307_p11, %p9293_p12  ;;  %p9315_p2 = scmp.lt.s32.totalorder %s9313_s26, %s9306_s27 }
  0x97   : > { %p9310_p9 = pneg %p9309_p5  ;;  %p9316_p4 = por %p9315_p2, %p9314_p0 }
  0x99   : > { %p9317_p8 = pnand %p9316_p4, %p9310_p9 }
  0x9b   : > { %9320 = shalt.err (!%p9317_p8)
}
  0x9c   : > { %s9455_s14 = smov 1024   ;;  %s13993_s28 = smov 64  }
  0x9d   : > { %9108 = dma.hbm_to_vmem [thread:$0]  (!%p9742_p7), %s9736_s17, 2048, %s9738_s23, %s658_s15, %s9455_s14, %s9455_s14, %s13993_s28  }
  0x9e   : > { %s8784_s29 = sshll.u32 %s9726_s18, 5  ;;  %s8928_s13 = sshll.u32 %s9441_s1, 9 }
  0x9f   : > { %s9781_s26 = scalar_lea.hbm %s13661_s5, %s8928_s13  ;;  %s684_s7 = scalar_lea.vmem [#allocation5], %s8784_s29 }
  0xa0   : > { %s693_s4 = sshll.u32 %s684_s7, 4  ;;  %s13994_s9 = sand.u32 1, %s9445_s22   ;;  %s9783_s4 = int_to_ptr.vmem [resolvable:$true] %s693_s4 }
  0xa1   : > { %s9787_s11 = scalar_lea.sflag [#allocation6], %s13994_s9  ;;  %s9321_s6 = scalar_lea.hbm %s9781_s26, 512 }
  0xa2   : > { %p9322_p1 = scmp.ne.s32.totalorder %s9781_s26, %s9321_s6  ;;  %s9326_s23 = scalar_lea.hbm %s13661_s5, 1024 }
  0xa3   : > { %p9327_p10 = scmp.lt.u32.totalorder %s9781_s26, %s13661_s5  ;;  %p9328_p11 = scmp.lt.u32.totalorder %s9326_s23, %s9321_s6 }
  0xa4   : > { %p9324_p13 = pnand %p9322_p1, %p9293_p12  ;;  %p9330_p9 = scmp.lt.u32.totalorder %s9321_s6, %s9781_s26 }
  0xa5   : > { %p9329_p5 = por %p9328_p11, %p9327_p10 }
  0xa6   : > { %p9325_p6 = pneg %p9324_p13 }
  0xa7   : > { %p9331_p0 = por %p9330_p9, %p9329_p5 }
  0xa9   : > { %p9332_p2 = pnand %p9331_p0, %p9325_p6 }
  0xab   : > { %9335 = shalt.err (!%p9332_p2)
}
  0xac   : > { %s9336_s9 = scalar_lea.vmem %s9783_s4, 512  ;;  %s9456_s7 = smov [#allocation5]  }
  0xad   : > { %p9337_p4 = scmp.ne.s32.totalorder %s9783_s4, %s9336_s9  ;;  %s9341_s28 = sshll.u32 %s9456_s7, 4  ;;  %s9342_s28 = int_to_ptr.vmem [resolvable:$false] %s9341_s28 }
  0xae   : > { %s9343_s29 = scalar_lea.vmem %s9342_s28, 1024  ;;  %p9344_p13 = scmp.lt.s32.totalorder %s9783_s4, %s9342_s28 }
  0xaf   : > { %p9339_p8 = pnand %p9337_p4, %p9293_p12  ;;  %p9345_p10 = scmp.lt.s32.totalorder %s9343_s29, %s9336_s9 }
  0xb1   : > { %p9340_p1 = pneg %p9339_p8  ;;  %p9346_p11 = por %p9345_p10, %p9344_p13 }
  0xb3   : > { %p9347_p5 = pnand %p9346_p11, %p9340_p1 }
  0xb5   : > { %9350 = shalt.err (!%p9347_p5)
}
  0xb6   : > { %s9457_s6 = smov 256   ;;  %s9458_s13 = smov 16  }
  0xb7   : > { %9111 = dma.hbm_to_vmem [thread:$0]  (!%p9742_p7), %s9781_s26, 512, %s9783_s4, %s9787_s11, %s9457_s6, %s9457_s6, %s9458_s13  }
  0xb8   : > { %p13995_p12 = scmp.ne.s32.totalorder %s13981_s3, 0 }
  0xba   : > { %705 = sbr.rel (%p13995_p12) target bundleno = 1765 (0x6e5), region = 96 }
  0xc1   : > { %s9816_s25 = sand.u32 1, %s9429_s30   ;;  %p13996_p6 = scmp.ne.s32.totalorder %s13978_s24, 0 }
  0xc2   : > { %s8788_s27 = sshll.u32 %s9816_s25, 7  ;;  %s708_s18 = scalar_lea.sflag [#allocation3], %s9816_s25 }
  0xc3   : > { %s9820_s17 = scalar_lea.vmem [#allocation2], %s8788_s27 }
  0xc4   : > { %9404 = dma.done.wait (%p13996_p6), %s708_s18, 2048  }
  0xc5   : > { %9406 = vsyncadd (%p13996_p6), %s708_s18, 4294965248  ;;  %s716_s4 = sand.u32 1, %s9597_s2   ;;  %s8789_s11 = sshll.u32 %s9816_s25, 5 }
  0xc6   : > { %s717_s3 = scalar_lea.sflag [#allocation6], %s716_s4  ;;  %s9830_s12 = scalar_lea.vmem [#allocation5], %s8789_s11 }
  0xc7   : > { %9408 = dma.done.wait (%p13996_p6), %s717_s3, 512  }
  0xc8   : > { %9410 = vsyncadd (%p13996_p6), %s717_s3, 4294966784  ;;  %p13997_p7 = scmp.eq.s32.totalorder %s9597_s2, 0 }
  0xca   : > { %9412 = dma.done.wait (%p13997_p7), [#allocation6], 128   ;;  %p13998_p9 = pmov %p13997_p7 }
  0xcb   : > { %p13999_p0 = pmov %p13997_p7 }
  0xcc   : > { %9414 = vsyncadd (%p13998_p9), [#allocation6], 4294967168 }
  0xcd   : > { %9416 = dma.done.wait (%p13999_p0), [#allocation9], 384   ;;  %p14000_p2 = pmov %p13999_p0 }
  0xce   : > { %p829_p4 = scmp.lt.s32.totalorder %s9437_s21, 1  ;;  %v884_v0 = vlaneseq  ;;  %v9459_v1 = vmov 1966171168   ;;  %v13692_v7 = vmov 0.0   ;;  %s14001_s14 = sld [smem:[#allocation269_spill]]  ;;  %v13689_v13 = vmov 0  }
  0xcf   : > { %9418 = vsyncadd (%p14000_p2), [#allocation9], 4294966912  ;;  %v882_v2 = vunpack.c.l.s4 %v9459_v1  ;;  %1744 = vmatprep.mubr.f32.mxu1 %v13692_v7  ;;  %2206 = vmatprep.mubr.f32.mxu0 %v13692_v7  ;;  %s14002_s29 = sld [smem:[#allocation270_spill]]  ;;  %s14006_s18 = sld [smem:[#allocation271_spill]]  ;;  %vm1268_vm1 = vcmask 1041409   ;;  %vm1271_vm2 = vcmask 1042434  }
  0xd0   : > { %s830_s24 = scalar_select %p829_p4, %s9437_s21, 1  ;;  %v885_v3 = vshrl.u32 %v884_v0, 7  ;;  %9188 = vset.pattern.permute.xlu0 %v13689_v13  ;;  %9189 = vset.pattern.permute.xlu1 %v13689_v13  ;;  %vm1274_vm3 = vcmask 1043459   ;;  %vm1647_vm5 = vcmask 1042432   ;;  %vm1277_vm8 = vcmask 1044484  }
  0xd1   : > { %v883_v4 = vunpack.c.0.s8 %v882_v2  ;;  %vm1640_vm9 = vcmask 23552   ;;  %vm1280_vm10 = vcmask 1045509   ;;  %vm2381_vm11 = vcmask 130048   ;;  %s14033_s15 = sld [smem:[#allocation278_spill]]  ;;  %s14034_s7 = sld [smem:[#allocation280_spill]] }
  0xd2   : > { %s8929_s26 = sshll.u32 %s830_s24, 3  ;;  %s9076_s23 = smul.u32 48, %s830_s24  ;;  %v9846_v5 = vsub.s32 2, %v885_v3  ;;  %v1169_v6 = vsub.s32 6, %v885_v3  ;;  %v1189_v9 = vsub.s32 5, %v885_v3  ;;  %v1211_v10 = vsub.s32 4, %v885_v3 }
  0xd3   : > { %v9856_v8 = vsub.s32 %v883_v4, %v885_v3  ;;  %v9858_v11 = vsub.s32 0, %v885_v3  ;;  %v9860_v12 = vsub.s32 1, %v885_v3  ;;  %s14010_s24 = sld [smem:[#allocation275_spill]]  ;;  %vm1283_vm12 = vcmask 1046534  }
  0xd4   : > { %s836_s9 = scalar_lea.vmem %s14001_s14, %s8929_s26  ;;  %vm1286_vm13 = vcmask 1047559   ;;  %vm3484_vm14 = vcmask 1043456   ;;  %vm9462_vm15 = vmmov 1  }
  0xd5   : > { %s846_s6 = scalar_lea.vmem %s14002_s29, %s8929_s26  ;;  %14003 = vst [vmem:[#allocation20_spill] sm:$0xff] %v9856_v8  ;;  %14004 = vst [vmem:[#allocation21_spill] sm:$0xff] %v9858_v11  ;;  %s9867_s4 = scalar_lea.vmem %s14006_s18, %s9076_s23  ;;  %v8800_v14 = vld.sshfl [vmem:[%s836_s9] sm:$0x5f pattern:$0x75316420] }
  0xd6   : > { %14005 = vst [vmem:[#allocation22_spill] sm:$0xff] %v9860_v12  ;;  %v9869_v15 = vld [vmem:[%s846_s6] sm:$0x77]  ;;  %v880_v16 = vcombine.high %v8800_v14, %v8800_v14  ;;  %v887_v17 = vrot.slane %v8800_v14, %v9856_v8  ;;  %s14007_s26 = sld [smem:[#allocation272_spill]]  ;;  %v922_v27 = vld [vmem:[%s9867_s4 + $0x8] sm:$0xff]  ;;  %v924_v28 = vld [vmem:[%s9867_s4 + $0x18] sm:$0xff] }
  0xd7   : > { %v904_v18 = vrot.slane %v9869_v15, %v9856_v8  ;;  %v1170_v19 = vrot.slane %v9869_v15, %v1169_v6  ;;  %v1190_v20 = vrot.slane %v9869_v15, %v1189_v9  ;;  %v1212_v21 = vrot.slane %v9869_v15, %v1211_v10  ;;  %v921_v34 = vld [vmem:[%s9867_s4] sm:$0xff]  ;;  %v926_v35 = vld [vmem:[%s9867_s4 + $0x28] sm:$0xff]  ;;  %v923_v56 = vld [vmem:[%s9867_s4 + $0x10] sm:$0xff]  ;;  %s14008_s18 = sld [smem:[#allocation283_spill]]  ;;  %s14446_s29 = sld [smem:[#allocation282_spill]] }
  0xd8   : > { %v1166_v22 = vrot.slane %v9869_v15, %v9846_v5  ;;  %v894_v23 = vrot.slane %v880_v16, %v9856_v8  ;;  %v895_v24 = vcombine.high %v887_v17, %v887_v17  ;;  %v936_v29 = vrot.slane %v887_v17, %v9858_v11  ;;  %v925_v61 = vld [vmem:[%s9867_s4 + $0x20] sm:$0xff]  ;;  %s14568_s9 = sld [smem:[#allocation284_spill]] }
  0xd9   : > { %v905_v25 = vcombine.high %v904_v18, %v904_v18  ;;  %v9886_v26 = vrot.slane %v904_v18, %v9856_v8  ;;  %v940_v30 = vrot.slane %v887_v17, %v9860_v12  ;;  %v1180_v31 = vrot.slane %v1170_v19, %v9846_v5 }
  0xda   : > { %v948_v37 = vrot.slane %v894_v23, %v9860_v12  ;;  %v944_v39 = vrot.slane %v894_v23, %v9858_v11  ;;  %v956_v40 = vrot.slane %v895_v24, %v9860_v12  ;;  %v1200_v42 = vrot.slane %v1190_v20, %v9860_v12 }
  0xdb   : > { %v9894_v32 = vrot.slane %v905_v25, %v9856_v8  ;;  %v9898_v33 = vcombine.high %v9886_v26, %v9886_v26  ;;  %v9911_v41 = vsub.f32 %v922_v27, %v940_v30  ;;  %v952_v43 = vrot.slane %v895_v24, %v9858_v11 }
  0xdc   : > { %s9878_s2 = scalar_lea.vmem %s14007_s26, %s9076_s23  ;;  %v9915_v44 = vsub.f32 %v924_v28, %v948_v37  ;;  %v9919_v45 = vrot.slane %v9886_v26, %v9860_v12  ;;  %v9928_v48 = vsub.f32 %v921_v34, %v936_v29  ;;  %v9930_v49 = vsub.f32 %v926_v35, %v956_v40  ;;  %s8931_s23 = sshll.u32 %s9437_s21, 9 }
  0xdd   : > { %v9903_v36 = vld [vmem:[%s9878_s2 + $0x8] sm:$0xff]  ;;  %v9907_v38 = vld [vmem:[%s9878_s2 + $0x18] sm:$0xff]  ;;  %v9923_v46 = vrot.slane %v9894_v32, %v9860_v12  ;;  %v970_v50 = vmul.f32 %v9911_v41, %v9911_v41  ;;  %v9936_v51 = vrot.slane %v9898_v33, %v9860_v12  ;;  %v1222_v3 = vrot.slane %v1212_v21, %v9858_v11  ;;  %v9988_v37 = vld [vmem:[%s9878_s2] sm:$0xff]  ;;  %s8546_s21 = scalar_lea.sflag [#allocation4], %s9816_s25 }
  0xde   : > { %v9926_v47 = vld [vmem:[%s9878_s2 + $0x28] sm:$0xff]  ;;  %v972_v52 = vmul.f32 %v9915_v44, %v9915_v44  ;;  %v1114_v53 = vmul.f32 %v9919_v45, %v9903_v36  ;;  %v1134_v55 = vmul.f32 %v9919_v45, %v9911_v41  ;;  %v974_v57 = vmul.f32 %v9930_v49, %v9930_v49 }
  0xdf   : > { %v1116_v54 = vmul.f32 %v9923_v46, %v9907_v38  ;;  %v1118_v58 = vmul.f32 %v9936_v51, %v9926_v47  ;;  %v1136_v59 = vmul.f32 %v9923_v46, %v9915_v44  ;;  %v1138_v60 = vmul.f32 %v9936_v51, %v9930_v49 }
  0xe0   : > { %v977_v62 = vadd.f32 %v972_v52, %v970_v50  ;;  %v1182_v0 = vmul.f32 %v1180_v31, %v9907_v38  ;;  %v1202_v1 = vmul.f32 %v1200_v42, %v9926_v47  ;;  %v1226_v4 = vmul.f32 %v1180_v31, %v9903_v36 }
  0xe1   : > { %v1121_v63 = vadd.f32 %v1116_v54, %v1114_v53  ;;  %v1141_v2 = vadd.f32 %v1136_v59, %v1134_v55  ;;  %v1230_v6 = vmul.f32 %v1200_v42, %v9903_v36  ;;  %v9961_v9 = vsub.f32 %v923_v56, %v944_v39  ;;  %v9991_v39 = vld [vmem:[%s9878_s2 + $0x10] sm:$0xff]  ;;  %v10008_v54 = vld [vmem:[%s9878_s2 + $0x20] sm:$0xff]  ;;  %s14063_s2 = sld [smem:[#allocation279_spill]] }
  0xe2   : > { %v9963_v10 = vadd.f32 %v977_v62, %v974_v57  ;;  %v1204_v16 = vsub.f32 %v1182_v0, %v1202_v1  ;;  %v9967_v17 = vsub.f32 %v925_v61, %v952_v43  ;;  %v1224_v18 = vmul.f32 %v1222_v3, %v9926_v47 }
  0xe3   : > { %v9965_v14 = vadd.f32 %v1121_v63, %v1118_v58  ;;  %v1232_v19 = vmul.f32 %v1222_v3, %v9907_v38  ;;  %v9972_v20 = vadd.f32 %v1141_v2, %v1138_v60  ;;  %v1308_v21 = vrot.slane %v9911_v41, 7 }
  0xe4   : > { %9191 = vrsqrt.f32 %v9963_v10  ;;  %v1186_v23 = vrot.slane %v9869_v15, %v9860_v12  ;;  %v994_v24 = vmax.f32 %v9963_v10, 1e-24  ;;  %v1228_v25 = vsub.f32 %v1224_v18, %v1226_v4 }
  0xe5   : > { %v1234_v27 = vsub.f32 %v1230_v6, %v1232_v19  ;;  %v1236_v28 = vmul.f32 %v1204_v16, %v9911_v41  ;;  %vm988_vm0 = vcmp.eq.f32.partialorder %v9963_v10, inf  ;;  %v1310_v29 = vrot.slane %v9915_v44, 6 }
  0xe6   : > { %v969_v30 = vmul.f32 %v9928_v48, %v9928_v48  ;;  %v971_v31 = vmul.f32 %v9961_v9, %v9961_v9  ;;  %9193 = vrsqrt.f32 %v994_v24  ;;  %v1238_v34 = vmul.f32 %v1228_v25, %v9915_v44 }
  0xe7   : > { %v1240_v35 = vmul.f32 %v1234_v27, %v9930_v49  ;;  %v973_v40 = vmul.f32 %v9967_v17, %v9967_v17  ;;  %v9997_v43 = vrot.slane %v9886_v26, %v9858_v11  ;;  %v10001_v50 = vrot.slane %v9894_v32, %v9858_v11 }
  0xe8   : > { %v975_v42 = vadd.f32 %v971_v31, %v969_v30  ;;  %v10005_v52 = vrot.slane %v9898_v33, %v9858_v11  ;;  %v1243_v53 = vadd.f32 %v1238_v34, %v1236_v28  ;;  %v1176_v55 = vrot.slane %v1166_v22, %v9846_v5 }
  0xe9   : > { %v1196_v56 = vrot.slane %v1186_v23, %v9860_v12  ;;  %v1208_v26 = vrot.slane %v9869_v15, %v9858_v11  ;;  %v1113_v33 = vmul.f32 %v9997_v43, %v9988_v37  ;;  %v1115_v57 = vmul.f32 %v10001_v50, %v9991_v39 }
  0xea   : > { %v10017_v32 = vadd.f32 %v975_v42, %v973_v40  ;;  %v1117_v58 = vmul.f32 %v10005_v52, %v10008_v54  ;;  %v10025_v59 = vadd.f32 %v1243_v53, %v1240_v35  ;;  %v1133_v5 = vmul.f32 %v9997_v43, %v9928_v48  ;;  %v2729_v42 = vld [vmem:[%s13664_s8] sm:$0xff] }
  0xeb   : > { %v1135_v15 = vmul.f32 %v10001_v50, %v9961_v9  ;;  %v1137_v22 = vmul.f32 %v10005_v52, %v9967_v17  ;;  %vm990_vm4 = vcmp.eq.f32.partialorder %v9963_v10, 0.0  ;;  %v991_v60 = vand.u32 2147483648, %v9963_v10  ;;  %2733 = vperm.xlu0 %9188, %v2729_v42  }
  0xec   : > { %v1292_v61 = vrot.slane %v9972_v20, 5  ;;  %9195 = vrsqrt.f32 %v10017_v32  ;;  %v1312_v62 = vrot.slane %v9930_v49, 5  ;;  %v993_v63 = vmax.f32 %v10017_v32, 1e-24 }
  0xed   : > { %v1119_v0 = vadd.f32 %v1115_v57, %v1113_v33  ;;  %v1139_v1 = vadd.f32 %v1135_v15, %v1133_v5  ;;  %vm981_vm6 = vcmp.eq.f32.partialorder %v10017_v32, inf  ;;  %v1181_v3 = vmul.f32 %v1176_v55, %v9991_v39  ;;  %v2730_v5 = vld [vmem:[%s13664_s8 + $0x8] sm:$0xff] }
  0xee   : > { %v9192_v2 = vpop.eup %9191  ;;  %v1201_v4 = vmul.f32 %v1196_v56, %v10008_v54  ;;  %v1218_v6 = vrot.slane %v1208_v26, %v9858_v11  ;;  %v1225_v16 = vmul.f32 %v1176_v55, %v9988_v37  ;;  %9197 = vrsqrt.f32 %v993_v63 }
  0xef   : > { %v987_v18 = vmul.f32 %v9192_v2, %v9963_v10  ;;  %v10045_v19 = vadd.f32 %v1119_v0, %v1117_v58  ;;  %v10047_v23 = vadd.f32 %v1139_v1, %v1137_v22  ;;  %vm983_vm7 = vcmp.eq.f32.partialorder %v10017_v32, 0.0  ;;  %2738 = vperm.xlu0 %9188, %v2730_v5  }
  0xf0   : > { %v1203_v24 = vsub.f32 %v1181_v3, %v1201_v4  ;;  %v1223_v25 = vmul.f32 %v1218_v6, %v10008_v54  ;;  %v1229_v27 = vmul.f32 %v1196_v56, %v9988_v37  ;;  %v1231_v28 = vmul.f32 %v1218_v6, %v9991_v39  ;;  %v9194_v30 = vpop.eup %9193 }
  0xf1   : > { %v989_v31 = vsel %vm988_vm0, %v9963_v10, %v987_v18  ;;  %v984_v34 = vand.u32 2147483648, %v10017_v32  ;;  %v1302_v40 = vrot.slane %v9928_v48, 7  ;;  %v10067_v55 = vmul.f32 %v9194_v30, %v9911_v41  ;;  %vm11020_vm0 = vmpackc.low %vm3484_vm14, %vm9462_vm15 }
  0xf2   : > { %v10064_v53 = vsel %vm990_vm4, %v991_v60, %v989_v31  ;;  %v10070_v56 = vmul.f32 %v9194_v30, %v9915_v44  ;;  %v10073_v26 = vmul.f32 %v9194_v30, %v9930_v49  ;;  %v1227_v57 = vsub.f32 %v1223_v25, %v1225_v16 }
  0xf3   : > { %v1309_v33 = vsel %vm1268_vm1, %v1308_v21, %v10064_v53  ;;  %v1233_v58 = vsub.f32 %v1229_v27, %v1231_v28  ;;  %v1235_v10 = vmul.f32 %v1203_v24, %v9928_v48  ;;  %v1034_v15 = vmul.f32 %v9919_v45, %v10067_v55 }
  0xf4   : > { %v1036_v22 = vmul.f32 %v9923_v46, %v10070_v56  ;;  %v1038_v60 = vmul.f32 %v9936_v51, %v10073_v26  ;;  %v1124_v21 = vmul.f32 %v10067_v55, %v9903_v36  ;;  %v1126_v63 = vmul.f32 %v10070_v56, %v9907_v38 }
  0xf5   : > { %v1128_v0 = vmul.f32 %v10073_v26, %v9926_v47  ;;  %v1311_v1 = vsel %vm1271_vm2, %v1310_v29, %v1309_v33  ;;  %v1237_v2 = vmul.f32 %v1227_v57, %v9961_v9  ;;  %v1239_v16 = vmul.f32 %v1233_v58, %v9967_v17  ;;  %v2807_v29 = vld [vmem:[%s13666_s10] sm:$0xff] }
  0xf6   : > { %v9196_v3 = vpop.eup %9195  ;;  %v1041_v4 = vadd.f32 %v1036_v22, %v1034_v15  ;;  %v10100_v6 = vsel %vm1274_vm3, %v1312_v62, %v1311_v1  ;;  %v1304_v18 = vrot.slane %v9961_v9, 6  ;;  %v1131_v24 = vadd.f32 %v1126_v63, %v1124_v21  ;;  %2811 = vperm.xlu0 %9188, %v2807_v29  }
  0xf7   : > { %v1625_v25 = vrot.slane %v10100_v6, 1  ;;  %v980_v27 = vmul.f32 %v9196_v3, %v10017_v32  ;;  %v1241_v28 = vadd.f32 %v1237_v2, %v1235_v10  ;;  %v1306_v62 = vrot.slane %v9967_v17, 5  ;;  %v4699_v3 = vld [vmem:[%s13672_s16 + $0x8] sm:$0xff] }
  0xf8   : > { %v10109_v30 = vadd.f32 %v1041_v4, %v1038_v60  ;;  %v1350_v31 = vrot.slane %v10064_v53, 1  ;;  %v1352_v42 = vrot.slane %v9915_v44, 7  ;;  %v9198_v33 = vpop.eup %9197  ;;  %v10114_v57 = vadd.f32 %v1131_v24, %v1128_v0 }
  0xf9   : > { %8801 = vmatprep.subr.msk.mxu1 %vm1647_vm5, %v1625_v25  ;;  %v982_v58 = vsel %vm981_vm6, %v10017_v32, %v980_v27  ;;  %v10120_v10 = vadd.f32 %v1241_v28, %v1239_v16  ;;  %v1354_v5 = vrot.slane %v9930_v49, 6  ;;  %v10137_v2 = vmul.f32 %v9198_v33, %v9928_v48 }
  0xfa   : > { %v1044_v15 = vmul.f32 %v10109_v30, %v10067_v55  ;;  %v1046_v22 = vmul.f32 %v10109_v30, %v10070_v56  ;;  %v1048_v60 = vmul.f32 %v10109_v30, %v10073_v26  ;;  %v1288_v21 = vrot.slane %v10109_v30, 7  ;;  %4707 = vperm.xlu0 %9188, %v4699_v3  }
  0xfb   : > { %v13688_v63 = vrot.slane %v10114_v57, 6  ;;  %v13691_v0 = vrot.slane %v10114_v57, 4  ;;  %v10134_v1 = vsel %vm983_vm7, %v984_v34, %v982_v58  ;;  %v10157_v25 = vmul.f32 %v9198_v33, %v9961_v9 }
  0xfc   : > { %v10143_v4 = vsub.f32 %v9919_v45, %v1044_v15  ;;  %v10146_v16 = vsub.f32 %v9923_v46, %v1046_v22  ;;  %v10149_v24 = vsub.f32 %v9936_v51, %v1048_v60  ;;  %v1289_v32 = vsel %vm1268_vm1, %v1288_v21, %v9965_v14  ;;  %v8440_v60 = vld [vmem:[%s14008_s18] sm:$0xff] }
  0xfd   : > { %v1291_v34 = vsel %vm1271_vm2, %v13688_v63, %v1289_v32  ;;  %v10160_v45 = vmul.f32 %v9198_v33, %v9967_v17  ;;  %v1033_v46 = vmul.f32 %v9997_v43, %v10137_v2  ;;  %v1035_v58 = vmul.f32 %v10001_v50, %v10157_v25 }
  0xfe   : > { %v1056_v51 = vmul.f32 %v10143_v4, %v10143_v4  ;;  %v1058_v27 = vmul.f32 %v10146_v16, %v10146_v16  ;;  %v1060_v28 = vmul.f32 %v10149_v24, %v10149_v24  ;;  %v1293_v29 = vsel %vm1274_vm3, %v1292_v61, %v1291_v34  ;;  %8444 = vperm.xlu0 %9188, %v8440_v60  }
  0xff   : > { %v10176_v33 = vsel %vm1277_vm8, %v13691_v0, %v1293_v29  ;;  %v1037_v15 = vmul.f32 %v10005_v52, %v10160_v45  ;;  %v1123_v22 = vmul.f32 %v10137_v2, %v9988_v37  ;;  %v1125_v21 = vmul.f32 %v10157_v25, %v9991_v39 }
 0x100   : > { %v1063_v61 = vadd.f32 %v1058_v27, %v1056_v51  ;;  %v1127_v3 = vmul.f32 %v10160_v45, %v10008_v54  ;;  %v1346_v32 = vrot.slane %v9961_v9, 7  ;;  %v1039_v34 = vadd.f32 %v1035_v58, %v1033_v46 }
 0x101   : > { %v1303_v29 = vsel %vm1268_vm1, %v1302_v40, %v10134_v1  ;;  %v1351_v63 = vsel %vm1268_vm1, %v9911_v41, %v1350_v31  ;;  %v1344_v13 = vrot.slane %v10134_v1, 1  ;;  %v1129_v27 = vadd.f32 %v1125_v21, %v1123_v22 }
 0x102   : > { %v1064_v51 = vadd.f32 %v1063_v61, %v1060_v28  ;;  %v1305_v0 = vsel %vm1271_vm2, %v1304_v18, %v1303_v29  ;;  %v1353_v35 = vsel %vm1271_vm2, %v1352_v42, %v1351_v63  ;;  %v10201_v7 = vadd.f32 %v1039_v34, %v1037_v15  ;;  %v10217_v18 = vld [vmem:[%s14010_s24] sm:$0xff] }
 0x103   : > { %v10204_v46 = vsel %vm1274_vm3, %v1306_v62, %v1305_v0  ;;  %v10207_v58 = vsel %vm1274_vm3, %v1354_v5, %v1353_v35  ;;  %v1345_v40 = vsel %vm1268_vm1, %v9928_v48, %v1344_v13  ;;  %v10211_v12 = vadd.f32 %v1129_v27, %v1127_v3 }
 0x104   : > { %14009 = vst [vmem:[#allocation23_spill] sm:$0xff] %v10207_v58  ;;  %v1066_v31 = vmax.f32 %v1064_v51, 1e-24  ;;  %v1624_v28 = vrot.slane %v10204_v46, 1  ;;  %v1627_v42 = vrot.slane %v10207_v58, 1  ;;  %v1043_v62 = vmul.f32 %v10201_v7, %v10137_v2 }
 0x105   : > { %v1045_v35 = vmul.f32 %v10201_v7, %v10157_v25  ;;  %v1047_v13 = vmul.f32 %v10201_v7, %v10160_v45  ;;  %v1267_v5 = vrot.slane %v10201_v7, 7  ;;  %v13696_v63 = vrot.slane %v10211_v12, 6 }
 0x106   : > { %9199 = vrsqrt.f32 %v1066_v31  ;;  %v13697_v0 = vrot.slane %v10211_v12, 4  ;;  %8802 = vmatpush1.msk.msra.mxu1 %vm1647_vm5, %v1624_v28  ;;  %v1347_v15 = vsel %vm1271_vm2, %v1346_v32, %v1345_v40  ;;  %v10232_v22 = vsub.f32 %v9997_v43, %v1043_v62 }
 0x107   : > { %v10235_v60 = vsub.f32 %v10001_v50, %v1045_v35  ;;  %v10238_v61 = vsub.f32 %v10005_v52, %v1047_v13  ;;  %v1269_v21 = vsel %vm1268_vm1, %v1267_v5, %v10045_v19  ;;  %8803 = vmatmul.mubr.msk.f32.vlgmr.msra.gmra.mrb[0].mxu1 %vm1640_vm9, %v10217_v18  ;;  %v14011_v43 = vmov 0.0   ;;  %v10252_v50 = vld [vmem:[%s14010_s24 + $0x8] sm:$0xff]  ;;  %8805 = vmatprep.subr.msk.mxu1 %vm1647_vm5, %v1627_v42 }
 0x108   : > { %v1272_v32 = vsel %vm1271_vm2, %v13696_v63, %v1269_v21  ;;  %1750 = vmatprep.mubr.f32.mxu1 %v14011_v43  ;;  %v1348_v52 = vrot.slane %v9967_v17, 6  ;;  %v1536_v34 = vrot.slane %v9965_v14, 6  ;;  %v1055_v29 = vmul.f32 %v10232_v22, %v10232_v22 }
 0x109   : > { %v1057_v51 = vmul.f32 %v10235_v60, %v10235_v60  ;;  %v1059_v27 = vmul.f32 %v10238_v61, %v10238_v61  ;;  %v14012_v40 = vrot.slane %v10047_v23, 5  ;;  %v1537_v62 = vrot.slane %v10109_v30, 5 }
 0x10a   : > { %v10272_v42 = vsel %vm1274_vm3, %v1348_v52, %v1347_v15  ;;  %v1540_v35 = vrot.slane %v9972_v20, 3  ;;  %v1558_v15 = vrot.slane %v9915_v44, 4  ;;  %v1560_v52 = vrot.slane %v9930_v49, 3 }
 0x10b   : > { %v1275_v31 = vsel %vm1274_vm3, %v14012_v40, %v1272_v32  ;;  %14013 = vst [vmem:[#allocation24_spill] sm:$0xff] %v10272_v42  ;;  %v1061_v13 = vadd.f32 %v1057_v51, %v1055_v29  ;;  %8804 = vmatmul.mubr.msk.f32.gmra.mrb[2].mxu1 %vm1640_vm9, %v10252_v50  ;;  %v1626_v5 = vrot.slane %v10272_v42, 1  ;;  %v1555_v32 = vrot.slane %v10064_v53, 6 }
 0x10c   : > { %v10269_v28 = vsel %vm1277_vm8, %v13697_v0, %v1275_v31  ;;  %v1538_v40 = vsel %vm1268_vm1, %v1537_v62, %v1536_v34  ;;  %v1556_v31 = vrot.slane %v9911_v41, 5  ;;  %1821 = vmatprep.mubr.f32.mxu1 %v14011_v43  ;;  %v14014_v51 = vrot.slane %v10114_v57, 4 }
 0x10d   : > { %v1062_v29 = vadd.f32 %v1061_v13, %v1059_v27  ;;  %8806 = vmatpush1.msk.msra.mxu1 %vm1647_vm5, %v1626_v5  ;;  %v1438_v3 = vrot.slane %v10045_v19, 4  ;;  %v1439_v0 = vrot.slane %v10201_v7, 3  ;;  %v1441_v21 = vrot.slane %v10211_v12, 2 }
 0x10e   : > { %v1539_v63 = vsel %vm1271_vm2, %v14014_v51, %v1538_v40  ;;  %v1557_v62 = vsel %vm1268_vm1, %v1556_v31, %v1555_v32  ;;  %v1524_v11 = vrot.slane %v10045_v19, 6  ;;  %v14015_v27 = vrot.slane %v10114_v57, 2 }
 0x10f   : > { %v1541_v34 = vsel %vm1274_vm3, %v1540_v35, %v1539_v63  ;;  %v1065_v8 = vmax.f32 %v1062_v29, 1e-24  ;;  %v1559_v5 = vsel %vm1271_vm2, %v1558_v15, %v1557_v62  ;;  %v1440_v40 = vsel %vm1268_vm1, %v1439_v0, %v1438_v3  ;;  %8807 = vmatmul.mubr.msk.f32.vlgmr.msra.gmra.mrb[4].mxu1 %vm1640_vm9, %v10217_v18 }
 0x110   : > { %v10299_v13 = vsel %vm1277_vm8, %v14015_v27, %v1541_v34  ;;  %v9200_v63 = vpop.eup %9199  ;;  %v10307_v32 = vsel %vm1274_vm3, %v1560_v52, %v1559_v5  ;;  %v10310_v31 = vsel %vm1271_vm2, %v1441_v21, %v1440_v40  ;;  %v1525_v29 = vrot.slane %v10201_v7, 5  ;;  %1827 = vmatprep.mubr.f32.mxu1 %v14011_v43 }
 0x111   : > { %14016 = vst [vmem:[#allocation25_spill] sm:$0xff] %v10310_v31  ;;  %v1070_v15 = vmul.f32 %v9200_v63, %v10143_v4  ;;  %v1072_v0 = vmul.f32 %v9200_v63, %v10146_v16  ;;  %v1074_v3 = vmul.f32 %v9200_v63, %v10149_v24  ;;  %9201 = vrsqrt.f32 %v1065_v8 }
 0x112   : > { %v1637_v51 = vrot.slane %v10307_v32, 1  ;;  %v1526_v52 = vsel %vm1268_vm1, %v1525_v29, %v1524_v11  ;;  %v1528_v34 = vrot.slane %v10047_v23, 3  ;;  %v1548_v62 = vrot.slane %v10134_v1, 6 }
 0x113   : > { %v1076_v27 = vmul.f32 %v1074_v3, %v10070_v56  ;;  %v1078_v5 = vmul.f32 %v1072_v0, %v10073_v26  ;;  %v1082_v4 = vmul.f32 %v1070_v15, %v10073_v26  ;;  %v1084_v16 = vmul.f32 %v1074_v3, %v10067_v55  ;;  %8808 = vmatmul.mubr.msk.f32.gmra.mrb[6].mxu1 %vm1640_vm9, %v10252_v50 }
 0x114   : > { %v1088_v8 = vmul.f32 %v1072_v0, %v10067_v55  ;;  %v1090_v24 = vmul.f32 %v1070_v15, %v10070_v56  ;;  %v1144_v11 = vmul.f32 %v1070_v15, %v9903_v36  ;;  %v1146_v40 = vmul.f32 %v1072_v0, %v9907_v38  ;;  %8825 = vmatprep.subr.msk.mxu0 %vm1647_vm5, %v1637_v51 }
 0x115   : > { %v10332_v63 = vsub.f32 %v1076_v27, %v1078_v5  ;;  %v10334_v29 = vsub.f32 %v1082_v4, %v1084_v16  ;;  %v1148_v26 = vmul.f32 %v1074_v3, %v9926_v47  ;;  %v14017_v35 = vrot.slane %v10211_v12, 4  ;;  %1898 = vmatprep.mubr.f32.mxu1 %v14011_v43 }
 0x116   : > { %v10341_v56 = vsub.f32 %v1088_v8, %v1090_v24  ;;  %v1151_v15 = vadd.f32 %v1146_v40, %v1144_v11  ;;  %v1549_v51 = vrot.slane %v9928_v48, 5  ;;  %v1553_v16 = vrot.slane %v9967_v17, 3  ;;  %v1606_v8 = vld [vmem:[%s9820_s17 + $0x10] sm:$0xff] }
 0x117   : > { %v1527_v55 = vsel %vm1271_vm2, %v14017_v35, %v1526_v52  ;;  %v1094_v27 = vmul.f32 %v10332_v63, %v10332_v63  ;;  %v1096_v3 = vmul.f32 %v10334_v29, %v10334_v29  ;;  %v1551_v35 = vrot.slane %v9961_v9, 4  ;;  %v1614_v24 = vld [vmem:[%s9820_s17 + $0x50] sm:$0xff] }
 0x118   : > { %v1529_v0 = vsel %vm1274_vm3, %v1528_v34, %v1527_v55  ;;  %v1098_v52 = vmul.f32 %v10341_v56, %v10341_v56  ;;  %v10355_v4 = vadd.f32 %v1151_v15, %v1148_v26  ;;  %v1550_v34 = vsel %vm1268_vm1, %v1549_v51, %v1548_v62 }
 0x119   : > { %v10350_v5 = vsel %vm1277_vm8, %v1441_v21, %v1529_v0  ;;  %v1101_v11 = vadd.f32 %v1096_v3, %v1094_v27  ;;  %v1552_v40 = vsel %vm1271_vm2, %v1551_v35, %v1550_v34  ;;  %v1390_v55 = vrot.slane %v10064_v53, 2 }
 0x11a   : > { %v1391_v21 = vrot.slane %v9911_v41, 1  ;;  %v1296_v0 = vrot.slane %v10355_v4, 3  ;;  %v1543_v42 = vrot.slane %v10355_v4, 1  ;;  %v10367_v26 = vsel %vm1274_vm3, %v1553_v16, %v1552_v40 }
 0x11b   : > { %14018 = vst [vmem:[#allocation26_spill] sm:$0xff] %v10367_v26  ;;  %v1394_v62 = vrot.slane %v9930_v49, 7  ;;  %v9202_v15 = vpop.eup %9201  ;;  %v1102_v51 = vadd.f32 %v1101_v11, %v1098_v52  ;;  %v1636_v58 = vrot.slane %v10367_v26, 1  ;;  %v8838_v3 = vcombine.low %v1606_v8, %v1614_v24 }
 0x11c   : > { %v1392_v27 = vsel %vm1268_vm1, %v1391_v21, %v1390_v55  ;;  %v10374_v35 = vsel %vm1280_vm10, %v1296_v0, %v10176_v33  ;;  %v1069_v34 = vmul.f32 %v9202_v15, %v10232_v22  ;;  %v1071_v31 = vmul.f32 %v9202_v15, %v10235_v60 }
 0x11d   : > { %v1073_v16 = vmul.f32 %v9202_v15, %v10238_v61  ;;  %v1104_v40 = vmax.f32 %v1102_v51, 1e-24  ;;  %v10381_v52 = vsel %vm1280_vm10, %v1543_v42, %v10299_v13  ;;  %8826 = vmatpush1.msk.msra.mxu0 %vm1647_vm5, %v1636_v58  ;;  %v1393_v11 = vsel %vm1271_vm2, %v9915_v44, %v1392_v27 }
 0x11e   : > { %v8839_v55 = vcombine.high %v1606_v8, %v1614_v24  ;;  %v1077_v21 = vmul.f32 %v1071_v31, %v10160_v45  ;;  %v1081_v22 = vmul.f32 %v1069_v34, %v10160_v45  ;;  %8827 = vmatmul.mubr.msk.f32.vlgmr.msra.gmra.mrb[0].mxu0 %vm1640_vm9, %v10217_v18  ;;  %v1087_v61 = vmul.f32 %v1071_v31, %v10137_v2 }
 0x11f   : > { %v1075_v33 = vmul.f32 %v1073_v16, %v10157_v25  ;;  %v1083_v60 = vmul.f32 %v1073_v16, %v10137_v2  ;;  %9203 = vrsqrt.f32 %v1104_v40  ;;  %v1089_v58 = vmul.f32 %v1069_v34, %v10157_v25  ;;  %2212 = vmatprep.mubr.f32.mxu0 %v14011_v43 }
 0x120   : > { %v1143_v42 = vmul.f32 %v1069_v34, %v9988_v37  ;;  %2471 = vmatprep.subr.bf16.mxu0 %v8839_v55  ;;  %v1145_v45 = vmul.f32 %v1071_v31, %v9991_v39  ;;  %v1147_v24 = vmul.f32 %v1073_v16, %v10008_v54  ;;  %v10405_v2 = vsel %vm1274_vm3, %v1394_v62, %v1393_v11 }
 0x121   : > { %v10396_v13 = vsub.f32 %v1075_v33, %v1077_v21  ;;  %v10398_v8 = vsub.f32 %v1081_v22, %v1083_v60  ;;  %2472 = vmatpush1.bf16.msra.mxu0 %v8838_v3  ;;  %v10402_v0 = vsub.f32 %v1087_v61, %v1089_v58  ;;  %v1384_v25 = vrot.slane %v10134_v1, 2  ;;  %v10416_v3 = vld [vmem:[#allocation7] sm:$0xff]  }
 0x122   : > { %v1385_v15 = vrot.slane %v9928_v48, 1  ;;  %v1149_v34 = vadd.f32 %v1145_v45, %v1143_v42  ;;  %v1629_v31 = vrot.slane %v10405_v2, 1  ;;  %8828 = vmatmul.mubr.msk.f32.gmra.mrb[2].mxu0 %vm1640_vm9, %v10252_v50  ;;  %v1388_v40 = vrot.slane %v9967_v17, 7 }
 0x123   : > { %v1093_v51 = vmul.f32 %v10396_v13, %v10396_v13  ;;  %v1095_v27 = vmul.f32 %v10398_v8, %v10398_v8  ;;  %v1097_v62 = vmul.f32 %v10402_v0, %v10402_v0  ;;  %v14019_v11 = vmov 0  }
 0x124   : > { %v1386_v16 = vsel %vm1268_vm1, %v1385_v15, %v1384_v25  ;;  %2503 = vmatprep.mubr.bf16.mxu0 %v14019_v11  ;;  %v1430_v55 = vrot.slane %v10064_v53, 3  ;;  %v10424_v21 = vadd.f32 %v1149_v34, %v1147_v24  ;;  %8809 = vmatprep.subr.msk.mxu1 %vm1647_vm5, %v1629_v31  ;;  %v1431_v60 = vrot.slane %v9911_v41, 2 }
 0x125   : > { %v1099_v33 = vadd.f32 %v1095_v27, %v1093_v51  ;;  %v1387_v22 = vsel %vm1271_vm2, %v9961_v9, %v1386_v16  ;;  %v1433_v58 = vrot.slane %v9915_v44, 1  ;;  %v1424_v42 = vrot.slane %v10134_v1, 3 }
 0x126   : > { %v10431_v61 = vsel %vm1274_vm3, %v1388_v40, %v1387_v22  ;;  %v1425_v45 = vrot.slane %v9928_v48, 2  ;;  %v1279_v24 = vrot.slane %v10424_v21, 3  ;;  %v1531_v15 = vrot.slane %v10424_v21, 1  ;;  %8852 = vmatmul.mubr.msk.bf16.vlgmr.msra.gmra.mrb[4].mxu0 %vm2381_vm11, %v10416_v3 }
 0x127   : > { %v1100_v25 = vadd.f32 %v1099_v33, %v1097_v62  ;;  %v1628_v51 = vrot.slane %v10431_v61, 1  ;;  %v1432_v27 = vsel %vm1268_vm1, %v1431_v60, %v1430_v55  ;;  %v1427_v31 = vrot.slane %v9961_v9, 1  ;;  %2589 = vmatprep.mubr.bf16.mxu0 %v14019_v11 }
 0x128   : > { %v1426_v34 = vsel %vm1268_vm1, %v1425_v45, %v1424_v42  ;;  %v1473_v16 = vrot.slane %v10064_v53, 4  ;;  %v10448_v40 = vsel %vm1280_vm10, %v1279_v24, %v10269_v28  ;;  %v10452_v33 = vsel %vm1280_vm10, %v1531_v15, %v10350_v5  ;;  %v1608_v24 = vld [vmem:[%s9820_s17 + $0x20] sm:$0xff] }
 0x129   : > { %v1103_v62 = vmax.f32 %v1100_v25, 1e-24  ;;  %8810 = vmatpush1.msk.msra.mxu1 %vm1647_vm5, %v1628_v51  ;;  %v1434_v55 = vsel %vm1271_vm2, %v1433_v58, %v1432_v27  ;;  %v9204_v22 = vpop.eup %9203  ;;  %v1428_v28 = vsel %vm1271_vm2, %v1427_v31, %v1426_v34  ;;  %v1474_v5 = vrot.slane %v9911_v41, 3  ;;  %v1616_v15 = vld [vmem:[%s9820_s17 + $0x60] sm:$0xff] }
 0x12a   : > { %8811 = vmatmul.mubr.msk.f32.vlgmr.msra.gmra.mrb[8].mxu1 %vm1640_vm9, %v10217_v18  ;;  %v10460_v60 = vsel %vm1274_vm3, %v9930_v49, %v1434_v55  ;;  %v1476_v42 = vrot.slane %v9915_v44, 2  ;;  %v1108_v45 = vmul.f32 %v9204_v22, %v10332_v63  ;;  %v1110_v25 = vmul.f32 %v9204_v22, %v10334_v29 }
 0x12b   : > { %v1112_v58 = vmul.f32 %v9204_v22, %v10341_v56  ;;  %9205 = vrsqrt.f32 %v1103_v62  ;;  %1904 = vmatprep.mubr.f32.mxu1 %v14011_v43  ;;  %v1631_v51 = vrot.slane %v10460_v60, 1  ;;  %v10474_v27 = vsel %vm1274_vm3, %v9967_v17, %v1428_v28 }
 0x12c   : > { %v1475_v34 = vsel %vm1268_vm1, %v1474_v5, %v1473_v16  ;;  %v1478_v63 = vrot.slane %v9930_v49, 1  ;;  %v1154_v29 = vmul.f32 %v1108_v45, %v9903_v36  ;;  %v1156_v56 = vmul.f32 %v1110_v25, %v9907_v38 }
 0x12d   : > { %v1158_v31 = vmul.f32 %v1112_v58, %v9926_v47  ;;  %v1630_v62 = vrot.slane %v10474_v27, 1  ;;  %8813 = vmatprep.subr.msk.mxu1 %vm1647_vm5, %v1631_v51  ;;  %v1477_v55 = vsel %vm1271_vm2, %v1476_v42, %v1475_v34  ;;  %v8842_v22 = vcombine.low %v1608_v24, %v1616_v15 }
 0x12e   : > { %8812 = vmatmul.mubr.msk.f32.gmra.mrb[10].mxu1 %vm1640_vm9, %v10252_v50  ;;  %v8843_v28 = vcombine.high %v1608_v24, %v1616_v15  ;;  %v1466_v16 = vrot.slane %v10134_v1, 4  ;;  %v1161_v5 = vadd.f32 %v1156_v56, %v1154_v29  ;;  %v10490_v36 = vsel %vm1274_vm3, %v1478_v63, %v1477_v55 }
 0x12f   : > { %8814 = vmatpush1.msk.msra.mxu1 %vm1647_vm5, %v1630_v62  ;;  %1975 = vmatprep.mubr.f32.mxu1 %v14011_v43  ;;  %v1467_v38 = vrot.slane %v9928_v48, 3  ;;  %v1469_v47 = vrot.slane %v9961_v9, 2  ;;  %v1633_v45 = vrot.slane %v10490_v36, 1  ;;  %v1471_v42 = vrot.slane %v9967_v17, 1 }
 0x130   : > { %2557 = vmatprep.subr.bf16.mxu0 %v8843_v28  ;;  %v1515_v25 = vrot.slane %v10064_v53, 5  ;;  %v1516_v58 = vrot.slane %v9911_v41, 4  ;;  %v10498_v24 = vadd.f32 %v1161_v5, %v1158_v31  ;;  %v1518_v51 = vrot.slane %v9915_v44, 3 }
 0x131   : > { %v1468_v15 = vsel %vm1268_vm1, %v1467_v38, %v1466_v16  ;;  %2558 = vmatpush1.bf16.msra.mxu0 %v8842_v22  ;;  %v1520_v34 = vrot.slane %v9930_v49, 2  ;;  %8817 = vmatprep.subr.msk.mxu1 %vm1647_vm5, %v1633_v45  ;;  %v1508_v56 = vrot.slane %v10134_v1, 5  ;;  %v1509_v31 = vrot.slane %v9928_v48, 4 }
 0x132   : > { %8815 = vmatmul.mubr.msk.f32.vlgmr.msra.gmra.mrb[12].mxu1 %vm1640_vm9, %v10217_v18  ;;  %v1470_v63 = vsel %vm1271_vm2, %v1469_v47, %v1468_v15  ;;  %v1517_v29 = vsel %vm1268_vm1, %v1516_v58, %v1515_v25  ;;  %v1298_v62 = vrot.slane %v10498_v24, 2  ;;  %v1545_v55 = vsel %vm1283_vm12, %v10498_v24, %v10381_v52 }
 0x133   : > { %1981 = vmatprep.mubr.f32.mxu1 %v14011_v43  ;;  %v10516_v22 = vsel %vm1274_vm3, %v1471_v42, %v1470_v63  ;;  %v1519_v28 = vsel %vm1271_vm2, %v1518_v51, %v1517_v29  ;;  %v14020_v16 = vrot.slane %v10025_v59, 7  ;;  %v1510_v52 = vsel %vm1268_vm1, %v1509_v31, %v1508_v56 }
 0x134   : > { %v1632_v38 = vrot.slane %v10516_v22, 1  ;;  %8854 = vmatmul.mubr.msk.bf16.vlgmr.msra.gmra.mrb[8].mxu0 %vm2381_vm11, %v10416_v3  ;;  %v10528_v47 = vsel %vm1274_vm3, %v1520_v34, %v1519_v28  ;;  %v1299_v42 = vsel %vm1283_vm12, %v1298_v62, %v10374_v35  ;;  %v1511_v15 = vrot.slane %v9961_v9, 3 }
 0x135   : > { %v10522_v5 = vsel %vm1286_vm13, %v14020_v16, %v1545_v55  ;;  %14022 = vst [vmem:[#allocation28_spill] sm:$0xff] %v10528_v47  ;;  %v9206_v45 = vpop.eup %9205  ;;  %v1635_v58 = vrot.slane %v10528_v47, 1  ;;  %2675 = vmatprep.mubr.bf16.mxu0 %v14019_v11  ;;  %v14023_v51 = vrot.slane %v10025_v59, 1  ;;  %v1513_v62 = vrot.slane %v9967_v17, 2 }
 0x136   : > { %14021 = vst [vmem:[#allocation27_spill] sm:$0xff] %v10522_v5  ;;  %v1107_v63 = vmul.f32 %v9206_v45, %v10396_v13  ;;  %v1109_v29 = vmul.f32 %v9206_v45, %v10398_v8  ;;  %v1111_v35 = vmul.f32 %v9206_v45, %v10402_v0  ;;  %8816 = vmatmul.mubr.msk.f32.gmra.mrb[14].mxu1 %vm1640_vm9, %v10252_v50  ;;  %v1595_v13 = vrot.slane %v10064_v53, 7 }
 0x137   : > { %v10541_v34 = vsel %vm1286_vm13, %v14023_v51, %v1299_v42  ;;  %8818 = vmatpush1.msk.msra.mxu1 %vm1647_vm5, %v1632_v38  ;;  %2052 = vmatprep.mubr.f32.mxu1 %v14011_v43  ;;  %v1512_v31 = vsel %vm1271_vm2, %v1511_v15, %v1510_v52  ;;  %v1596_v28 = vrot.slane %v9911_v41, 6  ;;  %v1598_v38 = vrot.slane %v9915_v44, 5  ;;  %v1618_v42 = vld [vmem:[%s9820_s17 + $0x70] sm:$0xff] }
 0x138   : > { %v1153_v8 = vmul.f32 %v1107_v63, %v9988_v37  ;;  %v1155_v0 = vmul.f32 %v1109_v29, %v9991_v39  ;;  %v1157_v55 = vmul.f32 %v1111_v35, %v10008_v54  ;;  %8821 = vmatprep.subr.msk.mxu1 %vm1647_vm5, %v1635_v58  ;;  %v10561_v16 = vsel %vm1274_vm3, %v1513_v62, %v1512_v31  ;;  %v1610_v54 = vld [vmem:[%s9820_s17 + $0x30] sm:$0xff]  ;;  %v1604_v31 = vld [vmem:[%s9820_s17] sm:$0xff] }
 0x139   : > { %14024 = vst [vmem:[#allocation29_spill] sm:$0xff] %v10561_v16  ;;  %v1600_v52 = vrot.slane %v9930_v49, 4  ;;  %v1588_v53 = vrot.slane %v10134_v1, 7  ;;  %v1634_v37 = vrot.slane %v10561_v16, 1  ;;  %v1597_v39 = vsel %vm1268_vm1, %v1596_v28, %v1595_v13  ;;  %v1612_v62 = vld [vmem:[%s9820_s17 + $0x40] sm:$0xff] }
 0x13a   : > { %v1159_v45 = vadd.f32 %v1155_v0, %v1153_v8  ;;  %8819 = vmatmul.mubr.msk.f32.vlgmr.msra.gmra.mrb[16].mxu1 %vm1640_vm9, %v10217_v18  ;;  %v1589_v41 = vrot.slane %v9928_v48, 6  ;;  %v1534_v44 = vrot.slane %v10120_v10, 7  ;;  %v1599_v49 = vsel %vm1271_vm2, %v1598_v38, %v1597_v39 }
 0x13b   : > { %2058 = vmatprep.mubr.f32.mxu1 %v14011_v43  ;;  %v1591_v1 = vrot.slane %v9961_v9, 5  ;;  %v1593_v58 = vrot.slane %v9967_v17, 4  ;;  %v1285_v51 = vrot.slane %v10120_v10, 1  ;;  %8822 = vmatpush1.msk.msra.mxu1 %vm1647_vm5, %v1634_v37  ;;  %v10583_v48 = vsel %vm1274_vm3, %v1600_v52, %v1599_v49  ;;  %v1613_v37 = vld [vmem:[%s9820_s17 + $0x48] sm:$0xff] }
 0x13c   : > { %v10578_v15 = vadd.f32 %v1159_v45, %v1157_v55  ;;  %14025 = vst [vmem:[#allocation30_spill] sm:$0xff] %v10583_v48  ;;  %v1590_v63 = vsel %vm1268_vm1, %v1589_v41, %v1588_v53  ;;  %v1639_v29 = vrot.slane %v10583_v48, 1  ;;  %v8846_v9 = vcombine.low %v1610_v54, %v1618_v42 }
 0x13d   : > { %v1592_v35 = vsel %vm1271_vm2, %v1591_v1, %v1590_v63  ;;  %v8847_v13 = vcombine.high %v1610_v54, %v1618_v42  ;;  %v8835_v52 = vcombine.high %v1604_v31, %v1612_v62  ;;  %v8834_v39 = vcombine.low %v1604_v31, %v1612_v62  ;;  %v1607_v54 = vld [vmem:[%s9820_s17 + $0x18] sm:$0xff]  ;;  %v1617_v1 = vld [vmem:[%s9820_s17 + $0x68] sm:$0xff] }
 0x13e   : > { %v1282_v17 = vrot.slane %v10578_v15, 2  ;;  %v1533_v8 = vsel %vm1283_vm12, %v10578_v15, %v10452_v33  ;;  %8820 = vmatmul.mubr.msk.f32.gmra.mrb[18].mxu1 %vm1640_vm9, %v10252_v50  ;;  %v10597_v0 = vsel %vm1274_vm3, %v1593_v58, %v1592_v35  ;;  %8829 = vmatprep.subr.msk.mxu1 %vm1647_vm5, %v1639_v29  ;;  %v1615_v42 = vld [vmem:[%s9820_s17 + $0x58] sm:$0xff]  ;;  %v1371_v62 = vrot.slane %v9965_v14, 2 }
 0x13f   : > { %14026 = vst [vmem:[#allocation31_spill] sm:$0xff] %v10597_v0  ;;  %v10600_v55 = vsel %vm1286_vm13, %v1534_v44, %v1533_v8  ;;  %2129 = vmatprep.mubr.f32.mxu1 %v14011_v43  ;;  %v1638_v28 = vrot.slane %v10597_v0, 1  ;;  %2643 = vmatprep.subr.bf16.mxu0 %v8847_v13  ;;  %v8841_v49 = vcombine.high %v1607_v54, %v1615_v42  ;;  %v1619_v63 = vld [vmem:[%s9820_s17 + $0x78] sm:$0xff]  ;;  %v1358_v13 = vrot.slane %v10045_v19, 2 }
 0x140   : > { %14027 = vst [vmem:[#allocation32_spill] sm:$0xff] %v10600_v55  ;;  %v1284_v33 = vsel %vm1283_vm12, %v1282_v17, %v10448_v40  ;;  %2644 = vmatpush1.bf16.msra.mxu0 %v8846_v9  ;;  %v1605_v40 = vld [vmem:[%s9820_s17 + $0x8] sm:$0xff]  ;;  %v8840_v58 = vcombine.low %v1607_v54, %v1615_v42  ;;  %v1372_v9 = vrot.slane %v10109_v30, 1  ;;  %v1359_v17 = vrot.slane %v10201_v7, 1 }
 0x141   : > { %v10610_v53 = vsel %vm1286_vm13, %v1285_v51, %v1284_v33  ;;  %v8837_v41 = vcombine.high %v1605_v40, %v1613_v37  ;;  %v8836_v44 = vcombine.low %v1605_v40, %v1613_v37  ;;  %v1378_v40 = vrot.slane %v10355_v4, 5 }
 0x142   : > { %8823 = vmatmul.mubr.msk.f32.vlgmr.msra.gmra.mrb[20].mxu1 %vm1640_vm9, %v10217_v18  ;;  %v1373_v8 = vsel %vm1268_vm1, %v1372_v9, %v1371_v62  ;;  %v1360_v33 = vsel %vm1268_vm1, %v1359_v17, %v1358_v13  ;;  %v1380_v42 = vrot.slane %v10498_v24, 4  ;;  %v1332_v9 = vrot.slane %v10114_v57, 7 }
 0x143   : > { %2135 = vmatprep.mubr.f32.mxu1 %v14011_v43  ;;  %8830 = vmatpush1.msk.msra.mxu1 %vm1647_vm5, %v1638_v28  ;;  %v1375_v28 = vrot.slane %v9972_v20, 7  ;;  %v1361_v37 = vsel %vm1271_vm2, %v10211_v12, %v1360_v33  ;;  %v1334_v17 = vrot.slane %v9972_v20, 6  ;;  %v1338_v33 = vrot.slane %v10355_v4, 4 }
 0x144   : > { %2385 = vmatprep.subr.bf16.mxu1 %v8835_v52  ;;  %8856 = vmatmul.mubr.msk.bf16.vlgmr.msra.gmra.mrb[12].mxu0 %vm2381_vm11, %v10416_v3  ;;  %v1412_v25 = vrot.slane %v10109_v30, 2  ;;  %v1496_v56 = vrot.slane %v10109_v30, 4  ;;  %v1504_v48 = vrot.slane %v10498_v24, 7  ;;  %v1506_v16 = vrot.slane %v10025_v59, 6 }
 0x145   : > { %2889 = vmatprep.mubr.f32.mxu0 %v14011_v43  ;;  %v1483_v55 = vrot.slane %v10201_v7, 4 }
 0x146   : > { %8824 = vmatmul.mubr.msk.f32.gmra.mrb[22].mxu1 %vm1640_vm9, %v10252_v50 }
 0x147   : > { %2283 = vmatprep.mubr.f32.mxu1 %v14011_v43 }
 0x14a   : > { %8831 = vmatmul.mubr.msk.f32.vlgmr.msra.gmra.mrb[24].mxu1 %vm1640_vm9, %v10217_v18  ;;  %v1609_v18 = vld [vmem:[%s9820_s17 + $0x28] sm:$0xff] }
 0x14b   : > { %2289 = vmatprep.mubr.f32.mxu1 %v14011_v43  ;;  %2386 = vmatpush1.bf16.msra.mxu1 %v8834_v39  ;;  %v8845_v51 = vcombine.high %v1609_v18, %v1617_v1  ;;  %v8844_v29 = vcombine.low %v1609_v18, %v1617_v1  ;;  %v1330_v39 = vrot.slane %v9965_v14, 1  ;;  %v1365_v1 = vrot.slane %v10424_v21, 5 }
 0x14c   : > { %2428 = vmatprep.subr.bf16.mxu1 %v8837_v41  ;;  %v14028_v41 = vrot.slane %v10114_v57, 6 }
 0x14d   : > { %v1331_v62 = vsel %vm1268_vm1, %v10109_v30, %v1330_v39  ;;  %v1452_v39 = vrot.slane %v9965_v14, 4 }
 0x14e   : > { %8832 = vmatmul.mubr.msk.f32.gmra.mrb[26].mxu1 %vm1640_vm9, %v10252_v50  ;;  %v1611_v50 = vld [vmem:[%s9820_s17 + $0x38] sm:$0xff] }
 0x14f   : > { %2417 = vmatprep.mubr.bf16.mxu1 %v14019_v11  ;;  %v8849_v35 = vcombine.high %v1611_v50, %v1619_v63  ;;  %v8848_v31 = vcombine.low %v1611_v50, %v1619_v63  ;;  %v1367_v63 = vrot.slane %v10578_v15, 4 }
 0x152   : > { %8850 = vmatmul.mubr.msk.bf16.vlgmr.msra.gmra.mrb[28].mxu1 %vm2381_vm11, %v10416_v3 }
 0x153   : > { %2429 = vmatpush1.bf16.msra.mxu1 %v8836_v44  ;;  %2460 = vmatprep.mubr.bf16.mxu1 %v14019_v11 }
 0x154   : > { %2514 = vmatprep.subr.bf16.mxu1 %v8841_v49  ;;  %v1382_v49 = vrot.slane %v10025_v59, 3 }
 0x15a   : > { %8851 = vmatmul.mubr.msk.bf16.vlgmr.msra.gmra.mrb[32].mxu1 %vm2381_vm11, %v10416_v3 }
 0x15b   : > { %2515 = vmatpush1.bf16.msra.mxu1 %v8840_v58  ;;  %2546 = vmatprep.mubr.bf16.mxu1 %v14019_v11 }
 0x15c   : > { %2600 = vmatprep.subr.bf16.mxu1 %v8845_v51  ;;  %v14029_v51 = vrot.slane %v10211_v12, 6 }
 0x162   : > { %8853 = vmatmul.mubr.msk.bf16.vlgmr.msra.gmra.mrb[36].mxu1 %vm2381_vm11, %v10416_v3 }
 0x163   : > { %2601 = vmatpush1.bf16.msra.mxu1 %v8844_v29  ;;  %2632 = vmatprep.mubr.bf16.mxu1 %v14019_v11  ;;  %v1369_v29 = vrot.slane %v10120_v10, 3 }
 0x164   : > { %2686 = vmatprep.subr.bf16.mxu1 %v8849_v35 }
 0x16a   : > { %8855 = vmatmul.mubr.msk.bf16.vlgmr.msra.gmra.mrb[40].mxu1 %vm2381_vm11, %v10416_v3 }
 0x16b   : > { %2687 = vmatpush1.bf16.msra.mxu1 %v8848_v31  ;;  %2718 = vmatprep.mubr.bf16.mxu1 %v14019_v11  ;;  %v1374_v11 = vsel %vm1271_vm2, %v10114_v57, %v1373_v8  ;;  %v13705_v8 = vrot.slane %v10114_v57, 5 }
 0x16c   : > { %v1376_v52 = vsel %vm1274_vm3, %v1375_v28, %v1374_v11  ;;  %v1333_v11 = vsel %vm1271_vm2, %v1332_v9, %v1331_v62  ;;  %v13704_v62 = vrot.slane %v10211_v12, 5 }
 0x16d   : > { %v1377_v54 = vsel %vm1277_vm8, %v14028_v41, %v1376_v52  ;;  %v1340_v52 = vrot.slane %v10498_v24, 3  ;;  %v1453_v41 = vrot.slane %v10109_v30, 3 }
 0x16e   : > { %v1379_v44 = vsel %vm1280_vm10, %v1378_v40, %v1377_v54  ;;  %v1342_v40 = vrot.slane %v10025_v59, 2  ;;  %v1457_v54 = vrot.slane %v9972_v20, 1 }
 0x16f   : > { %v1381_v58 = vsel %vm1283_vm12, %v1380_v42, %v1379_v44  ;;  %v1460_v44 = vrot.slane %v10355_v4, 7 }
 0x170   : > { %v10683_v35 = vsel %vm1286_vm13, %v1382_v49, %v1381_v58  ;;  %v1462_v49 = vrot.slane %v10498_v24, 6  ;;  %v1316_v58 = vrot.slane %v10045_v19, 1 }
 0x172   : > { %8857 = vmatmul.mubr.msk.bf16.vlgmr.msra.gmra.mrb[44].mxu1 %vm2381_vm11, %v10416_v3  ;;  %v1362_v3 = vrot.slane %v10047_v23, 7 }
 0x173   : > { %2966 = vmatprep.mubr.f32.mxu1 %v14011_v43 }
 0x174   : > { %v1363_v18 = vsel %vm1274_vm3, %v1362_v3, %v1361_v37  ;;  %v1335_v3 = vsel %vm1274_vm3, %v1334_v17, %v1333_v11  ;;  %v1464_v11 = vrot.slane %v10025_v59, 5 }
 0x175   : > { %v1364_v50 = vsel %vm1277_vm8, %v14029_v51, %v1363_v18  ;;  %v1337_v37 = vsel %vm1277_vm8, %v13705_v8, %v1335_v3  ;;  %v13706_v51 = vrot.slane %v10211_v12, 7  ;;  %v1324_v3 = vrot.slane %v10424_v21, 4 }
 0x176   : > { %v1366_v31 = vsel %vm1280_vm10, %v1365_v1, %v1364_v50  ;;  %v1339_v42 = vsel %vm1280_vm10, %v1338_v33, %v1337_v37  ;;  %v1454_v1 = vsel %vm1268_vm1, %v1453_v41, %v1452_v39  ;;  %v1317_v33 = vsel %vm1268_vm1, %v10201_v7, %v1316_v58 }
 0x177   : > { %v1368_v13 = vsel %vm1283_vm12, %v1367_v63, %v1366_v31  ;;  %v1341_v18 = vsel %vm1283_vm12, %v1340_v52, %v1339_v42  ;;  %v14030_v63 = vrot.slane %v10114_v57, 2  ;;  %v1320_v31 = vrot.slane %v10047_v23, 6 }
 0x178   : > { %v10693_v28 = vsel %vm1286_vm13, %v1369_v29, %v1368_v13  ;;  %v10716_v50 = vsel %vm1286_vm13, %v1342_v40, %v1341_v18  ;;  %v1319_v37 = vsel %vm1271_vm2, %v13706_v51, %v1317_v33  ;;  %v1326_v39 = vrot.slane %v10578_v15, 3 }
 0x179   : > { %v1456_v29 = vsel %vm1271_vm2, %v14030_v63, %v1454_v1  ;;  %v1328_v41 = vrot.slane %v10120_v10, 2  ;;  %v1321_v42 = vsel %vm1274_vm3, %v1320_v31, %v1319_v37  ;;  %v1443_v18 = vrot.slane %v10047_v23, 1 }
 0x17a   : > { %v1458_v17 = vsel %vm1274_vm3, %v1457_v54, %v1456_v29  ;;  %v1446_v1 = vrot.slane %v10424_v21, 7  ;;  %v1323_v63 = vsel %vm1277_vm8, %v13704_v62, %v1321_v42  ;;  %v1448_v29 = vrot.slane %v10578_v15, 6 }
 0x17b   : > { %v1459_v40 = vsel %vm1277_vm8, %v10114_v57, %v1458_v17  ;;  %v1450_v17 = vrot.slane %v10120_v10, 5  ;;  %v1325_v31 = vsel %vm1280_vm10, %v1324_v3, %v1323_v63  ;;  %v1414_v3 = vrot.slane %v10114_v57, 1 }
 0x17c   : > { %v1461_v54 = vsel %vm1280_vm10, %v1460_v44, %v1459_v40  ;;  %v14031_v40 = vld [vmem:[#allocation25_spill] sm:$0xff]  ;;  %v1327_v42 = vsel %vm1283_vm12, %v1326_v39, %v1325_v31  ;;  %v1418_v63 = vrot.slane %v10355_v4, 6 }
 0x17d   : > { %v1463_v58 = vsel %vm1283_vm12, %v1462_v49, %v1461_v54  ;;  %v1444_v37 = vsel %vm1274_vm3, %v1443_v18, %v14031_v40  ;;  %v1411_v49 = vrot.slane %v9965_v14, 3  ;;  %v10765_v45 = vsel %vm1286_vm13, %v1328_v41, %v1327_v42 }
 0x17e   : > { %v10752_v44 = vsel %vm1286_vm13, %v1464_v11, %v1463_v58  ;;  %v1445_v38 = vsel %vm1277_vm8, %v10211_v12, %v1444_v37  ;;  %v1420_v41 = vrot.slane %v10498_v24, 5  ;;  %v1398_v37 = vrot.slane %v10045_v19, 3 }
 0x17f   : > { %v1447_v11 = vsel %vm1280_vm10, %v1446_v1, %v1445_v38  ;;  %v1413_v58 = vsel %vm1268_vm1, %v1412_v25, %v1411_v49  ;;  %v1422_v25 = vrot.slane %v10025_v59, 4  ;;  %v1401_v49 = vrot.slane %v10211_v12, 1 }
 0x180   : > { %v1449_v18 = vsel %vm1283_vm12, %v1448_v29, %v1447_v11  ;;  %v1415_v31 = vsel %vm1271_vm2, %v1414_v3, %v1413_v58  ;;  %v1399_v29 = vrot.slane %v10201_v7, 2  ;;  %v1405_v42 = vrot.slane %v10424_v21, 6 }
 0x181   : > { %v10775_v39 = vsel %vm1286_vm13, %v1450_v17, %v1449_v18  ;;  %v1416_v1 = vsel %vm1274_vm3, %v9972_v20, %v1415_v31  ;;  %v1407_v11 = vrot.slane %v10578_v15, 5  ;;  %v1495_v31 = vrot.slane %v9965_v14, 5 }
 0x182   : > { %v1417_v17 = vsel %vm1277_vm8, %v1332_v9, %v1416_v1  ;;  %v1400_v58 = vsel %vm1268_vm1, %v1399_v29, %v1398_v37  ;;  %v1498_v9 = vrot.slane %v10114_v57, 3  ;;  %v1500_v1 = vrot.slane %v9972_v20, 2 }
 0x183   : > { %v1419_v18 = vsel %vm1280_vm10, %v1418_v63, %v1417_v17  ;;  %v1402_v51 = vsel %vm1271_vm2, %v1401_v49, %v1400_v58  ;;  %v1409_v29 = vrot.slane %v10120_v10, 4  ;;  %v1497_v17 = vsel %vm1268_vm1, %v1496_v56, %v1495_v31  ;;  %v3474_v56 = vld [vmem:[%s14033_s15] sm:$0xff]  ;;  %s14064_s15 = sld [smem:[#allocation281_spill]] }
 0x184   : > { %v1421_v8 = vsel %vm1283_vm12, %v1420_v41, %v1419_v18  ;;  %v1403_v37 = vsel %vm1274_vm3, %v10047_v23, %v1402_v51  ;;  %v14032_v41 = vrot.slane %v10211_v12, 7  ;;  %v1499_v58 = vsel %vm1271_vm2, %v1498_v9, %v1497_v17  ;;  %3477 = vperm.xlu1 %9189, %v3474_v56  }
 0x185   : > { %v10805_v63 = vsel %vm1286_vm13, %v1422_v25, %v1421_v8  ;;  %v1501_v25 = vsel %vm1274_vm3, %v1500_v1, %v1499_v58  ;;  %v1482_v51 = vrot.slane %v10045_v19, 5  ;;  %v1485_v17 = vrot.slane %v10211_v12, 3  ;;  %v4102_v58 = vld [vmem:[%s14034_s7] sm:$0xff]  ;;  %s13607_s7 = scalar_lea.hbm %s14568_s9, %s8931_s23 }
 0x186   : > { %v1404_v18 = vsel %vm1277_vm8, %v14032_v41, %v1403_v37  ;;  %v1502_v37 = vsel %vm1277_vm8, %v1414_v3, %v1501_v25  ;;  %v1487_v41 = vrot.slane %v10047_v23, 2  ;;  %v1493_v25 = vrot.slane %v10120_v10, 6 }
 0x187   : > { %v1406_v8 = vsel %vm1280_vm10, %v1405_v42, %v1404_v18  ;;  %v1503_v1 = vsel %vm1280_vm10, %v10355_v4, %v1502_v37  ;;  %v1484_v18 = vsel %vm1268_vm1, %v1483_v55, %v1482_v51  ;;  %v1577_v55 = vrot.slane %v10109_v30, 6 }
 0x188   : > { %v1408_v31 = vsel %vm1283_vm12, %v1407_v11, %v1406_v8  ;;  %v1505_v11 = vsel %vm1283_vm12, %v1504_v48, %v1503_v1  ;;  %v1486_v3 = vsel %vm1271_vm2, %v1485_v17, %v1484_v18  ;;  %v1491_v8 = vrot.slane %v10578_v15, 7  ;;  %4105 = vperm.xlu1 %9189, %v4102_v58  }
 0x189   : > { %v10829_v42 = vsel %vm1286_vm13, %v1409_v29, %v1408_v31  ;;  %v10842_v29 = vsel %vm1286_vm13, %v1506_v16, %v1505_v11  ;;  %v1488_v56 = vsel %vm1274_vm3, %v1487_v41, %v1486_v3  ;;  %v1576_v31 = vrot.slane %v9965_v14, 7  ;;  %v4698_v14 = vld [vmem:[%s13672_s16] sm:$0xff] }
 0x18a   : > { %14035 = vst [vmem:[#allocation25_spill] sm:$0xff] %v10842_v29  ;;  %v1489_v51 = vsel %vm1277_vm8, %v1401_v49, %v1488_v56  ;;  %v1580_v37 = vrot.slane %v9972_v20, 4  ;;  %v1583_v48 = vrot.slane %v10355_v4, 2  ;;  %v1585_v16 = vrot.slane %v10498_v24, 1 }
 0x18b   : > { %v1490_v1 = vsel %vm1280_vm10, %v10424_v21, %v1489_v51  ;;  %v1578_v18 = vsel %vm1268_vm1, %v1577_v55, %v1576_v31  ;;  %v1564_v41 = vrot.slane %v10045_v19, 7  ;;  %v14036_v20 = vrot.slane %v10114_v57, 5  ;;  %v2808_v55 = vld [vmem:[%s13666_s10 + $0x8] sm:$0xff] }
 0x18c   : > { %v1492_v30 = vsel %vm1283_vm12, %v1491_v8, %v1490_v1  ;;  %v1565_v49 = vrot.slane %v10201_v7, 6  ;;  %v1568_v58 = vrot.slane %v10047_v23, 4  ;;  %v1571_v57 = vrot.slane %v10424_v21, 2  ;;  %4702 = vperm.xlu1 %9189, %v4698_v14   ;;  %v10903_v14 = vpop.permute.xlu0 %2733 }
 0x18d   : > { %v1579_v4 = vsel %vm1271_vm2, %v14036_v20, %v1578_v18  ;;  %v10867_v24 = vsel %vm1286_vm13, %v1493_v25, %v1492_v30  ;;  %v14038_v23 = vrot.slane %v10211_v12, 5  ;;  %v1573_v25 = vrot.slane %v10578_v15, 1  ;;  %v8441_v18 = vld [vmem:[%s14008_s18 + $0x8] sm:$0xff] }
 0x18e   : > { %14037 = vst [vmem:[#allocation33_spill] sm:$0xff] %v10867_v24  ;;  %v1581_v19 = vsel %vm1274_vm3, %v1580_v37, %v1579_v4  ;;  %v1566_v8 = vsel %vm1268_vm1, %v1565_v49, %v1564_v41  ;;  %vm3480_vm1 = vcmask 97280  }
 0x18f   : > { %v1582_v56 = vsel %vm1277_vm8, %v1498_v9, %v1581_v19  ;;  %v1567_v31 = vsel %vm1271_vm2, %v14038_v23, %v1566_v8  ;;  %vm4108_vm2 = vcmask 64512  }
 0x190   : > { %v1584_v7 = vsel %vm1280_vm10, %v1583_v48, %v1582_v56  ;;  %v1569_v9 = vsel %vm1274_vm3, %v1568_v58, %v1567_v31  ;;  %2816 = vperm.xlu1 %9189, %v2808_v55   ;;  %v10905_v56 = vpop.permute.xlu0 %2738 }
 0x191   : > { %v1586_v51 = vsel %vm1283_vm12, %v1585_v16, %v1584_v7  ;;  %v1570_v12 = vsel %vm1277_vm8, %v1485_v17, %v1569_v9 }
 0x192   : > { %v10889_v21 = vsel %vm1286_vm13, %v10025_v59, %v1586_v51  ;;  %v1572_v15 = vsel %vm1280_vm10, %v1571_v57, %v1570_v12 }
 0x193   : > { %14039 = vst [vmem:[#allocation34_spill] sm:$0xff] %v10889_v21  ;;  %v1574_v1 = vsel %vm1283_vm12, %v1573_v25, %v1572_v15 }
 0x194   : > { %v10901_v16 = vsel %vm1286_vm13, %v10120_v10, %v1574_v1  ;;  %8449 = vperm.xlu1 %9189, %v8441_v18  }
 0x195   : > { %14040 = vst [vmem:[#allocation35_spill] sm:$0xff] %v10901_v16 }
 0x1da   : > { %v10723_v13 = vpop.f32.mrb[0].mxu1 }
 0x1db   : > { %v10730_v52 = vpop.f32.mrb[1].mxu1 }
 0x1de   : > { %v10749_v33 = vpop.f32.mrb[2].mxu1 }
 0x1df   : > { %v10758_v54 = vpop.f32.mrb[3].mxu1 }
 0x1e2   : > { %v10772_v40 = vpop.f32.mrb[4].mxu1 }
 0x1e3   : > { %v10780_v38 = vpop.f32.mrb[5].mxu1 }
 0x1e6   : > { %v10796_v62 = vpop.f32.mrb[6].mxu1 }
 0x1e7   : > { %v10802_v0 = vpop.f32.mrb[7].mxu1 }
 0x1f1   : > { %v10864_v11 = vpop.f32.mrb[0].mxu0 }
 0x1f2   : > { %v10870_v3 = vpop.f32.mrb[1].mxu0 }
 0x1f5   : > { %v10885_v37 = vpop.f32.mrb[2].mxu0 }
 0x1f6   : > { %v10892_v48 = vpop.f32.mrb[3].mxu0 }
 0x1f9   : > { %v2505_v41 = vpop.f32.mrb[4].mxu0 }
 0x1fa   : > { %v2507_v59 = vpop.f32.mrb[5].mxu0 }
 0x1fb   : > { %v2509_v17 = vpop.f32.mrb[6].mxu0 }
 0x1fc   : > { %v2511_v20 = vpop.f32.mrb[7].mxu0 }
 0x1fd   : > { %v1900_v30 = vpop.f32.mrb[8].mxu1 }
 0x1fe   : > { %v2506_v4 = vadd.f32 %v2505_v41, %v1900_v30  ;;  %v1902_v49 = vpop.f32.mrb[9].mxu1 }
 0x1ff   : > { %v2508_v58 = vadd.f32 %v2507_v59, %v1902_v49 }
 0x200   : > { %v2745_v7 = vadd.f32 %v10903_v14, %v2506_v4 }
 0x201   : > { %v1906_v19 = vpop.f32.mrb[10].mxu1  ;;  %v2746_v23 = vadd.f32 %v10903_v14, %v2508_v58 }
 0x202   : > { %v2510_v8 = vadd.f32 %v2509_v17, %v1906_v19  ;;  %v1908_v57 = vpop.f32.mrb[11].mxu1  ;;  %v2777_v9 = vmax.f32 %v2745_v7, 0.0 }
 0x203   : > { %v2512_v10 = vadd.f32 %v2511_v20, %v1908_v57  ;;  %v2778_v1 = vmax.f32 %v2746_v23, 0.0 }
 0x204   : > { %v2761_v31 = vadd.f32 %v10905_v56, %v2510_v8 }
 0x205   : > { %v10910_v25 = vpop.f32.mrb[12].mxu1  ;;  %v2762_v55 = vadd.f32 %v10905_v56, %v2512_v10 }
 0x206   : > { %v10913_v51 = vpop.f32.mrb[13].mxu1  ;;  %v2793_v12 = vmax.f32 %v2761_v31, 0.0 }
 0x207   : > { %v2591_v15 = vpop.f32.mrb[8].mxu0  ;;  %v2794_v18 = vmax.f32 %v2762_v55, 0.0 }
 0x208   : > { %v2593_v41 = vpop.f32.mrb[9].mxu0  ;;  %v10915_v59 = vpack.c.bf16 %v2793_v12, %v2777_v9 }
 0x209   : > { %v10917_v17 = vpop.f32.mrb[14].mxu1  ;;  %v2595_v30 = vpop.f32.mrb[10].mxu0  ;;  %v10919_v20 = vpack.c.bf16 %v2794_v18, %v2778_v1 }
 0x20a   : > { %v10921_v4 = vpop.f32.mrb[15].mxu1  ;;  %v2597_v49 = vpop.f32.mrb[11].mxu0 }
 0x20d   : > { %v2054_v58 = vpop.f32.mrb[16].mxu1 }
 0x20e   : > { %v2592_v19 = vadd.f32 %v2591_v15, %v2054_v58  ;;  %v2056_v8 = vpop.f32.mrb[17].mxu1 }
 0x20f   : > { %v2594_v57 = vadd.f32 %v2593_v41, %v2056_v8 }
 0x210   : > { %v2749_v10 = vadd.f32 %v10903_v14, %v2592_v19 }
 0x211   : > { %v2060_v7 = vpop.f32.mrb[18].mxu1  ;;  %v2750_v55 = vadd.f32 %v10903_v14, %v2594_v57 }
 0x212   : > { %v2596_v23 = vadd.f32 %v2595_v30, %v2060_v7  ;;  %v2062_v31 = vpop.f32.mrb[19].mxu1  ;;  %v2781_v16 = vmax.f32 %v2749_v10, 0.0 }
 0x213   : > { %v2598_v9 = vadd.f32 %v2597_v49, %v2062_v31  ;;  %v2782_v15 = vmax.f32 %v2750_v55, 0.0 }
 0x214   : > { %v2765_v12 = vadd.f32 %v10905_v56, %v2596_v23 }
 0x215   : > { %v2766_v1 = vadd.f32 %v10905_v56, %v2598_v9  ;;  %v10927_v18 = vpop.f32.mrb[20].mxu1 }
 0x216   : > { %v2797_v21 = vmax.f32 %v2765_v12, 0.0  ;;  %v10929_v24 = vpop.f32.mrb[21].mxu1 }
 0x217   : > { %v2798_v41 = vmax.f32 %v2766_v1, 0.0  ;;  %v2677_v58 = vpop.f32.mrb[12].mxu0 }
 0x218   : > { %v10931_v8 = vpack.c.bf16 %v2797_v21, %v2781_v16  ;;  %v2678_v30 = vadd.f32 %v2677_v58, %v10864_v11  ;;  %v2679_v19 = vpop.f32.mrb[13].mxu0 }
 0x219   : > { %v10934_v57 = vpop.f32.mrb[22].mxu1  ;;  %v2680_v49 = vadd.f32 %v2679_v19, %v10870_v3  ;;  %v2681_v7 = vpop.f32.mrb[14].mxu0  ;;  %v10937_v23 = vpack.c.bf16 %v2798_v41, %v2782_v15 }
 0x21a   : > { %v10939_v31 = vpop.f32.mrb[23].mxu1  ;;  %v2753_v10 = vadd.f32 %v10903_v14, %v2678_v30  ;;  %v2682_v55 = vadd.f32 %v2681_v7, %v10885_v37  ;;  %v2683_v9 = vpop.f32.mrb[15].mxu0 }
 0x21b   : > { %v2754_v21 = vadd.f32 %v10903_v14, %v2680_v49  ;;  %v2684_v16 = vadd.f32 %v2683_v9, %v10892_v48 }
 0x21c   : > { %v2785_v11 = vmax.f32 %v2753_v10, 0.0  ;;  %v2769_v12 = vadd.f32 %v10905_v56, %v2682_v55 }
 0x21d   : > { %v10946_v1 = vpop.f32.mrb[24].mxu1  ;;  %v2786_v3 = vmax.f32 %v2754_v21, 0.0  ;;  %v2770_v15 = vadd.f32 %v10905_v56, %v2684_v16 }
 0x21e   : > { %v10949_v41 = vpop.f32.mrb[25].mxu1  ;;  %v2801_v58 = vmax.f32 %v2769_v12, 0.0 }
 0x21f   : > { %v2802_v19 = vmax.f32 %v2770_v15, 0.0 }
 0x220   : > { %v10951_v30 = vpack.c.bf16 %v2801_v58, %v2785_v11 }
 0x221   : > { %v10953_v37 = vpop.f32.mrb[26].mxu1  ;;  %v10955_v7 = vpack.c.bf16 %v2802_v19, %v2786_v3 }
 0x222   : > { %v10957_v49 = vpop.f32.mrb[27].mxu1 }
 0x225   : > { %v2419_v48 = vpop.f32.mrb[28].mxu1 }
 0x226   : > { %v2420_v10 = vadd.f32 %v2419_v48, %v10723_v13  ;;  %v2421_v55 = vpop.f32.mrb[29].mxu1 }
 0x227   : > { %v2422_v9 = vadd.f32 %v2421_v55, %v10730_v52  ;;  %v2423_v21 = vpop.f32.mrb[30].mxu1 }
 0x228   : > { %v2741_v16 = vadd.f32 %v10903_v14, %v2420_v10  ;;  %v2424_v12 = vadd.f32 %v2423_v21, %v10749_v33  ;;  %v2425_v15 = vpop.f32.mrb[31].mxu1 }
 0x229   : > { %v2742_v11 = vadd.f32 %v10903_v14, %v2422_v9  ;;  %v2426_v58 = vadd.f32 %v2425_v15, %v10758_v54 }
 0x22a   : > { %v2757_v3 = vadd.f32 %v10905_v56, %v2424_v12  ;;  %v2773_v26 = vmax.f32 %v2741_v16, 0.0 }
 0x22b   : > { %v2758_v19 = vadd.f32 %v10905_v56, %v2426_v58  ;;  %v2774_v13 = vmax.f32 %v2742_v11, 0.0 }
 0x22c   : > { %v2789_v47 = vmax.f32 %v2757_v3, 0.0 }
 0x22d   : > { %v2790_v48 = vmax.f32 %v2758_v19, 0.0  ;;  %v2462_v29 = vpop.f32.mrb[32].mxu1  ;;  %v10983_v19 = vld [vmem:[#allocation8 + $0x8] sm:$0xff] }
 0x22e   : > { %v8934_v52 = vpack.c.bf16 %v2789_v47, %v2773_v26  ;;  %v2463_v55 = vadd.f32 %v2462_v29, %v10772_v40  ;;  %v2464_v10 = vpop.f32.mrb[33].mxu1  ;;  %v10974_v26 = vld [vmem:[#allocation8] sm:$0xff] }
 0x22f   : > { %v2465_v33 = vadd.f32 %v2464_v10, %v10780_v38  ;;  %v2466_v21 = vpop.f32.mrb[34].mxu1  ;;  %v8932_v5 = vpack.c.bf16 %v2790_v48, %v2774_v13 }
 0x230   : > { %v2743_v9 = vadd.f32 %v10903_v14, %v2463_v55  ;;  %v2467_v54 = vadd.f32 %v2466_v21, %v10796_v62  ;;  %v2468_v12 = vpop.f32.mrb[35].mxu1 }
 0x231   : > { %v2744_v15 = vadd.f32 %v10903_v14, %v2465_v33  ;;  %v2469_v16 = vadd.f32 %v2468_v12, %v10802_v0  ;;  %8933 = vmatprep.subr.bf16.mxu0 %v8932_v5 }
 0x232   : > { %v2759_v11 = vadd.f32 %v10905_v56, %v2467_v54  ;;  %8935 = vmatpush1.bf16.msra.mxu0 %v8934_v52  ;;  %v2775_v40 = vmax.f32 %v2743_v9, 0.0 }
 0x233   : > { %v2760_v47 = vadd.f32 %v10905_v56, %v2469_v16  ;;  %8941 = vmatprep.subr.bf16.mxu0 %v10919_v20  ;;  %v2776_v29 = vmax.f32 %v2744_v15, 0.0 }
 0x234   : > { %v2791_v38 = vmax.f32 %v2759_v11, 0.0 }
 0x235   : > { %v2792_v58 = vmax.f32 %v2760_v47, 0.0  ;;  %v2548_v62 = vpop.f32.mrb[36].mxu1  ;;  %8858 = vmatmul.mubr.msk.f32.vlgmr.msra.gmra.mrb[16].mxu0 %vm2381_vm11, %v10974_v26 }
 0x236   : > { %v8938_v3 = vpack.c.bf16 %v2791_v38, %v2775_v40  ;;  %v2549_v5 = vadd.f32 %v2548_v62, %v10910_v25  ;;  %v2550_v0 = vpop.f32.mrb[37].mxu1  ;;  %8943 = vmatpush1.bf16.msra.mxu0 %v10915_v59  ;;  %2895 = vmatprep.mubr.f32.mxu0 %v14011_v43 }
 0x237   : > { %v2551_v20 = vadd.f32 %v2550_v0, %v10913_v51  ;;  %v2552_v13 = vpop.f32.mrb[38].mxu1  ;;  %8949 = vmatprep.subr.bf16.mxu0 %v10937_v23  ;;  %v8936_v48 = vpack.c.bf16 %v2792_v58, %v2776_v29 }
 0x238   : > { %v2747_v52 = vadd.f32 %v10903_v14, %v2549_v5  ;;  %v2553_v55 = vadd.f32 %v2552_v13, %v10917_v17  ;;  %v2554_v10 = vpop.f32.mrb[39].mxu1 }
 0x239   : > { %v2748_v25 = vadd.f32 %v10903_v14, %v2551_v20  ;;  %v2555_v33 = vadd.f32 %v2554_v10, %v10921_v4  ;;  %8859 = vmatmul.mubr.msk.f32.gmra.mrb[18].mxu0 %vm2381_vm11, %v10983_v19  ;;  %8937 = vmatprep.subr.bf16.mxu1 %v8936_v48 }
 0x23a   : > { %v2763_v59 = vadd.f32 %v10905_v56, %v2553_v55  ;;  %8939 = vmatpush1.bf16.msra.mxu1 %v8938_v3  ;;  %3043 = vmatprep.mubr.f32.mxu0 %v14011_v43  ;;  %v2779_v23 = vmax.f32 %v2747_v52, 0.0 }
 0x23b   : > { %v2764_v51 = vadd.f32 %v10905_v56, %v2555_v33  ;;  %v2780_v9 = vmax.f32 %v2748_v25, 0.0 }
 0x23c   : > { %v2795_v21 = vmax.f32 %v2763_v59, 0.0 }
 0x23d   : > { %v2796_v17 = vmax.f32 %v2764_v51, 0.0  ;;  %v2634_v54 = vpop.f32.mrb[40].mxu1  ;;  %8860 = vmatmul.mubr.msk.f32.vlgmr.msra.gmra.mrb[48].mxu1 %vm2381_vm11, %v10974_v26  ;;  %8862 = vmatmul.mubr.msk.f32.vlgmr.msra.gmra.mrb[20].mxu0 %vm2381_vm11, %v10974_v26 }
 0x23e   : > { %v8946_v4 = vpack.c.bf16 %v2795_v21, %v2779_v23  ;;  %v2635_v12 = vadd.f32 %v2634_v54, %v10927_v18  ;;  %8951 = vmatpush1.bf16.msra.mxu0 %v10931_v8  ;;  %v2636_v15 = vpop.f32.mrb[41].mxu1  ;;  %2972 = vmatprep.mubr.f32.mxu1 %v14011_v43  ;;  %v14044_v21 = vpack.c.bf16 %v10204_v46, %v10610_v53 }
 0x23f   : > { %v2637_v16 = vadd.f32 %v2636_v15, %v10929_v24  ;;  %8957 = vmatprep.subr.bf16.mxu0 %v10955_v7  ;;  %v2638_v11 = vpop.f32.mrb[42].mxu1  ;;  %3049 = vmatprep.mubr.f32.mxu0 %v14011_v43  ;;  %v8944_v47 = vpack.c.bf16 %v2796_v17, %v2780_v9  ;;  %v3473_v9 = vld [vmem:[#allocation10] sm:$0xff]  ;;  %v8979_v46 = vpack.c.bf16 %v10431_v61, %v10693_v28  ;;  %v14050_v28 = vld [vmem:[#allocation28_spill] sm:$0xff] }
 0x240   : > { %v2751_v40 = vadd.f32 %v10903_v14, %v2635_v12  ;;  %v2639_v38 = vadd.f32 %v2638_v11, %v10934_v57  ;;  %v2640_v29 = vpop.f32.mrb[43].mxu1  ;;  %v8988_v53 = vpack.c.bf16 %v10490_v36, %v10752_v44  ;;  %v8982_v54 = vpack.c.bf16 %v10460_v60, %v10805_v63  ;;  %v14047_v36 = vld [vmem:[#allocation27_spill] sm:$0xff]  ;;  %v14052_v63 = vld [vmem:[#allocation32_spill] sm:$0xff] }
 0x241   : > { %v2752_v18 = vadd.f32 %v10903_v14, %v2637_v16  ;;  %v2641_v8 = vadd.f32 %v2640_v29, %v10939_v31  ;;  %8861 = vmatmul.mubr.msk.f32.gmra.mrb[50].mxu1 %vm2381_vm11, %v10983_v19  ;;  %8863 = vmatmul.mubr.msk.f32.gmra.mrb[22].mxu0 %vm2381_vm11, %v10983_v19  ;;  %v8991_v61 = vpack.c.bf16 %v10516_v22, %v10775_v39  ;;  %v14051_v39 = vld [vmem:[#allocation26_spill] sm:$0xff]  ;;  %v14058_v15 = vld [vmem:[#allocation35_spill] sm:$0xff] }
 0x242   : > { %v2767_v24 = vadd.f32 %v10905_v56, %v2639_v38  ;;  %8945 = vmatprep.subr.bf16.mxu1 %v8944_v47  ;;  %3120 = vmatprep.mubr.f32.mxu1 %v14011_v43  ;;  %v2783_v57 = vmax.f32 %v2751_v40, 0.0  ;;  %v8985_v60 = vpack.c.bf16 %v10474_v27, %v10829_v42  ;;  %v14048_v22 = vpack.c.bf16 %v10307_v32, %v14047_v36  ;;  %v14054_v32 = vld [vmem:[#allocation33_spill] sm:$0xff]  ;;  %v14059_v16 = vld [vmem:[#allocation31_spill] sm:$0xff]  ;;  %v11145_v47 = vpop.permute.xlu1 %3477  ;;  %v11147_v40 = vpop.permute.xlu0 %2811 }
 0x243   : > { %v2768_v7 = vadd.f32 %v10905_v56, %v2641_v8  ;;  %8947 = vmatpush1.bf16.msra.mxu1 %v8946_v4  ;;  %3197 = vmatprep.mubr.f32.mxu0 %v14011_v43  ;;  %v2784_v31 = vmax.f32 %v2752_v18, 0.0  ;;  %v14055_v27 = vld [vmem:[#allocation29_spill] sm:$0xff]  ;;  %v14057_v4 = vld [vmem:[#allocation30_spill] sm:$0xff]  ;;  %v9009_v11 = vpack.c.bf16 %v14059_v16, %v14058_v15 }
 0x244   : > { %v2799_v58 = vmax.f32 %v2767_v24, 0.0  ;;  %v8997_v42 = vpack.c.bf16 %v14055_v27, %v14054_v32 }
 0x245   : > { %v2800_v62 = vmax.f32 %v2768_v7, 0.0  ;;  %v2720_v3 = vpop.f32.mrb[44].mxu1  ;;  %8866 = vmatmul.mubr.msk.f32.vlgmr.msra.gmra.mrb[24].mxu0 %vm2381_vm11, %v10974_v26 }
 0x246   : > { %v8954_v0 = vpack.c.bf16 %v2799_v58, %v2783_v57  ;;  %v2721_v20 = vadd.f32 %v2720_v3, %v10946_v1  ;;  %8864 = vmatmul.mubr.msk.f32.vlgmr.msra.gmra.mrb[52].mxu1 %vm2381_vm11, %v10974_v26  ;;  %8959 = vmatpush1.bf16.msra.mxu0 %v10951_v30  ;;  %v2722_v13 = vpop.f32.mrb[45].mxu1  ;;  %v14043_v1 = vpack.c.bf16 %v10100_v6, %v10541_v34  ;;  %v11151_v57 = vpop.permute.xlu1 %4105 }
 0x247   : > { %v2723_v48 = vadd.f32 %v2722_v13, %v10949_v41  ;;  %v2724_v52 = vpop.f32.mrb[46].mxu1  ;;  %3126 = vmatprep.mubr.f32.mxu1 %v14011_v43  ;;  %3203 = vmatprep.mubr.f32.mxu0 %v14011_v43  ;;  %v8952_v55 = vpack.c.bf16 %v2800_v62, %v2784_v31 }
 0x248   : > { %v2755_v10 = vadd.f32 %v10903_v14, %v2721_v20  ;;  %v2725_v25 = vadd.f32 %v2724_v52, %v10953_v37  ;;  %v2726_v33 = vpop.f32.mrb[47].mxu1  ;;  %8966 = vmatprep.subr.msk.bf16.mxu0 %vm11020_vm0, %v14043_v1  ;;  %v8976_v37 = vpack.c.bf16 %v10405_v2, %v10683_v35  ;;  %v14045_v2 = vld [vmem:[#allocation23_spill] sm:$0xff] }
 0x249   : > { %v2756_v30 = vadd.f32 %v10903_v14, %v2723_v48  ;;  %v2727_v41 = vadd.f32 %v2726_v33, %v10957_v49  ;;  %8867 = vmatmul.mubr.msk.f32.gmra.mrb[26].mxu0 %vm2381_vm11, %v10983_v19  ;;  %8953 = vmatprep.subr.bf16.mxu1 %v8952_v55  ;;  %v8970_v35 = vpack.c.bf16 %v14045_v2, %v10716_v50  ;;  %v14046_v50 = vld [vmem:[#allocation24_spill] sm:$0xff] }
 0x24a   : > { %v2771_v59 = vadd.f32 %v10905_v56, %v2725_v25  ;;  %8865 = vmatmul.mubr.msk.f32.gmra.mrb[54].mxu1 %vm2381_vm11, %v10983_v19  ;;  %3351 = vmatprep.mubr.f32.mxu0 %v14011_v43  ;;  %v2787_v34 = vmax.f32 %v2755_v10, 0.0  ;;  %v8973_v17 = vpack.c.bf16 %v14046_v50, %v10765_v45  ;;  %v14049_v45 = vld [vmem:[#allocation25_spill] sm:$0xff]  ;;  %v11161_v48 = vpop.permute.xlu1 %4702 }
 0x24b   : > { %v2772_v6 = vadd.f32 %v10905_v56, %v2727_v41  ;;  %8955 = vmatpush1.bf16.msra.mxu1 %v8954_v0  ;;  %3274 = vmatprep.mubr.f32.mxu1 %v14011_v43  ;;  %v2788_v49 = vmax.f32 %v2756_v30, 0.0  ;;  %v8994_v44 = vpack.c.bf16 %v14050_v28, %v14049_v45  ;;  %14060 = vst [vmem:[#allocation23_spill] sm:$0xff] %v11161_v48 }
 0x24c   : > { %v2803_v14 = vmax.f32 %v2771_v59, 0.0 }
 0x24d   : > { %v2804_v51 = vmax.f32 %v2772_v6, 0.0  ;;  %8870 = vmatmul.mubr.msk.f32.vlgmr.msra.gmra.mrb[28].mxu0 %vm2381_vm11, %v10974_v26 }
 0x24e   : > { %v8962_v23 = vpack.c.bf16 %v2803_v14, %v2787_v34  ;;  %8868 = vmatmul.mubr.msk.f32.vlgmr.msra.gmra.mrb[56].mxu1 %vm2381_vm11, %v10974_v26  ;;  %3357 = vmatprep.mubr.f32.mxu0 %v14011_v43  ;;  %v11167_v34 = vpop.permute.xlu1 %2816 }
 0x24f   : > { %3280 = vmatprep.mubr.f32.mxu1 %v14011_v43  ;;  %v8960_v56 = vpack.c.bf16 %v2804_v51, %v2788_v49  ;;  %8969 = vmatpush1.bf16.msk.msra.mxu0 %vm11020_vm0, %v14044_v21 }
 0x250   : > { %8978 = vmatprep.subr.msk.bf16.mxu0 %vm11020_vm0, %v8976_v37 }
 0x251   : > { %8871 = vmatmul.mubr.msk.f32.gmra.mrb[30].mxu0 %vm2381_vm11, %v10983_v19  ;;  %8961 = vmatprep.subr.bf16.mxu1 %v8960_v56 }
 0x252   : > { %8869 = vmatmul.mubr.msk.f32.gmra.mrb[58].mxu1 %vm2381_vm11, %v10983_v19  ;;  %3581 = vmatprep.mubr.f32.mxu0 %v14011_v43 }
 0x253   : > { %8963 = vmatpush1.bf16.msra.mxu1 %v8962_v23  ;;  %3428 = vmatprep.mubr.f32.mxu1 %v14011_v43 }
 0x254   : > { %8972 = vmatprep.subr.msk.bf16.mxu1 %vm11020_vm0, %v8970_v35 }
 0x255   : > { %8876 = vmatmul.mubr.msk.f32.vlgmr.msra.gmra.mrb[32].mxu0 %vm3480_vm1, %v3473_v9 }
 0x256   : > { %8872 = vmatmul.mubr.msk.f32.vlgmr.msra.gmra.mrb[60].mxu1 %vm2381_vm11, %v10974_v26  ;;  %8981 = vmatpush1.bf16.msk.msra.mxu0 %vm11020_vm0, %v8979_v46  ;;  %v14053_v26 = vpack.c.bf16 %v14051_v39, %v14052_v63 }
 0x257   : > { %3434 = vmatprep.mubr.f32.mxu1 %v14011_v43  ;;  %3723 = vmatprep.mubr.f32.mxu0 %v14011_v43 }
 0x258   : > { %8990 = vmatprep.subr.msk.bf16.mxu0 %vm11020_vm0, %v8988_v53  ;;  %8975 = vmatpush1.bf16.msk.msra.mxu1 %vm11020_vm0, %v8973_v17 }
 0x259   : > { %8882 = vmatmul.mubr.msk.f32.vlgmr.msra.gmra.mrb[34].mxu0 %vm3480_vm1, %v3473_v9  ;;  %8984 = vmatprep.subr.msk.bf16.mxu1 %vm11020_vm0, %v8982_v54 }
 0x25a   : > { %8873 = vmatmul.mubr.msk.f32.gmra.mrb[62].mxu1 %vm2381_vm11, %v10983_v19  ;;  %8993 = vmatpush1.bf16.msk.msra.mxu0 %vm11020_vm0, %v8991_v61  ;;  %v14056_v19 = vld [vmem:[#allocation34_spill] sm:$0xff] }
 0x25b   : > { %3652 = vmatprep.mubr.f32.mxu1 %v14011_v43  ;;  %3865 = vmatprep.mubr.f32.mxu0 %v14011_v43  ;;  %v9006_v12 = vpack.c.bf16 %v14057_v4, %v14056_v19 }
 0x25c   : > { %9002 = vmatprep.subr.msk.bf16.mxu0 %vm11020_vm0, %v14048_v22 }
 0x25d   : > { %8888 = vmatmul.mubr.msk.f32.vlgmr.msra.gmra.mrb[36].mxu0 %vm3480_vm1, %v3473_v9 }
 0x25e   : > { %8879 = vmatmul.mubr.msk.f32.vlgmr.msra.gmra.mrb[64].mxu1 %vm3480_vm1, %v3473_v9  ;;  %9005 = vmatpush1.bf16.msk.msra.mxu0 %vm11020_vm0, %v14053_v26 }
 0x25f   : > { %8987 = vmatpush1.bf16.msk.msra.mxu1 %vm11020_vm0, %v8985_v60  ;;  %3794 = vmatprep.mubr.f32.mxu1 %v14011_v43 }
 0x260   : > { %4007 = vmatprep.mubr.f32.mxu0 %v14011_v43  ;;  %8996 = vmatprep.subr.msk.bf16.mxu1 %vm11020_vm0, %v8994_v44 }
 0x261   : > { %8894 = vmatmul.mubr.msk.f32.vlgmr.msra.gmra.mrb[38].mxu0 %vm3480_vm1, %v3473_v9 }
 0x262   : > { %8885 = vmatmul.mubr.msk.f32.vlgmr.msra.gmra.mrb[66].mxu1 %vm3480_vm1, %v3473_v9  ;;  %4176 = vmatprep.mubr.f32.mxu0 %v14011_v43 }
 0x263   : > { %8999 = vmatpush1.bf16.msk.msra.mxu1 %vm11020_vm0, %v8997_v42  ;;  %3936 = vmatprep.mubr.f32.mxu1 %v14011_v43 }
 0x264   : > { %9008 = vmatprep.subr.msk.bf16.mxu1 %vm11020_vm0, %v9006_v12 }
 0x266   : > { %8891 = vmatmul.mubr.msk.f32.vlgmr.msra.gmra.mrb[68].mxu1 %vm3480_vm1, %v3473_v9 }
 0x267   : > { %9011 = vmatpush1.bf16.msk.msra.mxu1 %vm11020_vm0, %v9009_v11  ;;  %4078 = vmatprep.mubr.f32.mxu1 %v14011_v43 }
 0x26a   : > { %8897 = vmatmul.mubr.msk.f32.vlgmr.msra.gmra.mrb[70].mxu1 %vm3480_vm1, %v3473_v9 }
 0x26b   : > { %4247 = vmatprep.mubr.f32.mxu1 %v14011_v43 }
 0x308   : > { %v2891_v38 = vpop.f32.mrb[16].mxu0 }
 0x309   : > { %v2892_v29 = vadd.f32 %v2891_v38, %v11147_v40  ;;  %v2893_v18 = vpop.f32.mrb[17].mxu0 }
 0x30a   : > { %v2894_v8 = vadd.f32 %v2893_v18, %v11147_v40 }
 0x30b   : > { %v3441_v24 = vmax.f32 %v2892_v29, 0.0 }
 0x30c   : > { %v3442_v7 = vmax.f32 %v2894_v8, 0.0  ;;  %v11153_v58 = vpop.f32.mrb[18].mxu0 }
 0x30d   : > { %v11155_v31 = vpop.f32.mrb[19].mxu0 }
 0x30e   : > { %v11157_v62 = vcombine.low %v3441_v24, %v3442_v7  ;;  %v11159_v3 = vcombine.high %v3441_v24, %v3442_v7 }
 0x310   : > { %v2968_v5 = vpop.f32.mrb[48].mxu1  ;;  %v3045_v0 = vpop.f32.mrb[20].mxu0 }
 0x311   : > { %v2970_v20 = vpop.f32.mrb[49].mxu1  ;;  %v3047_v13 = vpop.f32.mrb[21].mxu0  ;;  %v2969_v52 = vadd.f32 %v2968_v5, %v11147_v40  ;;  %v3046_v55 = vadd.f32 %v3045_v0, %v11147_v40 }
 0x312   : > { %v2971_v33 = vadd.f32 %v2970_v20, %v11147_v40  ;;  %v3048_v1 = vadd.f32 %v3047_v13, %v11147_v40 }
 0x313   : > { %v3443_v59 = vmax.f32 %v2969_v52, 0.0  ;;  %v3445_v6 = vmax.f32 %v3046_v55, 0.0 }
 0x314   : > { %v2974_v10 = vpop.f32.mrb[50].mxu1  ;;  %v3051_v25 = vpop.f32.mrb[22].mxu0  ;;  %v3444_v37 = vmax.f32 %v2971_v33, 0.0  ;;  %v3446_v49 = vmax.f32 %v3048_v1, 0.0 }
 0x315   : > { %v2976_v30 = vpop.f32.mrb[51].mxu1  ;;  %v3053_v41 = vpop.f32.mrb[23].mxu0  ;;  %v2975_v56 = vadd.f32 %v2974_v10, %v11167_v34  ;;  %v3052_v2 = vadd.f32 %v3051_v25, %v11167_v34 }
 0x316   : > { %v2977_v21 = vadd.f32 %v2976_v30, %v11167_v34  ;;  %v3054_v35 = vadd.f32 %v3053_v41, %v11167_v34  ;;  %v11173_v46 = vcombine.low %v3443_v59, %v3444_v37  ;;  %v11175_v53 = vcombine.high %v3443_v59, %v3444_v37 }
 0x317   : > { %v11177_v50 = vcombine.low %v3445_v6, %v3446_v49  ;;  %v11179_v17 = vcombine.high %v3445_v6, %v3446_v49  ;;  %v3459_v54 = vmax.f32 %v2975_v56, 0.0  ;;  %v3461_v60 = vmax.f32 %v3052_v2, 0.0 }
 0x318   : > { %v3199_v14 = vpop.f32.mrb[24].mxu0  ;;  %v3460_v61 = vmax.f32 %v2977_v21, 0.0  ;;  %v3462_v36 = vmax.f32 %v3054_v35, 0.0 }
 0x319   : > { %v3122_v51 = vpop.f32.mrb[52].mxu1  ;;  %v3201_v23 = vpop.f32.mrb[25].mxu0  ;;  %v3200_v41 = vadd.f32 %v3199_v14, %v11147_v40 }
 0x31a   : > { %v3124_v9 = vpop.f32.mrb[53].mxu1  ;;  %v11181_v44 = vcombine.low %v3459_v54, %v3460_v61  ;;  %v11183_v39 = vcombine.high %v3459_v54, %v3460_v61  ;;  %v11185_v63 = vcombine.low %v3461_v60, %v3462_v36  ;;  %v11187_v26 = vcombine.high %v3461_v60, %v3462_v36 }
 0x31b   : > { %v3123_v30 = vadd.f32 %v3122_v51, %v11147_v40  ;;  %v3125_v59 = vadd.f32 %v3124_v9, %v11147_v40  ;;  %v3202_v6 = vadd.f32 %v3201_v23, %v11147_v40  ;;  %v3449_v21 = vmax.f32 %v3200_v41, 0.0 }
 0x31c   : > { %v3205_v22 = vpop.f32.mrb[26].mxu0 }
 0x31d   : > { %v3128_v45 = vpop.f32.mrb[54].mxu1  ;;  %v3207_v28 = vpop.f32.mrb[27].mxu0  ;;  %v3447_v56 = vmax.f32 %v3123_v30, 0.0  ;;  %v3448_v2 = vmax.f32 %v3125_v59, 0.0  ;;  %v3450_v35 = vmax.f32 %v3202_v6, 0.0  ;;  %v3206_v51 = vadd.f32 %v3205_v22, %v11167_v34 }
 0x31e   : > { %v3130_v32 = vpop.f32.mrb[55].mxu1  ;;  %v3129_v54 = vadd.f32 %v3128_v45, %v11167_v34  ;;  %v3208_v14 = vadd.f32 %v3207_v28, %v11167_v34 }
 0x31f   : > { %v3131_v61 = vadd.f32 %v3130_v32, %v11167_v34  ;;  %v11233_v60 = vcombine.low %v3447_v56, %v3448_v2  ;;  %v11235_v9 = vcombine.high %v3447_v56, %v3448_v2  ;;  %v11237_v23 = vcombine.low %v3449_v21, %v3450_v35 }
 0x320   : > { %v3353_v27 = vpop.f32.mrb[28].mxu0  ;;  %v11239_v36 = vcombine.high %v3449_v21, %v3450_v35  ;;  %v3463_v41 = vmax.f32 %v3129_v54, 0.0  ;;  %v3465_v6 = vmax.f32 %v3206_v51, 0.0  ;;  %v3466_v45 = vmax.f32 %v3208_v14, 0.0 }
 0x321   : > { %v3276_v42 = vpop.f32.mrb[56].mxu1  ;;  %v3355_v19 = vpop.f32.mrb[29].mxu0  ;;  %v3464_v59 = vmax.f32 %v3131_v61, 0.0  ;;  %v3354_v21 = vadd.f32 %v3353_v27, %v11147_v40 }
 0x322   : > { %v3278_v4 = vpop.f32.mrb[57].mxu1  ;;  %14061 = vst [vmem:[#allocation24_spill] sm:$0xff] %v11239_v36  ;;  %v11249_v28 = vcombine.low %v3465_v6, %v3466_v45  ;;  %v11251_v56 = vcombine.high %v3465_v6, %v3466_v45  ;;  %v3277_v2 = vadd.f32 %v3276_v42, %v11147_v40  ;;  %v3356_v54 = vadd.f32 %v3355_v19, %v11147_v40 }
 0x323   : > { %v11245_v32 = vcombine.low %v3463_v41, %v3464_v59  ;;  %v11247_v22 = vcombine.high %v3463_v41, %v3464_v59  ;;  %v3279_v35 = vadd.f32 %v3278_v4, %v11147_v40  ;;  %v3453_v51 = vmax.f32 %v3354_v21, 0.0 }
 0x324   : > { %v3359_v12 = vpop.f32.mrb[30].mxu0  ;;  %v3451_v61 = vmax.f32 %v3277_v2, 0.0  ;;  %v3454_v36 = vmax.f32 %v3356_v54, 0.0 }
 0x325   : > { %v3282_v15 = vpop.f32.mrb[58].mxu1  ;;  %v3361_v16 = vpop.f32.mrb[31].mxu0  ;;  %14062 = vst [vmem:[#allocation27_spill] sm:$0xff] %v11245_v32  ;;  %v3452_v14 = vmax.f32 %v3279_v35, 0.0  ;;  %v3360_v59 = vadd.f32 %v3359_v12, %v11167_v34 }
 0x326   : > { %v3284_v11 = vpop.f32.mrb[59].mxu1  ;;  %v3283_v32 = vadd.f32 %v3282_v15, %v11167_v34  ;;  %v3362_v6 = vadd.f32 %v3361_v16, %v11167_v34  ;;  %v11265_v27 = vcombine.low %v3453_v51, %v3454_v36  ;;  %v11267_v4 = vcombine.high %v3453_v51, %v3454_v36 }
 0x327   : > { %v3285_v41 = vadd.f32 %v3284_v11, %v11167_v34  ;;  %v11261_v45 = vcombine.low %v3451_v61, %v3452_v14  ;;  %v11263_v42 = vcombine.high %v3451_v61, %v3452_v14  ;;  %v3469_v21 = vmax.f32 %v3360_v59, 0.0 }
 0x328   : > { %v11189_v38 = vpop.f32.mrb[32].mxu0  ;;  %v3467_v19 = vmax.f32 %v3283_v32, 0.0  ;;  %v3470_v35 = vmax.f32 %v3362_v6, 0.0 }
 0x329   : > { %v11191_v29 = vpop.f32.mrb[60].mxu1  ;;  %v11193_v18 = vpop.f32.mrb[33].mxu0  ;;  %v3468_v2 = vmax.f32 %v3285_v41, 0.0  ;;  %v3584_v61 = vadd.f32 %v11189_v38, %v11145_v47 }
 0x32a   : > { %v11195_v8 = vpop.f32.mrb[61].mxu1  ;;  %v11273_v11 = vcombine.low %v3469_v21, %v3470_v35  ;;  %v11275_v12 = vcombine.high %v3469_v21, %v3470_v35  ;;  %v3431_v16 = vadd.f32 %v11191_v29, %v11147_v40  ;;  %v3586_v51 = vadd.f32 %v11193_v18, %v11145_v47  ;;  %v11296_v18 = vld [vmem:[%s14063_s2] sm:$0xff]  ;;  %s827_s2 = scalar_lea.vmem [#allocation11], %s8789_s11 }
 0x32b   : > { %v11269_v54 = vcombine.low %v3467_v19, %v3468_v2  ;;  %v11271_v15 = vcombine.high %v3467_v19, %v3468_v2  ;;  %v3433_v32 = vadd.f32 %v11195_v8, %v11147_v40  ;;  %v4085_v59 = vmax.f32 %v3584_v61, 0.0  ;;  %s8561_s17 = sshll.u32 %s827_s2, 4  ;;  %s13602_s17 = int_to_ptr.vmem [resolvable:$true] %s8561_s17 }
 0x32c   : > { %v11197_v24 = vpop.f32.mrb[34].mxu0  ;;  %v3455_v36 = vmax.f32 %v3431_v16, 0.0  ;;  %v4086_v19 = vmax.f32 %v3586_v51, 0.0  ;;  %s9351_s28 = scalar_lea.vmem %s13602_s17, 512 }
 0x32d   : > { %v11199_v7 = vpop.f32.mrb[62].mxu1  ;;  %v11201_v5 = vpop.f32.mrb[35].mxu0  ;;  %v3726_v14 = vadd.f32 %v11197_v24, %v11145_v47  ;;  %v3456_v6 = vmax.f32 %v3433_v32, 0.0  ;;  %p9352_p8 = scmp.ne.s32.totalorder %s13602_s17, %s9351_s28 }
 0x32e   : > { %v11203_v0 = vpop.f32.mrb[63].mxu1  ;;  %v3437_v41 = vadd.f32 %v11199_v7, %v11167_v34  ;;  %v3728_v29 = vadd.f32 %v11201_v5, %v11145_v47  ;;  %4112 = vmatprep.subr.mxu0 %v4086_v19 }
 0x32f   : > { %v3439_v38 = vadd.f32 %v11203_v0, %v11167_v34  ;;  %v4089_v40 = vmax.f32 %v3726_v14, 0.0  ;;  %v11298_v24 = vcombine.low %v3455_v36, %v3456_v6  ;;  %v11300_v7 = vcombine.high %v3455_v36, %v3456_v6  ;;  %4113 = vmatpush1.msra.mxu0 %v4085_v59  ;;  %p9353_p1 = pnand %p9352_p8, %p9718_p3 }
 0x330   : > { %v11205_v20 = vpop.f32.mrb[36].mxu0  ;;  %v3471_v2 = vmax.f32 %v3437_v41, 0.0  ;;  %v4090_v8 = vmax.f32 %v3728_v29, 0.0  ;;  %8898 = vmatmul.mubr.msk.f32.vlgmr.msra.gmra.mrb[40].mxu0 %vm4108_vm2, %v11296_v18 }
 0x331   : > { %v11207_v13 = vpop.f32.mrb[64].mxu1  ;;  %v11209_v52 = vpop.f32.mrb[37].mxu0  ;;  %v3472_v21 = vmax.f32 %v3439_v38, 0.0  ;;  %v3868_v32 = vadd.f32 %v11205_v20, %v11145_v47  ;;  %4318 = vmatprep.mubr.f32.mxu0 %v14011_v43  ;;  %p9354_p13 = pneg %p9353_p1 }
 0x332   : > { %v11211_v55 = vpop.f32.mrb[65].mxu1  ;;  %v3870_v0 = vadd.f32 %v11209_v52, %v11145_v47  ;;  %v3655_v61 = vadd.f32 %v11207_v13, %v11145_v47  ;;  %4254 = vmatprep.subr.mxu0 %v4090_v8 }
 0x333   : > { %v3657_v5 = vadd.f32 %v11211_v55, %v11145_v47  ;;  %v11306_v35 = vcombine.low %v3471_v2, %v3472_v21  ;;  %v11308_v16 = vcombine.high %v3471_v2, %v3472_v21  ;;  %4255 = vmatpush1.msra.mxu0 %v4089_v40  ;;  %v4093_v55 = vmax.f32 %v3868_v32, 0.0 }
 0x334   : > { %v11213_v10 = vpop.f32.mrb[38].mxu0  ;;  %v4094_v51 = vmax.f32 %v3870_v0, 0.0  ;;  %v4087_v52 = vmax.f32 %v3655_v61, 0.0  ;;  %8900 = vmatmul.mubr.msk.f32.vlgmr.msra.gmra.mrb[42].mxu0 %vm4108_vm2, %v11296_v18 }
 0x335   : > { %v11215_v25 = vpop.f32.mrb[66].mxu1  ;;  %v11217_v33 = vpop.f32.mrb[39].mxu0  ;;  %v4088_v36 = vmax.f32 %v3657_v5, 0.0  ;;  %v4010_v13 = vadd.f32 %v11213_v10, %v11145_v47  ;;  %4460 = vmatprep.mubr.f32.mxu0 %v14011_v43 }
 0x336   : > { %v11219_v1 = vpop.f32.mrb[67].mxu1  ;;  %4396 = vmatprep.subr.mxu0 %v4094_v51  ;;  %v3797_v20 = vadd.f32 %v11215_v25, %v11145_v47  ;;  %v4012_v41 = vadd.f32 %v11217_v33, %v11145_v47 }
 0x337   : > { %4183 = vmatprep.subr.mxu1 %v4088_v36  ;;  %4397 = vmatpush1.msra.mxu0 %v4093_v55  ;;  %v3799_v14 = vadd.f32 %v11219_v1, %v11145_v47  ;;  %v4097_v38 = vmax.f32 %v4010_v13, 0.0 }
 0x338   : > { %4184 = vmatpush1.msra.mxu1 %v4087_v52  ;;  %8902 = vmatmul.mubr.msk.f32.vlgmr.msra.gmra.mrb[44].mxu0 %vm4108_vm2, %v11296_v18  ;;  %v4098_v59 = vmax.f32 %v4012_v41, 0.0  ;;  %v4091_v29 = vmax.f32 %v3797_v20, 0.0 }
 0x339   : > { %v11225_v37 = vpop.f32.mrb[68].mxu1  ;;  %8899 = vmatmul.mubr.msk.f32.vlgmr.msra.gmra.mrb[72].mxu1 %vm4108_vm2, %v11296_v18  ;;  %v4092_v1 = vmax.f32 %v3799_v14, 0.0  ;;  %4602 = vmatprep.mubr.f32.mxu0 %v14011_v43 }
 0x33a   : > { %v11227_v49 = vpop.f32.mrb[69].mxu1  ;;  %4389 = vmatprep.mubr.f32.mxu1 %v14011_v43  ;;  %v3939_v33 = vadd.f32 %v11225_v37, %v11145_v47  ;;  %4538 = vmatprep.subr.mxu0 %v4098_v59  ;;  %v2900_v37 = vadd.f32 %v11155_v31, %v11167_v34  ;;  %v11379_v59 = vld [vmem:[%s14064_s15 + $0x8] sm:$0xff] }
 0x33b   : > { %v3941_v25 = vadd.f32 %v11227_v49, %v11145_v47  ;;  %4325 = vmatprep.subr.mxu1 %v4092_v1  ;;  %4539 = vmatpush1.msra.mxu0 %v4097_v38 }
 0x33c   : > { %4326 = vmatpush1.msra.mxu1 %v4091_v29  ;;  %v4095_v2 = vmax.f32 %v3939_v33, 0.0  ;;  %8904 = vmatmul.mubr.msk.f32.vlgmr.msra.gmra.mrb[46].mxu0 %vm4108_vm2, %v11296_v18  ;;  %v3458_v40 = vmax.f32 %v2900_v37, 0.0 }
 0x33d   : > { %v11241_v30 = vpop.f32.mrb[70].mxu1  ;;  %v4096_v6 = vmax.f32 %v3941_v25, 0.0  ;;  %8901 = vmatmul.mubr.msk.f32.vlgmr.msra.gmra.mrb[74].mxu1 %vm4108_vm2, %v11296_v18  ;;  %4780 = vmatprep.mubr.f32.mxu0 %v14011_v43 }
 0x33e   : > { %v11243_v48 = vpop.f32.mrb[71].mxu1  ;;  %v4081_v49 = vadd.f32 %v11241_v30, %v11145_v47  ;;  %4531 = vmatprep.mubr.f32.mxu1 %v14011_v43 }
 0x33f   : > { %v4083_v10 = vadd.f32 %v11243_v48, %v11145_v47  ;;  %4467 = vmatprep.subr.mxu1 %v4096_v6  ;;  %v2898_v47 = vadd.f32 %v11153_v58, %v11167_v34 }
 0x340   : > { %4468 = vmatpush1.msra.mxu1 %v4095_v2  ;;  %v4099_v48 = vmax.f32 %v4081_v49, 0.0 }
 0x341   : > { %v4100_v19 = vmax.f32 %v4083_v10, 0.0  ;;  %8903 = vmatmul.mubr.msk.f32.vlgmr.msra.gmra.mrb[76].mxu1 %vm4108_vm2, %v11296_v18  ;;  %v3457_v30 = vmax.f32 %v2898_v47, 0.0 }
 0x342   : > { %4673 = vmatprep.mubr.f32.mxu1 %v14011_v43 }
 0x343   : > { %4609 = vmatprep.subr.mxu1 %v4100_v19  ;;  %v11358_v8 = vcombine.low %v3457_v30, %v3458_v40  ;;  %v11360_v21 = vcombine.high %v3457_v30, %v3458_v40 }
 0x344   : > { %4610 = vmatpush1.msra.mxu1 %v4099_v48 }
 0x345   : > { %8905 = vmatmul.mubr.msk.f32.vlgmr.msra.gmra.mrb[78].mxu1 %vm4108_vm2, %v11296_v18  ;;  %v11368_v18 = vld [vmem:[%s14064_s15] sm:$0xff] }
 0x346   : > { %4857 = vmatprep.mubr.f32.mxu1 %v14011_v43 }
 0x403   : > { %v4178_v5 = vpop.f32.mrb[40].mxu0 }
 0x404   : > { %v4179_v58 = vadd.f32 %v4178_v5, %v11151_v57  ;;  %v4180_v0 = vpop.f32.mrb[41].mxu0 }
 0x405   : > { %v4181_v61 = vadd.f32 %v4180_v0, %v11151_v57 }
 0x406   : > { %v4680_v31 = vmax.f32 %v4179_v58, 0.0 }
 0x407   : > { %v4681_v32 = vmax.f32 %v4181_v61, 0.0  ;;  %v4320_v36 = vpop.f32.mrb[42].mxu0 }
 0x408   : > { %v4321_v34 = vadd.f32 %v4320_v36, %v11151_v57  ;;  %v4322_v51 = vpop.f32.mrb[43].mxu0 }
 0x409   : > { %v4323_v52 = vadd.f32 %v4322_v51, %v11151_v57  ;;  %4716 = vmatprep.subr.mxu0 %v4681_v32 }
 0x40a   : > { %4717 = vmatpush1.msra.mxu0 %v4680_v31  ;;  %v4684_v25 = vmax.f32 %v4321_v34, 0.0 }
 0x40b   : > { %v4685_v20 = vmax.f32 %v4323_v52, 0.0  ;;  %v4462_v14 = vpop.f32.mrb[44].mxu0  ;;  %8906 = vmatmul.mubr.msk.f32.vlgmr.msra.gmra.mrb[48].mxu0 %vm4108_vm2, %v11368_v18 }
 0x40c   : > { %v4249_v55 = vpop.f32.mrb[72].mxu1  ;;  %v4464_v1 = vpop.f32.mrb[45].mxu0  ;;  %4786 = vmatprep.mubr.f32.mxu0 %v14011_v43  ;;  %v4463_v29 = vadd.f32 %v4462_v14, %v11151_v57 }
 0x40d   : > { %v4250_v13 = vadd.f32 %v4249_v55, %v11151_v57  ;;  %v4251_v41 = vpop.f32.mrb[73].mxu1  ;;  %v4465_v33 = vadd.f32 %v4464_v1, %v11151_v57  ;;  %4870 = vmatprep.subr.mxu0 %v4685_v20 }
 0x40e   : > { %v4252_v10 = vadd.f32 %v4251_v41, %v11151_v57  ;;  %4871 = vmatpush1.msra.mxu0 %v4684_v25  ;;  %v4688_v30 = vmax.f32 %v4463_v29, 0.0 }
 0x40f   : > { %v4682_v6 = vmax.f32 %v4250_v13, 0.0  ;;  %v4689_v49 = vmax.f32 %v4465_v33, 0.0  ;;  %8907 = vmatmul.mubr.msk.f32.gmra.mrb[50].mxu0 %vm4108_vm2, %v11379_v59  ;;  %v4604_v2 = vpop.f32.mrb[46].mxu0 }
 0x410   : > { %v4683_v38 = vmax.f32 %v4252_v10, 0.0  ;;  %v4391_v19 = vpop.f32.mrb[74].mxu1  ;;  %4934 = vmatprep.mubr.f32.mxu0 %v14011_v43  ;;  %v4606_v37 = vpop.f32.mrb[47].mxu0  ;;  %v4605_v31 = vadd.f32 %v4604_v2, %v11151_v57 }
 0x411   : > { %v4392_v48 = vadd.f32 %v4391_v19, %v11151_v57  ;;  %v4393_v47 = vpop.f32.mrb[75].mxu1  ;;  %5024 = vmatprep.subr.mxu0 %v4689_v49  ;;  %v4607_v5 = vadd.f32 %v4606_v37, %v11151_v57 }
 0x412   : > { %4793 = vmatprep.subr.mxu1 %v4683_v38  ;;  %v4394_v40 = vadd.f32 %v4393_v47, %v11151_v57  ;;  %v4692_v13 = vmax.f32 %v4605_v31, 0.0 }
 0x413   : > { %4794 = vmatpush1.msra.mxu1 %v4682_v6  ;;  %8910 = vmatmul.mubr.msk.f32.vlgmr.msra.gmra.mrb[52].mxu0 %vm4108_vm2, %v11368_v18  ;;  %v4693_v0 = vmax.f32 %v4607_v5, 0.0  ;;  %v4686_v32 = vmax.f32 %v4392_v48, 0.0 }
 0x414   : > { %8908 = vmatmul.mubr.msk.f32.vlgmr.msra.gmra.mrb[80].mxu1 %vm4108_vm2, %v11368_v18  ;;  %v4687_v58 = vmax.f32 %v4394_v40, 0.0  ;;  %v4533_v61 = vpop.f32.mrb[76].mxu1  ;;  %5025 = vmatpush1.msra.mxu0 %v4688_v30  ;;  %v14067_v30 = vld [vmem:[#allocation22_spill] sm:$0xff] }
 0x415   : > { %4863 = vmatprep.mubr.f32.mxu1 %v14011_v43  ;;  %4940 = vmatprep.mubr.f32.mxu0 %v14011_v43  ;;  %v4535_v36 = vpop.f32.mrb[77].mxu1  ;;  %v4534_v51 = vadd.f32 %v4533_v61, %v11151_v57 }
 0x416   : > { %v4536_v34 = vadd.f32 %v4535_v36, %v11151_v57  ;;  %4947 = vmatprep.subr.mxu1 %v4687_v58  ;;  %5178 = vmatprep.subr.mxu0 %v4693_v0 }
 0x417   : > { %4948 = vmatpush1.msra.mxu1 %v4686_v32  ;;  %8911 = vmatmul.mubr.msk.f32.gmra.mrb[54].mxu0 %vm4108_vm2, %v11379_v59  ;;  %v4690_v41 = vmax.f32 %v4534_v51, 0.0 }
 0x418   : > { %v4691_v52 = vmax.f32 %v4536_v34, 0.0  ;;  %v4675_v55 = vpop.f32.mrb[78].mxu1  ;;  %8909 = vmatmul.mubr.msk.f32.gmra.mrb[82].mxu1 %vm4108_vm2, %v11379_v59  ;;  %5088 = vmatprep.mubr.f32.mxu0 %v14011_v43 }
 0x419   : > { %v4677_v20 = vpop.f32.mrb[79].mxu1  ;;  %5011 = vmatprep.mubr.f32.mxu1 %v14011_v43  ;;  %v4676_v10 = vadd.f32 %v4675_v55, %v11151_v57 }
 0x41a   : > { %v4678_v14 = vadd.f32 %v4677_v20, %v11151_v57  ;;  %5101 = vmatprep.subr.mxu1 %v4691_v52  ;;  %v14065_v57 = vld [vmem:[#allocation20_spill] sm:$0xff] }
 0x41b   : > { %8914 = vmatmul.mubr.msk.f32.vlgmr.msra.gmra.mrb[56].mxu0 %vm4108_vm2, %v11368_v18  ;;  %v4694_v1 = vmax.f32 %v4676_v10, 0.0  ;;  %v5376_v33 = vrot.slane %v11157_v62, %v14065_v57  ;;  %v5383_v29 = vrot.slane %v11159_v3, %v14065_v57  ;;  %v14066_v3 = vld [vmem:[#allocation21_spill] sm:$0xff]  ;;  %v6096_v31 = vrot.slane %v11177_v50, %v14065_v57 }
 0x41c   : > { %v4695_v25 = vmax.f32 %v4678_v14, 0.0  ;;  %8912 = vmatmul.mubr.msk.f32.vlgmr.msra.gmra.mrb[84].mxu1 %vm4108_vm2, %v11368_v18  ;;  %5179 = vmatpush1.msra.mxu0 %v4692_v13  ;;  %v6103_v55 = vrot.slane %v11179_v17, %v14065_v57 }
 0x41d   : > { %5102 = vmatpush1.msra.mxu1 %v4690_v41  ;;  %5017 = vmatprep.mubr.f32.mxu1 %v14011_v43  ;;  %v5384_v38 = vcombine.high %v5376_v33, %v5376_v33  ;;  %v5385_v6 = vcombine.high %v5383_v29, %v5383_v29  ;;  %v5392_v49 = vrot.slane %v5376_v33, %v14065_v57 }
 0x41e   : > { %5255 = vmatprep.subr.mxu1 %v4695_v25  ;;  %5094 = vmatprep.mubr.f32.mxu0 %v14011_v43  ;;  %v5399_v19 = vrot.slane %v5383_v29, %v14065_v57 }
 0x41f   : > { %8915 = vmatmul.mubr.msk.f32.gmra.mrb[58].mxu0 %vm4108_vm2, %v11379_v59  ;;  %v5406_v2 = vrot.slane %v5384_v38, %v14065_v57  ;;  %v5414_v62 = vcombine.high %v5392_v49, %v5392_v49  ;;  %v11447_v37 = vrot.slane %v5392_v49, %v14066_v3  ;;  %v11450_v40 = vrot.slane %v5392_v49, %v14067_v30 }
 0x420   : > { %8913 = vmatmul.mubr.msk.f32.gmra.mrb[86].mxu1 %vm4108_vm2, %v11379_v59  ;;  %5242 = vmatprep.mubr.f32.mxu0 %v14011_v43  ;;  %v5415_v48 = vcombine.high %v5399_v19, %v5399_v19  ;;  %v11453_v0 = vrot.slane %v5399_v19, %v14066_v3  ;;  %v6104_v38 = vcombine.high %v6096_v31, %v6096_v31 }
 0x421   : > { %5165 = vmatprep.mubr.f32.mxu1 %v14011_v43  ;;  %v5416_v47 = vcombine.high %v5406_v2, %v5406_v2  ;;  %v11462_v32 = vrot.slane %v5406_v2, %v14067_v30  ;;  %v11468_v34 = vrot.slane %v5414_v62, %v14066_v3  ;;  %v11471_v51 = vrot.slane %v5414_v62, %v14067_v30 }
 0x422   : > { %14068 = vst [vmem:[#allocation25_spill] sm:$0xff] %v11453_v0  ;;  %v11490_v25 = vrot.slane %v5415_v48, %v14066_v3  ;;  %v11493_v10 = vrot.slane %v5415_v48, %v14067_v30  ;;  %v6105_v49 = vcombine.high %v6103_v55, %v6103_v55 }
 0x423   : > { %8918 = vmatmul.mubr.msk.f32.vlgmr.msra.gmra.mrb[60].mxu0 %vm4108_vm2, %v11368_v18  ;;  %v11477_v20 = vrot.slane %v5416_v47, %v14066_v3  ;;  %v11487_v41 = vrot.slane %v5416_v47, %v14067_v30 }
 0x424   : > { %8916 = vmatmul.mubr.msk.f32.vlgmr.msra.gmra.mrb[88].mxu1 %vm4108_vm2, %v11368_v18  ;;  %5248 = vmatprep.mubr.f32.mxu0 %v14011_v43  ;;  %14074 = vst [vmem:[#allocation34_spill] sm:$0xff] %v11490_v25  ;;  %14075 = vst [vmem:[#allocation30_spill] sm:$0xff] %v11493_v10 }
 0x425   : > { %5256 = vmatpush1.msra.mxu1 %v4694_v1  ;;  %5171 = vmatprep.mubr.f32.mxu1 %v14011_v43  ;;  %14070 = vst [vmem:[#allocation26_spill] sm:$0xff] %v11477_v20  ;;  %14073 = vst [vmem:[#allocation29_spill] sm:$0xff] %v11487_v41 }
 0x427   : > { %8919 = vmatmul.mubr.msk.f32.gmra.mrb[62].mxu0 %vm4108_vm2, %v11379_v59 }
 0x428   : > { %8917 = vmatmul.mubr.msk.f32.gmra.mrb[90].mxu1 %vm4108_vm2, %v11379_v59 }
 0x429   : > { %5319 = vmatprep.mubr.f32.mxu1 %v14011_v43 }
 0x42c   : > { %8920 = vmatmul.mubr.msk.f32.vlgmr.msra.gmra.mrb[92].mxu1 %vm4108_vm2, %v11368_v18  ;;  %v5413_v18 = vrot.slane %v5385_v6, %v14065_v57 }
 0x42d   : > { %5325 = vmatprep.mubr.f32.mxu1 %v14011_v43  ;;  %v5704_v43 = vrot.slane %v11173_v46, %v14065_v57  ;;  %v11456_v46 = vrot.slane %v5399_v19, %v14067_v30  ;;  %v6112_v19 = vrot.slane %v6096_v31, %v14065_v57 }
 0x42e   : > { %v5417_v58 = vcombine.high %v5413_v18, %v5413_v18  ;;  %v11480_v13 = vrot.slane %v5413_v18, %v14066_v3  ;;  %v11483_v14 = vrot.slane %v5413_v18, %v14067_v30 }
 0x42f   : > { %v5712_v5 = vcombine.high %v5704_v43, %v5704_v43  ;;  %14069 = vst [vmem:[#allocation28_spill] sm:$0xff] %v11456_v46  ;;  %v5720_v36 = vrot.slane %v5704_v43, %v14065_v57 }
 0x430   : > { %8921 = vmatmul.mubr.msk.f32.gmra.mrb[94].mxu1 %vm4108_vm2, %v11379_v59  ;;  %v5711_v59 = vrot.slane %v11175_v53, %v14065_v57  ;;  %v11459_v53 = vrot.slane %v5406_v2, %v14066_v3  ;;  %14071 = vst [vmem:[#allocation32_spill] sm:$0xff] %v11480_v13  ;;  %14072 = vst [vmem:[#allocation33_spill] sm:$0xff] %v11483_v14  ;;  %v11497_v1 = vrot.slane %v5417_v58, %v14066_v3 }
 0x431   : > { %v5734_v50 = vrot.slane %v5712_v5, %v14065_v57  ;;  %v11500_v33 = vrot.slane %v5417_v58, %v14067_v30  ;;  %v5742_v29 = vcombine.high %v5720_v36, %v5720_v36  ;;  %v6119_v2 = vrot.slane %v6103_v55, %v14065_v57 }
 0x432   : > { %v5713_v61 = vcombine.high %v5711_v59, %v5711_v59  ;;  %v5727_v52 = vrot.slane %v5711_v59, %v14065_v57  ;;  %14076 = vst [vmem:[#allocation35_spill] sm:$0xff] %v11497_v1  ;;  %v11505_v18 = vrot.slane %v5720_v36, %v14066_v3  ;;  %v11508_v59 = vrot.slane %v5720_v36, %v14067_v30 }
 0x433   : > { %14077 = vst [vmem:[#allocation31_spill] sm:$0xff] %v11500_v33  ;;  %v5744_v43 = vcombine.high %v5734_v50, %v5734_v50  ;;  %v11514_v47 = vrot.slane %v5734_v50, %v14066_v3  ;;  %v11517_v5 = vrot.slane %v5734_v50, %v14067_v30  ;;  %v11526_v31 = vrot.slane %v5742_v29, %v14067_v30 }
 0x434   : > { %v5741_v17 = vrot.slane %v5713_v61, %v14065_v57  ;;  %v5743_v6 = vcombine.high %v5727_v52, %v5727_v52  ;;  %v11511_v62 = vrot.slane %v5727_v52, %v14066_v3  ;;  %v11520_v58 = vrot.slane %v5727_v52, %v14067_v30 }
 0x435   : > { %v11523_v61 = vrot.slane %v5742_v29, %v14066_v3  ;;  %14080 = vst [vmem:[#allocation37_spill] sm:$0xff] %v11526_v31  ;;  %v6126_v36 = vrot.slane %v6104_v38, %v14065_v57  ;;  %v5754_v55 = vrot.slane %v11181_v44, %v14065_v57  ;;  %v6133_v52 = vrot.slane %v6105_v49, %v14065_v57 }
 0x436   : > { %14078 = vst [vmem:[#allocation20_spill] sm:$0xff] %v11511_v62  ;;  %v5745_v48 = vcombine.high %v5741_v17, %v5741_v17  ;;  %14079 = vst [vmem:[#allocation36_spill] sm:$0xff] %v11520_v58  ;;  %v11532_v1 = vrot.slane %v5741_v17, %v14066_v3  ;;  %v11535_v50 = vrot.slane %v5741_v17, %v14067_v30 }
 0x437   : > { %v5761_v33 = vrot.slane %v11183_v39, %v14065_v57  ;;  %v11541_v25 = vrot.slane %v5744_v43, %v14066_v3  ;;  %v11544_v29 = vrot.slane %v5744_v43, %v14067_v30  ;;  %v11547_v38 = vrot.slane %v5743_v6, %v14066_v3 }
 0x438   : > { %14081 = vst [vmem:[#allocation38_spill] sm:$0xff] %v11532_v1  ;;  %14082 = vst [vmem:[#allocation39_spill] sm:$0xff] %v11535_v50  ;;  %v6134_v44 = vcombine.high %v6112_v19, %v6112_v19  ;;  %v11550_v10 = vrot.slane %v5743_v6, %v14067_v30  ;;  %v11553_v17 = vrot.slane %v5745_v48, %v14066_v3 }
 0x439   : > { %14083 = vst [vmem:[#allocation40_spill] sm:$0xff] %v11541_v25  ;;  %14084 = vst [vmem:[#allocation41_spill] sm:$0xff] %v11544_v29  ;;  %v11556_v49 = vrot.slane %v5745_v48, %v14067_v30  ;;  %v6135_v39 = vcombine.high %v6119_v2, %v6119_v2  ;;  %v6136_v1 = vcombine.high %v6126_v36, %v6126_v36 }
 0x43a   : > { %14085 = vst [vmem:[#allocation42_spill] sm:$0xff] %v11547_v38  ;;  %14086 = vst [vmem:[#allocation43_spill] sm:$0xff] %v11550_v10  ;;  %v11559_v13 = vrot.slane %v6112_v19, %v14066_v3  ;;  %v11562_v43 = vrot.slane %v6112_v19, %v14067_v30  ;;  %v5762_v50 = vcombine.high %v5754_v55, %v5754_v55 }
 0x43b   : > { %14087 = vst [vmem:[#allocation44_spill] sm:$0xff] %v11553_v17  ;;  %14088 = vst [vmem:[#allocation45_spill] sm:$0xff] %v11556_v49  ;;  %v6137_v38 = vcombine.high %v6133_v52, %v6133_v52  ;;  %v11565_v62 = vrot.slane %v6126_v36, %v14066_v3  ;;  %v11568_v6 = vrot.slane %v6126_v36, %v14067_v30 }
 0x43c   : > { %v5763_v17 = vcombine.high %v5761_v33, %v5761_v33  ;;  %v11571_v48 = vrot.slane %v6134_v44, %v14066_v3  ;;  %v11574_v49 = vrot.slane %v6134_v44, %v14067_v30  ;;  %v5770_v10 = vrot.slane %v5754_v55, %v14065_v57 }
 0x43d   : > { %14089 = vst [vmem:[#allocation46_spill] sm:$0xff] %v11565_v62  ;;  %v6146_v19 = vrot.slane %v11185_v63, %v14065_v57  ;;  %v11580_v58 = vrot.slane %v6119_v2, %v14066_v3  ;;  %v11583_v25 = vrot.slane %v6119_v2, %v14067_v30  ;;  %v5777_v36 = vrot.slane %v5761_v33, %v14065_v57 }
 0x43e   : > { %14090 = vst [vmem:[#allocation47_spill] sm:$0xff] %v11571_v48  ;;  %14091 = vst [vmem:[#allocation48_spill] sm:$0xff] %v11574_v49  ;;  %v6153_v29 = vrot.slane %v11187_v26, %v14065_v57  ;;  %v11589_v48 = vrot.slane %v6136_v1, %v14066_v3  ;;  %v11592_v44 = vrot.slane %v6136_v1, %v14067_v30 }
 0x43f   : > { %14092 = vst [vmem:[#allocation49_spill] sm:$0xff] %v11580_v58  ;;  %14093 = vst [vmem:[#allocation50_spill] sm:$0xff] %v11583_v25  ;;  %v11595_v55 = vrot.slane %v6133_v52, %v14066_v3  ;;  %v5784_v63 = vrot.slane %v5762_v50, %v14065_v57  ;;  %v11599_v58 = vrot.slane %v6133_v52, %v14067_v30 }
 0x440   : > { %14094 = vst [vmem:[#allocation51_spill] sm:$0xff] %v11589_v48  ;;  %14095 = vst [vmem:[#allocation52_spill] sm:$0xff] %v11592_v44  ;;  %v11602_v2 = vrot.slane %v6135_v39, %v14066_v3  ;;  %v11605_v33 = vrot.slane %v6135_v39, %v14067_v30  ;;  %v5791_v26 = vrot.slane %v5763_v17, %v14065_v57 }
 0x441   : > { %14096 = vst [vmem:[#allocation53_spill] sm:$0xff] %v11595_v55  ;;  %14097 = vst [vmem:[#allocation54_spill] sm:$0xff] %v11599_v58  ;;  %v11609_v25 = vrot.slane %v6137_v38, %v14066_v3  ;;  %v11612_v1 = vrot.slane %v6137_v38, %v14067_v30  ;;  %v5792_v55 = vcombine.high %v5770_v10, %v5770_v10 }
 0x442   : > { %14098 = vst [vmem:[#allocation55_spill] sm:$0xff] %v11602_v2  ;;  %14099 = vst [vmem:[#allocation56_spill] sm:$0xff] %v11605_v33  ;;  %v6154_v48 = vcombine.high %v6146_v19, %v6146_v19  ;;  %v5793_v50 = vcombine.high %v5777_v36, %v5777_v36  ;;  %v6155_v44 = vcombine.high %v6153_v29, %v6153_v29 }
 0x443   : > { %14100 = vst [vmem:[#allocation57_spill] sm:$0xff] %v11609_v25  ;;  %14101 = vst [vmem:[#allocation58_spill] sm:$0xff] %v11612_v1  ;;  %v6162_v52 = vrot.slane %v6146_v19, %v14065_v57  ;;  %v6169_v58 = vrot.slane %v6153_v29, %v14065_v57  ;;  %v5794_v2 = vcombine.high %v5784_v63, %v5784_v63 }
 0x444   : > { %v11617_v39 = vrot.slane %v5770_v10, %v14066_v3  ;;  %v11620_v17 = vrot.slane %v5770_v10, %v14067_v30  ;;  %v11623_v25 = vrot.slane %v5777_v36, %v14066_v3  ;;  %v5795_v38 = vcombine.high %v5791_v26, %v5791_v26 }
 0x445   : > { %v11626_v1 = vrot.slane %v5784_v63, %v14066_v3  ;;  %v11629_v33 = vrot.slane %v5784_v63, %v14067_v30  ;;  %v11632_v19 = vrot.slane %v5777_v36, %v14067_v30  ;;  %v11635_v29 = vrot.slane %v5792_v55, %v14066_v3 }
 0x446   : > { %14102 = vst [vmem:[#allocation59_spill] sm:$0xff] %v11617_v39  ;;  %14103 = vst [vmem:[#allocation60_spill] sm:$0xff] %v11620_v17  ;;  %v11638_v39 = vrot.slane %v5792_v55, %v14067_v30  ;;  %v6176_v10 = vrot.slane %v6154_v48, %v14065_v57  ;;  %v11644_v17 = vrot.slane %v5791_v26, %v14066_v3 }
 0x447   : > { %14104 = vst [vmem:[#allocation61_spill] sm:$0xff] %v11623_v25  ;;  %14105 = vst [vmem:[#allocation62_spill] sm:$0xff] %v11626_v1  ;;  %v6488_v25 = vrot.slane %v11233_v60, %v14065_v57  ;;  %v11647_v63 = vrot.slane %v5791_v26, %v14067_v30  ;;  %v6183_v36 = vrot.slane %v6155_v44, %v14065_v57 }
 0x448   : > { %14106 = vst [vmem:[#allocation63_spill] sm:$0xff] %v11629_v33  ;;  %14107 = vst [vmem:[#allocation64_spill] sm:$0xff] %v11632_v19  ;;  %v6495_v19 = vrot.slane %v11235_v9, %v14065_v57  ;;  %v11656_v55 = vrot.slane %v5794_v2, %v14067_v30  ;;  %v11659_v48 = vrot.slane %v5793_v50, %v14066_v3 }
 0x449   : > { %14108 = vst [vmem:[#allocation65_spill] sm:$0xff] %v11635_v29  ;;  %14109 = vst [vmem:[#allocation66_spill] sm:$0xff] %v11638_v39  ;;  %v11653_v29 = vrot.slane %v5794_v2, %v14066_v3  ;;  %v6184_v60 = vcombine.high %v6162_v52, %v6162_v52  ;;  %v11665_v26 = vrot.slane %v5795_v38, %v14066_v3 }
 0x44a   : > { %14110 = vst [vmem:[#allocation67_spill] sm:$0xff] %v11644_v17  ;;  %14111 = vst [vmem:[#allocation68_spill] sm:$0xff] %v11647_v63  ;;  %v11662_v17 = vrot.slane %v5793_v50, %v14067_v30  ;;  %v11668_v44 = vrot.slane %v5795_v38, %v14067_v30  ;;  %v6185_v9 = vcombine.high %v6169_v58, %v6169_v58 }
 0x44b   : > { %14112 = vst [vmem:[#allocation69_spill] sm:$0xff] %v11653_v29  ;;  %14113 = vst [vmem:[#allocation70_spill] sm:$0xff] %v11656_v55  ;;  %v6186_v63 = vcombine.high %v6176_v10, %v6176_v10  ;;  %v11671_v29 = vrot.slane %v6162_v52, %v14066_v3  ;;  %v11674_v2 = vrot.slane %v6162_v52, %v14067_v30 }
 0x44c   : > { %14114 = vst [vmem:[#allocation71_spill] sm:$0xff] %v11659_v48  ;;  %14115 = vst [vmem:[#allocation72_spill] sm:$0xff] %v11662_v17  ;;  %v6496_v55 = vcombine.high %v6488_v25, %v6488_v25  ;;  %v6187_v48 = vcombine.high %v6183_v36, %v6183_v36  ;;  %v11677_v39 = vrot.slane %v6176_v10, %v14066_v3 }
 0x44d   : > { %14116 = vst [vmem:[#allocation73_spill] sm:$0xff] %v11665_v26  ;;  %14117 = vst [vmem:[#allocation74_spill] sm:$0xff] %v11668_v44  ;;  %v11680_v50 = vrot.slane %v6176_v10, %v14067_v30  ;;  %v6497_v26 = vcombine.high %v6495_v19, %v6495_v19  ;;  %v11683_v38 = vrot.slane %v6184_v60, %v14066_v3 }
 0x44e   : > { %14118 = vst [vmem:[#allocation75_spill] sm:$0xff] %v11671_v29  ;;  %14119 = vst [vmem:[#allocation76_spill] sm:$0xff] %v11674_v2  ;;  %v11686_v44 = vrot.slane %v6184_v60, %v14067_v30  ;;  %v6504_v17 = vrot.slane %v6488_v25, %v14065_v57  ;;  %v6880_v52 = vrot.slane %v11237_v23, %v14065_v57  ;;  %v14141_v29 = vld [vmem:[#allocation27_spill] sm:$0xff] }
 0x44f   : > { %14120 = vst [vmem:[#allocation77_spill] sm:$0xff] %v11677_v39  ;;  %14121 = vst [vmem:[#allocation78_spill] sm:$0xff] %v11680_v50  ;;  %v11692_v1 = vrot.slane %v6169_v58, %v14066_v3  ;;  %v11695_v39 = vrot.slane %v6169_v58, %v14067_v30  ;;  %v6511_v10 = vrot.slane %v6495_v19, %v14065_v57  ;;  %v14126_v50 = vld [vmem:[#allocation24_spill] sm:$0xff] }
 0x450   : > { %14122 = vst [vmem:[#allocation79_spill] sm:$0xff] %v11683_v38  ;;  %14123 = vst [vmem:[#allocation80_spill] sm:$0xff] %v11686_v44  ;;  %v6887_v33 = vrot.slane %v14126_v50, %v14065_v57  ;;  %v11701_v38 = vrot.slane %v6186_v63, %v14066_v3  ;;  %v11704_v60 = vrot.slane %v6186_v63, %v14067_v30 }
 0x451   : > { %14124 = vst [vmem:[#allocation81_spill] sm:$0xff] %v11692_v1  ;;  %14125 = vst [vmem:[#allocation82_spill] sm:$0xff] %v11695_v39  ;;  %v11707_v25 = vrot.slane %v6183_v36, %v14066_v3  ;;  %v6518_v23 = vrot.slane %v6496_v55, %v14065_v57  ;;  %v11711_v1 = vrot.slane %v6183_v36, %v14067_v30 }
 0x452   : > { %14127 = vst [vmem:[#allocation24_spill] sm:$0xff] %v11701_v38  ;;  %14128 = vst [vmem:[#allocation83_spill] sm:$0xff] %v11704_v60  ;;  %v11714_v58 = vrot.slane %v6185_v9, %v14066_v3  ;;  %v11717_v19 = vrot.slane %v6185_v9, %v14067_v30  ;;  %v6525_v50 = vrot.slane %v6497_v26, %v14065_v57 }
 0x453   : > { %14129 = vst [vmem:[#allocation84_spill] sm:$0xff] %v11707_v25  ;;  %14130 = vst [vmem:[#allocation85_spill] sm:$0xff] %v11711_v1  ;;  %v11721_v39 = vrot.slane %v6187_v48, %v14066_v3  ;;  %v11724_v63 = vrot.slane %v6187_v48, %v14067_v30  ;;  %v6526_v25 = vcombine.high %v6504_v17, %v6504_v17 }
 0x454   : > { %14131 = vst [vmem:[#allocation86_spill] sm:$0xff] %v11714_v58  ;;  %14132 = vst [vmem:[#allocation87_spill] sm:$0xff] %v11717_v19  ;;  %v6888_v38 = vcombine.high %v6880_v52, %v6880_v52  ;;  %v6527_v55 = vcombine.high %v6511_v10, %v6511_v10  ;;  %v6889_v60 = vcombine.high %v6887_v33, %v6887_v33 }
 0x455   : > { %14133 = vst [vmem:[#allocation88_spill] sm:$0xff] %v11721_v39  ;;  %14134 = vst [vmem:[#allocation89_spill] sm:$0xff] %v11724_v63  ;;  %v6896_v36 = vrot.slane %v6880_v52, %v14065_v57  ;;  %v6903_v1 = vrot.slane %v6887_v33, %v14065_v57  ;;  %v6528_v58 = vcombine.high %v6518_v23, %v6518_v23 }
 0x456   : > { %v11729_v9 = vrot.slane %v6504_v17, %v14066_v3  ;;  %v11732_v26 = vrot.slane %v6504_v17, %v14067_v30  ;;  %v11735_v39 = vrot.slane %v6511_v10, %v14066_v3  ;;  %v6529_v48 = vcombine.high %v6525_v50, %v6525_v50 }
 0x457   : > { %v11738_v63 = vrot.slane %v6518_v23, %v14066_v3  ;;  %v11741_v19 = vrot.slane %v6518_v23, %v14067_v30  ;;  %v11744_v52 = vrot.slane %v6511_v10, %v14067_v30  ;;  %v11747_v33 = vrot.slane %v6526_v25, %v14066_v3 }
 0x458   : > { %14135 = vst [vmem:[#allocation90_spill] sm:$0xff] %v11735_v39  ;;  %v11750_v44 = vrot.slane %v6526_v25, %v14067_v30  ;;  %v6910_v17 = vrot.slane %v6888_v38, %v14065_v57  ;;  %v6538_v2 = vrot.slane %v14141_v29, %v14065_v57  ;;  %v11756_v39 = vrot.slane %v6525_v50, %v14066_v3 }
 0x459   : > { %14136 = vst [vmem:[#allocation91_spill] sm:$0xff] %v11738_v63  ;;  %14137 = vst [vmem:[#allocation92_spill] sm:$0xff] %v11741_v19  ;;  %v11759_v23 = vrot.slane %v6525_v50, %v14067_v30  ;;  %v6917_v10 = vrot.slane %v6889_v60, %v14065_v57  ;;  %v11768_v25 = vrot.slane %v6528_v58, %v14067_v30 }
 0x45a   : > { %14138 = vst [vmem:[#allocation93_spill] sm:$0xff] %v11744_v52  ;;  %14139 = vst [vmem:[#allocation94_spill] sm:$0xff] %v11747_v33  ;;  %v6545_v52 = vrot.slane %v11247_v22, %v14065_v57  ;;  %v11765_v33 = vrot.slane %v6528_v58, %v14066_v3  ;;  %v11771_v38 = vrot.slane %v6527_v55, %v14066_v3 }
 0x45b   : > { %14140 = vst [vmem:[#allocation95_spill] sm:$0xff] %v11750_v44  ;;  %14142 = vst [vmem:[#allocation27_spill] sm:$0xff] %v11756_v39  ;;  %v6918_v29 = vcombine.high %v6896_v36, %v6896_v36  ;;  %v11774_v39 = vrot.slane %v6527_v55, %v14067_v30  ;;  %v11777_v50 = vrot.slane %v6529_v48, %v14066_v3 }
 0x45c   : > { %14143 = vst [vmem:[#allocation96_spill] sm:$0xff] %v11759_v23  ;;  %14144 = vst [vmem:[#allocation97_spill] sm:$0xff] %v11765_v33  ;;  %v11780_v60 = vrot.slane %v6529_v48, %v14067_v30  ;;  %v6919_v22 = vcombine.high %v6903_v1, %v6903_v1  ;;  %v6920_v23 = vcombine.high %v6910_v17, %v6910_v17 }
 0x45d   : > { %14145 = vst [vmem:[#allocation98_spill] sm:$0xff] %v11768_v25  ;;  %14146 = vst [vmem:[#allocation99_spill] sm:$0xff] %v11771_v38  ;;  %v11783_v33 = vrot.slane %v6896_v36, %v14066_v3  ;;  %v11786_v58 = vrot.slane %v6896_v36, %v14067_v30  ;;  %v6546_v25 = vcombine.high %v6538_v2, %v6538_v2 }
 0x45e   : > { %14147 = vst [vmem:[#allocation100_spill] sm:$0xff] %v11774_v39  ;;  %14148 = vst [vmem:[#allocation101_spill] sm:$0xff] %v11777_v50  ;;  %v6921_v38 = vcombine.high %v6917_v10, %v6917_v10  ;;  %v11789_v44 = vrot.slane %v6910_v17, %v14066_v3  ;;  %v11792_v55 = vrot.slane %v6910_v17, %v14067_v30 }
 0x45f   : > { %14149 = vst [vmem:[#allocation102_spill] sm:$0xff] %v11780_v60  ;;  %v6547_v50 = vcombine.high %v6545_v52, %v6545_v52  ;;  %v11795_v48 = vrot.slane %v6918_v29, %v14066_v3  ;;  %v11798_v60 = vrot.slane %v6918_v29, %v14067_v30  ;;  %v6554_v39 = vrot.slane %v6538_v2, %v14065_v57 }
 0x460   : > { %14150 = vst [vmem:[#allocation103_spill] sm:$0xff] %v11789_v44  ;;  %14151 = vst [vmem:[#allocation104_spill] sm:$0xff] %v11792_v55  ;;  %v6930_v36 = vrot.slane %v11249_v28, %v14065_v57  ;;  %v11804_v49 = vrot.slane %v6903_v1, %v14066_v3  ;;  %v11807_v31 = vrot.slane %v6903_v1, %v14067_v30 }
 0x461   : > { %14152 = vst [vmem:[#allocation105_spill] sm:$0xff] %v11795_v48  ;;  %14153 = vst [vmem:[#allocation106_spill] sm:$0xff] %v11798_v60  ;;  %v6561_v17 = vrot.slane %v6545_v52, %v14065_v57  ;;  %v6937_v44 = vrot.slane %v11251_v56, %v14065_v57  ;;  %v11813_v48 = vrot.slane %v6920_v23, %v14066_v3 }
 0x462   : > { %14154 = vst [vmem:[#allocation107_spill] sm:$0xff] %v11804_v49  ;;  %14155 = vst [vmem:[#allocation108_spill] sm:$0xff] %v11807_v31  ;;  %v11816_v29 = vrot.slane %v6920_v23, %v14067_v30  ;;  %v11819_v2 = vrot.slane %v6917_v10, %v14066_v3  ;;  %v6568_v28 = vrot.slane %v6546_v25, %v14065_v57 }
 0x463   : > { %14156 = vst [vmem:[#allocation109_spill] sm:$0xff] %v11813_v48  ;;  %v11823_v49 = vrot.slane %v6917_v10, %v14067_v30  ;;  %v11826_v1 = vrot.slane %v6919_v22, %v14066_v3  ;;  %v11829_v52 = vrot.slane %v6919_v22, %v14067_v30  ;;  %v6575_v56 = vrot.slane %v6547_v50, %v14065_v57 }
 0x464   : > { %14157 = vst [vmem:[#allocation110_spill] sm:$0xff] %v11816_v29  ;;  %14158 = vst [vmem:[#allocation111_spill] sm:$0xff] %v11819_v2  ;;  %v11833_v31 = vrot.slane %v6921_v38, %v14066_v3  ;;  %v11836_v23 = vrot.slane %v6921_v38, %v14067_v30  ;;  %v6576_v2 = vcombine.high %v6554_v39, %v6554_v39 }
 0x465   : > { %14159 = vst [vmem:[#allocation112_spill] sm:$0xff] %v11823_v49  ;;  %14160 = vst [vmem:[#allocation113_spill] sm:$0xff] %v11826_v1  ;;  %v6938_v48 = vcombine.high %v6930_v36, %v6930_v36  ;;  %v6577_v25 = vcombine.high %v6561_v17, %v6561_v17  ;;  %v6939_v29 = vcombine.high %v6937_v44, %v6937_v44 }
 0x466   : > { %14161 = vst [vmem:[#allocation114_spill] sm:$0xff] %v11829_v52  ;;  %14162 = vst [vmem:[#allocation115_spill] sm:$0xff] %v11833_v31  ;;  %v6946_v10 = vrot.slane %v6930_v36, %v14065_v57  ;;  %v6953_v49 = vrot.slane %v6937_v44, %v14065_v57  ;;  %v6578_v1 = vcombine.high %v6568_v28, %v6568_v28 }
 0x467   : > { %14163 = vst [vmem:[#allocation116_spill] sm:$0xff] %v11836_v23  ;;  %v11841_v22 = vrot.slane %v6554_v39, %v14066_v3  ;;  %v11844_v50 = vrot.slane %v6554_v39, %v14067_v30  ;;  %v11847_v31 = vrot.slane %v6561_v17, %v14066_v3  ;;  %v6579_v38 = vcombine.high %v6575_v56, %v6575_v56 }
 0x468   : > { %v11850_v23 = vrot.slane %v6568_v28, %v14066_v3  ;;  %v11853_v52 = vrot.slane %v6561_v17, %v14067_v30  ;;  %v7272_v44 = vrot.slane %v11261_v45, %v14065_v57  ;;  %v11858_v36 = vrot.slane %v6568_v28, %v14067_v30 }
 0x469   : > { %14164 = vst [vmem:[#allocation117_spill] sm:$0xff] %v11841_v22  ;;  %14165 = vst [vmem:[#allocation118_spill] sm:$0xff] %v11844_v50  ;;  %v11861_v22 = vrot.slane %v6576_v2, %v14066_v3  ;;  %v11864_v39 = vrot.slane %v6576_v2, %v14067_v30  ;;  %v11868_v50 = vrot.slane %v6575_v56, %v14066_v3 }
 0x46a   : > { %14166 = vst [vmem:[#allocation119_spill] sm:$0xff] %v11847_v31  ;;  %14167 = vst [vmem:[#allocation120_spill] sm:$0xff] %v11850_v23  ;;  %v6960_v31 = vrot.slane %v6938_v48, %v14065_v57  ;;  %v11871_v17 = vrot.slane %v6575_v56, %v14067_v30  ;;  %v7279_v45 = vrot.slane %v11263_v42, %v14065_v57 }
 0x46b   : > { %14168 = vst [vmem:[#allocation121_spill] sm:$0xff] %v11853_v52  ;;  %14169 = vst [vmem:[#allocation122_spill] sm:$0xff] %v11858_v36  ;;  %v6967_v52 = vrot.slane %v6939_v29, %v14065_v57  ;;  %v11877_v28 = vrot.slane %v6578_v1, %v14066_v3  ;;  %v11883_v2 = vrot.slane %v6577_v25, %v14066_v3 }
 0x46c   : > { %14170 = vst [vmem:[#allocation123_spill] sm:$0xff] %v11861_v22  ;;  %14171 = vst [vmem:[#allocation124_spill] sm:$0xff] %v11864_v39  ;;  %v11880_v22 = vrot.slane %v6578_v1, %v14067_v30  ;;  %v6968_v48 = vcombine.high %v6946_v10, %v6946_v10  ;;  %v11889_v56 = vrot.slane %v6579_v38, %v14066_v3 }
 0x46d   : > { %14172 = vst [vmem:[#allocation125_spill] sm:$0xff] %v11868_v50  ;;  %14173 = vst [vmem:[#allocation126_spill] sm:$0xff] %v11871_v17  ;;  %v11886_v50 = vrot.slane %v6577_v25, %v14067_v30  ;;  %v11892_v29 = vrot.slane %v6579_v38, %v14067_v30  ;;  %v7280_v42 = vcombine.high %v7272_v44, %v7272_v44 }
 0x46e   : > { %14174 = vst [vmem:[#allocation127_spill] sm:$0xff] %v11877_v28  ;;  %14175 = vst [vmem:[#allocation128_spill] sm:$0xff] %v11880_v22  ;;  %v6969_v17 = vcombine.high %v6953_v49, %v6953_v49  ;;  %v6970_v39 = vcombine.high %v6960_v31, %v6960_v31  ;;  %v11895_v28 = vrot.slane %v6946_v10, %v14066_v3 }
 0x46f   : > { %14176 = vst [vmem:[#allocation129_spill] sm:$0xff] %v11883_v2  ;;  %14177 = vst [vmem:[#allocation130_spill] sm:$0xff] %v11886_v50  ;;  %v11898_v1 = vrot.slane %v6946_v10, %v14067_v30  ;;  %v6971_v2 = vcombine.high %v6967_v52, %v6967_v52  ;;  %v11901_v22 = vrot.slane %v6960_v31, %v14066_v3 }
 0x470   : > { %14178 = vst [vmem:[#allocation131_spill] sm:$0xff] %v11889_v56  ;;  %14179 = vst [vmem:[#allocation132_spill] sm:$0xff] %v11892_v29  ;;  %v11904_v25 = vrot.slane %v6960_v31, %v14067_v30  ;;  %v7281_v56 = vcombine.high %v7279_v45, %v7279_v45  ;;  %v11907_v38 = vrot.slane %v6968_v48, %v14066_v3 }
 0x471   : > { %14180 = vst [vmem:[#allocation133_spill] sm:$0xff] %v11895_v28  ;;  %14181 = vst [vmem:[#allocation134_spill] sm:$0xff] %v11898_v1  ;;  %v11910_v29 = vrot.slane %v6968_v48, %v14067_v30  ;;  %v7288_v50 = vrot.slane %v7272_v44, %v14065_v57  ;;  %v7664_v10 = vrot.slane %v11265_v27, %v14065_v57 }
 0x472   : > { %14182 = vst [vmem:[#allocation135_spill] sm:$0xff] %v11901_v22  ;;  %14183 = vst [vmem:[#allocation136_spill] sm:$0xff] %v11904_v25  ;;  %v11916_v23 = vrot.slane %v6953_v49, %v14066_v3  ;;  %v11919_v22 = vrot.slane %v6953_v49, %v14067_v30  ;;  %v7302_v31 = vrot.slane %v7280_v42, %v14065_v57 }
 0x473   : > { %14184 = vst [vmem:[#allocation137_spill] sm:$0xff] %v11907_v38  ;;  %14185 = vst [vmem:[#allocation138_spill] sm:$0xff] %v11910_v29  ;;  %v7671_v25 = vrot.slane %v11267_v4, %v14065_v57  ;;  %v11925_v38 = vrot.slane %v6970_v39, %v14066_v3  ;;  %v11928_v48 = vrot.slane %v6970_v39, %v14067_v30 }
 0x474   : > { %14186 = vst [vmem:[#allocation139_spill] sm:$0xff] %v11916_v23  ;;  %14187 = vst [vmem:[#allocation140_spill] sm:$0xff] %v11919_v22  ;;  %v11931_v44 = vrot.slane %v6967_v52, %v14066_v3  ;;  %v7295_v27 = vrot.slane %v7279_v45, %v14065_v57  ;;  %v11935_v23 = vrot.slane %v6967_v52, %v14067_v30 }
 0x475   : > { %14188 = vst [vmem:[#allocation141_spill] sm:$0xff] %v11925_v38  ;;  %14189 = vst [vmem:[#allocation142_spill] sm:$0xff] %v11928_v48  ;;  %v11938_v49 = vrot.slane %v6969_v17, %v14066_v3  ;;  %v11941_v42 = vrot.slane %v6969_v17, %v14067_v30  ;;  %v7309_v4 = vrot.slane %v7281_v56, %v14065_v57 }
 0x476   : > { %14190 = vst [vmem:[#allocation143_spill] sm:$0xff] %v11931_v44  ;;  %14191 = vst [vmem:[#allocation144_spill] sm:$0xff] %v11935_v23  ;;  %v11945_v22 = vrot.slane %v6971_v2, %v14066_v3  ;;  %v11948_v39 = vrot.slane %v6971_v2, %v14067_v30  ;;  %v7310_v44 = vcombine.high %v7288_v50, %v7288_v50 }
 0x477   : > { %14192 = vst [vmem:[#allocation145_spill] sm:$0xff] %v11938_v49  ;;  %14193 = vst [vmem:[#allocation146_spill] sm:$0xff] %v11941_v42  ;;  %v7672_v38 = vcombine.high %v7664_v10, %v7664_v10  ;;  %v11950_v45 = vcombine.high %v7302_v31, %v7302_v31  ;;  %v7673_v52 = vcombine.high %v7671_v25, %v7671_v25 }
 0x478   : > { %14194 = vst [vmem:[#allocation147_spill] sm:$0xff] %v11945_v22  ;;  %14195 = vst [vmem:[#allocation148_spill] sm:$0xff] %v11948_v39  ;;  %v7680_v23 = vrot.slane %v7664_v10, %v14065_v57  ;;  %v7322_v49 = vrot.slane %v11269_v54, %v14065_v57  ;;  %v7311_v17 = vcombine.high %v7295_v27, %v7295_v27 }
 0x479   : > { %v11956_v42 = vrot.slane %v7288_v50, %v14066_v3  ;;  %v7687_v56 = vrot.slane %v7671_v25, %v14065_v57  ;;  %v7329_v2 = vrot.slane %v11271_v15, %v14065_v57  ;;  %v11961_v22 = vcombine.high %v7309_v4, %v7309_v4 }
 0x47a   : > { %v11964_v39 = vrot.slane %v7288_v50, %v14067_v30  ;;  %v11967_v48 = vrot.slane %v7295_v27, %v14066_v3  ;;  %v11970_v10 = vrot.slane %v7295_v27, %v14067_v30  ;;  %v11973_v54 = vrot.slane %v7302_v31, %v14066_v3 }
 0x47b   : > { %14196 = vst [vmem:[#allocation149_spill] sm:$0xff] %v11956_v42  ;;  %v11976_v29 = vrot.slane %v7302_v31, %v14067_v30  ;;  %v11979_v25 = vrot.slane %v7310_v44, %v14066_v3  ;;  %v11982_v15 = vrot.slane %v7310_v44, %v14067_v30  ;;  %v11986_v50 = vrot.slane %v11950_v45, %v14066_v3 }
 0x47c   : > { %14197 = vst [vmem:[#allocation150_spill] sm:$0xff] %v11964_v39  ;;  %14198 = vst [vmem:[#allocation151_spill] sm:$0xff] %v11967_v48  ;;  %v11989_v36 = vrot.slane %v7309_v4, %v14066_v3  ;;  %v11992_v27 = vrot.slane %v7309_v4, %v14067_v30  ;;  %v7330_v28 = vcombine.high %v7322_v49, %v7322_v49 }
 0x47d   : > { %14199 = vst [vmem:[#allocation152_spill] sm:$0xff] %v11970_v10  ;;  %14200 = vst [vmem:[#allocation153_spill] sm:$0xff] %v11973_v54  ;;  %v11995_v31 = vrot.slane %v7311_v17, %v14066_v3  ;;  %v11998_v1 = vrot.slane %v7672_v38, %v14065_v57  ;;  %v12001_v44 = vrot.slane %v7673_v52, %v14065_v57 }
 0x47e   : > { %14201 = vst [vmem:[#allocation154_spill] sm:$0xff] %v11976_v29  ;;  %14202 = vst [vmem:[#allocation155_spill] sm:$0xff] %v11979_v25  ;;  %v7331_v48 = vcombine.high %v7329_v2, %v7329_v2  ;;  %v12004_v10 = vrot.slane %v7311_v17, %v14067_v30  ;;  %v12010_v4 = vcombine.high %v7680_v23, %v7680_v23 }
 0x47f   : > { %14203 = vst [vmem:[#allocation156_spill] sm:$0xff] %v11982_v15  ;;  %14204 = vst [vmem:[#allocation157_spill] sm:$0xff] %v11986_v50  ;;  %v12013_v50 = vcombine.high %v7687_v56, %v7687_v56  ;;  %v12016_v38 = vrot.slane %v7680_v23, %v14066_v3  ;;  %v7714_v52 = vrot.slane %v11273_v11, %v14065_v57 }
 0x480   : > { %14205 = vst [vmem:[#allocation158_spill] sm:$0xff] %v11989_v36  ;;  %14206 = vst [vmem:[#allocation159_spill] sm:$0xff] %v11992_v27  ;;  %v12008_v36 = vrot.slane %v11961_v22, %v14066_v3  ;;  %v7338_v27 = vrot.slane %v7322_v49, %v14065_v57  ;;  %v7721_v17 = vrot.slane %v11275_v12, %v14065_v57 }
 0x481   : > { %14207 = vst [vmem:[#allocation160_spill] sm:$0xff] %v11995_v31  ;;  %14208 = vst [vmem:[#allocation161_spill] sm:$0xff] %v12004_v10  ;;  %v12023_v31 = vrot.slane %v7680_v23, %v14067_v30  ;;  %v7345_v10 = vrot.slane %v7329_v2, %v14065_v57  ;;  %v7352_v49 = vrot.slane %v7330_v28, %v14065_v57 }
 0x482   : > { %14209 = vst [vmem:[#allocation162_spill] sm:$0xff] %v12008_v36  ;;  %14210 = vst [vmem:[#allocation163_spill] sm:$0xff] %v12016_v38  ;;  %v12026_v36 = vrot.slane %v7687_v56, %v14066_v3  ;;  %v12032_v25 = vcombine.high %v11998_v1, %v11998_v1  ;;  %v12036_v11 = vcombine.high %v12001_v44, %v12001_v44 }
 0x483   : > { %14211 = vst [vmem:[#allocation164_spill] sm:$0xff] %v12023_v31  ;;  %v12039_v12 = vrot.slane %v7687_v56, %v14067_v30  ;;  %v7359_v23 = vrot.slane %v7331_v48, %v14065_v57  ;;  %v12048_v28 = vrot.slane %v12010_v4, %v14066_v3  ;;  %v12052_v2 = vrot.slane %v12001_v44, %v14066_v3 }
 0x484   : > { %14212 = vst [vmem:[#allocation165_spill] sm:$0xff] %v12026_v36  ;;  %v12044_v36 = vrot.slane %v11998_v1, %v14066_v3  ;;  %v7360_v15 = vcombine.high %v7338_v27, %v7338_v27  ;;  %v12056_v60 = vrot.slane %v12013_v50, %v14066_v3  ;;  %v7722_v56 = vcombine.high %v7714_v52, %v7714_v52 }
 0x485   : > { %14213 = vst [vmem:[#allocation166_spill] sm:$0xff] %v12039_v12  ;;  %14215 = vst [vmem:[#allocation168_spill] sm:$0xff] %v12048_v28  ;;  %v7723_v12 = vcombine.high %v7721_v17, %v7721_v17  ;;  %v7730_v48 = vrot.slane %v7714_v52, %v14065_v57  ;;  %v7361_v54 = vcombine.high %v7345_v10, %v7345_v10 }
 0x486   : > { %14214 = vst [vmem:[#allocation167_spill] sm:$0xff] %v12044_v36  ;;  %14216 = vst [vmem:[#allocation169_spill] sm:$0xff] %v12052_v2  ;;  %v12059_v63 = vcombine.high %v7352_v49, %v7352_v49  ;;  %v12062_v36 = vrot.slane %v7338_v27, %v14066_v3  ;;  %v7737_v28 = vrot.slane %v7721_v17, %v14065_v57 }
 0x487   : > { %14217 = vst [vmem:[#allocation170_spill] sm:$0xff] %v12056_v60  ;;  %v12065_v62 = vcombine.high %v7359_v23, %v7359_v23  ;;  %v12068_v2 = vrot.slane %v7338_v27, %v14067_v30  ;;  %v12071_v29 = vrot.slane %v7345_v10, %v14066_v3  ;;  %v12074_v60 = vrot.slane %v7345_v10, %v14067_v30 }
 0x488   : > { %14218 = vst [vmem:[#allocation171_spill] sm:$0xff] %v12062_v36  ;;  %v12077_v52 = vrot.slane %v7352_v49, %v14066_v3  ;;  %v12080_v55 = vrot.slane %v7352_v49, %v14067_v30  ;;  %v12083_v36 = vrot.slane %v7360_v15, %v14066_v3  ;;  %v12086_v17 = vrot.slane %v7360_v15, %v14067_v30 }
 0x489   : > { %14219 = vst [vmem:[#allocation172_spill] sm:$0xff] %v12068_v2  ;;  %14220 = vst [vmem:[#allocation173_spill] sm:$0xff] %v12071_v29  ;;  %v12089_v27 = vrot.slane %v7359_v23, %v14066_v3  ;;  %v12092_v29 = vrot.slane %v7359_v23, %v14067_v30  ;;  %v8056_v10 = vrot.slane %v11298_v24, %v14065_v57 }
 0x48a   : > { %14221 = vst [vmem:[#allocation174_spill] sm:$0xff] %v12074_v60  ;;  %14222 = vst [vmem:[#allocation175_spill] sm:$0xff] %v12077_v52  ;;  %v8063_v60 = vrot.slane %v11300_v7, %v14065_v57  ;;  %v12100_v49 = vrot.slane %v12059_v63, %v14066_v3  ;;  %v12106_v15 = vrot.slane %v7722_v56, %v14065_v57 }
 0x48b   : > { %14223 = vst [vmem:[#allocation176_spill] sm:$0xff] %v12080_v55  ;;  %14224 = vst [vmem:[#allocation177_spill] sm:$0xff] %v12083_v36  ;;  %v12103_v36 = vrot.slane %v7361_v54, %v14066_v3  ;;  %v8106_v23 = vrot.slane %v11306_v35, %v14065_v57  ;;  %v12115_v24 = vrot.slane %v12065_v62, %v14066_v3 }
 0x48c   : > { %14225 = vst [vmem:[#allocation178_spill] sm:$0xff] %v12086_v17  ;;  %14226 = vst [vmem:[#allocation179_spill] sm:$0xff] %v12089_v27  ;;  %v12111_v27 = vrot.slane %v7361_v54, %v14067_v30  ;;  %v12118_v7 = vrot.slane %v7723_v12, %v14065_v57  ;;  %v12124_v56 = vcombine.high %v7737_v28, %v7737_v28 }
 0x48d   : > { %14227 = vst [vmem:[#allocation180_spill] sm:$0xff] %v12092_v29  ;;  %14228 = vst [vmem:[#allocation181_spill] sm:$0xff] %v12100_v49  ;;  %v8113_v29 = vrot.slane %v11308_v16, %v14065_v57  ;;  %v12127_v49 = vrot.slane %v7730_v48, %v14066_v3  ;;  %v12130_v35 = vrot.slane %v7730_v48, %v14067_v30 }
 0x48e   : > { %14229 = vst [vmem:[#allocation182_spill] sm:$0xff] %v12103_v36  ;;  %14230 = vst [vmem:[#allocation183_spill] sm:$0xff] %v12111_v27  ;;  %v12122_v36 = vcombine.high %v7730_v48, %v7730_v48  ;;  %v12133_v54 = vrot.slane %v7737_v28, %v14066_v3  ;;  %v8065_v27 = vcombine.high %v8063_v60, %v8063_v60 }
 0x48f   : > { %14231 = vst [vmem:[#allocation184_spill] sm:$0xff] %v12115_v24  ;;  %14232 = vst [vmem:[#allocation185_spill] sm:$0xff] %v12127_v49  ;;  %v8064_v24 = vcombine.high %v8056_v10, %v8056_v10  ;;  %v8072_v12 = vrot.slane %v8056_v10, %v14065_v57  ;;  %v12138_v16 = vcombine.high %v12106_v15, %v12106_v15 }
 0x490   : > { %14233 = vst [vmem:[#allocation186_spill] sm:$0xff] %v12130_v35  ;;  %14234 = vst [vmem:[#allocation187_spill] sm:$0xff] %v12133_v54  ;;  %v12141_v17 = vrot.slane %v7737_v28, %v14067_v30  ;;  %v8079_v52 = vrot.slane %v8063_v60, %v14065_v57  ;;  %v8114_v55 = vcombine.high %v8106_v23, %v8106_v23 }
 0x491   : > { %v8115_v49 = vcombine.high %v8113_v29, %v8113_v29  ;;  %v8122_v48 = vrot.slane %v8106_v23, %v14065_v57  ;;  %v12146_v35 = vrot.slane %v8113_v29, %v14065_v57  ;;  %v5426_v54 = vrot.slane %v11358_v8, %v14065_v57 }
 0x492   : > { %14235 = vst [vmem:[#allocation188_spill] sm:$0xff] %v12141_v17  ;;  %v12152_v10 = vcombine.high %v12118_v7, %v12118_v7  ;;  %v12156_v28 = vrot.slane %v12106_v15, %v14066_v3  ;;  %v12160_v60 = vrot.slane %v12122_v36, %v14066_v3  ;;  %v12164_v23 = vrot.slane %v12118_v7, %v14066_v3 }
 0x493   : > { %v12168_v29 = vrot.slane %v12124_v56, %v14066_v3  ;;  %v8086_v8 = vrot.slane %v8064_v24, %v14065_v57  ;;  %v8093_v17 = vrot.slane %v8065_v27, %v14065_v57  ;;  %v8094_v2 = vcombine.high %v8072_v12, %v8072_v12 }
 0x494   : > { %14236 = vst [vmem:[#allocation189_spill] sm:$0xff] %v12152_v10  ;;  %14237 = vst [vmem:[#allocation190_spill] sm:$0xff] %v12156_v28  ;;  %v8095_v19 = vcombine.high %v8079_v52, %v8079_v52  ;;  %v12173_v28 = vrot.slane %v8072_v12, %v14066_v3  ;;  %v12176_v42 = vrot.slane %v8079_v52, %v14066_v3 }
 0x495   : > { %14238 = vst [vmem:[#allocation191_spill] sm:$0xff] %v12160_v60  ;;  %14239 = vst [vmem:[#allocation192_spill] sm:$0xff] %v12164_v23  ;;  %v8136_v60 = vrot.slane %v8114_v55, %v14065_v57  ;;  %v12180_v23 = vrot.slane %v8115_v49, %v14065_v57  ;;  %v8144_v39 = vcombine.high %v8122_v48, %v8122_v48 }
 0x496   : > { %14240 = vst [vmem:[#allocation193_spill] sm:$0xff] %v12168_v29  ;;  %14241 = vst [vmem:[#allocation194_spill] sm:$0xff] %v12173_v28  ;;  %v12184_v29 = vcombine.high %v12146_v35, %v12146_v35  ;;  %v5434_v24 = vcombine.high %v5426_v54, %v5426_v54  ;;  %v12187_v27 = vrot.slane %v8122_v48, %v14066_v3 }
 0x497   : > { %14242 = vst [vmem:[#allocation195_spill] sm:$0xff] %v12176_v42  ;;  %14243 = vst [vmem:[#allocation196_spill] sm:$0xff] %v12180_v23  ;;  %v12191_v28 = vrot.slane %v12146_v35, %v14066_v3  ;;  %v12194_v42 = vrot.slane %v8072_v12, %v14067_v30  ;;  %v12198_v55 = vrot.slane %v11998_v1, %v14067_v30 }
 0x498   : > { %14244 = vst [vmem:[#allocation197_spill] sm:$0xff] %v12187_v27  ;;  %v12201_v49 = vrot.slane %v8086_v8, %v14067_v30  ;;  %v12204_v31 = vrot.slane %v8086_v8, %v14066_v3  ;;  %v8096_v38 = vcombine.high %v8086_v8, %v8086_v8  ;;  %v5433_v27 = vrot.slane %v11360_v21, %v14065_v57 }
 0x499   : > { %14245 = vst [vmem:[#allocation198_spill] sm:$0xff] %v12191_v28  ;;  %14246 = vst [vmem:[#allocation199_spill] sm:$0xff] %v12198_v55  ;;  %v12210_v28 = vrot.slane %v12010_v4, %v14067_v30  ;;  %v12213_v12 = vrot.slane %v8094_v2, %v14067_v30  ;;  %v12216_v1 = vrot.slane %v8094_v2, %v14066_v3 }
 0x49a   : > { %14247 = vst [vmem:[#allocation200_spill] sm:$0xff] %v12201_v49  ;;  %v5442_v55 = vrot.slane %v5426_v54, %v14065_v57  ;;  %v12221_v49 = vrot.slane %v11950_v45, %v14067_v30  ;;  %v12225_v8 = vrot.slane %v12032_v25, %v14067_v30  ;;  %v12229_v21 = vrot.slane %v12032_v25, %v14066_v3 }
 0x49b   : > { %14248 = vst [vmem:[#allocation201_spill] sm:$0xff] %v12213_v12  ;;  %14249 = vst [vmem:[#allocation202_spill] sm:$0xff] %v12216_v1  ;;  %v5456_v4 = vrot.slane %v5434_v24, %v14065_v57  ;;  %v12233_v12 = vrot.slane %v8079_v52, %v14067_v30  ;;  %v12237_v2 = vrot.slane %v12001_v44, %v14067_v30  ;;  %v14321_v1 = vld [vmem:[#allocation149_spill] sm:$0xff] }
 0x49c   : > { %14250 = vst [vmem:[#allocation203_spill] sm:$0xff] %v12221_v49  ;;  %14251 = vst [vmem:[#allocation204_spill] sm:$0xff] %v12225_v8  ;;  %v12240_v45 = vrot.slane %v8093_v17, %v14067_v30  ;;  %v8097_v54 = vcombine.high %v8093_v17, %v8093_v17  ;;  %v12243_v49 = vrot.slane %v8096_v38, %v14067_v30 }
 0x49d   : > { %14252 = vst [vmem:[#allocation205_spill] sm:$0xff] %v12229_v21  ;;  %14253 = vst [vmem:[#allocation206_spill] sm:$0xff] %v12233_v12  ;;  %v12246_v8 = vrot.slane %v8096_v38, %v14066_v3  ;;  %v12249_v25 = vrot.slane %v8093_v17, %v14066_v3  ;;  %v5435_v24 = vcombine.high %v5433_v27, %v5433_v27 }
 0x49e   : > { %14254 = vst [vmem:[#allocation207_spill] sm:$0xff] %v12237_v2  ;;  %14255 = vst [vmem:[#allocation208_spill] sm:$0xff] %v12240_v45  ;;  %v12253_v52 = vrot.slane %v12013_v50, %v14067_v30  ;;  %v12256_v44 = vrot.slane %v8095_v19, %v14067_v30  ;;  %v12259_v45 = vrot.slane %v8095_v19, %v14066_v3 }
 0x49f   : > { %14256 = vst [vmem:[#allocation209_spill] sm:$0xff] %v12243_v49  ;;  %14257 = vst [vmem:[#allocation210_spill] sm:$0xff] %v12246_v8  ;;  %v5464_v2 = vcombine.high %v5442_v55, %v5442_v55  ;;  %v12263_v12 = vrot.slane %v11961_v22, %v14067_v30  ;;  %v12267_v38 = vrot.slane %v12036_v11, %v14067_v30 }
 0x4a0   : > { %14258 = vst [vmem:[#allocation211_spill] sm:$0xff] %v12249_v25  ;;  %14259 = vst [vmem:[#allocation212_spill] sm:$0xff] %v12253_v52  ;;  %v5466_v17 = vcombine.high %v5456_v4, %v5456_v4  ;;  %v5449_v25 = vrot.slane %v5433_v27, %v14065_v57  ;;  %v12271_v50 = vrot.slane %v8097_v54, %v14067_v30 }
 0x4a1   : > { %14260 = vst [vmem:[#allocation213_spill] sm:$0xff] %v12256_v44  ;;  %14261 = vst [vmem:[#allocation214_spill] sm:$0xff] %v12259_v45  ;;  %v12275_v44 = vrot.slane %v12036_v11, %v14066_v3  ;;  %v12278_v19 = vrot.slane %v8097_v54, %v14066_v3  ;;  %v12281_v22 = vrot.slane %v8122_v48, %v14067_v30 }
 0x4a2   : > { %14262 = vst [vmem:[#allocation215_spill] sm:$0xff] %v12263_v12  ;;  %14263 = vst [vmem:[#allocation216_spill] sm:$0xff] %v12267_v38  ;;  %v12284_v12 = vrot.slane %v5442_v55, %v14067_v30  ;;  %v12287_v38 = vrot.slane %v5442_v55, %v14066_v3  ;;  %v12290_v27 = vrot.slane %v5456_v4, %v14067_v30 }
 0x4a3   : > { %14264 = vst [vmem:[#allocation217_spill] sm:$0xff] %v12271_v50  ;;  %14265 = vst [vmem:[#allocation218_spill] sm:$0xff] %v12275_v44  ;;  %v5463_v50 = vrot.slane %v5435_v24, %v14065_v57  ;;  %v12295_v11 = vrot.slane %v12106_v15, %v14067_v30  ;;  %v12298_v54 = vrot.slane %v5456_v4, %v14066_v3 }
 0x4a4   : > { %14266 = vst [vmem:[#allocation219_spill] sm:$0xff] %v12278_v19  ;;  %14267 = vst [vmem:[#allocation220_spill] sm:$0xff] %v12281_v22  ;;  %v12301_v48 = vrot.slane %v5464_v2, %v14067_v30  ;;  %v8146_v22 = vcombine.high %v8136_v60, %v8136_v60  ;;  %v12307_v55 = vrot.slane %v5464_v2, %v14066_v3 }
 0x4a5   : > { %14268 = vst [vmem:[#allocation221_spill] sm:$0xff] %v12284_v12  ;;  %14269 = vst [vmem:[#allocation222_spill] sm:$0xff] %v12287_v38  ;;  %v12304_v12 = vrot.slane %v8136_v60, %v14067_v30  ;;  %v5465_v57 = vcombine.high %v5449_v25, %v5449_v25  ;;  %v12313_v15 = vrot.slane %v8136_v60, %v14066_v3 }
 0x4a6   : > { %14270 = vst [vmem:[#allocation223_spill] sm:$0xff] %v12290_v27  ;;  %14271 = vst [vmem:[#allocation224_spill] sm:$0xff] %v12295_v11  ;;  %v12310_v27 = vrot.slane %v5466_v17, %v14067_v30  ;;  %v12317_v4 = vrot.slane %v12122_v36, %v14067_v30  ;;  %v12320_v24 = vrot.slane %v5466_v17, %v14066_v3 }
 0x4a7   : > { %14272 = vst [vmem:[#allocation225_spill] sm:$0xff] %v12298_v54  ;;  %14273 = vst [vmem:[#allocation226_spill] sm:$0xff] %v12301_v48  ;;  %v12323_v48 = vrot.slane %v5449_v25, %v14067_v30  ;;  %v12326_v2 = vrot.slane %v8144_v39, %v14067_v30  ;;  %v5467_v60 = vcombine.high %v5463_v50, %v5463_v50 }
 0x4a8   : > { %14274 = vst [vmem:[#allocation227_spill] sm:$0xff] %v12304_v12  ;;  %14275 = vst [vmem:[#allocation228_spill] sm:$0xff] %v12307_v55  ;;  %v12329_v55 = vrot.slane %v8144_v39, %v14066_v3  ;;  %v12336_v36 = vrot.slane %v12059_v63, %v14067_v30  ;;  %v12340_v17 = vrot.slane %v12138_v16, %v14067_v30 }
 0x4a9   : > { %14276 = vst [vmem:[#allocation229_spill] sm:$0xff] %v12310_v27  ;;  %14277 = vst [vmem:[#allocation230_spill] sm:$0xff] %v12313_v15  ;;  %v12332_v27 = vrot.slane %v5449_v25, %v14066_v3  ;;  %v12350_v25 = vrot.slane %v12138_v16, %v14066_v3  ;;  %v12356_v63 = vrot.slane %v5463_v50, %v14066_v3 }
 0x4aa   : > { %14278 = vst [vmem:[#allocation231_spill] sm:$0xff] %v12317_v4  ;;  %14279 = vst [vmem:[#allocation232_spill] sm:$0xff] %v12320_v24  ;;  %v12346_v24 = vrot.slane %v5463_v50, %v14067_v30  ;;  %v12368_v16 = vrot.slane %v12118_v7, %v14067_v30  ;;  %v12388_v7 = vrot.slane %v12180_v23, %v14066_v3 }
 0x4ab   : > { %14280 = vst [vmem:[#allocation233_spill] sm:$0xff] %v12323_v48  ;;  %14281 = vst [vmem:[#allocation234_spill] sm:$0xff] %v12326_v2  ;;  %v12343_v48 = vrot.slane %v8146_v22, %v14067_v30 }
 0x4ac   : > { %14282 = vst [vmem:[#allocation235_spill] sm:$0xff] %v12329_v55  ;;  %14283 = vst [vmem:[#allocation236_spill] sm:$0xff] %v12332_v27  ;;  %v12353_v27 = vrot.slane %v8146_v22, %v14066_v3  ;;  %v12371_v22 = vrot.slane %v5465_v57, %v14066_v3 }
 0x4ad   : > { %14284 = vst [vmem:[#allocation237_spill] sm:$0xff] %v12336_v36  ;;  %14285 = vst [vmem:[#allocation238_spill] sm:$0xff] %v12340_v17  ;;  %v12359_v36 = vrot.slane %v5465_v57, %v14067_v30  ;;  %v14292_v17 = vld [vmem:[#allocation23_spill] sm:$0xff]  ;;  %v12392_v57 = vrot.slane %v12124_v56, %v14067_v30  ;;  %v12412_v56 = vrot.slane %v12152_v10, %v14067_v30 }
 0x4ae   : > { %14286 = vst [vmem:[#allocation239_spill] sm:$0xff] %v12343_v48  ;;  %14287 = vst [vmem:[#allocation240_spill] sm:$0xff] %v12346_v24  ;;  %v12364_v24 = vrot.slane %v12146_v35, %v14067_v30 }
 0x4af   : > { %14288 = vst [vmem:[#allocation241_spill] sm:$0xff] %v12350_v25  ;;  %14289 = vst [vmem:[#allocation242_spill] sm:$0xff] %v12353_v27 }
 0x4b0   : > { %14290 = vst [vmem:[#allocation243_spill] sm:$0xff] %v12356_v63  ;;  %14291 = vst [vmem:[#allocation244_spill] sm:$0xff] %v12359_v36  ;;  %v12376_v63 = vrot.slane %v12180_v23, %v14067_v30  ;;  %v12382_v36 = vrot.slane %v5467_v60, %v14066_v3 }
 0x4b1   : > { %14293 = vst [vmem:[#allocation23_spill] sm:$0xff] %v12364_v24  ;;  %14294 = vst [vmem:[#allocation245_spill] sm:$0xff] %v12368_v16 }
 0x4b2   : > { %14295 = vst [vmem:[#allocation246_spill] sm:$0xff] %v12371_v22  ;;  %14296 = vst [vmem:[#allocation247_spill] sm:$0xff] %v12376_v63  ;;  %v12398_v22 = vpop.permute.xlu0 %4707 }
 0x4b3   : > { %14298 = vst [vmem:[#allocation249_spill] sm:$0xff] %v12382_v36  ;;  %14300 = vst [vmem:[#allocation251_spill] sm:$0xff] %v12388_v7  ;;  %v12408_v36 = vrot.slane %v12065_v62, %v14067_v30 }
 0x4b4   : > { %14301 = vst [vmem:[#allocation252_spill] sm:$0xff] %v12392_v57  ;;  %14306 = vst [vmem:[#allocation257_spill] sm:$0xff] %v12412_v56 }
 0x4b5   : > { %14305 = vst [vmem:[#allocation256_spill] sm:$0xff] %v12408_v36 }
 0x4de   : > { %v4782_v39 = vpop.f32.mrb[48].mxu0 }
 0x4df   : > { %v4783_v55 = vadd.f32 %v4782_v39, %v14292_v17  ;;  %v4784_v48 = vpop.f32.mrb[49].mxu0  ;;  %v12379_v39 = vrot.slane %v5467_v60, %v14067_v30 }
 0x4e0   : > { %v4785_v50 = vadd.f32 %v4784_v48, %v14292_v17  ;;  %v12396_v48 = vrot.slane %v12184_v29, %v14067_v30 }
 0x4e1   : > { %14297 = vst [vmem:[#allocation248_spill] sm:$0xff] %v12379_v39  ;;  %v12384_v35 = vmax.f32 %v4783_v55, 0.0  ;;  %v12404_v55 = vrot.slane %v12184_v29, %v14066_v3 }
 0x4e2   : > { %14302 = vst [vmem:[#allocation253_spill] sm:$0xff] %v12396_v48  ;;  %v12400_v39 = vmax.f32 %v4785_v50, 0.0  ;;  %v4788_v60 = vpop.f32.mrb[50].mxu0 }
 0x4e3   : > { %14299 = vst [vmem:[#allocation250_spill] sm:$0xff] %v12384_v35  ;;  %14304 = vst [vmem:[#allocation255_spill] sm:$0xff] %v12404_v55  ;;  %v4789_v23 = vadd.f32 %v4788_v60, %v12398_v22  ;;  %v4790_v48 = vpop.f32.mrb[51].mxu0  ;;  %v5628_v50 = vmul.f32 %v11447_v37, %v12384_v35  ;;  %v12419_v57 = vmul.f32 %v11459_v53, %v12384_v35 }
 0x4e4   : > { %14303 = vst [vmem:[#allocation254_spill] sm:$0xff] %v12400_v39  ;;  %v12423_v29 = vmul.f32 %v11468_v34, %v12384_v35  ;;  %v4791_v62 = vadd.f32 %v4790_v48, %v12398_v22  ;;  %v5629_v10 = vmul.f32 %v11450_v40, %v12400_v39  ;;  %v5633_v60 = vmul.f32 %v11462_v32, %v12400_v39 }
 0x4e5   : > { %v12432_v3 = vmul.f32 %v11471_v51, %v12400_v39  ;;  %v12434_v56 = vmax.f32 %v4789_v23, 0.0  ;;  %v12438_v30 = vmul.f32 %v11487_v41, %v12400_v39  ;;  %v12442_v48 = vmul.f32 %v11477_v20, %v12384_v35 }
 0x4e6   : > { %14307 = vst [vmem:[#allocation258_spill] sm:$0xff] %v12423_v29  ;;  %v12446_v55 = vmul.f32 %v11456_v46, %v12400_v39  ;;  %v12448_v7 = vmax.f32 %v4791_v62, 0.0  ;;  %v4936_v16 = vpop.f32.mrb[52].mxu0  ;;  %v12453_v24 = vmul.f32 %v11453_v0, %v12384_v35  ;;  %v12457_v27 = vmul.f32 %v11483_v14, %v12400_v39 }
 0x4e7   : > { %14308 = vst [vmem:[#allocation259_spill] sm:$0xff] %v12434_v56  ;;  %v4859_v36 = vpop.f32.mrb[80].mxu1  ;;  %14309 = vst [vmem:[#allocation260_spill] sm:$0xff] %v12438_v30  ;;  %v4937_v25 = vadd.f32 %v4936_v16, %v14292_v17  ;;  %v4938_v4 = vpop.f32.mrb[53].mxu0  ;;  %v5630_v62 = vmul.f32 %v11447_v37, %v12434_v56 }
 0x4e8   : > { %14310 = vst [vmem:[#allocation261_spill] sm:$0xff] %v12442_v48  ;;  %14311 = vst [vmem:[#allocation262_spill] sm:$0xff] %v12446_v55  ;;  %v4860_v63 = vadd.f32 %v4859_v36, %v14292_v17  ;;  %v4861_v23 = vpop.f32.mrb[81].mxu1  ;;  %v12465_v36 = vmul.f32 %v11459_v53, %v12434_v56  ;;  %v4939_v54 = vadd.f32 %v4938_v4, %v14292_v17 }
 0x4e9   : > { %14312 = vst [vmem:[#allocation263_spill] sm:$0xff] %v12448_v7  ;;  %14313 = vst [vmem:[#allocation264_spill] sm:$0xff] %v12453_v24  ;;  %v4862_v2 = vadd.f32 %v4861_v23, %v14292_v17  ;;  %v5631_v12 = vmul.f32 %v11450_v40, %v12448_v7  ;;  %v12474_v16 = vmul.f32 %v11462_v32, %v12448_v7  ;;  %v12476_v23 = vmax.f32 %v4937_v25, 0.0 }
 0x4ea   : > { %14314 = vst [vmem:[#allocation265_spill] sm:$0xff] %v12457_v27  ;;  %v12467_v15 = vmax.f32 %v4860_v63, 0.0  ;;  %v12482_v37 = vmul.f32 %v11471_v51, %v12448_v7  ;;  %v12486_v53 = vmul.f32 %v11468_v34, %v12434_v56  ;;  %v12488_v4 = vmax.f32 %v4939_v54, 0.0  ;;  %v4942_v63 = vpop.f32.mrb[54].mxu0 }
 0x4eb   : > { %v12478_v11 = vmax.f32 %v4862_v2, 0.0  ;;  %v4865_v51 = vpop.f32.mrb[82].mxu1  ;;  %v4943_v25 = vadd.f32 %v4942_v63, %v12398_v22  ;;  %v4944_v38 = vpop.f32.mrb[55].mxu0  ;;  %v6348_v54 = vmul.f32 %v11559_v13, %v12476_v23 }
 0x4ec   : > { %14315 = vst [vmem:[#allocation266_spill] sm:$0xff] %v12467_v15  ;;  %14316 = vst [vmem:[#allocation267_spill] sm:$0xff] %v12486_v53  ;;  %v5956_v40 = vmul.f32 %v11505_v18, %v12467_v15  ;;  %v12494_v32 = vmul.f32 %v11514_v47, %v12467_v15  ;;  %v12498_v2 = vmul.f32 %v11523_v61, %v12467_v15  ;;  %v4867_v45 = vpop.f32.mrb[83].mxu1 }
 0x4ed   : > { %v5957_v34 = vmul.f32 %v11508_v59, %v12478_v11  ;;  %v5961_v19 = vmul.f32 %v11517_v5, %v12478_v11  ;;  %v4866_v44 = vadd.f32 %v4865_v51, %v12398_v22  ;;  %v4945_v52 = vadd.f32 %v4944_v38, %v12398_v22 }
 0x4ee   : > { %14317 = vst [vmem:[#allocation268_spill] sm:$0xff] %v12498_v2  ;;  %v6349_v39 = vmul.f32 %v11562_v43, %v12488_v4  ;;  %v6020_v35 = vadd.f32 %v5956_v40, %v5628_v50  ;;  %v12511_v63 = vmax.f32 %v4943_v25, 0.0  ;;  %v4868_v27 = vadd.f32 %v4867_v45, %v12398_v22  ;;  %v5090_v46 = vpop.f32.mrb[56].mxu0 }
 0x4ef   : > { %v6021_v14 = vadd.f32 %v5957_v34, %v5629_v10  ;;  %v12514_v24 = vadd.f32 %v5961_v19, %v5633_v60  ;;  %v12516_v0 = vmax.f32 %v4866_v44, 0.0  ;;  %v12518_v55 = vmax.f32 %v4945_v52, 0.0  ;;  %v5013_v50 = vpop.f32.mrb[84].mxu1  ;;  %v5092_v25 = vpop.f32.mrb[57].mxu0 }
 0x4f0   : > { %v6412_v51 = vadd.f32 %v6348_v54, %v6020_v35  ;;  %v12522_v38 = vmul.f32 %v11568_v6, %v12488_v4  ;;  %v12524_v8 = vmax.f32 %v4868_v27, 0.0  ;;  %v5091_v40 = vadd.f32 %v5090_v46, %v14292_v17  ;;  %v5015_v52 = vpop.f32.mrb[85].mxu1 }
 0x4f1   : > { %v6413_v45 = vadd.f32 %v6349_v39, %v6021_v14  ;;  %v6350_v10 = vmul.f32 %v11559_v13, %v12511_v63  ;;  %v5014_v44 = vadd.f32 %v5013_v50, %v14292_v17  ;;  %v5093_v19 = vadd.f32 %v5092_v25, %v14292_v17 }
 0x4f2   : > { %v6351_v35 = vmul.f32 %v11562_v43, %v12518_v55  ;;  %v5958_v27 = vmul.f32 %v11505_v18, %v12516_v0  ;;  %v12535_v60 = vmax.f32 %v5091_v40, 0.0  ;;  %v5016_v46 = vadd.f32 %v5015_v52, %v14292_v17  ;;  %v5096_v54 = vpop.f32.mrb[58].mxu0 }
 0x4f3   : > { %v5959_v14 = vmul.f32 %v11508_v59, %v12524_v8  ;;  %v5963_v13 = vmul.f32 %v11517_v5, %v12524_v8  ;;  %v12542_v39 = vmax.f32 %v5014_v44, 0.0  ;;  %v12544_v34 = vmax.f32 %v5093_v19, 0.0  ;;  %v5019_v40 = vpop.f32.mrb[86].mxu1  ;;  %v5098_v52 = vpop.f32.mrb[59].mxu0 }
 0x4f4   : > { %v6022_v50 = vadd.f32 %v5958_v27, %v5630_v62  ;;  %v12548_v43 = vmul.f32 %v11568_v6, %v12518_v55  ;;  %v12550_v18 = vmax.f32 %v5016_v46, 0.0  ;;  %v5097_v25 = vadd.f32 %v5096_v54, %v12398_v22  ;;  %v5021_v19 = vpop.f32.mrb[87].mxu1 }
 0x4f5   : > { %v6023_v59 = vadd.f32 %v5959_v14, %v5631_v12  ;;  %v7132_v5 = vmul.f32 %v11783_v33, %v12535_v60  ;;  %v5020_v44 = vadd.f32 %v5019_v40, %v12398_v22  ;;  %v5099_v21 = vadd.f32 %v5098_v52, %v12398_v22 }
 0x4f6   : > { %v7133_v62 = vmul.f32 %v11786_v58, %v12544_v34  ;;  %v6414_v6 = vadd.f32 %v6350_v10, %v6022_v50  ;;  %v12559_v27 = vmax.f32 %v5097_v25, 0.0  ;;  %v5022_v46 = vadd.f32 %v5021_v19, %v12398_v22  ;;  %v5244_v40 = vpop.f32.mrb[60].mxu0 }
 0x4f7   : > { %v6415_v48 = vadd.f32 %v6351_v35, %v6023_v59  ;;  %v6741_v12 = vmul.f32 %v11732_v26, %v12550_v18  ;;  %v12564_v14 = vmax.f32 %v5020_v44, 0.0  ;;  %v12566_v54 = vmax.f32 %v5099_v21, 0.0  ;;  %v5167_v10 = vpop.f32.mrb[88].mxu1  ;;  %v5246_v25 = vpop.f32.mrb[61].mxu0 }
 0x4f8   : > { %v6740_v52 = vmul.f32 %v11729_v9, %v12542_v39  ;;  %v6027_v15 = vadd.f32 %v5963_v13, %v12474_v16  ;;  %v12571_v20 = vmax.f32 %v5022_v46, 0.0  ;;  %v5245_v50 = vadd.f32 %v5244_v40, %v14292_v17  ;;  %v5169_v21 = vpop.f32.mrb[89].mxu1 }
 0x4f9   : > { %v6805_v35 = vadd.f32 %v6741_v12, %v6413_v45  ;;  %v7134_v59 = vmul.f32 %v11783_v33, %v12559_v27  ;;  %v5168_v44 = vadd.f32 %v5167_v10, %v14292_v17  ;;  %v5247_v19 = vadd.f32 %v5246_v25, %v14292_v17 }
 0x4fa   : > { %v7135_v56 = vmul.f32 %v11786_v58, %v12566_v54  ;;  %v6742_v16 = vmul.f32 %v11729_v9, %v12564_v14  ;;  %v12582_v13 = vmax.f32 %v5245_v50, 0.0  ;;  %v5170_v46 = vadd.f32 %v5169_v21, %v14292_v17  ;;  %v5250_v10 = vpop.f32.mrb[62].mxu0  ;;  %v14318_v21 = vld [vmem:[#allocation163_spill] sm:$0xff] }
 0x4fb   : > { %v6743_v45 = vmul.f32 %v11732_v26, %v12571_v20  ;;  %v7197_v12 = vadd.f32 %v7133_v62, %v6805_v35  ;;  %v12587_v33 = vmax.f32 %v5168_v44, 0.0  ;;  %v12589_v40 = vmax.f32 %v5247_v19, 0.0  ;;  %v5173_v58 = vpop.f32.mrb[90].mxu1  ;;  %v5252_v50 = vpop.f32.mrb[63].mxu0  ;;  %v14319_v44 = vld [vmem:[#allocation164_spill] sm:$0xff] }
 0x4fc   : > { %v6804_v25 = vadd.f32 %v6740_v52, %v6412_v51  ;;  %v6806_v49 = vadd.f32 %v6742_v16, %v6414_v6  ;;  %v12591_v30 = vmax.f32 %v5170_v46, 0.0  ;;  %v5251_v9 = vadd.f32 %v5250_v10, %v12398_v22  ;;  %v5175_v62 = vpop.f32.mrb[91].mxu1  ;;  %v14320_v46 = vld [vmem:[#allocation150_spill] sm:$0xff] }
 0x4fd   : > { %v6807_v41 = vadd.f32 %v6743_v45, %v6415_v48  ;;  %v7916_v7 = vmul.f32 %v14318_v21, %v12582_v13  ;;  %v5174_v26 = vadd.f32 %v5173_v58, %v12398_v22  ;;  %v5253_v35 = vadd.f32 %v5252_v50, %v12398_v22 }
 0x4fe   : > { %v7917_v19 = vmul.f32 %v14319_v44, %v12589_v40  ;;  %v7196_v51 = vadd.f32 %v7132_v5, %v6804_v25  ;;  %v12600_v6 = vmax.f32 %v5251_v9, 0.0  ;;  %v5176_v52 = vadd.f32 %v5175_v62, %v12398_v22 }
 0x4ff   : > { %v7199_v16 = vadd.f32 %v7135_v56, %v6807_v41  ;;  %v7525_v48 = vmul.f32 %v14320_v46, %v12591_v30  ;;  %v12605_v45 = vmax.f32 %v5174_v26, 0.0  ;;  %v12607_v10 = vmax.f32 %v5253_v35, 0.0  ;;  %v5321_v2 = vpop.f32.mrb[92].mxu1 }
 0x500   : > { %v7198_v58 = vadd.f32 %v7134_v59, %v6806_v49  ;;  %v7524_v50 = vmul.f32 %v14321_v1, %v12587_v33  ;;  %v12611_v53 = vmax.f32 %v5176_v52, 0.0  ;;  %v7918_v25 = vmul.f32 %v14318_v21, %v12600_v6  ;;  %v5323_v9 = vpop.f32.mrb[93].mxu1 }
 0x501   : > { %v7589_v5 = vadd.f32 %v7525_v48, %v7197_v12  ;;  %v6417_v41 = vadd.f32 %v12522_v38, %v12514_v24  ;;  %v5322_v56 = vadd.f32 %v5321_v2, %v14292_v17  ;;  %v7919_v26 = vmul.f32 %v14319_v44, %v12607_v10  ;;  %v14322_v38 = vld [vmem:[#allocation92_spill] sm:$0xff] }
 0x502   : > { %v7526_v49 = vmul.f32 %v14321_v1, %v12605_v45  ;;  %v7588_v59 = vadd.f32 %v7524_v50, %v7196_v51  ;;  %v5324_v62 = vadd.f32 %v5323_v9, %v14292_v17  ;;  %v7527_v12 = vmul.f32 %v14320_v46, %v12611_v53  ;;  %v14323_v51 = vld [vmem:[#allocation104_spill] sm:$0xff] }
 0x503   : > { %v7981_v35 = vadd.f32 %v7917_v19, %v7589_v5  ;;  %v6419_v21 = vadd.f32 %v12548_v43, %v6027_v15  ;;  %v12626_v52 = vmax.f32 %v5322_v56, 0.0  ;;  %v6745_v48 = vmul.f32 %v14322_v38, %v12550_v18  ;;  %v5327_v29 = vpop.f32.mrb[94].mxu1 }
 0x504   : > { %v7590_v24 = vadd.f32 %v7526_v49, %v7198_v58  ;;  %v7980_v2 = vadd.f32 %v7916_v7, %v7588_v59  ;;  %v12630_v44 = vmax.f32 %v5324_v62, 0.0  ;;  %v7591_v1 = vadd.f32 %v7527_v12, %v7199_v16  ;;  %v5329_v15 = vpop.f32.mrb[95].mxu1  ;;  %v14324_v58 = vld [vmem:[#allocation194_spill] sm:$0xff] }
 0x505   : > { %v6747_v17 = vmul.f32 %v14322_v38, %v12571_v20  ;;  %v7137_v46 = vmul.f32 %v14323_v51, %v12544_v34  ;;  %v5328_v19 = vadd.f32 %v5327_v29, %v12398_v22  ;;  %v8308_v7 = vmul.f32 %v14324_v58, %v12626_v52  ;;  %v14326_v38 = vld [vmem:[#allocation199_spill] sm:$0xff] }
 0x506   : > { %v7982_v43 = vadd.f32 %v7918_v25, %v7590_v24  ;;  %v6809_v50 = vadd.f32 %v6745_v48, %v6417_v41  ;;  %v5330_v5 = vadd.f32 %v5329_v15, %v12398_v22  ;;  %v7983_v56 = vadd.f32 %v7919_v26, %v7591_v1  ;;  %v14325_v24 = vld [vmem:[#allocation154_spill] sm:$0xff] }
 0x507   : > { %v8309_v16 = vmul.f32 %v12194_v42, %v12630_v44  ;;  %v6811_v9 = vadd.f32 %v6747_v17, %v6419_v21  ;;  %v12642_v49 = vmax.f32 %v5328_v19, 0.0  ;;  %v8372_v59 = vadd.f32 %v8308_v7, %v7980_v2  ;;  %v14327_v17 = vld [vmem:[#allocation200_spill] sm:$0xff] }
 0x508   : > { %v7139_v62 = vmul.f32 %v14323_v51, %v12566_v54  ;;  %v7201_v29 = vadd.f32 %v7137_v46, %v6809_v50  ;;  %v12646_v12 = vmax.f32 %v5330_v5, 0.0  ;;  %v7529_v41 = vmul.f32 %v14325_v24, %v12591_v30 }
 0x509   : > { %v8373_v25 = vadd.f32 %v8309_v16, %v7981_v35  ;;  %v7531_v22 = vmul.f32 %v14325_v24, %v12611_v53  ;;  %v8310_v26 = vmul.f32 %v14324_v58, %v12642_v49  ;;  %v7921_v2 = vmul.f32 %v14326_v38, %v12589_v40  ;;  %v14328_v16 = vld [vmem:[#allocation46_spill] sm:$0xff] }
 0x50a   : > { %v7203_v21 = vadd.f32 %v7139_v62, %v6811_v9  ;;  %v7923_v48 = vmul.f32 %v14326_v38, %v12607_v10  ;;  %v8311_v1 = vmul.f32 %v12194_v42, %v12646_v12  ;;  %v7593_v35 = vadd.f32 %v7529_v41, %v7201_v29 }
 0x50b   : > { %v8313_v51 = vmul.f32 %v14327_v17, %v12630_v44  ;;  %v8315_v46 = vmul.f32 %v14327_v17, %v12646_v12  ;;  %v8374_v19 = vadd.f32 %v8310_v26, %v7982_v43  ;;  %v5962_v58 = vmul.f32 %v11514_v47, %v12516_v0  ;;  %v14329_v43 = vld [vmem:[#allocation91_spill] sm:$0xff] }
 0x50c   : > { %v7595_v15 = vadd.f32 %v7531_v22, %v7203_v21  ;;  %v6024_v7 = vadd.f32 %v12494_v32, %v12419_v57  ;;  %v8375_v50 = vadd.f32 %v8311_v1, %v7983_v56  ;;  %v7985_v5 = vadd.f32 %v7921_v2, %v7593_v35  ;;  %v14330_v21 = vld [vmem:[#allocation103_spill] sm:$0xff] }
 0x50d   : > { %v6352_v42 = vmul.f32 %v14328_v16, %v12476_v23  ;;  %v6354_v9 = vmul.f32 %v14328_v16, %v12511_v63  ;;  %v9014_v62 = vpack.c.bf16 %v8374_v19, %v8372_v59  ;;  %v6026_v24 = vadd.f32 %v5962_v58, %v12465_v36  ;;  %v14331_v36 = vld [vmem:[#allocation153_spill] sm:$0xff]  ;;  %v14332_v1 = vld [vmem:[#allocation167_spill] sm:$0xff] }
 0x50e   : > { %v7987_v29 = vadd.f32 %v7923_v48, %v7595_v15  ;;  %v6744_v41 = vmul.f32 %v14329_v43, %v12542_v39  ;;  %v9012_v22 = vpack.c.bf16 %v8375_v50, %v8373_v25  ;;  %v8377_v47 = vadd.f32 %v8313_v51, %v7985_v5 }
 0x50f   : > { %v6416_v26 = vadd.f32 %v6352_v42, %v6024_v7  ;;  %v6746_v57 = vmul.f32 %v14329_v43, %v12564_v14  ;;  %v6418_v56 = vadd.f32 %v6354_v9, %v6026_v24  ;;  %v7136_v38 = vmul.f32 %v14330_v21, %v12535_v60  ;;  %v14333_v7 = vld [vmem:[#allocation37_spill] sm:$0xff]  ;;  %v14334_v42 = vld [vmem:[#allocation48_spill] sm:$0xff] }
 0x510   : > { %v8379_v32 = vadd.f32 %v8315_v46, %v7987_v29  ;;  %v7138_v59 = vmul.f32 %v14330_v21, %v12559_v27  ;;  %9013 = vmatprep.subr.bf16.mxu0 %v9012_v22  ;;  %v7528_v48 = vmul.f32 %v14331_v36, %v12587_v33  ;;  %v7530_v25 = vmul.f32 %v14331_v36, %v12605_v45  ;;  %v14335_v29 = vld [vmem:[#allocation95_spill] sm:$0xff] }
 0x511   : > { %v6808_v2 = vadd.f32 %v6744_v41, %v6416_v26  ;;  %v7920_v35 = vmul.f32 %v14332_v1, %v12582_v13  ;;  %9015 = vmatpush1.bf16.msra.mxu0 %v9014_v62  ;;  %v6810_v51 = vadd.f32 %v6746_v57, %v6418_v56  ;;  %v7922_v46 = vmul.f32 %v14332_v1, %v12600_v6  ;;  %v14336_v26 = vld [vmem:[#allocation106_spill] sm:$0xff]  ;;  %v14337_v56 = vld [vmem:[#allocation156_spill] sm:$0xff] }
 0x512   : > { %v9016_v17 = vpack.c.bf16 %v8379_v32, %v8377_v47  ;;  %v8312_v19 = vmul.f32 %v12204_v31, %v12626_v52  ;;  %v8314_v58 = vmul.f32 %v12204_v31, %v12642_v49  ;;  %v5965_v50 = vmul.f32 %v14333_v7, %v12478_v11 }
 0x513   : > { %v7200_v15 = vadd.f32 %v7136_v38, %v6808_v2  ;;  %v5967_v5 = vmul.f32 %v14333_v7, %v12524_v8  ;;  %v7202_v16 = vadd.f32 %v7138_v59, %v6810_v51  ;;  %v6357_v9 = vmul.f32 %v14334_v42, %v12488_v4 }
 0x514   : > { %9017 = vmatprep.subr.bf16.mxu0 %v9016_v17  ;;  %v6359_v62 = vmul.f32 %v14334_v42, %v12518_v55  ;;  %v6749_v24 = vmul.f32 %v14335_v29, %v12550_v18  ;;  %v6029_v31 = vadd.f32 %v5965_v50, %v12432_v3  ;;  %v6751_v22 = vmul.f32 %v14335_v29, %v12571_v20  ;;  %v14341_v42 = vld [vmem:[#allocation47_spill] sm:$0xff]  ;;  %v14342_v29 = vld [vmem:[#allocation94_spill] sm:$0xff] }
 0x515   : > { %v7592_v43 = vadd.f32 %v7528_v48, %v7200_v15  ;;  %v6031_v41 = vadd.f32 %v5967_v5, %v12482_v37  ;;  %v7594_v47 = vadd.f32 %v7530_v25, %v7202_v16  ;;  %v7141_v57 = vmul.f32 %v14336_v26, %v12544_v34  ;;  %v14338_v25 = vld [vmem:[#allocation201_spill] sm:$0xff]  ;;  %v14340_v5 = vld [vmem:[#allocation268_spill] sm:$0xff] }
 0x516   : > { %v7143_v32 = vmul.f32 %v14336_v26, %v12566_v54  ;;  %v7533_v21 = vmul.f32 %v14337_v56, %v12591_v30  ;;  %v6421_v59 = vadd.f32 %v6357_v9, %v6029_v31  ;;  %v7535_v3 = vmul.f32 %v14337_v56, %v12611_v53  ;;  %v14343_v31 = vld [vmem:[#allocation267_spill] sm:$0xff]  ;;  %v14344_v26 = vld [vmem:[#allocation105_spill] sm:$0xff] }
 0x517   : > { %v7984_v38 = vadd.f32 %v7920_v35, %v7592_v43  ;;  %v6423_v2 = vadd.f32 %v6359_v62, %v6031_v41  ;;  %v7986_v37 = vadd.f32 %v7922_v46, %v7594_v47  ;;  %v7925_v36 = vmul.f32 %v12210_v28, %v12589_v40  ;;  %v14339_v46 = vld [vmem:[#allocation258_spill] sm:$0xff] }
 0x518   : > { %v7927_v48 = vmul.f32 %v12210_v28, %v12607_v10  ;;  %v8317_v1 = vmul.f32 %v14338_v25, %v12630_v44  ;;  %v6813_v51 = vadd.f32 %v6749_v24, %v6421_v59  ;;  %v8319_v35 = vmul.f32 %v14338_v25, %v12646_v12  ;;  %v14345_v59 = vld [vmem:[#allocation155_spill] sm:$0xff] }
 0x519   : > { %v8376_v17 = vadd.f32 %v8312_v19, %v7984_v38  ;;  %v6815_v15 = vadd.f32 %v6751_v22, %v6423_v2  ;;  %v8378_v7 = vadd.f32 %v8314_v58, %v7986_v37  ;;  %v5966_v50 = vmul.f32 %v11523_v61, %v12516_v0 }
 0x51a   : > { %v6028_v16 = vadd.f32 %v14340_v5, %v14339_v46  ;;  %v6356_v9 = vmul.f32 %v14341_v42, %v12476_v23  ;;  %v7205_v28 = vadd.f32 %v7141_v57, %v6813_v51  ;;  %v6358_v19 = vmul.f32 %v14341_v42, %v12511_v63 }
 0x51b   : > { %v7207_v62 = vadd.f32 %v7143_v32, %v6815_v15  ;;  %v6748_v24 = vmul.f32 %v14342_v29, %v12542_v39  ;;  %v9018_v43 = vpack.c.bf16 %v8378_v7, %v8376_v17  ;;  %v6030_v58 = vadd.f32 %v5966_v50, %v14343_v31  ;;  %v14347_v50 = vld [vmem:[#allocation202_spill] sm:$0xff] }
 0x51c   : > { %v6420_v41 = vadd.f32 %v6356_v9, %v6028_v16  ;;  %v6750_v61 = vmul.f32 %v14342_v29, %v12564_v14  ;;  %v7597_v22 = vadd.f32 %v7533_v21, %v7205_v28  ;;  %v7140_v56 = vmul.f32 %v14344_v26, %v12535_v60  ;;  %v14346_v21 = vld [vmem:[#allocation168_spill] sm:$0xff]  ;;  %v14348_v9 = vld [vmem:[#allocation263_spill] sm:$0xff]  ;;  %v14349_v28 = vld [vmem:[#allocation29_spill] sm:$0xff] }
 0x51d   : > { %v7599_v47 = vadd.f32 %v7535_v3, %v7207_v62  ;;  %v7142_v57 = vmul.f32 %v14344_v26, %v12559_v27  ;;  %9019 = vmatpush1.bf16.msra.mxu0 %v9018_v43  ;;  %v6422_v32 = vadd.f32 %v6358_v19, %v6030_v58  ;;  %v7532_v2 = vmul.f32 %v14345_v59, %v12587_v33  ;;  %v14351_v43 = vld [vmem:[#allocation52_spill] sm:$0xff] }
 0x51e   : > { %v6812_v38 = vadd.f32 %v6748_v24, %v6420_v41  ;;  %v7534_v37 = vmul.f32 %v14345_v59, %v12605_v45  ;;  %v7989_v25 = vadd.f32 %v7925_v36, %v7597_v22  ;;  %v7924_v3 = vmul.f32 %v14346_v21, %v12582_v13  ;;  %v14352_v41 = vld [vmem:[#allocation260_spill] sm:$0xff] }
 0x51f   : > { %v7991_v17 = vadd.f32 %v7927_v48, %v7599_v47  ;;  %v7926_v51 = vmul.f32 %v14346_v21, %v12600_v6  ;;  %v6814_v15 = vadd.f32 %v6750_v61, %v6422_v32  ;;  %v8316_v46 = vmul.f32 %v14347_v50, %v12626_v52  ;;  %v14350_v48 = vld [vmem:[#allocation41_spill] sm:$0xff] }
 0x520   : > { %v7204_v7 = vadd.f32 %v7140_v56, %v6812_v38  ;;  %v8318_v5 = vmul.f32 %v14347_v50, %v12642_v49  ;;  %v8381_v16 = vadd.f32 %v8317_v1, %v7989_v25  ;;  %v5643_v36 = vmul.f32 %v14349_v28, %v14348_v9  ;;  %v14354_v38 = vld [vmem:[#allocation110_spill] sm:$0xff]  ;;  %v14355_v25 = vld [vmem:[#allocation203_spill] sm:$0xff]  ;;  %v14356_v50 = vld [vmem:[#allocation204_spill] sm:$0xff] }
 0x521   : > { %v8383_v42 = vadd.f32 %v8319_v35, %v7991_v17  ;;  %v5969_v62 = vmul.f32 %v14350_v48, %v12478_v11  ;;  %v7206_v19 = vadd.f32 %v7142_v57, %v6814_v15  ;;  %v5971_v24 = vmul.f32 %v14350_v48, %v12524_v8  ;;  %v14353_v35 = vld [vmem:[#allocation98_spill] sm:$0xff]  ;;  %v14357_v28 = vld [vmem:[#allocation209_spill] sm:$0xff] }
 0x522   : > { %v7596_v29 = vadd.f32 %v7532_v2, %v7204_v7  ;;  %v6361_v31 = vmul.f32 %v14351_v43, %v12488_v4  ;;  %v6363_v1 = vmul.f32 %v14351_v43, %v12518_v55  ;;  %v6753_v22 = vmul.f32 %v14353_v35, %v12550_v18  ;;  %v14360_v43 = vld [vmem:[#allocation266_spill] sm:$0xff] }
 0x523   : > { %v9020_v58 = vpack.c.bf16 %v8383_v42, %v8381_v16  ;;  %v6033_v61 = vadd.f32 %v5969_v62, %v14352_v41  ;;  %v7598_v47 = vadd.f32 %v7534_v37, %v7206_v19  ;;  %v6035_v56 = vadd.f32 %v5971_v24, %v5643_v36  ;;  %v14359_v19 = vld [vmem:[#allocation26_spill] sm:$0xff] }
 0x524   : > { %v7988_v26 = vadd.f32 %v7924_v3, %v7596_v29  ;;  %v6755_v57 = vmul.f32 %v14353_v35, %v12571_v20  ;;  %v7145_v59 = vmul.f32 %v14354_v38, %v12544_v34  ;;  %v7147_v2 = vmul.f32 %v14354_v38, %v12566_v54 }
 0x525   : > { %9021 = vmatprep.subr.bf16.mxu0 %v9020_v58  ;;  %v6425_v32 = vadd.f32 %v6361_v31, %v6033_v61  ;;  %v7537_v17 = vmul.f32 %v14355_v25, %v12591_v30  ;;  %v7990_v21 = vadd.f32 %v7926_v51, %v7598_v47  ;;  %v6427_v7 = vadd.f32 %v6363_v1, %v6035_v56  ;;  %v14361_v31 = vld [vmem:[#allocation40_spill] sm:$0xff]  ;;  %v14362_v61 = vld [vmem:[#allocation51_spill] sm:$0xff]  ;;  %v14363_v47 = vld [vmem:[#allocation97_spill] sm:$0xff] }
 0x526   : > { %v8380_v15 = vadd.f32 %v8316_v46, %v7988_v26  ;;  %v7539_v37 = vmul.f32 %v14355_v25, %v12611_v53  ;;  %v7929_v16 = vmul.f32 %v14356_v50, %v12589_v40  ;;  %v7931_v42 = vmul.f32 %v14356_v50, %v12607_v10  ;;  %v14358_v46 = vld [vmem:[#allocation259_spill] sm:$0xff] }
 0x527   : > { %v6817_v3 = vadd.f32 %v6753_v22, %v6425_v32  ;;  %v8321_v36 = vmul.f32 %v14357_v28, %v12630_v44  ;;  %v8382_v48 = vadd.f32 %v8318_v5, %v7990_v21  ;;  %v6819_v62 = vadd.f32 %v6755_v57, %v6427_v7  ;;  %v14364_v57 = vld [vmem:[#allocation261_spill] sm:$0xff] }
 0x528   : > { %v8323_v51 = vmul.f32 %v14357_v28, %v12646_v12  ;;  %v5642_v29 = vmul.f32 %v14359_v19, %v14358_v46  ;;  %v5968_v58 = vmul.f32 %v14361_v31, %v14360_v43  ;;  %v5970_v41 = vmul.f32 %v14361_v31, %v12516_v0  ;;  %v14365_v21 = vld [vmem:[#allocation109_spill] sm:$0xff] }
 0x529   : > { %v7209_v24 = vadd.f32 %v7145_v59, %v6817_v3  ;;  %v6360_v1 = vmul.f32 %v14362_v61, %v12476_v23  ;;  %v9022_v35 = vpack.c.bf16 %v8382_v48, %v8380_v15  ;;  %v7211_v22 = vadd.f32 %v7147_v2, %v6819_v62  ;;  %v14366_v15 = vld [vmem:[#allocation157_spill] sm:$0xff] }
 0x52a   : > { %v6362_v5 = vmul.f32 %v14362_v61, %v12511_v63  ;;  %v6752_v26 = vmul.f32 %v14363_v47, %v12542_v39  ;;  %v6032_v32 = vadd.f32 %v5968_v58, %v14364_v57  ;;  %v6034_v38 = vadd.f32 %v5970_v41, %v5642_v29  ;;  %v14367_v19 = vld [vmem:[#allocation205_spill] sm:$0xff] }
 0x52b   : > { %v7601_v56 = vadd.f32 %v7537_v17, %v7209_v24  ;;  %v6754_v59 = vmul.f32 %v14363_v47, %v12564_v14  ;;  %9023 = vmatpush1.bf16.msra.mxu0 %v9022_v35  ;;  %v7603_v25 = vadd.f32 %v7539_v37, %v7211_v22  ;;  %v7144_v7 = vmul.f32 %v14365_v21, %v12535_v60  ;;  %v14368_v24 = vld [vmem:[#allocation210_spill] sm:$0xff]  ;;  %v14369_v35 = vld [vmem:[#allocation28_spill] sm:$0xff] }
 0x52c   : > { %v7146_v2 = vmul.f32 %v14365_v21, %v12559_v27  ;;  %v7536_v3 = vmul.f32 %v14366_v15, %v12587_v33  ;;  %v6424_v28 = vadd.f32 %v6360_v1, %v6032_v32  ;;  %v6426_v17 = vadd.f32 %v6362_v5, %v6034_v38  ;;  %v14371_v32 = vld [vmem:[#allocation50_spill] sm:$0xff]  ;;  %v14373_v21 = vld [vmem:[#allocation93_spill] sm:$0xff] }
 0x52d   : > { %v7993_v50 = vadd.f32 %v7929_v16, %v7601_v56  ;;  %v7538_v48 = vmul.f32 %v14366_v15, %v12605_v45  ;;  %v7995_v62 = vadd.f32 %v7931_v42, %v7603_v25  ;;  %v7928_v29 = vmul.f32 %v14367_v19, %v12582_v13  ;;  %v14370_v42 = vld [vmem:[#allocation36_spill] sm:$0xff] }
 0x52e   : > { %v7930_v37 = vmul.f32 %v14367_v19, %v12600_v6  ;;  %v8320_v31 = vmul.f32 %v14368_v24, %v12626_v52  ;;  %v6816_v41 = vadd.f32 %v6752_v26, %v6424_v28  ;;  %v6818_v61 = vadd.f32 %v6754_v59, %v6426_v17  ;;  %v14372_v59 = vld [vmem:[#allocation262_spill] sm:$0xff] }
 0x52f   : > { %v8385_v58 = vadd.f32 %v8321_v36, %v7993_v50  ;;  %v8322_v16 = vmul.f32 %v14368_v24, %v12642_v49  ;;  %v8387_v1 = vadd.f32 %v8323_v51, %v7995_v62  ;;  %v5647_v22 = vmul.f32 %v14369_v35, %v14348_v9 }
 0x530   : > { %v5973_v5 = vmul.f32 %v14370_v42, %v12478_v11  ;;  %v5975_v47 = vmul.f32 %v14370_v42, %v12524_v8  ;;  %v7208_v56 = vadd.f32 %v7144_v7, %v6816_v41  ;;  %v7210_v57 = vadd.f32 %v7146_v2, %v6818_v61  ;;  %v14374_v7 = vld [vmem:[#allocation108_spill] sm:$0xff] }
 0x531   : > { %v6365_v36 = vmul.f32 %v14371_v32, %v12488_v4  ;;  %v6367_v26 = vmul.f32 %v14371_v32, %v12518_v55  ;;  %v9024_v38 = vpack.c.bf16 %v8387_v1, %v8385_v58  ;;  %v6757_v15 = vmul.f32 %v14373_v21, %v12550_v18  ;;  %v14375_v58 = vld [vmem:[#allocation152_spill] sm:$0xff] }
 0x532   : > { %v6037_v51 = vadd.f32 %v5973_v5, %v14372_v59  ;;  %v6039_v25 = vadd.f32 %v5975_v47, %v5647_v22  ;;  %v7600_v50 = vadd.f32 %v7536_v3, %v7208_v56  ;;  %v7602_v28 = vadd.f32 %v7538_v48, %v7210_v57  ;;  %v14376_v48 = vld [vmem:[#allocation166_spill] sm:$0xff]  ;;  %v14379_v59 = vld [vmem:[#allocation20_spill] sm:$0xff] }
 0x533   : > { %v6759_v17 = vmul.f32 %v14373_v21, %v12571_v20  ;;  %v7149_v2 = vmul.f32 %v14374_v7, %v12544_v34  ;;  %9025 = vmatprep.subr.bf16.mxu0 %v9024_v38  ;;  %v7151_v24 = vmul.f32 %v14374_v7, %v12566_v54  ;;  %v7541_v41 = vmul.f32 %v14375_v58, %v12591_v30  ;;  %v14377_v47 = vld [vmem:[#allocation206_spill] sm:$0xff] }
 0x534   : > { %v6429_v62 = vadd.f32 %v6365_v36, %v6037_v51  ;;  %v6431_v19 = vadd.f32 %v6367_v26, %v6039_v25  ;;  %v7992_v61 = vadd.f32 %v7928_v29, %v7600_v50  ;;  %v7994_v1 = vadd.f32 %v7930_v37, %v7602_v28  ;;  %v14378_v37 = vld [vmem:[#allocation25_spill] sm:$0xff] }
 0x535   : > { %v7543_v3 = vmul.f32 %v14375_v58, %v12611_v53  ;;  %v7933_v35 = vmul.f32 %v14376_v48, %v12589_v40  ;;  %v7935_v5 = vmul.f32 %v14376_v48, %v12607_v10  ;;  %v8325_v56 = vmul.f32 %v14377_v47, %v12630_v44  ;;  %v14383_v58 = vld [vmem:[#allocation107_spill] sm:$0xff] }
 0x536   : > { %v6821_v22 = vadd.f32 %v6757_v15, %v6429_v62  ;;  %v6823_v42 = vadd.f32 %v6759_v17, %v6431_v19  ;;  %v8384_v57 = vadd.f32 %v8320_v31, %v7992_v61  ;;  %v8386_v32 = vadd.f32 %v8322_v16, %v7994_v1  ;;  %v14380_v15 = vld [vmem:[#allocation49_spill] sm:$0xff]  ;;  %v14381_v16 = vld [vmem:[#allocation90_spill] sm:$0xff]  ;;  %v14384_v48 = vld [vmem:[#allocation151_spill] sm:$0xff] }
 0x537   : > { %v8327_v29 = vmul.f32 %v14377_v47, %v12646_v12  ;;  %v5646_v36 = vmul.f32 %v14378_v37, %v14358_v46  ;;  %v5972_v51 = vmul.f32 %v14379_v59, %v14360_v43  ;;  %v5974_v25 = vmul.f32 %v14379_v59, %v12516_v0 }
 0x538   : > { %v7213_v26 = vadd.f32 %v7149_v2, %v6821_v22  ;;  %v7215_v38 = vadd.f32 %v7151_v24, %v6823_v42  ;;  %v9026_v21 = vpack.c.bf16 %v8386_v32, %v8384_v57  ;;  %v6364_v50 = vmul.f32 %v14380_v15, %v12476_v23  ;;  %v14382_v2 = vld [vmem:[#allocation264_spill] sm:$0xff]  ;;  %v14385_v32 = vld [vmem:[#allocation165_spill] sm:$0xff] }
 0x539   : > { %v6366_v31 = vmul.f32 %v14380_v15, %v12511_v63  ;;  %v6756_v28 = vmul.f32 %v14381_v16, %v12542_v39  ;;  %v6036_v62 = vadd.f32 %v5972_v51, %v14382_v2  ;;  %v6038_v19 = vadd.f32 %v5974_v25, %v5646_v36 }
 0x53a   : > { %v7605_v17 = vadd.f32 %v7541_v41, %v7213_v26  ;;  %v7607_v7 = vadd.f32 %v7543_v3, %v7215_v38  ;;  %9027 = vmatpush1.bf16.msra.mxu0 %v9026_v21  ;;  %v6758_v24 = vmul.f32 %v14381_v16, %v12564_v14  ;;  %v7148_v61 = vmul.f32 %v14383_v58, %v12535_v60  ;;  %v14386_v26 = vld [vmem:[#allocation195_spill] sm:$0xff] }
 0x53b   : > { %v7150_v1 = vmul.f32 %v14383_v58, %v12559_v27  ;;  %v7540_v22 = vmul.f32 %v14384_v48, %v12587_v33  ;;  %v6428_v41 = vadd.f32 %v6364_v50, %v6036_v62  ;;  %v6430_v3 = vadd.f32 %v6366_v31, %v6038_v19  ;;  %v14388_v50 = vld [vmem:[#allocation39_spill] sm:$0xff]  ;;  %v14391_v58 = vld [vmem:[#allocation96_spill] sm:$0xff] }
 0x53c   : > { %v7997_v42 = vadd.f32 %v7933_v35, %v7605_v17  ;;  %v7999_v47 = vadd.f32 %v7935_v5, %v7607_v7  ;;  %v7542_v57 = vmul.f32 %v14384_v48, %v12605_v45  ;;  %v7932_v37 = vmul.f32 %v14385_v32, %v12582_v13  ;;  %v14387_v5 = vld [vmem:[#allocation33_spill] sm:$0xff] }
 0x53d   : > { %v7934_v36 = vmul.f32 %v14385_v32, %v12600_v6  ;;  %v8324_v38 = vmul.f32 %v14386_v26, %v12626_v52  ;;  %v6820_v25 = vadd.f32 %v6756_v28, %v6428_v41  ;;  %v6822_v21 = vadd.f32 %v6758_v24, %v6430_v3  ;;  %v14390_v28 = vld [vmem:[#allocation265_spill] sm:$0xff] }
 0x53e   : > { %v8389_v59 = vadd.f32 %v8325_v56, %v7997_v42  ;;  %v8391_v51 = vadd.f32 %v8327_v29, %v7999_v47  ;;  %v8326_v35 = vmul.f32 %v14386_v26, %v12642_v49  ;;  %v5651_v15 = vmul.f32 %v14387_v5, %v14348_v9  ;;  %v14389_v56 = vld [vmem:[#allocation54_spill] sm:$0xff] }
 0x53f   : > { %v5977_v31 = vmul.f32 %v14388_v50, %v12478_v11  ;;  %v5979_v16 = vmul.f32 %v14388_v50, %v12524_v8  ;;  %v7212_v7 = vadd.f32 %v7148_v61, %v6820_v25  ;;  %v7214_v2 = vadd.f32 %v7150_v1, %v6822_v21  ;;  %v14392_v61 = vld [vmem:[#allocation112_spill] sm:$0xff] }
 0x540   : > { %v9028_v17 = vpack.c.bf16 %v8391_v51, %v8389_v59  ;;  %v6369_v29 = vmul.f32 %v14389_v56, %v12488_v4  ;;  %v6371_v24 = vmul.f32 %v14389_v56, %v12518_v55  ;;  %v6761_v48 = vmul.f32 %v14391_v58, %v12550_v18  ;;  %v14393_v59 = vld [vmem:[#allocation159_spill] sm:$0xff]  ;;  %v14397_v56 = vld [vmem:[#allocation32_spill] sm:$0xff] }
 0x541   : > { %v6041_v62 = vadd.f32 %v5977_v31, %v14390_v28  ;;  %v6043_v19 = vadd.f32 %v5979_v16, %v5651_v15  ;;  %v7604_v42 = vadd.f32 %v7540_v22, %v7212_v7  ;;  %v7606_v47 = vadd.f32 %v7542_v57, %v7214_v2  ;;  %v14394_v57 = vld [vmem:[#allocation207_spill] sm:$0xff]  ;;  %v14395_v16 = vld [vmem:[#allocation208_spill] sm:$0xff] }
 0x542   : > { %9029 = vmatprep.subr.bf16.mxu0 %v9028_v17  ;;  %v6763_v41 = vmul.f32 %v14391_v58, %v12571_v20  ;;  %v7153_v1 = vmul.f32 %v14392_v61, %v12544_v34  ;;  %v7155_v26 = vmul.f32 %v14392_v61, %v12566_v54  ;;  %v7545_v51 = vmul.f32 %v14393_v59, %v12591_v30 }
 0x543   : > { %v6433_v3 = vadd.f32 %v6369_v29, %v6041_v62  ;;  %v6435_v32 = vadd.f32 %v6371_v24, %v6043_v19  ;;  %v7996_v25 = vadd.f32 %v7932_v37, %v7604_v42  ;;  %v7998_v21 = vadd.f32 %v7934_v36, %v7606_v47  ;;  %v14396_v36 = vld [vmem:[#allocation250_spill] sm:$0xff] }
 0x544   : > { %v7547_v22 = vmul.f32 %v14393_v59, %v12611_v53  ;;  %v7937_v5 = vmul.f32 %v14394_v57, %v12589_v40  ;;  %v7939_v31 = vmul.f32 %v14394_v57, %v12607_v10  ;;  %v8329_v17 = vmul.f32 %v14395_v16, %v12630_v44  ;;  %v14398_v24 = vld [vmem:[#allocation38_spill] sm:$0xff] }
 0x545   : > { %v6825_v15 = vadd.f32 %v6761_v48, %v6433_v3  ;;  %v6827_v50 = vadd.f32 %v6763_v41, %v6435_v32  ;;  %v8388_v7 = vadd.f32 %v8324_v38, %v7996_v25  ;;  %v8390_v2 = vadd.f32 %v8326_v35, %v7998_v21  ;;  %v14399_v38 = vld [vmem:[#allocation53_spill] sm:$0xff]  ;;  %v14400_v3 = vld [vmem:[#allocation27_spill] sm:$0xff] }
 0x546   : > { %v8331_v37 = vmul.f32 %v14395_v16, %v12646_v12  ;;  %v5648_v29 = vmul.f32 %v14397_v56, %v14396_v36  ;;  %v5650_v19 = vmul.f32 %v14397_v56, %v14358_v46  ;;  %v5976_v58 = vmul.f32 %v14398_v24, %v14360_v43  ;;  %v14401_v25 = vld [vmem:[#allocation111_spill] sm:$0xff]  ;;  %v14403_v56 = vld [vmem:[#allocation169_spill] sm:$0xff] }
 0x547   : > { %v7217_v28 = vadd.f32 %v7153_v1, %v6825_v15  ;;  %v7219_v62 = vadd.f32 %v7155_v26, %v6827_v50  ;;  %v9030_v48 = vpack.c.bf16 %v8390_v2, %v8388_v7  ;;  %v5978_v42 = vmul.f32 %v14398_v24, %v12516_v0 }
 0x548   : > { %v6368_v35 = vmul.f32 %v14399_v38, %v12476_v23  ;;  %v6370_v47 = vmul.f32 %v14399_v38, %v12511_v63  ;;  %v6040_v1 = vadd.f32 %v5976_v58, %v5648_v29  ;;  %v6760_v32 = vmul.f32 %v14400_v3, %v12542_v39  ;;  %v14406_v38 = vld [vmem:[#allocation30_spill] sm:$0xff] }
 0x549   : > { %v7609_v41 = vadd.f32 %v7545_v51, %v7217_v28  ;;  %v7611_v61 = vadd.f32 %v7547_v22, %v7219_v62  ;;  %9031 = vmatpush1.bf16.msra.mxu0 %v9030_v48  ;;  %v6042_v26 = vadd.f32 %v5978_v42, %v5650_v19  ;;  %v6762_v59 = vmul.f32 %v14400_v3, %v12564_v14  ;;  %v14402_v51 = vld [vmem:[#allocation158_spill] sm:$0xff] }
 0x54a   : > { %v7152_v21 = vmul.f32 %v14401_v25, %v12535_v60  ;;  %v7154_v57 = vmul.f32 %v14401_v25, %v12559_v27  ;;  %v6432_v16 = vadd.f32 %v6368_v35, %v6040_v1  ;;  %v7544_v22 = vmul.f32 %v14402_v51, %v12587_v33  ;;  %v14405_v42 = vld [vmem:[#allocation254_spill] sm:$0xff]  ;;  %v14407_v1 = vld [vmem:[#allocation43_spill] sm:$0xff]  ;;  %v14409_v25 = vld [vmem:[#allocation100_spill] sm:$0xff] }
 0x54b   : > { %v8001_v15 = vadd.f32 %v7937_v5, %v7609_v41  ;;  %v8003_v50 = vadd.f32 %v7939_v31, %v7611_v61  ;;  %v6434_v7 = vadd.f32 %v6370_v47, %v6042_v26  ;;  %v7546_v2 = vmul.f32 %v14402_v51, %v12605_v45  ;;  %v14404_v5 = vld [vmem:[#allocation211_spill] sm:$0xff] }
 0x54c   : > { %v7936_v29 = vmul.f32 %v14403_v56, %v12582_v13  ;;  %v7938_v28 = vmul.f32 %v14403_v56, %v12600_v6  ;;  %v6824_v24 = vadd.f32 %v6760_v32, %v6432_v16  ;;  %v8328_v31 = vmul.f32 %v14404_v5, %v12626_v52  ;;  %v14408_v32 = vld [vmem:[#allocation56_spill] sm:$0xff]  ;;  %v14410_v56 = vld [vmem:[#allocation114_spill] sm:$0xff] }
 0x54d   : > { %v8393_v62 = vadd.f32 %v8329_v17, %v8001_v15  ;;  %v8395_v19 = vadd.f32 %v8331_v37, %v8003_v50  ;;  %v6826_v58 = vadd.f32 %v6762_v59, %v6434_v7  ;;  %v8330_v48 = vmul.f32 %v14404_v5, %v12642_v49 }
 0x54e   : > { %v5653_v35 = vmul.f32 %v14406_v38, %v14405_v42  ;;  %v5655_v47 = vmul.f32 %v14406_v38, %v14348_v9  ;;  %v7216_v61 = vadd.f32 %v7152_v21, %v6824_v24  ;;  %v5981_v17 = vmul.f32 %v14407_v1, %v12478_v11 }
 0x54f   : > { %v9032_v41 = vpack.c.bf16 %v8395_v19, %v8393_v62  ;;  %v5983_v37 = vmul.f32 %v14407_v1, %v12524_v8  ;;  %v7218_v3 = vadd.f32 %v7154_v57, %v6826_v58  ;;  %v6373_v26 = vmul.f32 %v14408_v32, %v12488_v4  ;;  %v14411_v19 = vld [vmem:[#allocation161_spill] sm:$0xff] }
 0x550   : > { %v6375_v59 = vmul.f32 %v14408_v32, %v12518_v55  ;;  %v6765_v15 = vmul.f32 %v14409_v25, %v12550_v18  ;;  %v7608_v50 = vadd.f32 %v7544_v22, %v7216_v61  ;;  %v6045_v16 = vadd.f32 %v5981_v17, %v5653_v35  ;;  %v14413_v61 = vld [vmem:[#allocation213_spill] sm:$0xff] }
 0x551   : > { %9033 = vmatprep.subr.bf16.mxu0 %v9032_v41  ;;  %v6047_v21 = vadd.f32 %v5983_v37, %v5655_v47  ;;  %v6767_v51 = vmul.f32 %v14409_v25, %v12571_v20  ;;  %v7610_v7 = vadd.f32 %v7546_v2, %v7218_v3  ;;  %v7157_v57 = vmul.f32 %v14410_v56, %v12544_v34  ;;  %v14412_v47 = vld [vmem:[#allocation212_spill] sm:$0xff]  ;;  %v14415_v25 = vld [vmem:[#allocation42_spill] sm:$0xff] }
 0x552   : > { %v7159_v62 = vmul.f32 %v14410_v56, %v12566_v54  ;;  %v7549_v24 = vmul.f32 %v14411_v19, %v12591_v30  ;;  %v8000_v5 = vadd.f32 %v7936_v29, %v7608_v50  ;;  %v6437_v58 = vadd.f32 %v6373_v26, %v6045_v16  ;;  %v14414_v26 = vld [vmem:[#allocation34_spill] sm:$0xff] }
 0x553   : > { %v6439_v38 = vadd.f32 %v6375_v59, %v6047_v21  ;;  %v7551_v22 = vmul.f32 %v14411_v19, %v12611_v53  ;;  %v8002_v35 = vadd.f32 %v7938_v28, %v7610_v7  ;;  %v7941_v41 = vmul.f32 %v14412_v47, %v12589_v40  ;;  %v14417_v19 = vld [vmem:[#allocation99_spill] sm:$0xff] }
 0x554   : > { %v7943_v2 = vmul.f32 %v14412_v47, %v12607_v10  ;;  %v8333_v1 = vmul.f32 %v14413_v61, %v12630_v44  ;;  %v8392_v17 = vadd.f32 %v8328_v31, %v8000_v5  ;;  %v6829_v37 = vadd.f32 %v6765_v15, %v6437_v58  ;;  %v14416_v15 = vld [vmem:[#allocation55_spill] sm:$0xff]  ;;  %v14418_v47 = vld [vmem:[#allocation113_spill] sm:$0xff] }
 0x555   : > { %v6831_v3 = vadd.f32 %v6767_v51, %v6439_v38  ;;  %v8335_v29 = vmul.f32 %v14413_v61, %v12646_v12  ;;  %v8394_v32 = vadd.f32 %v8330_v48, %v8002_v35  ;;  %v5652_v59 = vmul.f32 %v14414_v26, %v14396_v36 }
 0x556   : > { %v5654_v28 = vmul.f32 %v14414_v26, %v14358_v46  ;;  %v5980_v50 = vmul.f32 %v14415_v25, %v14360_v43  ;;  %v7221_v16 = vadd.f32 %v7157_v57, %v6829_v37  ;;  %v5982_v31 = vmul.f32 %v14415_v25, %v12516_v0  ;;  %v14419_v37 = vld [vmem:[#allocation160_spill] sm:$0xff] }
 0x557   : > { %v7223_v21 = vadd.f32 %v7159_v62, %v6831_v3  ;;  %v6372_v51 = vmul.f32 %v14416_v15, %v12476_v23  ;;  %v9034_v7 = vpack.c.bf16 %v8394_v32, %v8392_v17  ;;  %v6374_v48 = vmul.f32 %v14416_v15, %v12511_v63 }
 0x558   : > { %v6044_v56 = vadd.f32 %v5980_v50, %v5652_v59  ;;  %v6764_v5 = vmul.f32 %v14417_v19, %v12542_v39  ;;  %v7613_v58 = vadd.f32 %v7549_v24, %v7221_v16  ;;  %v6046_v35 = vadd.f32 %v5982_v31, %v5654_v28  ;;  %v14420_v28 = vld [vmem:[#allocation170_spill] sm:$0xff] }
 0x559   : > { %v7615_v38 = vadd.f32 %v7551_v22, %v7223_v21  ;;  %v6766_v57 = vmul.f32 %v14417_v19, %v12564_v14  ;;  %9035 = vmatpush1.bf16.msra.mxu0 %v9034_v7  ;;  %v7156_v61 = vmul.f32 %v14418_v47, %v12535_v60  ;;  %v7158_v17 = vmul.f32 %v14418_v47, %v12559_v27  ;;  %v14421_v16 = vld [vmem:[#allocation214_spill] sm:$0xff]  ;;  %v14422_v7 = vld [vmem:[#allocation31_spill] sm:$0xff]  ;;  %v14423_v19 = vld [vmem:[#allocation45_spill] sm:$0xff] }
 0x55a   : > { %v6436_v62 = vadd.f32 %v6372_v51, %v6044_v56  ;;  %v7548_v3 = vmul.f32 %v14419_v37, %v12587_v33  ;;  %v8005_v32 = vadd.f32 %v7941_v41, %v7613_v58  ;;  %v6438_v59 = vadd.f32 %v6374_v48, %v6046_v35 }
 0x55b   : > { %v8007_v26 = vadd.f32 %v7943_v2, %v7615_v38  ;;  %v7550_v24 = vmul.f32 %v14419_v37, %v12605_v45  ;;  %v7940_v25 = vmul.f32 %v14420_v28, %v12582_v13  ;;  %v7942_v50 = vmul.f32 %v14420_v28, %v12600_v6 }
 0x55c   : > { %v6828_v22 = vadd.f32 %v6764_v5, %v6436_v62  ;;  %v8332_v21 = vmul.f32 %v14421_v16, %v12626_v52  ;;  %v8397_v31 = vadd.f32 %v8333_v1, %v8005_v32  ;;  %v6830_v51 = vadd.f32 %v6766_v57, %v6438_v59  ;;  %v14426_v59 = vld [vmem:[#allocation116_spill] sm:$0xff] }
 0x55d   : > { %v8399_v15 = vadd.f32 %v8335_v29, %v8007_v26  ;;  %v8334_v41 = vmul.f32 %v14421_v16, %v12642_v49  ;;  %v5657_v56 = vmul.f32 %v14422_v7, %v14405_v42  ;;  %v5659_v48 = vmul.f32 %v14422_v7, %v14348_v9  ;;  %v14424_v29 = vld [vmem:[#allocation58_spill] sm:$0xff]  ;;  %v14428_v7 = vld [vmem:[#allocation216_spill] sm:$0xff] }
 0x55e   : > { %v7220_v2 = vadd.f32 %v7156_v61, %v6828_v22  ;;  %v5985_v5 = vmul.f32 %v14423_v19, %v12478_v11  ;;  %v7222_v38 = vadd.f32 %v7158_v17, %v6830_v51  ;;  %v5987_v1 = vmul.f32 %v14423_v19, %v12524_v8  ;;  %v14425_v61 = vld [vmem:[#allocation102_spill] sm:$0xff] }
 0x55f   : > { %v9036_v58 = vpack.c.bf16 %v8399_v15, %v8397_v31  ;;  %v6377_v35 = vmul.f32 %v14424_v29, %v12488_v4  ;;  %v6379_v47 = vmul.f32 %v14424_v29, %v12518_v55  ;;  %v6769_v37 = vmul.f32 %v14425_v61, %v12550_v18  ;;  %v14427_v31 = vld [vmem:[#allocation215_spill] sm:$0xff] }
 0x560   : > { %v7612_v57 = vadd.f32 %v7548_v3, %v7220_v2  ;;  %v6049_v62 = vadd.f32 %v5985_v5, %v5657_v56  ;;  %v7614_v32 = vadd.f32 %v7550_v24, %v7222_v38  ;;  %v6051_v26 = vadd.f32 %v5987_v1, %v5659_v48  ;;  %v14429_v5 = vld [vmem:[#allocation217_spill] sm:$0xff]  ;;  %v14430_v29 = vld [vmem:[#allocation35_spill] sm:$0xff] }
 0x561   : > { %9037 = vmatprep.subr.bf16.mxu0 %v9036_v58  ;;  %v6771_v17 = vmul.f32 %v14425_v61, %v12571_v20  ;;  %v7161_v22 = vmul.f32 %v14426_v59, %v12544_v34  ;;  %v7163_v3 = vmul.f32 %v14426_v59, %v12566_v54  ;;  %v7553_v15 = vmul.f32 %v14427_v31, %v12591_v30 }
 0x562   : > { %v8004_v28 = vadd.f32 %v7940_v25, %v7612_v57  ;;  %v6441_v16 = vadd.f32 %v6377_v35, %v6049_v62  ;;  %v8006_v51 = vadd.f32 %v7942_v50, %v7614_v32  ;;  %v6443_v2 = vadd.f32 %v6379_v47, %v6051_v26 }
 0x563   : > { %v7555_v24 = vmul.f32 %v14427_v31, %v12611_v53  ;;  %v7945_v56 = vmul.f32 %v14428_v7, %v12589_v40  ;;  %v7947_v25 = vmul.f32 %v14428_v7, %v12607_v10  ;;  %v8337_v58 = vmul.f32 %v14429_v5, %v12630_v44  ;;  %v14434_v7 = vld [vmem:[#allocation115_spill] sm:$0xff] }
 0x564   : > { %v8396_v48 = vadd.f32 %v8332_v21, %v8004_v28  ;;  %v6833_v19 = vadd.f32 %v6769_v37, %v6441_v16  ;;  %v8398_v38 = vadd.f32 %v8334_v41, %v8006_v51  ;;  %v6835_v1 = vadd.f32 %v6771_v17, %v6443_v2  ;;  %v14431_v21 = vld [vmem:[#allocation44_spill] sm:$0xff]  ;;  %v14432_v41 = vld [vmem:[#allocation57_spill] sm:$0xff] }
 0x565   : > { %v8339_v50 = vmul.f32 %v14429_v5, %v12646_v12  ;;  %v5656_v35 = vmul.f32 %v14430_v29, %v14396_v36  ;;  %v5658_v62 = vmul.f32 %v14430_v29, %v14358_v46  ;;  %v5984_v47 = vmul.f32 %v14431_v21, %v14360_v43  ;;  %v14433_v16 = vld [vmem:[#allocation101_spill] sm:$0xff] }
 0x566   : > { %v7225_v57 = vadd.f32 %v7161_v22, %v6833_v19  ;;  %v5986_v61 = vmul.f32 %v14431_v21, %v12516_v0  ;;  %v9038_v37 = vpack.c.bf16 %v8398_v38, %v8396_v48  ;;  %v7227_v32 = vadd.f32 %v7163_v3, %v6835_v1 }
 0x567   : > { %v6376_v26 = vmul.f32 %v14432_v41, %v12476_v23  ;;  %v6378_v17 = vmul.f32 %v14432_v41, %v12511_v63  ;;  %v6048_v28 = vadd.f32 %v5984_v47, %v5656_v35  ;;  %v6768_v31 = vmul.f32 %v14433_v16, %v12542_v39 }
 0x568   : > { %v7617_v59 = vadd.f32 %v7553_v15, %v7225_v57  ;;  %v6050_v22 = vadd.f32 %v5986_v61, %v5658_v62  ;;  %9039 = vmatpush1.bf16.msra.mxu0 %v9038_v37  ;;  %v7619_v51 = vadd.f32 %v7555_v24, %v7227_v32  ;;  %v6770_v2 = vmul.f32 %v14433_v16, %v12564_v14  ;;  %v14435_v15 = vld [vmem:[#allocation162_spill] sm:$0xff] }
 0x569   : > { %v7160_v3 = vmul.f32 %v14434_v7, %v12535_v60  ;;  %v7162_v48 = vmul.f32 %v14434_v7, %v12559_v27  ;;  %v6440_v5 = vadd.f32 %v6376_v26, %v6048_v28  ;;  %v7552_v1 = vmul.f32 %v14435_v15, %v12587_v33  ;;  %v14436_v24 = vld [vmem:[#allocation218_spill] sm:$0xff] }
 0x56a   : > { %v8009_v19 = vadd.f32 %v7945_v56, %v7617_v59  ;;  %v6442_v38 = vadd.f32 %v6378_v17, %v6050_v22  ;;  %v8011_v29 = vadd.f32 %v7947_v25, %v7619_v51  ;;  %v7554_v35 = vmul.f32 %v14435_v15, %v12605_v45  ;;  %v14437_v56 = vld [vmem:[#allocation219_spill] sm:$0xff]  ;;  %v14438_v25 = vld [vmem:[#allocation221_spill] sm:$0xff]  ;;  %v14439_v22 = vld [vmem:[#allocation60_spill] sm:$0xff] }
 0x56b   : > { %v7944_v57 = vmul.f32 %v14436_v24, %v12582_v13  ;;  %v7946_v62 = vmul.f32 %v14436_v24, %v12600_v6  ;;  %v6832_v47 = vadd.f32 %v6768_v31, %v6440_v5  ;;  %v8336_v37 = vmul.f32 %v14437_v56, %v12626_v52  ;;  %v14441_v7 = vld [vmem:[#allocation118_spill] sm:$0xff] }
 0x56c   : > { %v8401_v21 = vadd.f32 %v8337_v58, %v8009_v19  ;;  %v6834_v61 = vadd.f32 %v6770_v2, %v6442_v38  ;;  %v8403_v32 = vadd.f32 %v8339_v50, %v8011_v29  ;;  %v8338_v41 = vmul.f32 %v14437_v56, %v12642_v49  ;;  %v14440_v50 = vld [vmem:[#allocation76_spill] sm:$0xff]  ;;  %v14442_v29 = vld [vmem:[#allocation134_spill] sm:$0xff] }
 0x56d   : > { %v5661_v26 = vmul.f32 %v14438_v25, %v14405_v42  ;;  %v5663_v17 = vmul.f32 %v14438_v25, %v14348_v9  ;;  %v7224_v59 = vadd.f32 %v7160_v3, %v6832_v47  ;;  %v5989_v58 = vmul.f32 %v14439_v22, %v12478_v11  ;;  %v14443_v47 = vld [vmem:[#allocation172_spill] sm:$0xff] }
 0x56e   : > { %v7226_v28 = vadd.f32 %v7162_v48, %v6834_v61  ;;  %v5991_v16 = vmul.f32 %v14439_v22, %v12524_v8  ;;  %v9040_v31 = vpack.c.bf16 %v8403_v32, %v8401_v21  ;;  %v6381_v51 = vmul.f32 %v14440_v50, %v12488_v4 }
 0x56f   : > { %v6383_v2 = vmul.f32 %v14440_v50, %v12518_v55  ;;  %v6773_v19 = vmul.f32 %v14441_v7, %v12550_v18  ;;  %v7616_v5 = vadd.f32 %v7552_v1, %v7224_v59  ;;  %v6053_v3 = vadd.f32 %v5989_v58, %v5661_v26  ;;  %v14444_v26 = vld [vmem:[#allocation186_spill] sm:$0xff] }
 0x570   : > { %v7618_v38 = vadd.f32 %v7554_v35, %v7226_v28  ;;  %v6055_v48 = vadd.f32 %v5991_v16, %v5663_v17  ;;  %9041 = vmatprep.subr.bf16.mxu0 %v9040_v31  ;;  %v6775_v15 = vmul.f32 %v14441_v7, %v12571_v20  ;;  %v7165_v24 = vmul.f32 %v14442_v29, %v12544_v34  ;;  %v14445_v28 = vld [vmem:[#allocation220_spill] sm:$0xff] }
 0x571   : > { %v7167_v21 = vmul.f32 %v14442_v29, %v12566_v54  ;;  %v7557_v61 = vmul.f32 %v14443_v47, %v12591_v30  ;;  %v8008_v56 = vadd.f32 %v7944_v57, %v7616_v5  ;;  %v6445_v25 = vadd.f32 %v6381_v51, %v6053_v3  ;;  %v8437_v57 = vld [vmem:[%s14446_s29 + $0x8] sm:$0xff]  ;;  %v14447_v51 = vld [vmem:[#allocation222_spill] sm:$0xff]  ;;  %v14448_v5 = vld [vmem:[#allocation59_spill] sm:$0xff] }
 0x572   : > { %v8010_v32 = vadd.f32 %v7946_v62, %v7618_v38  ;;  %v6447_v1 = vadd.f32 %v6383_v2, %v6055_v48  ;;  %v7559_v35 = vmul.f32 %v14443_v47, %v12611_v53  ;;  %v7949_v17 = vmul.f32 %v14444_v26, %v12589_v40  ;;  %8516 = vmatprep.mubr.f32.mxu0 %v8437_v57 }
 0x573   : > { %v7951_v59 = vmul.f32 %v14444_v26, %v12607_v10  ;;  %v8341_v22 = vmul.f32 %v14445_v28, %v12630_v44  ;;  %v8400_v58 = vadd.f32 %v8336_v37, %v8008_v56  ;;  %v6837_v31 = vadd.f32 %v6773_v19, %v6445_v25  ;;  %v14450_v56 = vld [vmem:[#allocation117_spill] sm:$0xff] }
 0x574   : > { %v8402_v16 = vadd.f32 %v8338_v41, %v8010_v32  ;;  %v6839_v50 = vadd.f32 %v6775_v15, %v6447_v1  ;;  %v8343_v62 = vmul.f32 %v14445_v28, %v12646_v12  ;;  %v5660_v2 = vmul.f32 %v14447_v51, %v14396_v36  ;;  %v14449_v15 = vld [vmem:[#allocation75_spill] sm:$0xff]  ;;  %v14451_v28 = vld [vmem:[#allocation133_spill] sm:$0xff] }
 0x575   : > { %v5662_v7 = vmul.f32 %v14447_v51, %v14358_v46  ;;  %v5988_v38 = vmul.f32 %v14448_v5, %v14360_v43  ;;  %v7229_v41 = vadd.f32 %v7165_v24, %v6837_v31  ;;  %v5990_v3 = vmul.f32 %v14448_v5, %v12516_v0  ;;  %v14452_v31 = vld [vmem:[#allocation171_spill] sm:$0xff] }
 0x576   : > { %v9042_v37 = vpack.c.bf16 %v8402_v16, %v8400_v58  ;;  %v7231_v19 = vadd.f32 %v7167_v21, %v6839_v50  ;;  %v6380_v29 = vmul.f32 %v14449_v15, %v12476_v23  ;;  %v6382_v47 = vmul.f32 %v14449_v15, %v12511_v63  ;;  %v14455_v15 = vld [vmem:[#allocation223_spill] sm:$0xff] }
 0x577   : > { %v6052_v48 = vadd.f32 %v5988_v38, %v5660_v2  ;;  %v6772_v32 = vmul.f32 %v14450_v56, %v12542_v39  ;;  %v7621_v25 = vadd.f32 %v7557_v61, %v7229_v41  ;;  %v6054_v26 = vadd.f32 %v5990_v3, %v5662_v7  ;;  %v14453_v7 = vld [vmem:[#allocation185_spill] sm:$0xff] }
 0x578   : > { %9043 = vmatpush1.bf16.msra.mxu0 %v9042_v37  ;;  %v7623_v1 = vadd.f32 %v7559_v35, %v7231_v19  ;;  %v6774_v24 = vmul.f32 %v14450_v56, %v12564_v14  ;;  %v7164_v58 = vmul.f32 %v14451_v28, %v12535_v60  ;;  %v7166_v16 = vmul.f32 %v14451_v28, %v12559_v27  ;;  %v14454_v37 = vld [vmem:[#allocation197_spill] sm:$0xff]  ;;  %v14456_v56 = vld [vmem:[#allocation63_spill] sm:$0xff] }
 0x579   : > { %v6444_v21 = vadd.f32 %v6380_v29, %v6052_v48  ;;  %v7556_v50 = vmul.f32 %v14452_v31, %v12587_v33  ;;  %v8013_v57 = vadd.f32 %v7949_v17, %v7621_v25  ;;  %v6446_v2 = vadd.f32 %v6382_v47, %v6054_v26 }
 0x57a   : > { %v8015_v51 = vadd.f32 %v7951_v59, %v7623_v1  ;;  %v7558_v61 = vmul.f32 %v14452_v31, %v12605_v45  ;;  %v7948_v5 = vmul.f32 %v14453_v7, %v12582_v13  ;;  %v7950_v38 = vmul.f32 %v14453_v7, %v12600_v6 }
 0x57b   : > { %v6836_v35 = vadd.f32 %v6772_v32, %v6444_v21  ;;  %v8340_v41 = vmul.f32 %v14454_v37, %v12626_v52  ;;  %v8405_v19 = vadd.f32 %v8341_v22, %v8013_v57  ;;  %v6838_v48 = vadd.f32 %v6774_v24, %v6446_v2  ;;  %v14459_v2 = vld [vmem:[#allocation136_spill] sm:$0xff] }
 0x57c   : > { %v8407_v3 = vadd.f32 %v8343_v62, %v8015_v51  ;;  %v8342_v17 = vmul.f32 %v14454_v37, %v12642_v49  ;;  %v5665_v29 = vmul.f32 %v14455_v15, %v14405_v42  ;;  %v5667_v47 = vmul.f32 %v14455_v15, %v14348_v9  ;;  %v14457_v62 = vld [vmem:[#allocation78_spill] sm:$0xff]  ;;  %v14461_v15 = vld [vmem:[#allocation224_spill] sm:$0xff] }
 0x57d   : > { %v7228_v59 = vadd.f32 %v7164_v58, %v6836_v35  ;;  %v5993_v32 = vmul.f32 %v14456_v56, %v12478_v11  ;;  %v7230_v1 = vadd.f32 %v7166_v16, %v6838_v48  ;;  %v5995_v22 = vmul.f32 %v14456_v56, %v12524_v8  ;;  %v14458_v58 = vld [vmem:[#allocation122_spill] sm:$0xff] }
 0x57e   : > { %v9044_v25 = vpack.c.bf16 %v8407_v3, %v8405_v19  ;;  %v6385_v26 = vmul.f32 %v14457_v62, %v12488_v4  ;;  %v6387_v28 = vmul.f32 %v14457_v62, %v12518_v55  ;;  %v6777_v31 = vmul.f32 %v14458_v58, %v12550_v18  ;;  %v14460_v19 = vld [vmem:[#allocation176_spill] sm:$0xff]  ;;  %v14463_v62 = vld [vmem:[#allocation225_spill] sm:$0xff] }
 0x57f   : > { %v7620_v24 = vadd.f32 %v7556_v50, %v7228_v59  ;;  %v6057_v21 = vadd.f32 %v5993_v32, %v5665_v29  ;;  %v7622_v57 = vadd.f32 %v7558_v61, %v7230_v1  ;;  %v6059_v51 = vadd.f32 %v5995_v22, %v5667_v47  ;;  %v14462_v32 = vld [vmem:[#allocation227_spill] sm:$0xff] }
 0x580   : > { %9045 = vmatprep.subr.bf16.mxu0 %v9044_v25  ;;  %v6779_v16 = vmul.f32 %v14458_v58, %v12571_v20  ;;  %v7169_v35 = vmul.f32 %v14459_v2, %v12544_v34  ;;  %v7171_v50 = vmul.f32 %v14459_v2, %v12566_v54  ;;  %v7561_v3 = vmul.f32 %v14460_v19, %v12591_v30 }
 0x581   : > { %v8012_v7 = vadd.f32 %v7948_v5, %v7620_v24  ;;  %v6449_v37 = vadd.f32 %v6385_v26, %v6057_v21  ;;  %v8014_v48 = vadd.f32 %v7950_v38, %v7622_v57  ;;  %v6451_v59 = vadd.f32 %v6387_v28, %v6059_v51 }
 0x582   : > { %v7563_v61 = vmul.f32 %v14460_v19, %v12611_v53  ;;  %v7953_v29 = vmul.f32 %v14461_v15, %v12589_v40  ;;  %v7955_v5 = vmul.f32 %v14461_v15, %v12607_v10  ;;  %v8345_v25 = vmul.f32 %v14462_v32, %v12630_v44  ;;  %v14467_v15 = vld [vmem:[#allocation135_spill] sm:$0xff] }
 0x583   : > { %v8404_v47 = vadd.f32 %v8340_v41, %v8012_v7  ;;  %v6841_v56 = vadd.f32 %v6777_v31, %v6449_v37  ;;  %v8406_v1 = vadd.f32 %v8342_v17, %v8014_v48  ;;  %v6843_v22 = vadd.f32 %v6779_v16, %v6451_v59  ;;  %v14464_v41 = vld [vmem:[#allocation62_spill] sm:$0xff]  ;;  %v14465_v17 = vld [vmem:[#allocation77_spill] sm:$0xff]  ;;  %v14466_v37 = vld [vmem:[#allocation120_spill] sm:$0xff] }
 0x584   : > { %v8347_v38 = vmul.f32 %v14462_v32, %v12646_v12  ;;  %v5664_v26 = vmul.f32 %v14463_v62, %v14396_v36  ;;  %v5666_v21 = vmul.f32 %v14463_v62, %v14358_v46  ;;  %v5992_v28 = vmul.f32 %v14464_v41, %v14360_v43 }
 0x585   : > { %v7233_v24 = vadd.f32 %v7169_v35, %v6841_v56  ;;  %v5994_v58 = vmul.f32 %v14464_v41, %v12516_v0  ;;  %v9046_v31 = vpack.c.bf16 %v8406_v1, %v8404_v47  ;;  %v7235_v57 = vadd.f32 %v7171_v50, %v6843_v22 }
 0x586   : > { %v6384_v51 = vmul.f32 %v14465_v17, %v12476_v23  ;;  %v6386_v16 = vmul.f32 %v14465_v17, %v12511_v63  ;;  %v6056_v7 = vadd.f32 %v5992_v28, %v5664_v26  ;;  %v6776_v19 = vmul.f32 %v14466_v37, %v12542_v39 }
 0x587   : > { %v7625_v2 = vadd.f32 %v7561_v3, %v7233_v24  ;;  %v6058_v35 = vadd.f32 %v5994_v58, %v5666_v21  ;;  %9047 = vmatpush1.bf16.msra.mxu0 %v9046_v31  ;;  %v7627_v48 = vadd.f32 %v7563_v61, %v7235_v57  ;;  %v6778_v59 = vmul.f32 %v14466_v37, %v12564_v14  ;;  %v14468_v3 = vld [vmem:[#allocation175_spill] sm:$0xff]  ;;  %v14469_v61 = vld [vmem:[#allocation190_spill] sm:$0xff] }
 0x588   : > { %v7168_v50 = vmul.f32 %v14467_v15, %v12535_v60  ;;  %v7170_v47 = vmul.f32 %v14467_v15, %v12559_v27  ;;  %v6448_v32 = vadd.f32 %v6384_v51, %v6056_v7  ;;  %v7560_v22 = vmul.f32 %v14468_v3, %v12587_v33  ;;  %v14474_v15 = vld [vmem:[#allocation124_spill] sm:$0xff] }
 0x589   : > { %v8017_v56 = vadd.f32 %v7953_v29, %v7625_v2  ;;  %v6450_v1 = vadd.f32 %v6386_v16, %v6058_v35  ;;  %v8019_v62 = vadd.f32 %v7955_v5, %v7627_v48  ;;  %v7562_v26 = vmul.f32 %v14468_v3, %v12605_v45  ;;  %v14470_v29 = vld [vmem:[#allocation230_spill] sm:$0xff] }
 0x58a   : > { %v7952_v24 = vmul.f32 %v14469_v61, %v12582_v13  ;;  %v7954_v21 = vmul.f32 %v14469_v61, %v12600_v6  ;;  %v6840_v28 = vadd.f32 %v6776_v19, %v6448_v32  ;;  %v8344_v31 = vmul.f32 %v14470_v29, %v12626_v52  ;;  %v14471_v5 = vld [vmem:[#allocation226_spill] sm:$0xff] }
 0x58b   : > { %v8409_v41 = vadd.f32 %v8345_v25, %v8017_v56  ;;  %v6842_v58 = vadd.f32 %v6778_v59, %v6450_v1  ;;  %v8411_v57 = vadd.f32 %v8347_v38, %v8019_v62  ;;  %v8346_v17 = vmul.f32 %v14470_v29, %v12642_v49  ;;  %v14472_v35 = vld [vmem:[#allocation66_spill] sm:$0xff]  ;;  %v14473_v38 = vld [vmem:[#allocation80_spill] sm:$0xff] }
 0x58c   : > { %v5669_v51 = vmul.f32 %v14471_v5, %v14405_v42  ;;  %v5671_v16 = vmul.f32 %v14471_v5, %v14348_v9  ;;  %v7232_v2 = vadd.f32 %v7168_v50, %v6840_v28  ;;  %v5997_v25 = vmul.f32 %v14472_v35, %v12478_v11  ;;  %v14475_v62 = vld [vmem:[#allocation138_spill] sm:$0xff] }
 0x58d   : > { %v7234_v7 = vadd.f32 %v7170_v47, %v6842_v58  ;;  %v5999_v37 = vmul.f32 %v14472_v35, %v12524_v8  ;;  %v9048_v19 = vpack.c.bf16 %v8411_v57, %v8409_v41  ;;  %v6389_v48 = vmul.f32 %v14473_v38, %v12488_v4  ;;  %v14476_v28 = vld [vmem:[#allocation178_spill] sm:$0xff] }
 0x58e   : > { %v6391_v59 = vmul.f32 %v14473_v38, %v12518_v55  ;;  %v6781_v56 = vmul.f32 %v14474_v15, %v12550_v18  ;;  %v7624_v32 = vadd.f32 %v7560_v22, %v7232_v2  ;;  %v6061_v50 = vadd.f32 %v5997_v25, %v5669_v51  ;;  %v14477_v51 = vld [vmem:[#allocation231_spill] sm:$0xff] }
 0x58f   : > { %v7626_v1 = vadd.f32 %v7562_v26, %v7234_v7  ;;  %v6063_v47 = vadd.f32 %v5999_v37, %v5671_v16  ;;  %9049 = vmatprep.subr.bf16.mxu0 %v9048_v19  ;;  %v6783_v3 = vmul.f32 %v14474_v15, %v12571_v20  ;;  %v7173_v61 = vmul.f32 %v14475_v62, %v12544_v34  ;;  %v14478_v7 = vld [vmem:[#allocation234_spill] sm:$0xff]  ;;  %v14480_v15 = vld [vmem:[#allocation65_spill] sm:$0xff] }
 0x590   : > { %v7175_v41 = vmul.f32 %v14475_v62, %v12566_v54  ;;  %v7565_v58 = vmul.f32 %v14476_v28, %v12591_v30  ;;  %v8016_v29 = vadd.f32 %v7952_v24, %v7624_v32  ;;  %v6453_v5 = vadd.f32 %v6389_v48, %v6061_v50 }
 0x591   : > { %v8018_v57 = vadd.f32 %v7954_v21, %v7626_v1  ;;  %v6455_v22 = vadd.f32 %v6391_v59, %v6063_v47  ;;  %v7567_v26 = vmul.f32 %v14476_v28, %v12611_v53  ;;  %v7957_v16 = vmul.f32 %v14477_v51, %v12589_v40  ;;  %v14479_v21 = vld [vmem:[#allocation228_spill] sm:$0xff]  ;;  %v14482_v28 = vld [vmem:[#allocation123_spill] sm:$0xff] }
 0x592   : > { %v7959_v2 = vmul.f32 %v14477_v51, %v12607_v10  ;;  %v8349_v35 = vmul.f32 %v14478_v7, %v12630_v44  ;;  %v8408_v25 = vadd.f32 %v8344_v31, %v8016_v29  ;;  %v6845_v19 = vadd.f32 %v6781_v56, %v6453_v5  ;;  %v14481_v56 = vld [vmem:[#allocation79_spill] sm:$0xff]  ;;  %v14483_v51 = vld [vmem:[#allocation137_spill] sm:$0xff] }
 0x593   : > { %v8410_v37 = vadd.f32 %v8346_v17, %v8018_v57  ;;  %v6847_v38 = vadd.f32 %v6783_v3, %v6455_v22  ;;  %v8351_v24 = vmul.f32 %v14478_v7, %v12646_v12  ;;  %v5668_v48 = vmul.f32 %v14479_v21, %v14396_v36 }
 0x594   : > { %v5670_v59 = vmul.f32 %v14479_v21, %v14358_v46  ;;  %v5996_v32 = vmul.f32 %v14480_v15, %v14360_v43  ;;  %v7237_v50 = vadd.f32 %v7173_v61, %v6845_v19  ;;  %v5998_v31 = vmul.f32 %v14480_v15, %v12516_v0 }
 0x595   : > { %v9050_v1 = vpack.c.bf16 %v8410_v37, %v8408_v25  ;;  %v7239_v47 = vadd.f32 %v7175_v41, %v6847_v38  ;;  %v6388_v3 = vmul.f32 %v14481_v56, %v12476_v23  ;;  %v6390_v62 = vmul.f32 %v14481_v56, %v12511_v63  ;;  %v14484_v37 = vld [vmem:[#allocation177_spill] sm:$0xff] }
 0x596   : > { %v6060_v17 = vadd.f32 %v5996_v32, %v5668_v48  ;;  %v6780_v29 = vmul.f32 %v14482_v28, %v12542_v39  ;;  %v7629_v57 = vadd.f32 %v7565_v58, %v7237_v50  ;;  %v6062_v22 = vadd.f32 %v5998_v31, %v5670_v59  ;;  %v14485_v59 = vld [vmem:[#allocation191_spill] sm:$0xff]  ;;  %v14487_v56 = vld [vmem:[#allocation229_spill] sm:$0xff] }
 0x597   : > { %9051 = vmatpush1.bf16.msra.mxu0 %v9050_v1  ;;  %v7631_v5 = vadd.f32 %v7567_v26, %v7239_v47  ;;  %v6782_v61 = vmul.f32 %v14482_v28, %v12564_v14  ;;  %v7172_v7 = vmul.f32 %v14483_v51, %v12535_v60  ;;  %v7174_v25 = vmul.f32 %v14483_v51, %v12559_v27  ;;  %v14486_v1 = vld [vmem:[#allocation235_spill] sm:$0xff]  ;;  %v14488_v28 = vld [vmem:[#allocation70_spill] sm:$0xff] }
 0x598   : > { %v6452_v41 = vadd.f32 %v6388_v3, %v6060_v17  ;;  %v7564_v19 = vmul.f32 %v14484_v37, %v12587_v33  ;;  %v8021_v38 = vadd.f32 %v7957_v16, %v7629_v57  ;;  %v6454_v48 = vadd.f32 %v6390_v62, %v6062_v22 }
 0x599   : > { %v8023_v21 = vadd.f32 %v7959_v2, %v7631_v5  ;;  %v7566_v58 = vmul.f32 %v14484_v37, %v12605_v45  ;;  %v7956_v15 = vmul.f32 %v14485_v59, %v12582_v13  ;;  %v7958_v32 = vmul.f32 %v14485_v59, %v12600_v6 }
 0x59a   : > { %v6844_v26 = vadd.f32 %v6780_v29, %v6452_v41  ;;  %v8348_v50 = vmul.f32 %v14486_v1, %v12626_v52  ;;  %v8413_v47 = vadd.f32 %v8349_v35, %v8021_v38  ;;  %v6846_v17 = vadd.f32 %v6782_v61, %v6454_v48  ;;  %v14491_v48 = vld [vmem:[#allocation142_spill] sm:$0xff] }
 0x59b   : > { %v8415_v31 = vadd.f32 %v8351_v24, %v8023_v21  ;;  %v8350_v16 = vmul.f32 %v14486_v1, %v12642_v49  ;;  %v5673_v3 = vmul.f32 %v14487_v56, %v14405_v42  ;;  %v5675_v62 = vmul.f32 %v14487_v56, %v14348_v9  ;;  %v14489_v24 = vld [vmem:[#allocation83_spill] sm:$0xff]  ;;  %v14493_v56 = vld [vmem:[#allocation238_spill] sm:$0xff] }
 0x59c   : > { %v7236_v2 = vadd.f32 %v7172_v7, %v6844_v26  ;;  %v6001_v29 = vmul.f32 %v14488_v28, %v12478_v11  ;;  %v7238_v5 = vadd.f32 %v7174_v25, %v6846_v17  ;;  %v6003_v35 = vmul.f32 %v14488_v28, %v12524_v8  ;;  %v14490_v7 = vld [vmem:[#allocation128_spill] sm:$0xff] }
 0x59d   : > { %v9052_v57 = vpack.c.bf16 %v8415_v31, %v8413_v47  ;;  %v6393_v22 = vmul.f32 %v14489_v24, %v12488_v4  ;;  %v6395_v51 = vmul.f32 %v14489_v24, %v12518_v55  ;;  %v6785_v37 = vmul.f32 %v14490_v7, %v12550_v18  ;;  %v14492_v47 = vld [vmem:[#allocation237_spill] sm:$0xff]  ;;  %v14495_v24 = vld [vmem:[#allocation232_spill] sm:$0xff] }
 0x59e   : > { %v7628_v61 = vadd.f32 %v7564_v19, %v7236_v2  ;;  %v6065_v41 = vadd.f32 %v6001_v29, %v5673_v3  ;;  %v7630_v38 = vadd.f32 %v7566_v58, %v7238_v5  ;;  %v6067_v21 = vadd.f32 %v6003_v35, %v5675_v62  ;;  %v14494_v29 = vld [vmem:[#allocation239_spill] sm:$0xff] }
 0x59f   : > { %9053 = vmatprep.subr.bf16.mxu0 %v9052_v57  ;;  %v6787_v25 = vmul.f32 %v14490_v7, %v12571_v20  ;;  %v7177_v26 = vmul.f32 %v14491_v48, %v12544_v34  ;;  %v7179_v19 = vmul.f32 %v14491_v48, %v12566_v54  ;;  %v7569_v31 = vmul.f32 %v14492_v47, %v12591_v30 }
 0x5a0   : > { %v8020_v59 = vadd.f32 %v7956_v15, %v7628_v61  ;;  %v6457_v1 = vadd.f32 %v6393_v22, %v6065_v41  ;;  %v8022_v17 = vadd.f32 %v7958_v32, %v7630_v38  ;;  %v6459_v2 = vadd.f32 %v6395_v51, %v6067_v21 }
 0x5a1   : > { %v7571_v58 = vmul.f32 %v14492_v47, %v12611_v53  ;;  %v7961_v3 = vmul.f32 %v14493_v56, %v12589_v40  ;;  %v7963_v15 = vmul.f32 %v14493_v56, %v12607_v10  ;;  %v8353_v57 = vmul.f32 %v14494_v29, %v12630_v44  ;;  %v14499_v56 = vld [vmem:[#allocation141_spill] sm:$0xff] }
 0x5a2   : > { %v8412_v62 = vadd.f32 %v8348_v50, %v8020_v59  ;;  %v6849_v28 = vadd.f32 %v6785_v37, %v6457_v1  ;;  %v8414_v5 = vadd.f32 %v8350_v16, %v8022_v17  ;;  %v6851_v35 = vadd.f32 %v6787_v25, %v6459_v2  ;;  %v14496_v50 = vld [vmem:[#allocation69_spill] sm:$0xff]  ;;  %v14497_v16 = vld [vmem:[#allocation24_spill] sm:$0xff]  ;;  %v14498_v1 = vld [vmem:[#allocation127_spill] sm:$0xff] }
 0x5a3   : > { %v8355_v32 = vmul.f32 %v14494_v29, %v12646_v12  ;;  %v5672_v22 = vmul.f32 %v14495_v24, %v14396_v36  ;;  %v5674_v41 = vmul.f32 %v14495_v24, %v14358_v46  ;;  %v6000_v51 = vmul.f32 %v14496_v50, %v14360_v43 }
 0x5a4   : > { %v7241_v61 = vadd.f32 %v7177_v26, %v6849_v28  ;;  %v6002_v7 = vmul.f32 %v14496_v50, %v12516_v0  ;;  %v9054_v37 = vpack.c.bf16 %v8414_v5, %v8412_v62  ;;  %v7243_v38 = vadd.f32 %v7179_v19, %v6851_v35 }
 0x5a5   : > { %v6392_v21 = vmul.f32 %v14497_v16, %v12476_v23  ;;  %v6394_v25 = vmul.f32 %v14497_v16, %v12511_v63  ;;  %v6064_v59 = vadd.f32 %v6000_v51, %v5672_v22  ;;  %v6784_v47 = vmul.f32 %v14498_v1, %v12542_v39 }
 0x5a6   : > { %v7633_v48 = vadd.f32 %v7569_v31, %v7241_v61  ;;  %v6066_v26 = vadd.f32 %v6002_v7, %v5674_v41  ;;  %9055 = vmatpush1.bf16.msra.mxu0 %v9054_v37  ;;  %v7635_v17 = vadd.f32 %v7571_v58, %v7243_v38  ;;  %v6786_v2 = vmul.f32 %v14498_v1, %v12564_v14  ;;  %v14500_v31 = vld [vmem:[#allocation181_spill] sm:$0xff] }
 0x5a7   : > { %v7176_v19 = vmul.f32 %v14499_v56, %v12535_v60  ;;  %v7178_v62 = vmul.f32 %v14499_v56, %v12559_v27  ;;  %v6456_v29 = vadd.f32 %v6392_v21, %v6064_v59  ;;  %v7568_v35 = vmul.f32 %v14500_v31, %v12587_v33  ;;  %v14501_v58 = vld [vmem:[#allocation241_spill] sm:$0xff] }
 0x5a8   : > { %v8025_v28 = vadd.f32 %v7961_v3, %v7633_v48  ;;  %v6458_v5 = vadd.f32 %v6394_v25, %v6066_v26  ;;  %v8027_v24 = vadd.f32 %v7963_v15, %v7635_v17  ;;  %v7570_v22 = vmul.f32 %v14500_v31, %v12605_v45  ;;  %v14502_v3 = vld [vmem:[#allocation242_spill] sm:$0xff]  ;;  %v14503_v15 = vld [vmem:[#allocation233_spill] sm:$0xff]  ;;  %v14504_v26 = vld [vmem:[#allocation64_spill] sm:$0xff] }
 0x5a9   : > { %v7960_v61 = vmul.f32 %v14501_v58, %v12582_v13  ;;  %v7962_v41 = vmul.f32 %v14501_v58, %v12600_v6  ;;  %v6848_v51 = vadd.f32 %v6784_v47, %v6456_v29  ;;  %v8352_v37 = vmul.f32 %v14502_v3, %v12626_v52  ;;  %v14506_v56 = vld [vmem:[#allocation121_spill] sm:$0xff] }
 0x5aa   : > { %v8417_v50 = vadd.f32 %v8353_v57, %v8025_v28  ;;  %v6850_v7 = vadd.f32 %v6786_v2, %v6458_v5  ;;  %v8419_v38 = vadd.f32 %v8355_v32, %v8027_v24  ;;  %v8354_v16 = vmul.f32 %v14502_v3, %v12642_v49  ;;  %v14505_v32 = vld [vmem:[#allocation82_spill] sm:$0xff]  ;;  %v14507_v24 = vld [vmem:[#allocation140_spill] sm:$0xff] }
 0x5ab   : > { %v5677_v21 = vmul.f32 %v14503_v15, %v14405_v42  ;;  %v5679_v25 = vmul.f32 %v14503_v15, %v14348_v9  ;;  %v7240_v48 = vadd.f32 %v7176_v19, %v6848_v51  ;;  %v6005_v57 = vmul.f32 %v14504_v26, %v12478_v11  ;;  %v14508_v51 = vld [vmem:[#allocation174_spill] sm:$0xff] }
 0x5ac   : > { %v7242_v59 = vadd.f32 %v7178_v62, %v6850_v7  ;;  %v6007_v1 = vmul.f32 %v14504_v26, %v12524_v8  ;;  %v9056_v47 = vpack.c.bf16 %v8419_v38, %v8417_v50  ;;  %v6397_v17 = vmul.f32 %v14505_v32, %v12488_v4 }
 0x5ad   : > { %v6399_v2 = vmul.f32 %v14505_v32, %v12518_v55  ;;  %v6789_v28 = vmul.f32 %v14506_v56, %v12550_v18  ;;  %v7632_v29 = vadd.f32 %v7568_v35, %v7240_v48  ;;  %v6069_v19 = vadd.f32 %v6005_v57, %v5677_v21  ;;  %v14509_v21 = vld [vmem:[#allocation188_spill] sm:$0xff] }
 0x5ae   : > { %v7634_v5 = vadd.f32 %v7570_v22, %v7242_v59  ;;  %v6071_v62 = vadd.f32 %v6007_v1, %v5679_v25  ;;  %9057 = vmatprep.subr.bf16.mxu0 %v9056_v47  ;;  %v6791_v31 = vmul.f32 %v14506_v56, %v12571_v20  ;;  %v7181_v58 = vmul.f32 %v14507_v24, %v12544_v34  ;;  %v14510_v59 = vld [vmem:[#allocation23_spill] sm:$0xff]  ;;  %v14512_v56 = vld [vmem:[#allocation61_spill] sm:$0xff] }
 0x5af   : > { %v7183_v50 = vmul.f32 %v14507_v24, %v12566_v54  ;;  %v7573_v7 = vmul.f32 %v14508_v51, %v12591_v30  ;;  %v8024_v3 = vadd.f32 %v7960_v61, %v7632_v29  ;;  %v6461_v15 = vadd.f32 %v6397_v17, %v6069_v19 }
 0x5b0   : > { %v8026_v38 = vadd.f32 %v7962_v41, %v7634_v5  ;;  %v6463_v35 = vadd.f32 %v6399_v2, %v6071_v62  ;;  %v7575_v22 = vmul.f32 %v14508_v51, %v12611_v53  ;;  %v7965_v25 = vmul.f32 %v14509_v21, %v12589_v40  ;;  %v14511_v41 = vld [vmem:[#allocation236_spill] sm:$0xff]  ;;  %v14514_v51 = vld [vmem:[#allocation119_spill] sm:$0xff] }
 0x5b1   : > { %v7967_v48 = vmul.f32 %v14509_v21, %v12607_v10  ;;  %v8357_v26 = vmul.f32 %v14510_v59, %v12630_v44  ;;  %v8416_v57 = vadd.f32 %v8352_v37, %v8024_v3  ;;  %v6853_v47 = vadd.f32 %v6789_v28, %v6461_v15  ;;  %v14513_v28 = vld [vmem:[#allocation81_spill] sm:$0xff]  ;;  %v14515_v21 = vld [vmem:[#allocation139_spill] sm:$0xff] }
 0x5b2   : > { %v8418_v1 = vadd.f32 %v8354_v16, %v8026_v38  ;;  %v6855_v32 = vadd.f32 %v6791_v31, %v6463_v35  ;;  %v8359_v61 = vmul.f32 %v14510_v59, %v12646_v12  ;;  %v5676_v17 = vmul.f32 %v14511_v41, %v14396_v36 }
 0x5b3   : > { %v5678_v2 = vmul.f32 %v14511_v41, %v14358_v46  ;;  %v6004_v29 = vmul.f32 %v14512_v56, %v14360_v43  ;;  %v7245_v19 = vadd.f32 %v7181_v58, %v6853_v47  ;;  %v6006_v37 = vmul.f32 %v14512_v56, %v12516_v0 }
 0x5b4   : > { %v9058_v5 = vpack.c.bf16 %v8418_v1, %v8416_v57  ;;  %v7247_v62 = vadd.f32 %v7183_v50, %v6855_v32  ;;  %v6396_v31 = vmul.f32 %v14513_v28, %v12476_v23  ;;  %v6398_v24 = vmul.f32 %v14513_v28, %v12511_v63  ;;  %v14516_v1 = vld [vmem:[#allocation173_spill] sm:$0xff]  ;;  %v14519_v28 = vld [vmem:[#allocation240_spill] sm:$0xff] }
 0x5b5   : > { %v6068_v16 = vadd.f32 %v6004_v29, %v5676_v17  ;;  %v6788_v3 = vmul.f32 %v14514_v51, %v12542_v39  ;;  %v7637_v38 = vadd.f32 %v7573_v7, %v7245_v19  ;;  %v6070_v35 = vadd.f32 %v6006_v37, %v5678_v2  ;;  %v14517_v2 = vld [vmem:[#allocation187_spill] sm:$0xff] }
 0x5b6   : > { %9059 = vmatpush1.bf16.msra.mxu0 %v9058_v5  ;;  %v7639_v15 = vadd.f32 %v7575_v22, %v7247_v62  ;;  %v6790_v58 = vmul.f32 %v14514_v51, %v12564_v14  ;;  %v7180_v59 = vmul.f32 %v14515_v21, %v12535_v60  ;;  %v7182_v57 = vmul.f32 %v14515_v21, %v12559_v27  ;;  %v14518_v5 = vld [vmem:[#allocation198_spill] sm:$0xff]  ;;  %v14520_v51 = vld [vmem:[#allocation68_spill] sm:$0xff] }
 0x5b7   : > { %v6460_v50 = vadd.f32 %v6396_v31, %v6068_v16  ;;  %v7572_v47 = vmul.f32 %v14516_v1, %v12587_v33  ;;  %v8029_v32 = vadd.f32 %v7965_v25, %v7637_v38  ;;  %v6462_v17 = vadd.f32 %v6398_v24, %v6070_v35 }
 0x5b8   : > { %v8031_v41 = vadd.f32 %v7967_v48, %v7639_v15  ;;  %v7574_v7 = vmul.f32 %v14516_v1, %v12605_v45  ;;  %v7964_v56 = vmul.f32 %v14517_v2, %v12582_v13  ;;  %v7966_v29 = vmul.f32 %v14517_v2, %v12600_v6 }
 0x5b9   : > { %v6852_v22 = vadd.f32 %v6788_v3, %v6460_v50  ;;  %v8356_v19 = vmul.f32 %v14518_v5, %v12626_v52  ;;  %v8421_v62 = vadd.f32 %v8357_v26, %v8029_v32  ;;  %v6854_v16 = vadd.f32 %v6790_v58, %v6462_v17  ;;  %v14523_v17 = vld [vmem:[#allocation144_spill] sm:$0xff] }
 0x5ba   : > { %v8423_v37 = vadd.f32 %v8359_v61, %v8031_v41  ;;  %v8358_v25 = vmul.f32 %v14518_v5, %v12642_v49  ;;  %v5681_v31 = vmul.f32 %v14519_v28, %v14405_v42  ;;  %v5683_v24 = vmul.f32 %v14519_v28, %v14348_v9  ;;  %v14521_v61 = vld [vmem:[#allocation85_spill] sm:$0xff] }
 0x5bb   : > { %v7244_v48 = vadd.f32 %v7180_v59, %v6852_v22  ;;  %v6009_v3 = vmul.f32 %v14520_v51, %v12478_v11  ;;  %v7246_v15 = vadd.f32 %v7182_v57, %v6854_v16  ;;  %v6011_v26 = vmul.f32 %v14520_v51, %v12524_v8  ;;  %v14522_v59 = vld [vmem:[#allocation126_spill] sm:$0xff]  ;;  %v14525_v28 = vld [vmem:[#allocation245_spill] sm:$0xff] }
 0x5bc   : > { %v9060_v38 = vpack.c.bf16 %v8423_v37, %v8421_v62  ;;  %v6401_v35 = vmul.f32 %v14521_v61, %v12488_v4  ;;  %v6403_v21 = vmul.f32 %v14521_v61, %v12518_v55  ;;  %v6793_v1 = vmul.f32 %v14522_v59, %v12550_v18  ;;  %v14524_v62 = vld [vmem:[#allocation180_spill] sm:$0xff]  ;;  %v14527_v61 = vld [vmem:[#allocation243_spill] sm:$0xff] }
 0x5bd   : > { %v7636_v58 = vadd.f32 %v7572_v47, %v7244_v48  ;;  %v6073_v50 = vadd.f32 %v6009_v3, %v5681_v31  ;;  %v7638_v32 = vadd.f32 %v7574_v7, %v7246_v15  ;;  %v6075_v41 = vadd.f32 %v6011_v26, %v5683_v24  ;;  %v14526_v3 = vld [vmem:[#allocation247_spill] sm:$0xff] }
 0x5be   : > { %9061 = vmatprep.subr.bf16.mxu0 %v9060_v38  ;;  %v6795_v57 = vmul.f32 %v14522_v59, %v12571_v20  ;;  %v7185_v22 = vmul.f32 %v14523_v17, %v12544_v34  ;;  %v7187_v47 = vmul.f32 %v14523_v17, %v12566_v54  ;;  %v7577_v37 = vmul.f32 %v14524_v62, %v12591_v30 }
 0x5bf   : > { %v8028_v2 = vadd.f32 %v7964_v56, %v7636_v58  ;;  %v6465_v5 = vadd.f32 %v6401_v35, %v6073_v50  ;;  %v8030_v16 = vadd.f32 %v7966_v29, %v7638_v32  ;;  %v6467_v48 = vadd.f32 %v6403_v21, %v6075_v41 }
 0x5c0   : > { %v7579_v7 = vmul.f32 %v14524_v62, %v12611_v53  ;;  %v7969_v31 = vmul.f32 %v14525_v28, %v12589_v40  ;;  %v7971_v56 = vmul.f32 %v14525_v28, %v12607_v10  ;;  %v8361_v38 = vmul.f32 %v14526_v3, %v12630_v44  ;;  %v14531_v28 = vld [vmem:[#allocation143_spill] sm:$0xff] }
 0x5c1   : > { %v8420_v24 = vadd.f32 %v8356_v19, %v8028_v2  ;;  %v6857_v51 = vadd.f32 %v6793_v1, %v6465_v5  ;;  %v8422_v15 = vadd.f32 %v8358_v25, %v8030_v16  ;;  %v6859_v26 = vadd.f32 %v6795_v57, %v6467_v48  ;;  %v14528_v19 = vld [vmem:[#allocation67_spill] sm:$0xff]  ;;  %v14529_v25 = vld [vmem:[#allocation84_spill] sm:$0xff]  ;;  %v14530_v5 = vld [vmem:[#allocation125_spill] sm:$0xff] }
 0x5c2   : > { %v8363_v29 = vmul.f32 %v14526_v3, %v12646_v12  ;;  %v5680_v35 = vmul.f32 %v14527_v61, %v14396_v36  ;;  %v5682_v50 = vmul.f32 %v14527_v61, %v14358_v46  ;;  %v6008_v21 = vmul.f32 %v14528_v19, %v14360_v43 }
 0x5c3   : > { %v7249_v58 = vadd.f32 %v7185_v22, %v6857_v51  ;;  %v6010_v59 = vmul.f32 %v14528_v19, %v12516_v0  ;;  %v9062_v1 = vpack.c.bf16 %v8422_v15, %v8420_v24  ;;  %v7251_v32 = vadd.f32 %v7187_v47, %v6859_v26 }
 0x5c4   : > { %v6400_v41 = vmul.f32 %v14529_v25, %v12476_v23  ;;  %v6402_v57 = vmul.f32 %v14529_v25, %v12511_v63  ;;  %v6072_v2 = vadd.f32 %v6008_v21, %v5680_v35  ;;  %v6792_v62 = vmul.f32 %v14530_v5, %v12542_v39 }
 0x5c5   : > { %v7641_v17 = vadd.f32 %v7577_v37, %v7249_v58  ;;  %v6074_v22 = vadd.f32 %v6010_v59, %v5682_v50  ;;  %9063 = vmatpush1.bf16.msra.mxu0 %v9062_v1  ;;  %v7643_v16 = vadd.f32 %v7579_v7, %v7251_v32  ;;  %v6794_v48 = vmul.f32 %v14530_v5, %v12564_v14  ;;  %v14532_v37 = vld [vmem:[#allocation179_spill] sm:$0xff]  ;;  %v14533_v7 = vld [vmem:[#allocation192_spill] sm:$0xff] }
 0x5c6   : > { %v7184_v47 = vmul.f32 %v14531_v28, %v12535_v60  ;;  %v7186_v24 = vmul.f32 %v14531_v28, %v12559_v27  ;;  %v6464_v3 = vadd.f32 %v6400_v41, %v6072_v2  ;;  %v7576_v26 = vmul.f32 %v14532_v37, %v12587_v33  ;;  %v14538_v28 = vld [vmem:[#allocation130_spill] sm:$0xff] }
 0x5c7   : > { %v8033_v51 = vadd.f32 %v7969_v31, %v7641_v17  ;;  %v6466_v15 = vadd.f32 %v6402_v57, %v6074_v22  ;;  %v8035_v61 = vadd.f32 %v7971_v56, %v7643_v16  ;;  %v7578_v35 = vmul.f32 %v14532_v37, %v12605_v45  ;;  %v14534_v31 = vld [vmem:[#allocation251_spill] sm:$0xff]  ;;  %v14535_v56 = vld [vmem:[#allocation244_spill] sm:$0xff] }
 0x5c8   : > { %v7968_v58 = vmul.f32 %v14533_v7, %v12582_v13  ;;  %v7970_v50 = vmul.f32 %v14533_v7, %v12600_v6  ;;  %v6856_v21 = vadd.f32 %v6792_v62, %v6464_v3  ;;  %v8360_v1 = vmul.f32 %v14534_v31, %v12626_v52  ;;  %v14536_v22 = vld [vmem:[#allocation72_spill] sm:$0xff] }
 0x5c9   : > { %v8425_v19 = vadd.f32 %v8361_v38, %v8033_v51  ;;  %v6858_v59 = vadd.f32 %v6794_v48, %v6466_v15  ;;  %v8427_v32 = vadd.f32 %v8363_v29, %v8035_v61  ;;  %v8362_v25 = vmul.f32 %v14534_v31, %v12642_v49  ;;  %v14537_v29 = vld [vmem:[#allocation87_spill] sm:$0xff]  ;;  %v14539_v61 = vld [vmem:[#allocation146_spill] sm:$0xff] }
 0x5ca   : > { %v5685_v41 = vmul.f32 %v14535_v56, %v14405_v42  ;;  %v5687_v57 = vmul.f32 %v14535_v56, %v14348_v9  ;;  %v7248_v17 = vadd.f32 %v7184_v47, %v6856_v21  ;;  %v6013_v38 = vmul.f32 %v14536_v22, %v12478_v11  ;;  %v14540_v21 = vld [vmem:[#allocation183_spill] sm:$0xff] }
 0x5cb   : > { %v7250_v2 = vadd.f32 %v7186_v24, %v6858_v59  ;;  %v6015_v5 = vmul.f32 %v14536_v22, %v12524_v8  ;;  %v9064_v62 = vpack.c.bf16 %v8427_v32, %v8425_v19  ;;  %v6405_v16 = vmul.f32 %v14537_v29, %v12488_v4 }
 0x5cc   : > { %v6407_v48 = vmul.f32 %v14537_v29, %v12518_v55  ;;  %v6797_v51 = vmul.f32 %v14538_v28, %v12550_v18  ;;  %v7640_v3 = vadd.f32 %v7576_v26, %v7248_v17  ;;  %v6077_v47 = vadd.f32 %v6013_v38, %v5685_v41  ;;  %v14541_v41 = vld [vmem:[#allocation252_spill] sm:$0xff] }
 0x5cd   : > { %v7642_v15 = vadd.f32 %v7578_v35, %v7250_v2  ;;  %v6079_v24 = vadd.f32 %v6015_v5, %v5687_v57  ;;  %9065 = vmatprep.subr.bf16.mxu0 %v9064_v62  ;;  %v6799_v37 = vmul.f32 %v14538_v28, %v12571_v20  ;;  %v7189_v7 = vmul.f32 %v14539_v61, %v12544_v34  ;;  %v14542_v2 = vld [vmem:[#allocation253_spill] sm:$0xff]  ;;  %v14544_v28 = vld [vmem:[#allocation71_spill] sm:$0xff] }
 0x5ce   : > { %v7191_v19 = vmul.f32 %v14539_v61, %v12566_v54  ;;  %v7581_v59 = vmul.f32 %v14540_v21, %v12591_v30  ;;  %v8032_v31 = vadd.f32 %v7968_v58, %v7640_v3  ;;  %v6469_v56 = vadd.f32 %v6405_v16, %v6077_v47 }
 0x5cf   : > { %v8034_v32 = vadd.f32 %v7970_v50, %v7642_v15  ;;  %v6471_v26 = vadd.f32 %v6407_v48, %v6079_v24  ;;  %v7583_v35 = vmul.f32 %v14540_v21, %v12611_v53  ;;  %v7973_v57 = vmul.f32 %v14541_v41, %v12589_v40  ;;  %v14543_v50 = vld [vmem:[#allocation246_spill] sm:$0xff]  ;;  %v14546_v21 = vld [vmem:[#allocation129_spill] sm:$0xff] }
 0x5d0   : > { %v7975_v17 = vmul.f32 %v14541_v41, %v12607_v10  ;;  %v8365_v22 = vmul.f32 %v14542_v2, %v12630_v44  ;;  %v8424_v38 = vadd.f32 %v8360_v1, %v8032_v31  ;;  %v6861_v62 = vadd.f32 %v6797_v51, %v6469_v56  ;;  %v14545_v51 = vld [vmem:[#allocation86_spill] sm:$0xff]  ;;  %v14547_v41 = vld [vmem:[#allocation145_spill] sm:$0xff] }
 0x5d1   : > { %v8426_v5 = vadd.f32 %v8362_v25, %v8034_v32  ;;  %v6863_v29 = vadd.f32 %v6799_v37, %v6471_v26  ;;  %v8367_v58 = vmul.f32 %v14542_v2, %v12646_v12  ;;  %v5684_v16 = vmul.f32 %v14543_v50, %v14396_v36 }
 0x5d2   : > { %v5686_v48 = vmul.f32 %v14543_v50, %v14358_v46  ;;  %v6012_v3 = vmul.f32 %v14544_v28, %v14360_v43  ;;  %v7253_v47 = vadd.f32 %v7189_v7, %v6861_v62  ;;  %v6014_v1 = vmul.f32 %v14544_v28, %v12516_v0 }
 0x5d3   : > { %v9066_v15 = vpack.c.bf16 %v8426_v5, %v8424_v38  ;;  %v7255_v24 = vadd.f32 %v7191_v19, %v6863_v29  ;;  %v6404_v37 = vmul.f32 %v14545_v51, %v12476_v23  ;;  %v6406_v61 = vmul.f32 %v14545_v51, %v12511_v63  ;;  %v14548_v5 = vld [vmem:[#allocation196_spill] sm:$0xff] }
 0x5d4   : > { %v6076_v25 = vadd.f32 %v6012_v3, %v5684_v16  ;;  %v6796_v31 = vmul.f32 %v14546_v21, %v12542_v39  ;;  %v7645_v32 = vadd.f32 %v7581_v59, %v7253_v47  ;;  %v6078_v26 = vadd.f32 %v6014_v1, %v5686_v48  ;;  %v14549_v59 = vld [vmem:[#allocation182_spill] sm:$0xff]  ;;  %v14550_v3 = vld [vmem:[#allocation193_spill] sm:$0xff] }
 0x5d5   : > { %9067 = vmatpush1.bf16.msra.mxu0 %v9066_v15  ;;  %v7647_v56 = vadd.f32 %v7583_v35, %v7255_v24  ;;  %v6798_v7 = vmul.f32 %v14546_v21, %v12564_v14  ;;  %v7188_v2 = vmul.f32 %v14547_v41, %v12535_v60  ;;  %v7190_v38 = vmul.f32 %v14547_v41, %v12559_v27  ;;  %v14554_v41 = vld [vmem:[#allocation89_spill] sm:$0xff] }
 0x5d6   : > { %v6468_v19 = vadd.f32 %v6404_v37, %v6076_v25  ;;  %v13508_v62 = vcombine.high %v14548_v5, %v14548_v5  ;;  %v8037_v29 = vadd.f32 %v7973_v57, %v7645_v32  ;;  %v6470_v16 = vadd.f32 %v6406_v61, %v6078_v26  ;;  %v14551_v57 = vld [vmem:[#allocation255_spill] sm:$0xff]  ;;  %v14552_v61 = vld [vmem:[#allocation248_spill] sm:$0xff] }
 0x5d7   : > { %v8039_v50 = vadd.f32 %v7975_v17, %v7647_v56  ;;  %v7580_v35 = vmul.f32 %v14549_v59, %v12587_v33  ;;  %v7582_v28 = vmul.f32 %v14549_v59, %v12605_v45  ;;  %v7972_v15 = vmul.f32 %v14550_v3, %v12582_v13  ;;  %v14555_v5 = vld [vmem:[#allocation132_spill] sm:$0xff] }
 0x5d8   : > { %v6860_v48 = vadd.f32 %v6796_v31, %v6468_v19  ;;  %v7974_v47 = vmul.f32 %v14550_v3, %v12600_v6  ;;  %v8429_v24 = vadd.f32 %v8365_v22, %v8037_v29  ;;  %v6862_v25 = vadd.f32 %v6798_v7, %v6470_v16  ;;  %v14553_v31 = vld [vmem:[#allocation74_spill] sm:$0xff] }
 0x5d9   : > { %v8431_v1 = vadd.f32 %v8367_v58, %v8039_v50  ;;  %v8364_v17 = vmul.f32 %v14551_v57, %v12626_v52  ;;  %v8366_v37 = vmul.f32 %v14551_v57, %v12642_v49  ;;  %v5689_v21 = vmul.f32 %v14552_v61, %v14405_v42 }
 0x5da   : > { %v7252_v51 = vadd.f32 %v7188_v2, %v6860_v48  ;;  %v6017_v32 = vmul.f32 %v14553_v31, %v12478_v11  ;;  %v7254_v26 = vadd.f32 %v7190_v38, %v6862_v25  ;;  %v5691_v22 = vmul.f32 %v14552_v61, %v14348_v9 }
 0x5db   : > { %v9068_v56 = vpack.c.bf16 %v8431_v1, %v8429_v24  ;;  %v6019_v58 = vmul.f32 %v14553_v31, %v12524_v8  ;;  %v6409_v2 = vmul.f32 %v14554_v41, %v12488_v4  ;;  %v6801_v29 = vmul.f32 %v14555_v5, %v12550_v18  ;;  %v14556_v8 = vld [vmem:[#allocation148_spill] sm:$0xff] }
 0x5dc   : > { %v7644_v7 = vadd.f32 %v7580_v35, %v7252_v51  ;;  %v6081_v19 = vadd.f32 %v6017_v32, %v5689_v21  ;;  %v7646_v42 = vadd.f32 %v7582_v28, %v7254_v26  ;;  %v6411_v11 = vmul.f32 %v14554_v41, %v12518_v55  ;;  %v14557_v35 = vld [vmem:[#allocation22_spill] sm:$0xff]  ;;  %v14558_v28 = vld [vmem:[#allocation256_spill] sm:$0xff] }
 0x5dd   : > { %9069 = vmatprep.subr.bf16.mxu0 %v9068_v56  ;;  %v6083_v50 = vadd.f32 %v6019_v58, %v5691_v22  ;;  %v6803_v9 = vmul.f32 %v14555_v5, %v12571_v20  ;;  %v7193_v59 = vmul.f32 %v14556_v8, %v12544_v34  ;;  %v8275_v4 = vrot.slane %v13508_v62, %v14557_v35  ;;  %v14563_v22 = vld [vmem:[#allocation131_spill] sm:$0xff] }
 0x5de   : > { %v8036_v38 = vadd.f32 %v7972_v15, %v7644_v7  ;;  %v6473_v16 = vadd.f32 %v6409_v2, %v6081_v19  ;;  %v8038_v48 = vadd.f32 %v7974_v47, %v7646_v42  ;;  %v7195_v18 = vmul.f32 %v14556_v8, %v12566_v54  ;;  %v14559_v15 = vld [vmem:[#allocation257_spill] sm:$0xff]  ;;  %v14564_v2 = vld [vmem:[#allocation147_spill] sm:$0xff] }
 0x5df   : > { %v6475_v3 = vadd.f32 %v6411_v11, %v6083_v50  ;;  %v7585_v24 = vmul.f32 %v14558_v28, %v12591_v30  ;;  %v7587_v20 = vmul.f32 %v14558_v28, %v12611_v53  ;;  %v7977_v25 = vmul.f32 %v14559_v15, %v12589_v40  ;;  %v14560_v47 = vld [vmem:[#allocation249_spill] sm:$0xff]  ;;  %v14562_v40 = vld [vmem:[#allocation88_spill] sm:$0xff] }
 0x5e0   : > { %v8428_v55 = vadd.f32 %v8364_v17, %v8036_v38  ;;  %v6865_v1 = vadd.f32 %v6801_v29, %v6473_v16  ;;  %v8430_v34 = vadd.f32 %v8366_v37, %v8038_v48  ;;  %v8369_v51 = vmul.f32 %v8275_v4, %v12630_v44  ;;  %v14561_v30 = vld [vmem:[#allocation73_spill] sm:$0xff]  ;;  %v14565_v29 = vld [vmem:[#allocation184_spill] sm:$0xff] }
 0x5e1   : > { %v6867_v57 = vadd.f32 %v6803_v9, %v6475_v3  ;;  %v5688_v61 = vmul.f32 %v14560_v47, %v14396_v36  ;;  %v5690_v54 = vmul.f32 %v14560_v47, %v14358_v46  ;;  %v6016_v17 = vmul.f32 %v14561_v30, %v14360_v43  ;;  %v14566_v9 = vld [vmem:[#allocation21_spill] sm:$0xff]  ;;  %v8450_v47 = vpop.permute.xlu1 %8449 }
 0x5e2   : > { %v7257_v21 = vadd.f32 %v7193_v59, %v6865_v1  ;;  %v6018_v53 = vmul.f32 %v14561_v30, %v12516_v0  ;;  %v9070_v31 = vpack.c.bf16 %v8430_v34, %v8428_v55  ;;  %v6408_v37 = vmul.f32 %v14562_v40, %v12476_v23  ;;  %v14567_v38 = vld [vmem:[#allocation189_spill] sm:$0xff] }
 0x5e3   : > { %v7259_v32 = vadd.f32 %v7195_v18, %v6867_v57  ;;  %v6410_v44 = vmul.f32 %v14562_v40, %v12511_v63  ;;  %v6080_v36 = vadd.f32 %v6016_v17, %v5688_v61  ;;  %v6800_v46 = vmul.f32 %v14563_v22, %v12542_v39 }
 0x5e4   : > { %v7649_v56 = vadd.f32 %v7585_v24, %v7257_v21  ;;  %v6082_v26 = vadd.f32 %v6018_v53, %v5690_v54  ;;  %9071 = vmatpush1.bf16.msra.mxu0 %v9070_v31  ;;  %v7979_v43 = vmul.f32 %v14559_v15, %v12607_v10  ;;  %v8371_v0 = vmul.f32 %v8275_v4, %v12646_v12  ;;  %v8535_v31 = vld [vmem:[%s9830_s12 + $0x10] sm:$0xff] }
 0x5e5   : > { %v7651_v58 = vadd.f32 %v7587_v20, %v7259_v32  ;;  %v6802_v7 = vmul.f32 %v14563_v22, %v12564_v14  ;;  %v6472_v19 = vadd.f32 %v6408_v37, %v6080_v36  ;;  %v7192_v5 = vmul.f32 %v14564_v2, %v12535_v60  ;;  %v8536_v37 = vld [vmem:[%s9830_s12 + $0x18] sm:$0xff] }
 0x5e6   : > { %v8041_v23 = vadd.f32 %v7977_v25, %v7649_v56  ;;  %v6474_v41 = vadd.f32 %v6410_v44, %v6082_v26  ;;  %v7194_v39 = vmul.f32 %v14564_v2, %v12559_v27  ;;  %v7584_v42 = vmul.f32 %v14565_v29, %v12587_v33  ;;  %v8533_v25 = vld [vmem:[%s9830_s12] sm:$0xff] }
 0x5e7   : > { %v8043_v63 = vadd.f32 %v7979_v43, %v7651_v58  ;;  %v6864_v10 = vadd.f32 %v6800_v46, %v6472_v19  ;;  %v7586_v12 = vmul.f32 %v14565_v29, %v12605_v45  ;;  %v7879_v16 = vrot.slane %v14567_v38, %v14566_v9 }
 0x5e8   : > { %v8433_v50 = vadd.f32 %v8369_v51, %v8041_v23  ;;  %v6866_v11 = vadd.f32 %v6802_v7, %v6474_v41  ;;  %v8271_v60 = vrot.slane %v13508_v62, %v14566_v9  ;;  %v8534_v51 = vld [vmem:[%s9830_s12 + $0x8] sm:$0xff]  ;;  %s9463_s12 = smov [#allocation11]  }
 0x5e9   : > { %v8435_v14 = vadd.f32 %v8371_v0, %v8043_v63  ;;  %v7256_v8 = vadd.f32 %v7192_v5, %v6864_v10  ;;  %v7976_v27 = vmul.f32 %v7879_v16, %v12582_v13  ;;  %v7978_v33 = vmul.f32 %v7879_v16, %v12600_v6  ;;  %v8436_v13 = vld [vmem:[%s14446_s29] sm:$0xff]  ;;  %v8439_v6 = vld [vmem:[%s14446_s29 + $0x18] sm:$0xff]  ;;  %s9355_s6 = sshll.u32 %s9463_s12, 4  ;;  %s9356_s6 = int_to_ptr.vmem [resolvable:$false] %s9355_s6 }
 0x5ea   : > { %v7258_v59 = vadd.f32 %v7194_v39, %v6866_v11  ;;  %v8368_v3 = vmul.f32 %v8271_v60, %v12626_v52  ;;  %v8370_v45 = vmul.f32 %v8271_v60, %v12642_v49  ;;  %v8438_v52 = vld [vmem:[%s14446_s29 + $0x10] sm:$0xff]  ;;  %v8445_v49 = vpop.permute.xlu0 %8444  ;;  %s9357_s13 = scalar_lea.vmem %s9356_s6, 1024  ;;  %p9358_p10 = scmp.lt.s32.totalorder %s13602_s17, %s9356_s6 }
 0x5eb   : > { %v9072_v35 = vpack.c.bf16 %v8435_v14, %v8433_v50  ;;  %v7648_v4 = vadd.f32 %v7584_v42, %v7256_v8  ;;  %p9359_p11 = scmp.lt.s32.totalorder %s9357_s13, %s9351_s28 }
 0x5ec   : > { %v7650_v48 = vadd.f32 %v7586_v12, %v7258_v59 }
 0x5ed   : > { %9073 = vmatprep.subr.bf16.mxu0 %v9072_v35  ;;  %v8040_v18 = vadd.f32 %v7976_v27, %v7648_v4  ;;  %p9360_p5 = por %p9359_p11, %p9358_p10 }
 0x5ee   : > { %v8042_v28 = vadd.f32 %v7978_v33, %v7650_v48 }
 0x5ef   : > { %v8432_v24 = vadd.f32 %v8368_v3, %v8040_v18  ;;  %p9361_p12 = pnand %p9360_p5, %p9354_p13 }
 0x5f0   : > { %v8434_v55 = vadd.f32 %v8370_v45, %v8042_v28 }
 0x5f2   : > { %v9074_v1 = vpack.c.bf16 %v8434_v55, %v8432_v24 }
 0x5f4   : > { %9075 = vmatpush1.bf16.msra.mxu0 %v9074_v1 }
 0x5f7   : > { %8517 = vmatmul.mubr.f32.vlgmr.msra.gmra.mrb[64].mxu0 %v8436_v13 }
 0x5f8   : > { %8522 = vmatprep.mubr.f32.mxu0 %v8439_v6 }
 0x5fb   : > { %8523 = vmatmul.mubr.f32.gmra.mrb[66].mxu0 %v8438_v52 }
 0x6ca   : > { %v8518_v62 = vpop.f32.mrb[64].mxu0 }
 0x6cb   : > { %v8519_v20 = vadd.f32 %v8518_v62, %v8445_v49  ;;  %v8520_v15 = vpop.f32.mrb[65].mxu0 }
 0x6cc   : > { %v8521_v34 = vadd.f32 %v8520_v15, %v8445_v49 }
 0x6cd   : > { %v8529_v57 = vmax.f32 %v8519_v20, 0.0 }
 0x6ce   : > { %v8530_v61 = vmax.f32 %v8521_v34, 0.0  ;;  %v8524_v21 = vpop.f32.mrb[66].mxu0 }
 0x6cf   : > { %v8537_v54 = vadd.f32 %v8533_v25, %v8529_v57  ;;  %v8525_v30 = vadd.f32 %v8524_v21, %v8450_v47  ;;  %v8526_v17 = vpop.f32.mrb[67].mxu0 }
 0x6d0   : > { %v8538_v53 = vadd.f32 %v8534_v51, %v8530_v61  ;;  %v8527_v32 = vadd.f32 %v8526_v17, %v8450_v47 }
 0x6d1   : > { %8541 = vst [vmem:[%s827_s2] sm:$0xff] %v8537_v54  ;;  %v8531_v40 = vmax.f32 %v8525_v30, 0.0 }
 0x6d2   : > { %8542 = vst [vmem:[%s827_s2 + $0x8] sm:$0xff] %v8538_v53  ;;  %v8532_v44 = vmax.f32 %v8527_v32, 0.0 }
 0x6d3   : > { %v8539_v56 = vadd.f32 %v8535_v31, %v8531_v40 }
 0x6d4   : > { %v8540_v36 = vadd.f32 %v8536_v37, %v8532_v44 }
 0x6d5   : > { %8543 = vst [vmem:[%s827_s2 + $0x10] sm:$0xff] %v8539_v56 }
 0x6d6   : > { %8544 = vst [vmem:[%s827_s2 + $0x18] sm:$0xff] %v8540_v36 }
 0x6d7   : > { %9364 = shalt.err (!%p9361_p12)
}
 0x6d8   : > { %s9365_s27 = scalar_lea.hbm %s13607_s7, 512  ;;  %s9369_s26 = scalar_lea.hbm %s14568_s9, 1024 }
 0x6d9   : > { %p9366_p6 = scmp.ne.s32.totalorder %s13607_s7, %s9365_s27  ;;  %p9370_p0 = scmp.lt.u32.totalorder %s13607_s7, %s14568_s9 }
 0x6da   : > { %p9371_p2 = scmp.lt.u32.totalorder %s9369_s26, %s9365_s27  ;;  %p9373_p8 = scmp.lt.u32.totalorder %s9365_s27, %s13607_s7 }
 0x6db   : > { %p9367_p7 = pnand %p9366_p6, %p9718_p3 }
 0x6dc   : > { %p9372_p4 = por %p9371_p2, %p9370_p0 }
 0x6dd   : > { %p9368_p9 = pneg %p9367_p7 }
 0x6de   : > { %p9374_p1 = por %p9373_p8, %p9372_p4 }
 0x6e0   : > { %p9375_p13 = pnand %p9374_p1, %p9368_p9 }
 0x6e2   : > { %9378 = shalt.err (!%p9375_p13)
}
 0x6e3   : > { %s9464_s11 = smov 256   ;;  %s9465_s14 = smov 16  }
 0x6e4   : > { %9093 = dma.vmem_to_hbm [thread:$0]  (%p9718_p3), %s13602_s17, 512, %s13607_s7, %s8546_s21, %s9464_s11, %s9464_s11, %s9465_s14  }
 0x6e5 PF: > { %s14569_s28 = sld [smem:[#allocation17_spill]]  ;;  %s14570_s12 = sld [smem:[#allocation18_spill]] }
 0x6e6   : > { %p14572_p11 = scmp.ge.s32.totalorder %s9445_s22, 2 }
 0x6eb   : > { %s8576_s6 = sand.u32 1, %s14569_s28   ;;  %p14571_p10 = scmp.ne.s32.totalorder %s14570_s12, 0 }
 0x6ec   : > { %s8577_s13 = scalar_lea.sflag [#allocation4], %s8576_s6 }
 0x6ed   : > { %p9113_p5 = pnand %p14572_p11, %p14571_p10 }
 0x6ef   : > { %9420 = dma.done.wait (!%p9113_p5), %s8577_s13, 512  }
 0x6f0   : > { %9422 = vsyncadd (!%p9113_p5), %s8577_s13, 4294966784  ;;  %s39_s22 = sadd.s32 1, %s9445_s22   ;;  %s14573_s25 = sld [smem:[#allocation19_spill]] }
 0x6f1   : > { %p36_p12 = scmp.ge.s32.totalorder %s39_s22, 4   ;;  %s14574_s0 = smov %s9429_s30 }
 0x6f2   : > { %s14575_s30 = smov %s9433_s20  ;;  %s14576_s20 = smov %s9730_s19 }
 0x6f3   : > { %s14577_s21 = smov %s9441_s1  ;;  %38 = sbr.rel (!%p36_p12) target bundleno = 26 (0x1a), region = 178 }
 0x6f6   : > { %s14578_s1 = smov %s14573_s25 }
 0x6fa   :  { %8582 = vsyncpa [#allocation3], 1 }
 0x6fb   :  { %8584 = vsyncpa [#allocation3 + $0x1], 1 }
 0x6fc   :  { %8585 = vsyncpa [#allocation6], 1 }
 0x6fd   :  { %8587 = vsyncpa [#allocation6 + $0x1], 1 }
 0x6fe   :  { %8588 = vsyncpa [#allocation9], 1 }
 0x6ff   :  { %8589 = vsyncpa [#allocation4], 1 }
 0x700   :  { %8591 = vsyncpa [#allocation4 + $0x1], 1 }

</bundles_post_ra>
